<compile_context>
chip_gen: v7x
topology: tpu7x:2x2x1
jax: 0.10.0
libtpu: 0.0.40
codegen_flags: <defaults>
</compile_context>

<pallas_src>
import jax
import jax.numpy as jnp
from jax import lax
from jax.experimental import pallas as pl
from jax.experimental.pallas import tpu as pltpu

LANES = 128
SUBLANES = 8                        # rows per f32 vreg
CHUNK = SUBLANES                    # inner-loop granularity: one vreg per feature
BATCH_QUANTUM = SUBLANES * LANES    # 1024: batch padding unit
MAX_TILE_BATCH = 64 * 1024          # 65536 rows / grid step (S = 512)

# (fan_in, fan_out, apply_relu) per layer, matching the PyTorch module.
_LAYERS = ((4, 16, True), (16, 8, True), (8, 4, True), (4, 1, False))
_N_PARAMS = sum(fi * fo + fo for fi, fo, _ in _LAYERS)  # 257


def mlp_kernel(w_ref, x_ref, o_ref):
    """Fused 4-layer MLP over one batch tile.

    w_ref: (257, 8, 128) f32 VMEM -- packed [W1|b1|...|W4|b4], each parameter
           pre-broadcast to a full (8,128) vreg (W stored PyTorch (out,in)).
    x_ref: (4, S, 128) f32 VMEM   -- feature-major batch tile (S*128 rows).
    o_ref: (S, 128)   f32 VMEM    -- lane-dense output tile.
    """
    s_tile = o_ref.shape[0]
    n_chunks = s_tile // CHUNK

    def chunk_body(c, carry):
        r0 = pl.multiple_of(c * CHUNK, CHUNK)
        rows = pl.ds(r0, CHUNK)
        # Live set stays ~30 vregs: 4 inputs + <=16 hidden + acc + weight in flight.
        h = [x_ref[f, rows, :] for f in range(4)]
        off = 0
        for fan_in, fan_out, relu in _LAYERS:
            w_off = off
            b_off = off + fan_in * fan_out
            new_h = []
            for o in range(fan_out):
                row = w_off + o * fan_in
                acc = w_ref[row] * h[0]
                for i in range(1, fan_in):
                    acc = acc + w_ref[row + i] * h[i]
                acc = acc + w_ref[b_off + o]
                if relu:
                    acc = jnp.maximum(acc, 0.0)
                new_h.append(acc)
            h = new_h
            off = b_off + fan_out
        o_ref[rows, :] = h[0].astype(o_ref.dtype)
        return carry

    lax.fori_loop(0, n_chunks, chunk_body, 0, unroll=2)


def pack_params(params):
    """Flatten W1,b1,...,W4,b4 (PyTorch (out,in) weights) into one f32 vector."""
    parts = []
    for k in range(1, 5):
        parts.append(params[f"W{k}"].reshape(-1))
        parts.append(params[f"b{k}"].reshape(-1))
    packed = jnp.concatenate(parts).astype(jnp.float32)
    assert packed.shape == (_N_PARAMS,)
    return packed


def _round_up(x, m):
    return (x + m - 1) // m * m


def _choose_tile_batch(batch):
    """Adaptive batch tile: large enough to amortize the ~0.35us/step grid
    overhead and the per-step parameter loads, small enough that tiny batches
    don't pad 100x, and (when there is enough work) >=2 grid steps so the
    'parallel' axis can shard across v7x's two TensorCores."""
    b_pad = _round_up(batch, BATCH_QUANTUM)
    n_steps = -(-b_pad // MAX_TILE_BATCH)
    if n_steps == 1 and b_pad >= 2 * BATCH_QUANTUM:
        n_steps = 2
    return _round_up(-(-b_pad // n_steps), BATCH_QUANTUM)


def _forward_feature_major(x_fm, packed_params):
    """x_fm: (4, B) float32 feature-major. Returns (B,) float32."""
    f_in, batch = x_fm.shape
    assert f_in == 4
    tile_batch = _choose_tile_batch(batch)        # shapes are static under jit
    b_pad = _round_up(batch, tile_batch)
    if b_pad != batch:
        x_fm = jnp.pad(x_fm, ((0, 0), (0, b_pad - batch)))
    xt = x_fm.reshape(4, b_pad // LANES, LANES)   # free reshape: batch onto lanes

    # Pre-broadcast every parameter to a full (8,128) vreg: ~1 MiB, resident
    # across grid steps (constant index_map), so weight application in the
    # kernel is a plain vld -- no scalar splat on the binding VALU slot.
    w_slab = jnp.broadcast_to(
        packed_params.astype(jnp.float32)[:, None, None],
        (_N_PARAMS, CHUNK, LANES))

    s_tile = tile_batch // LANES
    grid = (b_pad // tile_batch,)

    y = pl.pallas_call(
        mlp_kernel,
        out_shape=jax.ShapeDtypeStruct((b_pad // LANES, LANES), jnp.float32),
        grid=grid,
        in_specs=[
            pl.BlockSpec((_N_PARAMS, CHUNK, LANES), lambda i: (0, 0, 0)),
            pl.BlockSpec((4, s_tile, LANES), lambda i: (0, i, 0)),
        ],
        out_specs=pl.BlockSpec((s_tile, LANES), lambda i: (i, 0)),
        compiler_params=pltpu.CompilerParams(
            dimension_semantics=("parallel",),     # shard batch tiles over TCs
            vmem_limit_bytes=32 * 1024 * 1024,     # working set ~4.6 MiB; safe on v7x
        ),
    )(w_slab, xt)

    return y.reshape(b_pad)[:batch]


@jax.jit
def mlp_forward_feature_major(x_fm, packed_params):
    """Fast path: x_fm is (4, B) feature-major; no HBM relayout needed."""
    return _forward_feature_major(x_fm.astype(jnp.float32), packed_params)[:, None]


@jax.jit
def mlp_forward(x, packed_params):
    """PyTorch-compatible API: x is (B, 4) -> (B, 1).

    Honoring the (B,4) layout requires one (B,4)->(4,B) HBM relayout before
    the kernel (a 4-wide minor dim cannot be held lane-dense in VMEM).
    Callers that can produce feature-major activations should use
    mlp_forward_feature_major and skip that round trip.
    """
    x = x.astype(jnp.float32)
    return _forward_feature_major(x.T, packed_params)[:, None]


def init_params(key):
    """PyTorch-default Linear init: U(-1/sqrt(fan_in), 1/sqrt(fan_in)).
    Weights stored PyTorch-style as (out_features, in_features)."""
    params = {}
    for k, (fan_in, fan_out, _) in enumerate(_LAYERS, start=1):
        key, kw, kb = jax.random.split(key, 3)
        bound = 1.0 / (fan_in ** 0.5)
        params[f"W{k}"] = jax.random.uniform(
            kw, (fan_out, fan_in), jnp.float32, minval=-bound, maxval=bound)
        params[f"b{k}"] = jax.random.uniform(
            kb, (fan_out,), jnp.float32, minval=-bound, maxval=bound)
    return params


def mlp_reference(x, params):
    h = x.astype(jnp.float32)
    for k, (_, _, relu) in enumerate(_LAYERS, start=1):
        h = h @ params[f"W{k}"].T + params[f"b{k}"]
        if relu:
            h = jnp.maximum(h, 0.0)
    return h


if __name__ == "__main__":
    key = jax.random.PRNGKey(0)
    key, kx1, kx2 = jax.random.split(key, 3)
    params = init_params(key)
    packed = pack_params(params)

    # Moderate batch: adaptive tiling gives a 2-step "parallel" grid.
    x = jax.random.normal(kx1, (4096, 4), dtype=jnp.float32)
    y = jax.block_until_ready(mlp_forward(x, packed))
    y_ref = mlp_reference(x, params)
    assert y.shape == (4096, 1)
    assert jnp.allclose(y, y_ref, atol=1e-5, rtol=1e-5), "mismatch vs reference (B=4096)"

    # Small ragged batch: exercises the padding path with a small adaptive tile.
    x2 = jax.random.normal(kx2, (200, 4), dtype=jnp.float32)
    y2 = jax.block_until_ready(mlp_forward(x2, packed))
    y2_ref = mlp_reference(x2, params)
    assert y2.shape == (200, 1)
    assert jnp.allclose(y2, y2_ref, atol=1e-5, rtol=1e-5), "mismatch vs reference (B=200)"

    # Feature-major fast path (no wrapper-side transpose).
    y3 = jax.block_until_ready(mlp_forward_feature_major(x.T, packed))
    assert y3.shape == (4096, 1)
    assert jnp.allclose(y3, y_ref, atol=1e-5, rtol=1e-5), "mismatch (feature-major path)"

    print("KERNEL_OK")
</pallas_src>

<mosaic_0001>
module attributes {stable_mosaic.version = 11 : i64} {
  func.func @mlp_kernel(%arg0: i32, %arg1: memref<257x8x128xf32, #tpu.memory_space<vmem>>, %arg2: memref<4x16x128xf32, #tpu.memory_space<vmem>>, %arg3: memref<16x128xf32, #tpu.memory_space<vmem>>) attributes {dimension_semantics = [#tpu.dimension_semantics<parallel>], iteration_bounds = array<i64: 2>, scalar_prefetch = 0 : i64, scratch_operands = 0 : i64, tpu.core_type = #tpu.core_type<tc>, window_params = [{pipeline_mode = #tpu.pipeline_mode<synchronous>, transform_indices = @transform_0, window_bounds = array<i64: 257, 8, 128>}, {transform_indices = @transform_1, window_bounds = array<i64: 4, 16, 128>}, {transform_indices = @transform_2, window_bounds = array<i64: 16, 128>}]} {
    %c0_i32 = arith.constant 0 : i32
    %c8_i32 = arith.constant 8 : i32
    %0 = arith.muli %c0_i32, %c8_i32 : i32
    %1 = tpu.assume_multiple %0, 8 : i32
    %c0 = arith.constant 0 : index
    %2 = arith.index_cast %1 : i32 to index
    %c0_0 = arith.constant 0 : index
    %3 = vector.load %arg2[%c0, %2, %c0_0] : memref<4x16x128xf32, #tpu.memory_space<vmem>>, vector<1x8x128xf32>
    %4 = vector.shape_cast %3 : vector<1x8x128xf32> to vector<8x128xf32>
    %c1 = arith.constant 1 : index
    %5 = arith.index_cast %1 : i32 to index
    %c0_1 = arith.constant 0 : index
    %6 = vector.load %arg2[%c1, %5, %c0_1] : memref<4x16x128xf32, #tpu.memory_space<vmem>>, vector<1x8x128xf32>
    %7 = vector.shape_cast %6 : vector<1x8x128xf32> to vector<8x128xf32>
    %c2 = arith.constant 2 : index
    %8 = arith.index_cast %1 : i32 to index
    %c0_2 = arith.constant 0 : index
    %9 = vector.load %arg2[%c2, %8, %c0_2] : memref<4x16x128xf32, #tpu.memory_space<vmem>>, vector<1x8x128xf32>
    %10 = vector.shape_cast %9 : vector<1x8x128xf32> to vector<8x128xf32>
    %c3 = arith.constant 3 : index
    %11 = arith.index_cast %1 : i32 to index
    %c0_3 = arith.constant 0 : index
    %12 = vector.load %arg2[%c3, %11, %c0_3] : memref<4x16x128xf32, #tpu.memory_space<vmem>>, vector<1x8x128xf32>
    %13 = vector.shape_cast %12 : vector<1x8x128xf32> to vector<8x128xf32>
    %c0_4 = arith.constant 0 : index
    %c0_5 = arith.constant 0 : index
    %c0_6 = arith.constant 0 : index
    %14 = vector.load %arg1[%c0_4, %c0_5, %c0_6] : memref<257x8x128xf32, #tpu.memory_space<vmem>>, vector<1x8x128xf32>
    %15 = vector.shape_cast %14 : vector<1x8x128xf32> to vector<8x128xf32>
    %16 = arith.mulf %15, %4 : vector<8x128xf32>
    %c1_7 = arith.constant 1 : index
    %c0_8 = arith.constant 0 : index
    %c0_9 = arith.constant 0 : index
    %17 = vector.load %arg1[%c1_7, %c0_8, %c0_9] : memref<257x8x128xf32, #tpu.memory_space<vmem>>, vector<1x8x128xf32>
    %18 = vector.shape_cast %17 : vector<1x8x128xf32> to vector<8x128xf32>
    %19 = arith.mulf %18, %7 : vector<8x128xf32>
    %20 = arith.addf %16, %19 : vector<8x128xf32>
    %c2_10 = arith.constant 2 : index
    %c0_11 = arith.constant 0 : index
    %c0_12 = arith.constant 0 : index
    %21 = vector.load %arg1[%c2_10, %c0_11, %c0_12] : memref<257x8x128xf32, #tpu.memory_space<vmem>>, vector<1x8x128xf32>
    %22 = vector.shape_cast %21 : vector<1x8x128xf32> to vector<8x128xf32>
    %23 = arith.mulf %22, %10 : vector<8x128xf32>
    %24 = arith.addf %20, %23 : vector<8x128xf32>
    %c3_13 = arith.constant 3 : index
    %c0_14 = arith.constant 0 : index
    %c0_15 = arith.constant 0 : index
    %25 = vector.load %arg1[%c3_13, %c0_14, %c0_15] : memref<257x8x128xf32, #tpu.memory_space<vmem>>, vector<1x8x128xf32>
    %26 = vector.shape_cast %25 : vector<1x8x128xf32> to vector<8x128xf32>
    %27 = arith.mulf %26, %13 : vector<8x128xf32>
    %28 = arith.addf %24, %27 : vector<8x128xf32>
    %c64 = arith.constant 64 : index
    %c0_16 = arith.constant 0 : index
    %c0_17 = arith.constant 0 : index
    %29 = vector.load %arg1[%c64, %c0_16, %c0_17] : memref<257x8x128xf32, #tpu.memory_space<vmem>>, vector<1x8x128xf32>
    %30 = vector.shape_cast %29 : vector<1x8x128xf32> to vector<8x128xf32>
    %31 = arith.addf %28, %30 : vector<8x128xf32>
    %cst = arith.constant 0.000000e+00 : f32
    %32 = vector.broadcast %cst : f32 to vector<8x128xf32>
    %33 = arith.maximumf %31, %32 : vector<8x128xf32>
    %c4 = arith.constant 4 : index
    %c0_18 = arith.constant 0 : index
    %c0_19 = arith.constant 0 : index
    %34 = vector.load %arg1[%c4, %c0_18, %c0_19] : memref<257x8x128xf32, #tpu.memory_space<vmem>>, vector<1x8x128xf32>
    %35 = vector.shape_cast %34 : vector<1x8x128xf32> to vector<8x128xf32>
    %36 = arith.mulf %35, %4 : vector<8x128xf32>
    %c5 = arith.constant 5 : index
    %c0_20 = arith.constant 0 : index
    %c0_21 = arith.constant 0 : index
    %37 = vector.load %arg1[%c5, %c0_20, %c0_21] : memref<257x8x128xf32, #tpu.memory_space<vmem>>, vector<1x8x128xf32>
    %38 = vector.shape_cast %37 : vector<1x8x128xf32> to vector<8x128xf32>
    %39 = arith.mulf %38, %7 : vector<8x128xf32>
    %40 = arith.addf %36, %39 : vector<8x128xf32>
    %c6 = arith.constant 6 : index
    %c0_22 = arith.constant 0 : index
    %c0_23 = arith.constant 0 : index
    %41 = vector.load %arg1[%c6, %c0_22, %c0_23] : memref<257x8x128xf32, #tpu.memory_space<vmem>>, vector<1x8x128xf32>
    %42 = vector.shape_cast %41 : vector<1x8x128xf32> to vector<8x128xf32>
    %43 = arith.mulf %42, %10 : vector<8x128xf32>
    %44 = arith.addf %40, %43 : vector<8x128xf32>
    %c7 = arith.constant 7 : index
    %c0_24 = arith.constant 0 : index
    %c0_25 = arith.constant 0 : index
    %45 = vector.load %arg1[%c7, %c0_24, %c0_25] : memref<257x8x128xf32, #tpu.memory_space<vmem>>, vector<1x8x128xf32>
    %46 = vector.shape_cast %45 : vector<1x8x128xf32> to vector<8x128xf32>
    %47 = arith.mulf %46, %13 : vector<8x128xf32>
    %48 = arith.addf %44, %47 : vector<8x128xf32>
    %c65 = arith.constant 65 : index
    %c0_26 = arith.constant 0 : index
    %c0_27 = arith.constant 0 : index
    %49 = vector.load %arg1[%c65, %c0_26, %c0_27] : memref<257x8x128xf32, #tpu.memory_space<vmem>>, vector<1x8x128xf32>
    %50 = vector.shape_cast %49 : vector<1x8x128xf32> to vector<8x128xf32>
    %51 = arith.addf %48, %50 : vector<8x128xf32>
    %cst_28 = arith.constant 0.000000e+00 : f32
    %52 = vector.broadcast %cst_28 : f32 to vector<8x128xf32>
    %53 = arith.maximumf %51, %52 : vector<8x128xf32>
    %c8 = arith.constant 8 : index
    %c0_29 = arith.constant 0 : index
    %c0_30 = arith.constant 0 : index
    %54 = vector.load %arg1[%c8, %c0_29, %c0_30] : memref<257x8x128xf32, #tpu.memory_space<vmem>>, vector<1x8x128xf32>
    %55 = vector.shape_cast %54 : vector<1x8x128xf32> to vector<8x128xf32>
    %56 = arith.mulf %55, %4 : vector<8x128xf32>
    %c9 = arith.constant 9 : index
    %c0_31 = arith.constant 0 : index
    %c0_32 = arith.constant 0 : index
    %57 = vector.load %arg1[%c9, %c0_31, %c0_32] : memref<257x8x128xf32, #tpu.memory_space<vmem>>, vector<1x8x128xf32>
    %58 = vector.shape_cast %57 : vector<1x8x128xf32> to vector<8x128xf32>
    %59 = arith.mulf %58, %7 : vector<8x128xf32>
    %60 = arith.addf %56, %59 : vector<8x128xf32>
    %c10 = arith.constant 10 : index
    %c0_33 = arith.constant 0 : index
    %c0_34 = arith.constant 0 : index
    %61 = vector.load %arg1[%c10, %c0_33, %c0_34] : memref<257x8x128xf32, #tpu.memory_space<vmem>>, vector<1x8x128xf32>
    %62 = vector.shape_cast %61 : vector<1x8x128xf32> to vector<8x128xf32>
    %63 = arith.mulf %62, %10 : vector<8x128xf32>
    %64 = arith.addf %60, %63 : vector<8x128xf32>
    %c11 = arith.constant 11 : index
    %c0_35 = arith.constant 0 : index
    %c0_36 = arith.constant 0 : index
    %65 = vector.load %arg1[%c11, %c0_35, %c0_36] : memref<257x8x128xf32, #tpu.memory_space<vmem>>, vector<1x8x128xf32>
    %66 = vector.shape_cast %65 : vector<1x8x128xf32> to vector<8x128xf32>
    %67 = arith.mulf %66, %13 : vector<8x128xf32>
    %68 = arith.addf %64, %67 : vector<8x128xf32>
    %c66 = arith.constant 66 : index
    %c0_37 = arith.constant 0 : index
    %c0_38 = arith.constant 0 : index
    %69 = vector.load %arg1[%c66, %c0_37, %c0_38] : memref<257x8x128xf32, #tpu.memory_space<vmem>>, vector<1x8x128xf32>
    %70 = vector.shape_cast %69 : vector<1x8x128xf32> to vector<8x128xf32>
    %71 = arith.addf %68, %70 : vector<8x128xf32>
    %cst_39 = arith.constant 0.000000e+00 : f32
    %72 = vector.broadcast %cst_39 : f32 to vector<8x128xf32>
    %73 = arith.maximumf %71, %72 : vector<8x128xf32>
    %c12 = arith.constant 12 : index
    %c0_40 = arith.constant 0 : index
    %c0_41 = arith.constant 0 : index
    %74 = vector.load %arg1[%c12, %c0_40, %c0_41] : memref<257x8x128xf32, #tpu.memory_space<vmem>>, vector<1x8x128xf32>
    %75 = vector.shape_cast %74 : vector<1x8x128xf32> to vector<8x128xf32>
    %76 = arith.mulf %75, %4 : vector<8x128xf32>
    %c13 = arith.constant 13 : index
    %c0_42 = arith.constant 0 : index
    %c0_43 = arith.constant 0 : index
    %77 = vector.load %arg1[%c13, %c0_42, %c0_43] : memref<257x8x128xf32, #tpu.memory_space<vmem>>, vector<1x8x128xf32>
    %78 = vector.shape_cast %77 : vector<1x8x128xf32> to vector<8x128xf32>
    %79 = arith.mulf %78, %7 : vector<8x128xf32>
    %80 = arith.addf %76, %79 : vector<8x128xf32>
    %c14 = arith.constant 14 : index
    %c0_44 = arith.constant 0 : index
    %c0_45 = arith.constant 0 : index
    %81 = vector.load %arg1[%c14, %c0_44, %c0_45] : memref<257x8x128xf32, #tpu.memory_space<vmem>>, vector<1x8x128xf32>
    %82 = vector.shape_cast %81 : vector<1x8x128xf32> to vector<8x128xf32>
    %83 = arith.mulf %82, %10 : vector<8x128xf32>
    %84 = arith.addf %80, %83 : vector<8x128xf32>
    %c15 = arith.constant 15 : index
    %c0_46 = arith.constant 0 : index
    %c0_47 = arith.constant 0 : index
    %85 = vector.load %arg1[%c15, %c0_46, %c0_47] : memref<257x8x128xf32, #tpu.memory_space<vmem>>, vector<1x8x128xf32>
    %86 = vector.shape_cast %85 : vector<1x8x128xf32> to vector<8x128xf32>
    %87 = arith.mulf %86, %13 : vector<8x128xf32>
    %88 = arith.addf %84, %87 : vector<8x128xf32>
    %c67 = arith.constant 67 : index
    %c0_48 = arith.constant 0 : index
    %c0_49 = arith.constant 0 : index
    %89 = vector.load %arg1[%c67, %c0_48, %c0_49] : memref<257x8x128xf32, #tpu.memory_space<vmem>>, vector<1x8x128xf32>
    %90 = vector.shape_cast %89 : vector<1x8x128xf32> to vector<8x128xf32>
    %91 = arith.addf %88, %90 : vector<8x128xf32>
    %cst_50 = arith.constant 0.000000e+00 : f32
    %92 = vector.broadcast %cst_50 : f32 to vector<8x128xf32>
    %93 = arith.maximumf %91, %92 : vector<8x128xf32>
    %c16 = arith.constant 16 : index
    %c0_51 = arith.constant 0 : index
    %c0_52 = arith.constant 0 : index
    %94 = vector.load %arg1[%c16, %c0_51, %c0_52] : memref<257x8x128xf32, #tpu.memory_space<vmem>>, vector<1x8x128xf32>
    %95 = vector.shape_cast %94 : vector<1x8x128xf32> to vector<8x128xf32>
    %96 = arith.mulf %95, %4 : vector<8x128xf32>
    %c17 = arith.constant 17 : index
    %c0_53 = arith.constant 0 : index
    %c0_54 = arith.constant 0 : index
    %97 = vector.load %arg1[%c17, %c0_53, %c0_54] : memref<257x8x128xf32, #tpu.memory_space<vmem>>, vector<1x8x128xf32>
    %98 = vector.shape_cast %97 : vector<1x8x128xf32> to vector<8x128xf32>
    %99 = arith.mulf %98, %7 : vector<8x128xf32>
    %100 = arith.addf %96, %99 : vector<8x128xf32>
    %c18 = arith.constant 18 : index
    %c0_55 = arith.constant 0 : index
    %c0_56 = arith.constant 0 : index
    %101 = vector.load %arg1[%c18, %c0_55, %c0_56] : memref<257x8x128xf32, #tpu.memory_space<vmem>>, vector<1x8x128xf32>
    %102 = vector.shape_cast %101 : vector<1x8x128xf32> to vector<8x128xf32>
    %103 = arith.mulf %102, %10 : vector<8x128xf32>
    %104 = arith.addf %100, %103 : vector<8x128xf32>
    %c19 = arith.constant 19 : index
    %c0_57 = arith.constant 0 : index
    %c0_58 = arith.constant 0 : index
    %105 = vector.load %arg1[%c19, %c0_57, %c0_58] : memref<257x8x128xf32, #tpu.memory_space<vmem>>, vector<1x8x128xf32>
    %106 = vector.shape_cast %105 : vector<1x8x128xf32> to vector<8x128xf32>
    %107 = arith.mulf %106, %13 : vector<8x128xf32>
    %108 = arith.addf %104, %107 : vector<8x128xf32>
    %c68 = arith.constant 68 : index
    %c0_59 = arith.constant 0 : index
    %c0_60 = arith.constant 0 : index
    %109 = vector.load %arg1[%c68, %c0_59, %c0_60] : memref<257x8x128xf32, #tpu.memory_space<vmem>>, vector<1x8x128xf32>
    %110 = vector.shape_cast %109 : vector<1x8x128xf32> to vector<8x128xf32>
    %111 = arith.addf %108, %110 : vector<8x128xf32>
    %cst_61 = arith.constant 0.000000e+00 : f32
    %112 = vector.broadcast %cst_61 : f32 to vector<8x128xf32>
    %113 = arith.maximumf %111, %112 : vector<8x128xf32>
    %c20 = arith.constant 20 : index
    %c0_62 = arith.constant 0 : index
    %c0_63 = arith.constant 0 : index
    %114 = vector.load %arg1[%c20, %c0_62, %c0_63] : memref<257x8x128xf32, #tpu.memory_space<vmem>>, vector<1x8x128xf32>
    %115 = vector.shape_cast %114 : vector<1x8x128xf32> to vector<8x128xf32>
    %116 = arith.mulf %115, %4 : vector<8x128xf32>
    %c21 = arith.constant 21 : index
    %c0_64 = arith.constant 0 : index
    %c0_65 = arith.constant 0 : index
    %117 = vector.load %arg1[%c21, %c0_64, %c0_65] : memref<257x8x128xf32, #tpu.memory_space<vmem>>, vector<1x8x128xf32>
    %118 = vector.shape_cast %117 : vector<1x8x128xf32> to vector<8x128xf32>
    %119 = arith.mulf %118, %7 : vector<8x128xf32>
    %120 = arith.addf %116, %119 : vector<8x128xf32>
    %c22 = arith.constant 22 : index
    %c0_66 = arith.constant 0 : index
    %c0_67 = arith.constant 0 : index
    %121 = vector.load %arg1[%c22, %c0_66, %c0_67] : memref<257x8x128xf32, #tpu.memory_space<vmem>>, vector<1x8x128xf32>
    %122 = vector.shape_cast %121 : vector<1x8x128xf32> to vector<8x128xf32>
    %123 = arith.mulf %122, %10 : vector<8x128xf32>
    %124 = arith.addf %120, %123 : vector<8x128xf32>
    %c23 = arith.constant 23 : index
    %c0_68 = arith.constant 0 : index
    %c0_69 = arith.constant 0 : index
    %125 = vector.load %arg1[%c23, %c0_68, %c0_69] : memref<257x8x128xf32, #tpu.memory_space<vmem>>, vector<1x8x128xf32>
    %126 = vector.shape_cast %125 : vector<1x8x128xf32> to vector<8x128xf32>
    %127 = arith.mulf %126, %13 : vector<8x128xf32>
    %128 = arith.addf %124, %127 : vector<8x128xf32>
    %c69 = arith.constant 69 : index
    %c0_70 = arith.constant 0 : index
    %c0_71 = arith.constant 0 : index
    %129 = vector.load %arg1[%c69, %c0_70, %c0_71] : memref<257x8x128xf32, #tpu.memory_space<vmem>>, vector<1x8x128xf32>
    %130 = vector.shape_cast %129 : vector<1x8x128xf32> to vector<8x128xf32>
    %131 = arith.addf %128, %130 : vector<8x128xf32>
    %cst_72 = arith.constant 0.000000e+00 : f32
    %132 = vector.broadcast %cst_72 : f32 to vector<8x128xf32>
    %133 = arith.maximumf %131, %132 : vector<8x128xf32>
    %c24 = arith.constant 24 : index
    %c0_73 = arith.constant 0 : index
    %c0_74 = arith.constant 0 : index
    %134 = vector.load %arg1[%c24, %c0_73, %c0_74] : memref<257x8x128xf32, #tpu.memory_space<vmem>>, vector<1x8x128xf32>
    %135 = vector.shape_cast %134 : vector<1x8x128xf32> to vector<8x128xf32>
    %136 = arith.mulf %135, %4 : vector<8x128xf32>
    %c25 = arith.constant 25 : index
    %c0_75 = arith.constant 0 : index
    %c0_76 = arith.constant 0 : index
    %137 = vector.load %arg1[%c25, %c0_75, %c0_76] : memref<257x8x128xf32, #tpu.memory_space<vmem>>, vector<1x8x128xf32>
    %138 = vector.shape_cast %137 : vector<1x8x128xf32> to vector<8x128xf32>
    %139 = arith.mulf %138, %7 : vector<8x128xf32>
    %140 = arith.addf %136, %139 : vector<8x128xf32>
    %c26 = arith.constant 26 : index
    %c0_77 = arith.constant 0 : index
    %c0_78 = arith.constant 0 : index
    %141 = vector.load %arg1[%c26, %c0_77, %c0_78] : memref<257x8x128xf32, #tpu.memory_space<vmem>>, vector<1x8x128xf32>
    %142 = vector.shape_cast %141 : vector<1x8x128xf32> to vector<8x128xf32>
    %143 = arith.mulf %142, %10 : vector<8x128xf32>
    %144 = arith.addf %140, %143 : vector<8x128xf32>
    %c27 = arith.constant 27 : index
    %c0_79 = arith.constant 0 : index
    %c0_80 = arith.constant 0 : index
    %145 = vector.load %arg1[%c27, %c0_79, %c0_80] : memref<257x8x128xf32, #tpu.memory_space<vmem>>, vector<1x8x128xf32>
    %146 = vector.shape_cast %145 : vector<1x8x128xf32> to vector<8x128xf32>
    %147 = arith.mulf %146, %13 : vector<8x128xf32>
    %148 = arith.addf %144, %147 : vector<8x128xf32>
    %c70 = arith.constant 70 : index
    %c0_81 = arith.constant 0 : index
    %c0_82 = arith.constant 0 : index
    %149 = vector.load %arg1[%c70, %c0_81, %c0_82] : memref<257x8x128xf32, #tpu.memory_space<vmem>>, vector<1x8x128xf32>
    %150 = vector.shape_cast %149 : vector<1x8x128xf32> to vector<8x128xf32>
    %151 = arith.addf %148, %150 : vector<8x128xf32>
    %cst_83 = arith.constant 0.000000e+00 : f32
    %152 = vector.broadcast %cst_83 : f32 to vector<8x128xf32>
    %153 = arith.maximumf %151, %152 : vector<8x128xf32>
    %c28 = arith.constant 28 : index
    %c0_84 = arith.constant 0 : index
    %c0_85 = arith.constant 0 : index
    %154 = vector.load %arg1[%c28, %c0_84, %c0_85] : memref<257x8x128xf32, #tpu.memory_space<vmem>>, vector<1x8x128xf32>
    %155 = vector.shape_cast %154 : vector<1x8x128xf32> to vector<8x128xf32>
    %156 = arith.mulf %155, %4 : vector<8x128xf32>
    %c29 = arith.constant 29 : index
    %c0_86 = arith.constant 0 : index
    %c0_87 = arith.constant 0 : index
    %157 = vector.load %arg1[%c29, %c0_86, %c0_87] : memref<257x8x128xf32, #tpu.memory_space<vmem>>, vector<1x8x128xf32>
    %158 = vector.shape_cast %157 : vector<1x8x128xf32> to vector<8x128xf32>
    %159 = arith.mulf %158, %7 : vector<8x128xf32>
    %160 = arith.addf %156, %159 : vector<8x128xf32>
    %c30 = arith.constant 30 : index
    %c0_88 = arith.constant 0 : index
    %c0_89 = arith.constant 0 : index
    %161 = vector.load %arg1[%c30, %c0_88, %c0_89] : memref<257x8x128xf32, #tpu.memory_space<vmem>>, vector<1x8x128xf32>
    %162 = vector.shape_cast %161 : vector<1x8x128xf32> to vector<8x128xf32>
    %163 = arith.mulf %162, %10 : vector<8x128xf32>
    %164 = arith.addf %160, %163 : vector<8x128xf32>
    %c31 = arith.constant 31 : index
    %c0_90 = arith.constant 0 : index
    %c0_91 = arith.constant 0 : index
    %165 = vector.load %arg1[%c31, %c0_90, %c0_91] : memref<257x8x128xf32, #tpu.memory_space<vmem>>, vector<1x8x128xf32>
    %166 = vector.shape_cast %165 : vector<1x8x128xf32> to vector<8x128xf32>
    %167 = arith.mulf %166, %13 : vector<8x128xf32>
    %168 = arith.addf %164, %167 : vector<8x128xf32>
    %c71 = arith.constant 71 : index
    %c0_92 = arith.constant 0 : index
    %c0_93 = arith.constant 0 : index
    %169 = vector.load %arg1[%c71, %c0_92, %c0_93] : memref<257x8x128xf32, #tpu.memory_space<vmem>>, vector<1x8x128xf32>
    %170 = vector.shape_cast %169 : vector<1x8x128xf32> to vector<8x128xf32>
    %171 = arith.addf %168, %170 : vector<8x128xf32>
    %cst_94 = arith.constant 0.000000e+00 : f32
    %172 = vector.broadcast %cst_94 : f32 to vector<8x128xf32>
    %173 = arith.maximumf %171, %172 : vector<8x128xf32>
    %c32 = arith.constant 32 : index
    %c0_95 = arith.constant 0 : index
    %c0_96 = arith.constant 0 : index
    %174 = vector.load %arg1[%c32, %c0_95, %c0_96] : memref<257x8x128xf32, #tpu.memory_space<vmem>>, vector<1x8x128xf32>
    %175 = vector.shape_cast %174 : vector<1x8x128xf32> to vector<8x128xf32>
    %176 = arith.mulf %175, %4 : vector<8x128xf32>
    %c33 = arith.constant 33 : index
    %c0_97 = arith.constant 0 : index
    %c0_98 = arith.constant 0 : index
    %177 = vector.load %arg1[%c33, %c0_97, %c0_98] : memref<257x8x128xf32, #tpu.memory_space<vmem>>, vector<1x8x128xf32>
    %178 = vector.shape_cast %177 : vector<1x8x128xf32> to vector<8x128xf32>
    %179 = arith.mulf %178, %7 : vector<8x128xf32>
    %180 = arith.addf %176, %179 : vector<8x128xf32>
    %c34 = arith.constant 34 : index
    %c0_99 = arith.constant 0 : index
    %c0_100 = arith.constant 0 : index
    %181 = vector.load %arg1[%c34, %c0_99, %c0_100] : memref<257x8x128xf32, #tpu.memory_space<vmem>>, vector<1x8x128xf32>
    %182 = vector.shape_cast %181 : vector<1x8x128xf32> to vector<8x128xf32>
    %183 = arith.mulf %182, %10 : vector<8x128xf32>
    %184 = arith.addf %180, %183 : vector<8x128xf32>
    %c35 = arith.constant 35 : index
    %c0_101 = arith.constant 0 : index
    %c0_102 = arith.constant 0 : index
    %185 = vector.load %arg1[%c35, %c0_101, %c0_102] : memref<257x8x128xf32, #tpu.memory_space<vmem>>, vector<1x8x128xf32>
    %186 = vector.shape_cast %185 : vector<1x8x128xf32> to vector<8x128xf32>
    %187 = arith.mulf %186, %13 : vector<8x128xf32>
    %188 = arith.addf %184, %187 : vector<8x128xf32>
    %c72 = arith.constant 72 : index
    %c0_103 = arith.constant 0 : index
    %c0_104 = arith.constant 0 : index
    %189 = vector.load %arg1[%c72, %c0_103, %c0_104] : memref<257x8x128xf32, #tpu.memory_space<vmem>>, vector<1x8x128xf32>
    %190 = vector.shape_cast %189 : vector<1x8x128xf32> to vector<8x128xf32>
    %191 = arith.addf %188, %190 : vector<8x128xf32>
    %cst_105 = arith.constant 0.000000e+00 : f32
    %192 = vector.broadcast %cst_105 : f32 to vector<8x128xf32>
    %193 = arith.maximumf %191, %192 : vector<8x128xf32>
    %c36 = arith.constant 36 : index
    %c0_106 = arith.constant 0 : index
    %c0_107 = arith.constant 0 : index
    %194 = vector.load %arg1[%c36, %c0_106, %c0_107] : memref<257x8x128xf32, #tpu.memory_space<vmem>>, vector<1x8x128xf32>
    %195 = vector.shape_cast %194 : vector<1x8x128xf32> to vector<8x128xf32>
    %196 = arith.mulf %195, %4 : vector<8x128xf32>
    %c37 = arith.constant 37 : index
    %c0_108 = arith.constant 0 : index
    %c0_109 = arith.constant 0 : index
    %197 = vector.load %arg1[%c37, %c0_108, %c0_109] : memref<257x8x128xf32, #tpu.memory_space<vmem>>, vector<1x8x128xf32>
    %198 = vector.shape_cast %197 : vector<1x8x128xf32> to vector<8x128xf32>
    %199 = arith.mulf %198, %7 : vector<8x128xf32>
    %200 = arith.addf %196, %199 : vector<8x128xf32>
    %c38 = arith.constant 38 : index
    %c0_110 = arith.constant 0 : index
    %c0_111 = arith.constant 0 : index
    %201 = vector.load %arg1[%c38, %c0_110, %c0_111] : memref<257x8x128xf32, #tpu.memory_space<vmem>>, vector<1x8x128xf32>
    %202 = vector.shape_cast %201 : vector<1x8x128xf32> to vector<8x128xf32>
    %203 = arith.mulf %202, %10 : vector<8x128xf32>
    %204 = arith.addf %200, %203 : vector<8x128xf32>
    %c39 = arith.constant 39 : index
    %c0_112 = arith.constant 0 : index
    %c0_113 = arith.constant 0 : index
    %205 = vector.load %arg1[%c39, %c0_112, %c0_113] : memref<257x8x128xf32, #tpu.memory_space<vmem>>, vector<1x8x128xf32>
    %206 = vector.shape_cast %205 : vector<1x8x128xf32> to vector<8x128xf32>
    %207 = arith.mulf %206, %13 : vector<8x128xf32>
    %208 = arith.addf %204, %207 : vector<8x128xf32>
    %c73 = arith.constant 73 : index
    %c0_114 = arith.constant 0 : index
    %c0_115 = arith.constant 0 : index
    %209 = vector.load %arg1[%c73, %c0_114, %c0_115] : memref<257x8x128xf32, #tpu.memory_space<vmem>>, vector<1x8x128xf32>
    %210 = vector.shape_cast %209 : vector<1x8x128xf32> to vector<8x128xf32>
    %211 = arith.addf %208, %210 : vector<8x128xf32>
    %cst_116 = arith.constant 0.000000e+00 : f32
    %212 = vector.broadcast %cst_116 : f32 to vector<8x128xf32>
    %213 = arith.maximumf %211, %212 : vector<8x128xf32>
    %c40 = arith.constant 40 : index
    %c0_117 = arith.constant 0 : index
    %c0_118 = arith.constant 0 : index
    %214 = vector.load %arg1[%c40, %c0_117, %c0_118] : memref<257x8x128xf32, #tpu.memory_space<vmem>>, vector<1x8x128xf32>
    %215 = vector.shape_cast %214 : vector<1x8x128xf32> to vector<8x128xf32>
    %216 = arith.mulf %215, %4 : vector<8x128xf32>
    %c41 = arith.constant 41 : index
    %c0_119 = arith.constant 0 : index
    %c0_120 = arith.constant 0 : index
    %217 = vector.load %arg1[%c41, %c0_119, %c0_120] : memref<257x8x128xf32, #tpu.memory_space<vmem>>, vector<1x8x128xf32>
    %218 = vector.shape_cast %217 : vector<1x8x128xf32> to vector<8x128xf32>
    %219 = arith.mulf %218, %7 : vector<8x128xf32>
    %220 = arith.addf %216, %219 : vector<8x128xf32>
    %c42 = arith.constant 42 : index
    %c0_121 = arith.constant 0 : index
    %c0_122 = arith.constant 0 : index
    %221 = vector.load %arg1[%c42, %c0_121, %c0_122] : memref<257x8x128xf32, #tpu.memory_space<vmem>>, vector<1x8x128xf32>
    %222 = vector.shape_cast %221 : vector<1x8x128xf32> to vector<8x128xf32>
    %223 = arith.mulf %222, %10 : vector<8x128xf32>
    %224 = arith.addf %220, %223 : vector<8x128xf32>
    %c43 = arith.constant 43 : index
    %c0_123 = arith.constant 0 : index
    %c0_124 = arith.constant 0 : index
    %225 = vector.load %arg1[%c43, %c0_123, %c0_124] : memref<257x8x128xf32, #tpu.memory_space<vmem>>, vector<1x8x128xf32>
    %226 = vector.shape_cast %225 : vector<1x8x128xf32> to vector<8x128xf32>
    %227 = arith.mulf %226, %13 : vector<8x128xf32>
    %228 = arith.addf %224, %227 : vector<8x128xf32>
    %c74 = arith.constant 74 : index
    %c0_125 = arith.constant 0 : index
    %c0_126 = arith.constant 0 : index
    %229 = vector.load %arg1[%c74, %c0_125, %c0_126] : memref<257x8x128xf32, #tpu.memory_space<vmem>>, vector<1x8x128xf32>
    %230 = vector.shape_cast %229 : vector<1x8x128xf32> to vector<8x128xf32>
    %231 = arith.addf %228, %230 : vector<8x128xf32>
    %cst_127 = arith.constant 0.000000e+00 : f32
    %232 = vector.broadcast %cst_127 : f32 to vector<8x128xf32>
    %233 = arith.maximumf %231, %232 : vector<8x128xf32>
    %c44 = arith.constant 44 : index
    %c0_128 = arith.constant 0 : index
    %c0_129 = arith.constant 0 : index
    %234 = vector.load %arg1[%c44, %c0_128, %c0_129] : memref<257x8x128xf32, #tpu.memory_space<vmem>>, vector<1x8x128xf32>
    %235 = vector.shape_cast %234 : vector<1x8x128xf32> to vector<8x128xf32>
    %236 = arith.mulf %235, %4 : vector<8x128xf32>
    %c45 = arith.constant 45 : index
    %c0_130 = arith.constant 0 : index
    %c0_131 = arith.constant 0 : index
    %237 = vector.load %arg1[%c45, %c0_130, %c0_131] : memref<257x8x128xf32, #tpu.memory_space<vmem>>, vector<1x8x128xf32>
    %238 = vector.shape_cast %237 : vector<1x8x128xf32> to vector<8x128xf32>
    %239 = arith.mulf %238, %7 : vector<8x128xf32>
    %240 = arith.addf %236, %239 : vector<8x128xf32>
    %c46 = arith.constant 46 : index
    %c0_132 = arith.constant 0 : index
    %c0_133 = arith.constant 0 : index
    %241 = vector.load %arg1[%c46, %c0_132, %c0_133] : memref<257x8x128xf32, #tpu.memory_space<vmem>>, vector<1x8x128xf32>
    %242 = vector.shape_cast %241 : vector<1x8x128xf32> to vector<8x128xf32>
    %243 = arith.mulf %242, %10 : vector<8x128xf32>
    %244 = arith.addf %240, %243 : vector<8x128xf32>
    %c47 = arith.constant 47 : index
    %c0_134 = arith.constant 0 : index
    %c0_135 = arith.constant 0 : index
    %245 = vector.load %arg1[%c47, %c0_134, %c0_135] : memref<257x8x128xf32, #tpu.memory_space<vmem>>, vector<1x8x128xf32>
    %246 = vector.shape_cast %245 : vector<1x8x128xf32> to vector<8x128xf32>
    %247 = arith.mulf %246, %13 : vector<8x128xf32>
    %248 = arith.addf %244, %247 : vector<8x128xf32>
    %c75 = arith.constant 75 : index
    %c0_136 = arith.constant 0 : index
    %c0_137 = arith.constant 0 : index
    %249 = vector.load %arg1[%c75, %c0_136, %c0_137] : memref<257x8x128xf32, #tpu.memory_space<vmem>>, vector<1x8x128xf32>
    %250 = vector.shape_cast %249 : vector<1x8x128xf32> to vector<8x128xf32>
    %251 = arith.addf %248, %250 : vector<8x128xf32>
    %cst_138 = arith.constant 0.000000e+00 : f32
    %252 = vector.broadcast %cst_138 : f32 to vector<8x128xf32>
    %253 = arith.maximumf %251, %252 : vector<8x128xf32>
    %c48 = arith.constant 48 : index
    %c0_139 = arith.constant 0 : index
    %c0_140 = arith.constant 0 : index
    %254 = vector.load %arg1[%c48, %c0_139, %c0_140] : memref<257x8x128xf32, #tpu.memory_space<vmem>>, vector<1x8x128xf32>
    %255 = vector.shape_cast %254 : vector<1x8x128xf32> to vector<8x128xf32>
    %256 = arith.mulf %255, %4 : vector<8x128xf32>
    %c49 = arith.constant 49 : index
    %c0_141 = arith.constant 0 : index
    %c0_142 = arith.constant 0 : index
    %257 = vector.load %arg1[%c49, %c0_141, %c0_142] : memref<257x8x128xf32, #tpu.memory_space<vmem>>, vector<1x8x128xf32>
    %258 = vector.shape_cast %257 : vector<1x8x128xf32> to vector<8x128xf32>
    %259 = arith.mulf %258, %7 : vector<8x128xf32>
    %260 = arith.addf %256, %259 : vector<8x128xf32>
    %c50 = arith.constant 50 : index
    %c0_143 = arith.constant 0 : index
    %c0_144 = arith.constant 0 : index
    %261 = vector.load %arg1[%c50, %c0_143, %c0_144] : memref<257x8x128xf32, #tpu.memory_space<vmem>>, vector<1x8x128xf32>
    %262 = vector.shape_cast %261 : vector<1x8x128xf32> to vector<8x128xf32>
    %263 = arith.mulf %262, %10 : vector<8x128xf32>
    %264 = arith.addf %260, %263 : vector<8x128xf32>
    %c51 = arith.constant 51 : index
    %c0_145 = arith.constant 0 : index
    %c0_146 = arith.constant 0 : index
    %265 = vector.load %arg1[%c51, %c0_145, %c0_146] : memref<257x8x128xf32, #tpu.memory_space<vmem>>, vector<1x8x128xf32>
    %266 = vector.shape_cast %265 : vector<1x8x128xf32> to vector<8x128xf32>
    %267 = arith.mulf %266, %13 : vector<8x128xf32>
    %268 = arith.addf %264, %267 : vector<8x128xf32>
    %c76 = arith.constant 76 : index
    %c0_147 = arith.constant 0 : index
    %c0_148 = arith.constant 0 : index
    %269 = vector.load %arg1[%c76, %c0_147, %c0_148] : memref<257x8x128xf32, #tpu.memory_space<vmem>>, vector<1x8x128xf32>
    %270 = vector.shape_cast %269 : vector<1x8x128xf32> to vector<8x128xf32>
    %271 = arith.addf %268, %270 : vector<8x128xf32>
    %cst_149 = arith.constant 0.000000e+00 : f32
    %272 = vector.broadcast %cst_149 : f32 to vector<8x128xf32>
    %273 = arith.maximumf %271, %272 : vector<8x128xf32>
    %c52 = arith.constant 52 : index
    %c0_150 = arith.constant 0 : index
    %c0_151 = arith.constant 0 : index
    %274 = vector.load %arg1[%c52, %c0_150, %c0_151] : memref<257x8x128xf32, #tpu.memory_space<vmem>>, vector<1x8x128xf32>
    %275 = vector.shape_cast %274 : vector<1x8x128xf32> to vector<8x128xf32>
    %276 = arith.mulf %275, %4 : vector<8x128xf32>
    %c53 = arith.constant 53 : index
    %c0_152 = arith.constant 0 : index
    %c0_153 = arith.constant 0 : index
    %277 = vector.load %arg1[%c53, %c0_152, %c0_153] : memref<257x8x128xf32, #tpu.memory_space<vmem>>, vector<1x8x128xf32>
    %278 = vector.shape_cast %277 : vector<1x8x128xf32> to vector<8x128xf32>
    %279 = arith.mulf %278, %7 : vector<8x128xf32>
    %280 = arith.addf %276, %279 : vector<8x128xf32>
    %c54 = arith.constant 54 : index
    %c0_154 = arith.constant 0 : index
    %c0_155 = arith.constant 0 : index
    %281 = vector.load %arg1[%c54, %c0_154, %c0_155] : memref<257x8x128xf32, #tpu.memory_space<vmem>>, vector<1x8x128xf32>
    %282 = vector.shape_cast %281 : vector<1x8x128xf32> to vector<8x128xf32>
    %283 = arith.mulf %282, %10 : vector<8x128xf32>
    %284 = arith.addf %280, %283 : vector<8x128xf32>
    %c55 = arith.constant 55 : index
    %c0_156 = arith.constant 0 : index
    %c0_157 = arith.constant 0 : index
    %285 = vector.load %arg1[%c55, %c0_156, %c0_157] : memref<257x8x128xf32, #tpu.memory_space<vmem>>, vector<1x8x128xf32>
    %286 = vector.shape_cast %285 : vector<1x8x128xf32> to vector<8x128xf32>
    %287 = arith.mulf %286, %13 : vector<8x128xf32>
    %288 = arith.addf %284, %287 : vector<8x128xf32>
    %c77 = arith.constant 77 : index
    %c0_158 = arith.constant 0 : index
    %c0_159 = arith.constant 0 : index
    %289 = vector.load %arg1[%c77, %c0_158, %c0_159] : memref<257x8x128xf32, #tpu.memory_space<vmem>>, vector<1x8x128xf32>
    %290 = vector.shape_cast %289 : vector<1x8x128xf32> to vector<8x128xf32>
    %291 = arith.addf %288, %290 : vector<8x128xf32>
    %cst_160 = arith.constant 0.000000e+00 : f32
    %292 = vector.broadcast %cst_160 : f32 to vector<8x128xf32>
    %293 = arith.maximumf %291, %292 : vector<8x128xf32>
    %c56 = arith.constant 56 : index
    %c0_161 = arith.constant 0 : index
    %c0_162 = arith.constant 0 : index
    %294 = vector.load %arg1[%c56, %c0_161, %c0_162] : memref<257x8x128xf32, #tpu.memory_space<vmem>>, vector<1x8x128xf32>
    %295 = vector.shape_cast %294 : vector<1x8x128xf32> to vector<8x128xf32>
    %296 = arith.mulf %295, %4 : vector<8x128xf32>
    %c57 = arith.constant 57 : index
    %c0_163 = arith.constant 0 : index
    %c0_164 = arith.constant 0 : index
    %297 = vector.load %arg1[%c57, %c0_163, %c0_164] : memref<257x8x128xf32, #tpu.memory_space<vmem>>, vector<1x8x128xf32>
    %298 = vector.shape_cast %297 : vector<1x8x128xf32> to vector<8x128xf32>
    %299 = arith.mulf %298, %7 : vector<8x128xf32>
    %300 = arith.addf %296, %299 : vector<8x128xf32>
    %c58 = arith.constant 58 : index
    %c0_165 = arith.constant 0 : index
    %c0_166 = arith.constant 0 : index
    %301 = vector.load %arg1[%c58, %c0_165, %c0_166] : memref<257x8x128xf32, #tpu.memory_space<vmem>>, vector<1x8x128xf32>
    %302 = vector.shape_cast %301 : vector<1x8x128xf32> to vector<8x128xf32>
    %303 = arith.mulf %302, %10 : vector<8x128xf32>
    %304 = arith.addf %300, %303 : vector<8x128xf32>
    %c59 = arith.constant 59 : index
    %c0_167 = arith.constant 0 : index
    %c0_168 = arith.constant 0 : index
    %305 = vector.load %arg1[%c59, %c0_167, %c0_168] : memref<257x8x128xf32, #tpu.memory_space<vmem>>, vector<1x8x128xf32>
    %306 = vector.shape_cast %305 : vector<1x8x128xf32> to vector<8x128xf32>
    %307 = arith.mulf %306, %13 : vector<8x128xf32>
    %308 = arith.addf %304, %307 : vector<8x128xf32>
    %c78 = arith.constant 78 : index
    %c0_169 = arith.constant 0 : index
    %c0_170 = arith.constant 0 : index
    %309 = vector.load %arg1[%c78, %c0_169, %c0_170] : memref<257x8x128xf32, #tpu.memory_space<vmem>>, vector<1x8x128xf32>
    %310 = vector.shape_cast %309 : vector<1x8x128xf32> to vector<8x128xf32>
    %311 = arith.addf %308, %310 : vector<8x128xf32>
    %cst_171 = arith.constant 0.000000e+00 : f32
    %312 = vector.broadcast %cst_171 : f32 to vector<8x128xf32>
    %313 = arith.maximumf %311, %312 : vector<8x128xf32>
    %c60 = arith.constant 60 : index
    %c0_172 = arith.constant 0 : index
    %c0_173 = arith.constant 0 : index
    %314 = vector.load %arg1[%c60, %c0_172, %c0_173] : memref<257x8x128xf32, #tpu.memory_space<vmem>>, vector<1x8x128xf32>
    %315 = vector.shape_cast %314 : vector<1x8x128xf32> to vector<8x128xf32>
    %316 = arith.mulf %315, %4 : vector<8x128xf32>
    %c61 = arith.constant 61 : index
    %c0_174 = arith.constant 0 : index
    %c0_175 = arith.constant 0 : index
    %317 = vector.load %arg1[%c61, %c0_174, %c0_175] : memref<257x8x128xf32, #tpu.memory_space<vmem>>, vector<1x8x128xf32>
    %318 = vector.shape_cast %317 : vector<1x8x128xf32> to vector<8x128xf32>
    %319 = arith.mulf %318, %7 : vector<8x128xf32>
    %320 = arith.addf %316, %319 : vector<8x128xf32>
    %c62 = arith.constant 62 : index
    %c0_176 = arith.constant 0 : index
    %c0_177 = arith.constant 0 : index
    %321 = vector.load %arg1[%c62, %c0_176, %c0_177] : memref<257x8x128xf32, #tpu.memory_space<vmem>>, vector<1x8x128xf32>
    %322 = vector.shape_cast %321 : vector<1x8x128xf32> to vector<8x128xf32>
    %323 = arith.mulf %322, %10 : vector<8x128xf32>
    %324 = arith.addf %320, %323 : vector<8x128xf32>
    %c63 = arith.constant 63 : index
    %c0_178 = arith.constant 0 : index
    %c0_179 = arith.constant 0 : index
    %325 = vector.load %arg1[%c63, %c0_178, %c0_179] : memref<257x8x128xf32, #tpu.memory_space<vmem>>, vector<1x8x128xf32>
    %326 = vector.shape_cast %325 : vector<1x8x128xf32> to vector<8x128xf32>
    %327 = arith.mulf %326, %13 : vector<8x128xf32>
    %328 = arith.addf %324, %327 : vector<8x128xf32>
    %c79 = arith.constant 79 : index
    %c0_180 = arith.constant 0 : index
    %c0_181 = arith.constant 0 : index
    %329 = vector.load %arg1[%c79, %c0_180, %c0_181] : memref<257x8x128xf32, #tpu.memory_space<vmem>>, vector<1x8x128xf32>
    %330 = vector.shape_cast %329 : vector<1x8x128xf32> to vector<8x128xf32>
    %331 = arith.addf %328, %330 : vector<8x128xf32>
    %cst_182 = arith.constant 0.000000e+00 : f32
    %332 = vector.broadcast %cst_182 : f32 to vector<8x128xf32>
    %333 = arith.maximumf %331, %332 : vector<8x128xf32>
    %c80 = arith.constant 80 : index
    %c0_183 = arith.constant 0 : index
    %c0_184 = arith.constant 0 : index
    %334 = vector.load %arg1[%c80, %c0_183, %c0_184] : memref<257x8x128xf32, #tpu.memory_space<vmem>>, vector<1x8x128xf32>
    %335 = vector.shape_cast %334 : vector<1x8x128xf32> to vector<8x128xf32>
    %336 = arith.mulf %335, %33 : vector<8x128xf32>
    %c81 = arith.constant 81 : index
    %c0_185 = arith.constant 0 : index
    %c0_186 = arith.constant 0 : index
    %337 = vector.load %arg1[%c81, %c0_185, %c0_186] : memref<257x8x128xf32, #tpu.memory_space<vmem>>, vector<1x8x128xf32>
    %338 = vector.shape_cast %337 : vector<1x8x128xf32> to vector<8x128xf32>
    %339 = arith.mulf %338, %53 : vector<8x128xf32>
    %340 = arith.addf %336, %339 : vector<8x128xf32>
    %c82 = arith.constant 82 : index
    %c0_187 = arith.constant 0 : index
    %c0_188 = arith.constant 0 : index
    %341 = vector.load %arg1[%c82, %c0_187, %c0_188] : memref<257x8x128xf32, #tpu.memory_space<vmem>>, vector<1x8x128xf32>
    %342 = vector.shape_cast %341 : vector<1x8x128xf32> to vector<8x128xf32>
    %343 = arith.mulf %342, %73 : vector<8x128xf32>
    %344 = arith.addf %340, %343 : vector<8x128xf32>
    %c83 = arith.constant 83 : index
    %c0_189 = arith.constant 0 : index
    %c0_190 = arith.constant 0 : index
    %345 = vector.load %arg1[%c83, %c0_189, %c0_190] : memref<257x8x128xf32, #tpu.memory_space<vmem>>, vector<1x8x128xf32>
    %346 = vector.shape_cast %345 : vector<1x8x128xf32> to vector<8x128xf32>
    %347 = arith.mulf %346, %93 : vector<8x128xf32>
    %348 = arith.addf %344, %347 : vector<8x128xf32>
    %c84 = arith.constant 84 : index
    %c0_191 = arith.constant 0 : index
    %c0_192 = arith.constant 0 : index
    %349 = vector.load %arg1[%c84, %c0_191, %c0_192] : memref<257x8x128xf32, #tpu.memory_space<vmem>>, vector<1x8x128xf32>
    %350 = vector.shape_cast %349 : vector<1x8x128xf32> to vector<8x128xf32>
    %351 = arith.mulf %350, %113 : vector<8x128xf32>
    %352 = arith.addf %348, %351 : vector<8x128xf32>
    %c85 = arith.constant 85 : index
    %c0_193 = arith.constant 0 : index
    %c0_194 = arith.constant 0 : index
    %353 = vector.load %arg1[%c85, %c0_193, %c0_194] : memref<257x8x128xf32, #tpu.memory_space<vmem>>, vector<1x8x128xf32>
    %354 = vector.shape_cast %353 : vector<1x8x128xf32> to vector<8x128xf32>
    %355 = arith.mulf %354, %133 : vector<8x128xf32>
    %356 = arith.addf %352, %355 : vector<8x128xf32>
    %c86 = arith.constant 86 : index
    %c0_195 = arith.constant 0 : index
    %c0_196 = arith.constant 0 : index
    %357 = vector.load %arg1[%c86, %c0_195, %c0_196] : memref<257x8x128xf32, #tpu.memory_space<vmem>>, vector<1x8x128xf32>
    %358 = vector.shape_cast %357 : vector<1x8x128xf32> to vector<8x128xf32>
    %359 = arith.mulf %358, %153 : vector<8x128xf32>
    %360 = arith.addf %356, %359 : vector<8x128xf32>
    %c87 = arith.constant 87 : index
    %c0_197 = arith.constant 0 : index
    %c0_198 = arith.constant 0 : index
    %361 = vector.load %arg1[%c87, %c0_197, %c0_198] : memref<257x8x128xf32, #tpu.memory_space<vmem>>, vector<1x8x128xf32>
    %362 = vector.shape_cast %361 : vector<1x8x128xf32> to vector<8x128xf32>
    %363 = arith.mulf %362, %173 : vector<8x128xf32>
    %364 = arith.addf %360, %363 : vector<8x128xf32>
    %c88 = arith.constant 88 : index
    %c0_199 = arith.constant 0 : index
    %c0_200 = arith.constant 0 : index
    %365 = vector.load %arg1[%c88, %c0_199, %c0_200] : memref<257x8x128xf32, #tpu.memory_space<vmem>>, vector<1x8x128xf32>
    %366 = vector.shape_cast %365 : vector<1x8x128xf32> to vector<8x128xf32>
    %367 = arith.mulf %366, %193 : vector<8x128xf32>
    %368 = arith.addf %364, %367 : vector<8x128xf32>
    %c89 = arith.constant 89 : index
    %c0_201 = arith.constant 0 : index
    %c0_202 = arith.constant 0 : index
    %369 = vector.load %arg1[%c89, %c0_201, %c0_202] : memref<257x8x128xf32, #tpu.memory_space<vmem>>, vector<1x8x128xf32>
    %370 = vector.shape_cast %369 : vector<1x8x128xf32> to vector<8x128xf32>
    %371 = arith.mulf %370, %213 : vector<8x128xf32>
    %372 = arith.addf %368, %371 : vector<8x128xf32>
    %c90 = arith.constant 90 : index
    %c0_203 = arith.constant 0 : index
    %c0_204 = arith.constant 0 : index
    %373 = vector.load %arg1[%c90, %c0_203, %c0_204] : memref<257x8x128xf32, #tpu.memory_space<vmem>>, vector<1x8x128xf32>
    %374 = vector.shape_cast %373 : vector<1x8x128xf32> to vector<8x128xf32>
    %375 = arith.mulf %374, %233 : vector<8x128xf32>
    %376 = arith.addf %372, %375 : vector<8x128xf32>
    %c91 = arith.constant 91 : index
    %c0_205 = arith.constant 0 : index
    %c0_206 = arith.constant 0 : index
    %377 = vector.load %arg1[%c91, %c0_205, %c0_206] : memref<257x8x128xf32, #tpu.memory_space<vmem>>, vector<1x8x128xf32>
    %378 = vector.shape_cast %377 : vector<1x8x128xf32> to vector<8x128xf32>
    %379 = arith.mulf %378, %253 : vector<8x128xf32>
    %380 = arith.addf %376, %379 : vector<8x128xf32>
    %c92 = arith.constant 92 : index
    %c0_207 = arith.constant 0 : index
    %c0_208 = arith.constant 0 : index
    %381 = vector.load %arg1[%c92, %c0_207, %c0_208] : memref<257x8x128xf32, #tpu.memory_space<vmem>>, vector<1x8x128xf32>
    %382 = vector.shape_cast %381 : vector<1x8x128xf32> to vector<8x128xf32>
    %383 = arith.mulf %382, %273 : vector<8x128xf32>
    %384 = arith.addf %380, %383 : vector<8x128xf32>
    %c93 = arith.constant 93 : index
    %c0_209 = arith.constant 0 : index
    %c0_210 = arith.constant 0 : index
    %385 = vector.load %arg1[%c93, %c0_209, %c0_210] : memref<257x8x128xf32, #tpu.memory_space<vmem>>, vector<1x8x128xf32>
    %386 = vector.shape_cast %385 : vector<1x8x128xf32> to vector<8x128xf32>
    %387 = arith.mulf %386, %293 : vector<8x128xf32>
    %388 = arith.addf %384, %387 : vector<8x128xf32>
    %c94 = arith.constant 94 : index
    %c0_211 = arith.constant 0 : index
    %c0_212 = arith.constant 0 : index
    %389 = vector.load %arg1[%c94, %c0_211, %c0_212] : memref<257x8x128xf32, #tpu.memory_space<vmem>>, vector<1x8x128xf32>
    %390 = vector.shape_cast %389 : vector<1x8x128xf32> to vector<8x128xf32>
    %391 = arith.mulf %390, %313 : vector<8x128xf32>
    %392 = arith.addf %388, %391 : vector<8x128xf32>
    %c95 = arith.constant 95 : index
    %c0_213 = arith.constant 0 : index
    %c0_214 = arith.constant 0 : index
    %393 = vector.load %arg1[%c95, %c0_213, %c0_214] : memref<257x8x128xf32, #tpu.memory_space<vmem>>, vector<1x8x128xf32>
    %394 = vector.shape_cast %393 : vector<1x8x128xf32> to vector<8x128xf32>
    %395 = arith.mulf %394, %333 : vector<8x128xf32>
    %396 = arith.addf %392, %395 : vector<8x128xf32>
    %c208 = arith.constant 208 : index
    %c0_215 = arith.constant 0 : index
    %c0_216 = arith.constant 0 : index
    %397 = vector.load %arg1[%c208, %c0_215, %c0_216] : memref<257x8x128xf32, #tpu.memory_space<vmem>>, vector<1x8x128xf32>
    %398 = vector.shape_cast %397 : vector<1x8x128xf32> to vector<8x128xf32>
    %399 = arith.addf %396, %398 : vector<8x128xf32>
    %cst_217 = arith.constant 0.000000e+00 : f32
    %400 = vector.broadcast %cst_217 : f32 to vector<8x128xf32>
    %401 = arith.maximumf %399, %400 : vector<8x128xf32>
    %c96 = arith.constant 96 : index
    %c0_218 = arith.constant 0 : index
    %c0_219 = arith.constant 0 : index
    %402 = vector.load %arg1[%c96, %c0_218, %c0_219] : memref<257x8x128xf32, #tpu.memory_space<vmem>>, vector<1x8x128xf32>
    %403 = vector.shape_cast %402 : vector<1x8x128xf32> to vector<8x128xf32>
    %404 = arith.mulf %403, %33 : vector<8x128xf32>
    %c97 = arith.constant 97 : index
    %c0_220 = arith.constant 0 : index
    %c0_221 = arith.constant 0 : index
    %405 = vector.load %arg1[%c97, %c0_220, %c0_221] : memref<257x8x128xf32, #tpu.memory_space<vmem>>, vector<1x8x128xf32>
    %406 = vector.shape_cast %405 : vector<1x8x128xf32> to vector<8x128xf32>
    %407 = arith.mulf %406, %53 : vector<8x128xf32>
    %408 = arith.addf %404, %407 : vector<8x128xf32>
    %c98 = arith.constant 98 : index
    %c0_222 = arith.constant 0 : index
    %c0_223 = arith.constant 0 : index
    %409 = vector.load %arg1[%c98, %c0_222, %c0_223] : memref<257x8x128xf32, #tpu.memory_space<vmem>>, vector<1x8x128xf32>
    %410 = vector.shape_cast %409 : vector<1x8x128xf32> to vector<8x128xf32>
    %411 = arith.mulf %410, %73 : vector<8x128xf32>
    %412 = arith.addf %408, %411 : vector<8x128xf32>
    %c99 = arith.constant 99 : index
    %c0_224 = arith.constant 0 : index
    %c0_225 = arith.constant 0 : index
    %413 = vector.load %arg1[%c99, %c0_224, %c0_225] : memref<257x8x128xf32, #tpu.memory_space<vmem>>, vector<1x8x128xf32>
    %414 = vector.shape_cast %413 : vector<1x8x128xf32> to vector<8x128xf32>
    %415 = arith.mulf %414, %93 : vector<8x128xf32>
    %416 = arith.addf %412, %415 : vector<8x128xf32>
    %c100 = arith.constant 100 : index
    %c0_226 = arith.constant 0 : index
    %c0_227 = arith.constant 0 : index
    %417 = vector.load %arg1[%c100, %c0_226, %c0_227] : memref<257x8x128xf32, #tpu.memory_space<vmem>>, vector<1x8x128xf32>
    %418 = vector.shape_cast %417 : vector<1x8x128xf32> to vector<8x128xf32>
    %419 = arith.mulf %418, %113 : vector<8x128xf32>
    %420 = arith.addf %416, %419 : vector<8x128xf32>
    %c101 = arith.constant 101 : index
    %c0_228 = arith.constant 0 : index
    %c0_229 = arith.constant 0 : index
    %421 = vector.load %arg1[%c101, %c0_228, %c0_229] : memref<257x8x128xf32, #tpu.memory_space<vmem>>, vector<1x8x128xf32>
    %422 = vector.shape_cast %421 : vector<1x8x128xf32> to vector<8x128xf32>
    %423 = arith.mulf %422, %133 : vector<8x128xf32>
    %424 = arith.addf %420, %423 : vector<8x128xf32>
    %c102 = arith.constant 102 : index
    %c0_230 = arith.constant 0 : index
    %c0_231 = arith.constant 0 : index
    %425 = vector.load %arg1[%c102, %c0_230, %c0_231] : memref<257x8x128xf32, #tpu.memory_space<vmem>>, vector<1x8x128xf32>
    %426 = vector.shape_cast %425 : vector<1x8x128xf32> to vector<8x128xf32>
    %427 = arith.mulf %426, %153 : vector<8x128xf32>
    %428 = arith.addf %424, %427 : vector<8x128xf32>
    %c103 = arith.constant 103 : index
    %c0_232 = arith.constant 0 : index
    %c0_233 = arith.constant 0 : index
    %429 = vector.load %arg1[%c103, %c0_232, %c0_233] : memref<257x8x128xf32, #tpu.memory_space<vmem>>, vector<1x8x128xf32>
    %430 = vector.shape_cast %429 : vector<1x8x128xf32> to vector<8x128xf32>
    %431 = arith.mulf %430, %173 : vector<8x128xf32>
    %432 = arith.addf %428, %431 : vector<8x128xf32>
    %c104 = arith.constant 104 : index
    %c0_234 = arith.constant 0 : index
    %c0_235 = arith.constant 0 : index
    %433 = vector.load %arg1[%c104, %c0_234, %c0_235] : memref<257x8x128xf32, #tpu.memory_space<vmem>>, vector<1x8x128xf32>
    %434 = vector.shape_cast %433 : vector<1x8x128xf32> to vector<8x128xf32>
    %435 = arith.mulf %434, %193 : vector<8x128xf32>
    %436 = arith.addf %432, %435 : vector<8x128xf32>
    %c105 = arith.constant 105 : index
    %c0_236 = arith.constant 0 : index
    %c0_237 = arith.constant 0 : index
    %437 = vector.load %arg1[%c105, %c0_236, %c0_237] : memref<257x8x128xf32, #tpu.memory_space<vmem>>, vector<1x8x128xf32>
    %438 = vector.shape_cast %437 : vector<1x8x128xf32> to vector<8x128xf32>
    %439 = arith.mulf %438, %213 : vector<8x128xf32>
    %440 = arith.addf %436, %439 : vector<8x128xf32>
    %c106 = arith.constant 106 : index
    %c0_238 = arith.constant 0 : index
    %c0_239 = arith.constant 0 : index
    %441 = vector.load %arg1[%c106, %c0_238, %c0_239] : memref<257x8x128xf32, #tpu.memory_space<vmem>>, vector<1x8x128xf32>
    %442 = vector.shape_cast %441 : vector<1x8x128xf32> to vector<8x128xf32>
    %443 = arith.mulf %442, %233 : vector<8x128xf32>
    %444 = arith.addf %440, %443 : vector<8x128xf32>
    %c107 = arith.constant 107 : index
    %c0_240 = arith.constant 0 : index
    %c0_241 = arith.constant 0 : index
    %445 = vector.load %arg1[%c107, %c0_240, %c0_241] : memref<257x8x128xf32, #tpu.memory_space<vmem>>, vector<1x8x128xf32>
    %446 = vector.shape_cast %445 : vector<1x8x128xf32> to vector<8x128xf32>
    %447 = arith.mulf %446, %253 : vector<8x128xf32>
    %448 = arith.addf %444, %447 : vector<8x128xf32>
    %c108 = arith.constant 108 : index
    %c0_242 = arith.constant 0 : index
    %c0_243 = arith.constant 0 : index
    %449 = vector.load %arg1[%c108, %c0_242, %c0_243] : memref<257x8x128xf32, #tpu.memory_space<vmem>>, vector<1x8x128xf32>
    %450 = vector.shape_cast %449 : vector<1x8x128xf32> to vector<8x128xf32>
    %451 = arith.mulf %450, %273 : vector<8x128xf32>
    %452 = arith.addf %448, %451 : vector<8x128xf32>
    %c109 = arith.constant 109 : index
    %c0_244 = arith.constant 0 : index
    %c0_245 = arith.constant 0 : index
    %453 = vector.load %arg1[%c109, %c0_244, %c0_245] : memref<257x8x128xf32, #tpu.memory_space<vmem>>, vector<1x8x128xf32>
    %454 = vector.shape_cast %453 : vector<1x8x128xf32> to vector<8x128xf32>
    %455 = arith.mulf %454, %293 : vector<8x128xf32>
    %456 = arith.addf %452, %455 : vector<8x128xf32>
    %c110 = arith.constant 110 : index
    %c0_246 = arith.constant 0 : index
    %c0_247 = arith.constant 0 : index
    %457 = vector.load %arg1[%c110, %c0_246, %c0_247] : memref<257x8x128xf32, #tpu.memory_space<vmem>>, vector<1x8x128xf32>
    %458 = vector.shape_cast %457 : vector<1x8x128xf32> to vector<8x128xf32>
    %459 = arith.mulf %458, %313 : vector<8x128xf32>
    %460 = arith.addf %456, %459 : vector<8x128xf32>
    %c111 = arith.constant 111 : index
    %c0_248 = arith.constant 0 : index
    %c0_249 = arith.constant 0 : index
    %461 = vector.load %arg1[%c111, %c0_248, %c0_249] : memref<257x8x128xf32, #tpu.memory_space<vmem>>, vector<1x8x128xf32>
    %462 = vector.shape_cast %461 : vector<1x8x128xf32> to vector<8x128xf32>
    %463 = arith.mulf %462, %333 : vector<8x128xf32>
    %464 = arith.addf %460, %463 : vector<8x128xf32>
    %c209 = arith.constant 209 : index
    %c0_250 = arith.constant 0 : index
    %c0_251 = arith.constant 0 : index
    %465 = vector.load %arg1[%c209, %c0_250, %c0_251] : memref<257x8x128xf32, #tpu.memory_space<vmem>>, vector<1x8x128xf32>
    %466 = vector.shape_cast %465 : vector<1x8x128xf32> to vector<8x128xf32>
    %467 = arith.addf %464, %466 : vector<8x128xf32>
    %cst_252 = arith.constant 0.000000e+00 : f32
    %468 = vector.broadcast %cst_252 : f32 to vector<8x128xf32>
    %469 = arith.maximumf %467, %468 : vector<8x128xf32>
    %c112 = arith.constant 112 : index
    %c0_253 = arith.constant 0 : index
    %c0_254 = arith.constant 0 : index
    %470 = vector.load %arg1[%c112, %c0_253, %c0_254] : memref<257x8x128xf32, #tpu.memory_space<vmem>>, vector<1x8x128xf32>
    %471 = vector.shape_cast %470 : vector<1x8x128xf32> to vector<8x128xf32>
    %472 = arith.mulf %471, %33 : vector<8x128xf32>
    %c113 = arith.constant 113 : index
    %c0_255 = arith.constant 0 : index
    %c0_256 = arith.constant 0 : index
    %473 = vector.load %arg1[%c113, %c0_255, %c0_256] : memref<257x8x128xf32, #tpu.memory_space<vmem>>, vector<1x8x128xf32>
    %474 = vector.shape_cast %473 : vector<1x8x128xf32> to vector<8x128xf32>
    %475 = arith.mulf %474, %53 : vector<8x128xf32>
    %476 = arith.addf %472, %475 : vector<8x128xf32>
    %c114 = arith.constant 114 : index
    %c0_257 = arith.constant 0 : index
    %c0_258 = arith.constant 0 : index
    %477 = vector.load %arg1[%c114, %c0_257, %c0_258] : memref<257x8x128xf32, #tpu.memory_space<vmem>>, vector<1x8x128xf32>
    %478 = vector.shape_cast %477 : vector<1x8x128xf32> to vector<8x128xf32>
    %479 = arith.mulf %478, %73 : vector<8x128xf32>
    %480 = arith.addf %476, %479 : vector<8x128xf32>
    %c115 = arith.constant 115 : index
    %c0_259 = arith.constant 0 : index
    %c0_260 = arith.constant 0 : index
    %481 = vector.load %arg1[%c115, %c0_259, %c0_260] : memref<257x8x128xf32, #tpu.memory_space<vmem>>, vector<1x8x128xf32>
    %482 = vector.shape_cast %481 : vector<1x8x128xf32> to vector<8x128xf32>
    %483 = arith.mulf %482, %93 : vector<8x128xf32>
    %484 = arith.addf %480, %483 : vector<8x128xf32>
    %c116 = arith.constant 116 : index
    %c0_261 = arith.constant 0 : index
    %c0_262 = arith.constant 0 : index
    %485 = vector.load %arg1[%c116, %c0_261, %c0_262] : memref<257x8x128xf32, #tpu.memory_space<vmem>>, vector<1x8x128xf32>
    %486 = vector.shape_cast %485 : vector<1x8x128xf32> to vector<8x128xf32>
    %487 = arith.mulf %486, %113 : vector<8x128xf32>
    %488 = arith.addf %484, %487 : vector<8x128xf32>
    %c117 = arith.constant 117 : index
    %c0_263 = arith.constant 0 : index
    %c0_264 = arith.constant 0 : index
    %489 = vector.load %arg1[%c117, %c0_263, %c0_264] : memref<257x8x128xf32, #tpu.memory_space<vmem>>, vector<1x8x128xf32>
    %490 = vector.shape_cast %489 : vector<1x8x128xf32> to vector<8x128xf32>
    %491 = arith.mulf %490, %133 : vector<8x128xf32>
    %492 = arith.addf %488, %491 : vector<8x128xf32>
    %c118 = arith.constant 118 : index
    %c0_265 = arith.constant 0 : index
    %c0_266 = arith.constant 0 : index
    %493 = vector.load %arg1[%c118, %c0_265, %c0_266] : memref<257x8x128xf32, #tpu.memory_space<vmem>>, vector<1x8x128xf32>
    %494 = vector.shape_cast %493 : vector<1x8x128xf32> to vector<8x128xf32>
    %495 = arith.mulf %494, %153 : vector<8x128xf32>
    %496 = arith.addf %492, %495 : vector<8x128xf32>
    %c119 = arith.constant 119 : index
    %c0_267 = arith.constant 0 : index
    %c0_268 = arith.constant 0 : index
    %497 = vector.load %arg1[%c119, %c0_267, %c0_268] : memref<257x8x128xf32, #tpu.memory_space<vmem>>, vector<1x8x128xf32>
    %498 = vector.shape_cast %497 : vector<1x8x128xf32> to vector<8x128xf32>
    %499 = arith.mulf %498, %173 : vector<8x128xf32>
    %500 = arith.addf %496, %499 : vector<8x128xf32>
    %c120 = arith.constant 120 : index
    %c0_269 = arith.constant 0 : index
    %c0_270 = arith.constant 0 : index
    %501 = vector.load %arg1[%c120, %c0_269, %c0_270] : memref<257x8x128xf32, #tpu.memory_space<vmem>>, vector<1x8x128xf32>
    %502 = vector.shape_cast %501 : vector<1x8x128xf32> to vector<8x128xf32>
    %503 = arith.mulf %502, %193 : vector<8x128xf32>
    %504 = arith.addf %500, %503 : vector<8x128xf32>
    %c121 = arith.constant 121 : index
    %c0_271 = arith.constant 0 : index
    %c0_272 = arith.constant 0 : index
    %505 = vector.load %arg1[%c121, %c0_271, %c0_272] : memref<257x8x128xf32, #tpu.memory_space<vmem>>, vector<1x8x128xf32>
    %506 = vector.shape_cast %505 : vector<1x8x128xf32> to vector<8x128xf32>
    %507 = arith.mulf %506, %213 : vector<8x128xf32>
    %508 = arith.addf %504, %507 : vector<8x128xf32>
    %c122 = arith.constant 122 : index
    %c0_273 = arith.constant 0 : index
    %c0_274 = arith.constant 0 : index
    %509 = vector.load %arg1[%c122, %c0_273, %c0_274] : memref<257x8x128xf32, #tpu.memory_space<vmem>>, vector<1x8x128xf32>
    %510 = vector.shape_cast %509 : vector<1x8x128xf32> to vector<8x128xf32>
    %511 = arith.mulf %510, %233 : vector<8x128xf32>
    %512 = arith.addf %508, %511 : vector<8x128xf32>
    %c123 = arith.constant 123 : index
    %c0_275 = arith.constant 0 : index
    %c0_276 = arith.constant 0 : index
    %513 = vector.load %arg1[%c123, %c0_275, %c0_276] : memref<257x8x128xf32, #tpu.memory_space<vmem>>, vector<1x8x128xf32>
    %514 = vector.shape_cast %513 : vector<1x8x128xf32> to vector<8x128xf32>
    %515 = arith.mulf %514, %253 : vector<8x128xf32>
    %516 = arith.addf %512, %515 : vector<8x128xf32>
    %c124 = arith.constant 124 : index
    %c0_277 = arith.constant 0 : index
    %c0_278 = arith.constant 0 : index
    %517 = vector.load %arg1[%c124, %c0_277, %c0_278] : memref<257x8x128xf32, #tpu.memory_space<vmem>>, vector<1x8x128xf32>
    %518 = vector.shape_cast %517 : vector<1x8x128xf32> to vector<8x128xf32>
    %519 = arith.mulf %518, %273 : vector<8x128xf32>
    %520 = arith.addf %516, %519 : vector<8x128xf32>
    %c125 = arith.constant 125 : index
    %c0_279 = arith.constant 0 : index
    %c0_280 = arith.constant 0 : index
    %521 = vector.load %arg1[%c125, %c0_279, %c0_280] : memref<257x8x128xf32, #tpu.memory_space<vmem>>, vector<1x8x128xf32>
    %522 = vector.shape_cast %521 : vector<1x8x128xf32> to vector<8x128xf32>
    %523 = arith.mulf %522, %293 : vector<8x128xf32>
    %524 = arith.addf %520, %523 : vector<8x128xf32>
    %c126 = arith.constant 126 : index
    %c0_281 = arith.constant 0 : index
    %c0_282 = arith.constant 0 : index
    %525 = vector.load %arg1[%c126, %c0_281, %c0_282] : memref<257x8x128xf32, #tpu.memory_space<vmem>>, vector<1x8x128xf32>
    %526 = vector.shape_cast %525 : vector<1x8x128xf32> to vector<8x128xf32>
    %527 = arith.mulf %526, %313 : vector<8x128xf32>
    %528 = arith.addf %524, %527 : vector<8x128xf32>
    %c127 = arith.constant 127 : index
    %c0_283 = arith.constant 0 : index
    %c0_284 = arith.constant 0 : index
    %529 = vector.load %arg1[%c127, %c0_283, %c0_284] : memref<257x8x128xf32, #tpu.memory_space<vmem>>, vector<1x8x128xf32>
    %530 = vector.shape_cast %529 : vector<1x8x128xf32> to vector<8x128xf32>
    %531 = arith.mulf %530, %333 : vector<8x128xf32>
    %532 = arith.addf %528, %531 : vector<8x128xf32>
    %c210 = arith.constant 210 : index
    %c0_285 = arith.constant 0 : index
    %c0_286 = arith.constant 0 : index
    %533 = vector.load %arg1[%c210, %c0_285, %c0_286] : memref<257x8x128xf32, #tpu.memory_space<vmem>>, vector<1x8x128xf32>
    %534 = vector.shape_cast %533 : vector<1x8x128xf32> to vector<8x128xf32>
    %535 = arith.addf %532, %534 : vector<8x128xf32>
    %cst_287 = arith.constant 0.000000e+00 : f32
    %536 = vector.broadcast %cst_287 : f32 to vector<8x128xf32>
    %537 = arith.maximumf %535, %536 : vector<8x128xf32>
    %c128 = arith.constant 128 : index
    %c0_288 = arith.constant 0 : index
    %c0_289 = arith.constant 0 : index
    %538 = vector.load %arg1[%c128, %c0_288, %c0_289] : memref<257x8x128xf32, #tpu.memory_space<vmem>>, vector<1x8x128xf32>
    %539 = vector.shape_cast %538 : vector<1x8x128xf32> to vector<8x128xf32>
    %540 = arith.mulf %539, %33 : vector<8x128xf32>
    %c129 = arith.constant 129 : index
    %c0_290 = arith.constant 0 : index
    %c0_291 = arith.constant 0 : index
    %541 = vector.load %arg1[%c129, %c0_290, %c0_291] : memref<257x8x128xf32, #tpu.memory_space<vmem>>, vector<1x8x128xf32>
    %542 = vector.shape_cast %541 : vector<1x8x128xf32> to vector<8x128xf32>
    %543 = arith.mulf %542, %53 : vector<8x128xf32>
    %544 = arith.addf %540, %543 : vector<8x128xf32>
    %c130 = arith.constant 130 : index
    %c0_292 = arith.constant 0 : index
    %c0_293 = arith.constant 0 : index
    %545 = vector.load %arg1[%c130, %c0_292, %c0_293] : memref<257x8x128xf32, #tpu.memory_space<vmem>>, vector<1x8x128xf32>
    %546 = vector.shape_cast %545 : vector<1x8x128xf32> to vector<8x128xf32>
    %547 = arith.mulf %546, %73 : vector<8x128xf32>
    %548 = arith.addf %544, %547 : vector<8x128xf32>
    %c131 = arith.constant 131 : index
    %c0_294 = arith.constant 0 : index
    %c0_295 = arith.constant 0 : index
    %549 = vector.load %arg1[%c131, %c0_294, %c0_295] : memref<257x8x128xf32, #tpu.memory_space<vmem>>, vector<1x8x128xf32>
    %550 = vector.shape_cast %549 : vector<1x8x128xf32> to vector<8x128xf32>
    %551 = arith.mulf %550, %93 : vector<8x128xf32>
    %552 = arith.addf %548, %551 : vector<8x128xf32>
    %c132 = arith.constant 132 : index
    %c0_296 = arith.constant 0 : index
    %c0_297 = arith.constant 0 : index
    %553 = vector.load %arg1[%c132, %c0_296, %c0_297] : memref<257x8x128xf32, #tpu.memory_space<vmem>>, vector<1x8x128xf32>
    %554 = vector.shape_cast %553 : vector<1x8x128xf32> to vector<8x128xf32>
    %555 = arith.mulf %554, %113 : vector<8x128xf32>
    %556 = arith.addf %552, %555 : vector<8x128xf32>
    %c133 = arith.constant 133 : index
    %c0_298 = arith.constant 0 : index
    %c0_299 = arith.constant 0 : index
    %557 = vector.load %arg1[%c133, %c0_298, %c0_299] : memref<257x8x128xf32, #tpu.memory_space<vmem>>, vector<1x8x128xf32>
    %558 = vector.shape_cast %557 : vector<1x8x128xf32> to vector<8x128xf32>
    %559 = arith.mulf %558, %133 : vector<8x128xf32>
    %560 = arith.addf %556, %559 : vector<8x128xf32>
    %c134 = arith.constant 134 : index
    %c0_300 = arith.constant 0 : index
    %c0_301 = arith.constant 0 : index
    %561 = vector.load %arg1[%c134, %c0_300, %c0_301] : memref<257x8x128xf32, #tpu.memory_space<vmem>>, vector<1x8x128xf32>
    %562 = vector.shape_cast %561 : vector<1x8x128xf32> to vector<8x128xf32>
    %563 = arith.mulf %562, %153 : vector<8x128xf32>
    %564 = arith.addf %560, %563 : vector<8x128xf32>
    %c135 = arith.constant 135 : index
    %c0_302 = arith.constant 0 : index
    %c0_303 = arith.constant 0 : index
    %565 = vector.load %arg1[%c135, %c0_302, %c0_303] : memref<257x8x128xf32, #tpu.memory_space<vmem>>, vector<1x8x128xf32>
    %566 = vector.shape_cast %565 : vector<1x8x128xf32> to vector<8x128xf32>
    %567 = arith.mulf %566, %173 : vector<8x128xf32>
    %568 = arith.addf %564, %567 : vector<8x128xf32>
    %c136 = arith.constant 136 : index
    %c0_304 = arith.constant 0 : index
    %c0_305 = arith.constant 0 : index
    %569 = vector.load %arg1[%c136, %c0_304, %c0_305] : memref<257x8x128xf32, #tpu.memory_space<vmem>>, vector<1x8x128xf32>
    %570 = vector.shape_cast %569 : vector<1x8x128xf32> to vector<8x128xf32>
    %571 = arith.mulf %570, %193 : vector<8x128xf32>
    %572 = arith.addf %568, %571 : vector<8x128xf32>
    %c137 = arith.constant 137 : index
    %c0_306 = arith.constant 0 : index
    %c0_307 = arith.constant 0 : index
    %573 = vector.load %arg1[%c137, %c0_306, %c0_307] : memref<257x8x128xf32, #tpu.memory_space<vmem>>, vector<1x8x128xf32>
    %574 = vector.shape_cast %573 : vector<1x8x128xf32> to vector<8x128xf32>
    %575 = arith.mulf %574, %213 : vector<8x128xf32>
    %576 = arith.addf %572, %575 : vector<8x128xf32>
    %c138 = arith.constant 138 : index
    %c0_308 = arith.constant 0 : index
    %c0_309 = arith.constant 0 : index
    %577 = vector.load %arg1[%c138, %c0_308, %c0_309] : memref<257x8x128xf32, #tpu.memory_space<vmem>>, vector<1x8x128xf32>
    %578 = vector.shape_cast %577 : vector<1x8x128xf32> to vector<8x128xf32>
    %579 = arith.mulf %578, %233 : vector<8x128xf32>
    %580 = arith.addf %576, %579 : vector<8x128xf32>
    %c139 = arith.constant 139 : index
    %c0_310 = arith.constant 0 : index
    %c0_311 = arith.constant 0 : index
    %581 = vector.load %arg1[%c139, %c0_310, %c0_311] : memref<257x8x128xf32, #tpu.memory_space<vmem>>, vector<1x8x128xf32>
    %582 = vector.shape_cast %581 : vector<1x8x128xf32> to vector<8x128xf32>
    %583 = arith.mulf %582, %253 : vector<8x128xf32>
    %584 = arith.addf %580, %583 : vector<8x128xf32>
    %c140 = arith.constant 140 : index
    %c0_312 = arith.constant 0 : index
    %c0_313 = arith.constant 0 : index
    %585 = vector.load %arg1[%c140, %c0_312, %c0_313] : memref<257x8x128xf32, #tpu.memory_space<vmem>>, vector<1x8x128xf32>
    %586 = vector.shape_cast %585 : vector<1x8x128xf32> to vector<8x128xf32>
    %587 = arith.mulf %586, %273 : vector<8x128xf32>
    %588 = arith.addf %584, %587 : vector<8x128xf32>
    %c141 = arith.constant 141 : index
    %c0_314 = arith.constant 0 : index
    %c0_315 = arith.constant 0 : index
    %589 = vector.load %arg1[%c141, %c0_314, %c0_315] : memref<257x8x128xf32, #tpu.memory_space<vmem>>, vector<1x8x128xf32>
    %590 = vector.shape_cast %589 : vector<1x8x128xf32> to vector<8x128xf32>
    %591 = arith.mulf %590, %293 : vector<8x128xf32>
    %592 = arith.addf %588, %591 : vector<8x128xf32>
    %c142 = arith.constant 142 : index
    %c0_316 = arith.constant 0 : index
    %c0_317 = arith.constant 0 : index
    %593 = vector.load %arg1[%c142, %c0_316, %c0_317] : memref<257x8x128xf32, #tpu.memory_space<vmem>>, vector<1x8x128xf32>
    %594 = vector.shape_cast %593 : vector<1x8x128xf32> to vector<8x128xf32>
    %595 = arith.mulf %594, %313 : vector<8x128xf32>
    %596 = arith.addf %592, %595 : vector<8x128xf32>
    %c143 = arith.constant 143 : index
    %c0_318 = arith.constant 0 : index
    %c0_319 = arith.constant 0 : index
    %597 = vector.load %arg1[%c143, %c0_318, %c0_319] : memref<257x8x128xf32, #tpu.memory_space<vmem>>, vector<1x8x128xf32>
    %598 = vector.shape_cast %597 : vector<1x8x128xf32> to vector<8x128xf32>
    %599 = arith.mulf %598, %333 : vector<8x128xf32>
    %600 = arith.addf %596, %599 : vector<8x128xf32>
    %c211 = arith.constant 211 : index
    %c0_320 = arith.constant 0 : index
    %c0_321 = arith.constant 0 : index
    %601 = vector.load %arg1[%c211, %c0_320, %c0_321] : memref<257x8x128xf32, #tpu.memory_space<vmem>>, vector<1x8x128xf32>
    %602 = vector.shape_cast %601 : vector<1x8x128xf32> to vector<8x128xf32>
    %603 = arith.addf %600, %602 : vector<8x128xf32>
    %cst_322 = arith.constant 0.000000e+00 : f32
    %604 = vector.broadcast %cst_322 : f32 to vector<8x128xf32>
    %605 = arith.maximumf %603, %604 : vector<8x128xf32>
    %c144 = arith.constant 144 : index
    %c0_323 = arith.constant 0 : index
    %c0_324 = arith.constant 0 : index
    %606 = vector.load %arg1[%c144, %c0_323, %c0_324] : memref<257x8x128xf32, #tpu.memory_space<vmem>>, vector<1x8x128xf32>
    %607 = vector.shape_cast %606 : vector<1x8x128xf32> to vector<8x128xf32>
    %608 = arith.mulf %607, %33 : vector<8x128xf32>
    %c145 = arith.constant 145 : index
    %c0_325 = arith.constant 0 : index
    %c0_326 = arith.constant 0 : index
    %609 = vector.load %arg1[%c145, %c0_325, %c0_326] : memref<257x8x128xf32, #tpu.memory_space<vmem>>, vector<1x8x128xf32>
    %610 = vector.shape_cast %609 : vector<1x8x128xf32> to vector<8x128xf32>
    %611 = arith.mulf %610, %53 : vector<8x128xf32>
    %612 = arith.addf %608, %611 : vector<8x128xf32>
    %c146 = arith.constant 146 : index
    %c0_327 = arith.constant 0 : index
    %c0_328 = arith.constant 0 : index
    %613 = vector.load %arg1[%c146, %c0_327, %c0_328] : memref<257x8x128xf32, #tpu.memory_space<vmem>>, vector<1x8x128xf32>
    %614 = vector.shape_cast %613 : vector<1x8x128xf32> to vector<8x128xf32>
    %615 = arith.mulf %614, %73 : vector<8x128xf32>
    %616 = arith.addf %612, %615 : vector<8x128xf32>
    %c147 = arith.constant 147 : index
    %c0_329 = arith.constant 0 : index
    %c0_330 = arith.constant 0 : index
    %617 = vector.load %arg1[%c147, %c0_329, %c0_330] : memref<257x8x128xf32, #tpu.memory_space<vmem>>, vector<1x8x128xf32>
    %618 = vector.shape_cast %617 : vector<1x8x128xf32> to vector<8x128xf32>
    %619 = arith.mulf %618, %93 : vector<8x128xf32>
    %620 = arith.addf %616, %619 : vector<8x128xf32>
    %c148 = arith.constant 148 : index
    %c0_331 = arith.constant 0 : index
    %c0_332 = arith.constant 0 : index
    %621 = vector.load %arg1[%c148, %c0_331, %c0_332] : memref<257x8x128xf32, #tpu.memory_space<vmem>>, vector<1x8x128xf32>
    %622 = vector.shape_cast %621 : vector<1x8x128xf32> to vector<8x128xf32>
    %623 = arith.mulf %622, %113 : vector<8x128xf32>
    %624 = arith.addf %620, %623 : vector<8x128xf32>
    %c149 = arith.constant 149 : index
    %c0_333 = arith.constant 0 : index
    %c0_334 = arith.constant 0 : index
    %625 = vector.load %arg1[%c149, %c0_333, %c0_334] : memref<257x8x128xf32, #tpu.memory_space<vmem>>, vector<1x8x128xf32>
    %626 = vector.shape_cast %625 : vector<1x8x128xf32> to vector<8x128xf32>
    %627 = arith.mulf %626, %133 : vector<8x128xf32>
    %628 = arith.addf %624, %627 : vector<8x128xf32>
    %c150 = arith.constant 150 : index
    %c0_335 = arith.constant 0 : index
    %c0_336 = arith.constant 0 : index
    %629 = vector.load %arg1[%c150, %c0_335, %c0_336] : memref<257x8x128xf32, #tpu.memory_space<vmem>>, vector<1x8x128xf32>
    %630 = vector.shape_cast %629 : vector<1x8x128xf32> to vector<8x128xf32>
    %631 = arith.mulf %630, %153 : vector<8x128xf32>
    %632 = arith.addf %628, %631 : vector<8x128xf32>
    %c151 = arith.constant 151 : index
    %c0_337 = arith.constant 0 : index
    %c0_338 = arith.constant 0 : index
    %633 = vector.load %arg1[%c151, %c0_337, %c0_338] : memref<257x8x128xf32, #tpu.memory_space<vmem>>, vector<1x8x128xf32>
    %634 = vector.shape_cast %633 : vector<1x8x128xf32> to vector<8x128xf32>
    %635 = arith.mulf %634, %173 : vector<8x128xf32>
    %636 = arith.addf %632, %635 : vector<8x128xf32>
    %c152 = arith.constant 152 : index
    %c0_339 = arith.constant 0 : index
    %c0_340 = arith.constant 0 : index
    %637 = vector.load %arg1[%c152, %c0_339, %c0_340] : memref<257x8x128xf32, #tpu.memory_space<vmem>>, vector<1x8x128xf32>
    %638 = vector.shape_cast %637 : vector<1x8x128xf32> to vector<8x128xf32>
    %639 = arith.mulf %638, %193 : vector<8x128xf32>
    %640 = arith.addf %636, %639 : vector<8x128xf32>
    %c153 = arith.constant 153 : index
    %c0_341 = arith.constant 0 : index
    %c0_342 = arith.constant 0 : index
    %641 = vector.load %arg1[%c153, %c0_341, %c0_342] : memref<257x8x128xf32, #tpu.memory_space<vmem>>, vector<1x8x128xf32>
    %642 = vector.shape_cast %641 : vector<1x8x128xf32> to vector<8x128xf32>
    %643 = arith.mulf %642, %213 : vector<8x128xf32>
    %644 = arith.addf %640, %643 : vector<8x128xf32>
    %c154 = arith.constant 154 : index
    %c0_343 = arith.constant 0 : index
    %c0_344 = arith.constant 0 : index
    %645 = vector.load %arg1[%c154, %c0_343, %c0_344] : memref<257x8x128xf32, #tpu.memory_space<vmem>>, vector<1x8x128xf32>
    %646 = vector.shape_cast %645 : vector<1x8x128xf32> to vector<8x128xf32>
    %647 = arith.mulf %646, %233 : vector<8x128xf32>
    %648 = arith.addf %644, %647 : vector<8x128xf32>
    %c155 = arith.constant 155 : index
    %c0_345 = arith.constant 0 : index
    %c0_346 = arith.constant 0 : index
    %649 = vector.load %arg1[%c155, %c0_345, %c0_346] : memref<257x8x128xf32, #tpu.memory_space<vmem>>, vector<1x8x128xf32>
    %650 = vector.shape_cast %649 : vector<1x8x128xf32> to vector<8x128xf32>
    %651 = arith.mulf %650, %253 : vector<8x128xf32>
    %652 = arith.addf %648, %651 : vector<8x128xf32>
    %c156 = arith.constant 156 : index
    %c0_347 = arith.constant 0 : index
    %c0_348 = arith.constant 0 : index
    %653 = vector.load %arg1[%c156, %c0_347, %c0_348] : memref<257x8x128xf32, #tpu.memory_space<vmem>>, vector<1x8x128xf32>
    %654 = vector.shape_cast %653 : vector<1x8x128xf32> to vector<8x128xf32>
    %655 = arith.mulf %654, %273 : vector<8x128xf32>
    %656 = arith.addf %652, %655 : vector<8x128xf32>
    %c157 = arith.constant 157 : index
    %c0_349 = arith.constant 0 : index
    %c0_350 = arith.constant 0 : index
    %657 = vector.load %arg1[%c157, %c0_349, %c0_350] : memref<257x8x128xf32, #tpu.memory_space<vmem>>, vector<1x8x128xf32>
    %658 = vector.shape_cast %657 : vector<1x8x128xf32> to vector<8x128xf32>
    %659 = arith.mulf %658, %293 : vector<8x128xf32>
    %660 = arith.addf %656, %659 : vector<8x128xf32>
    %c158 = arith.constant 158 : index
    %c0_351 = arith.constant 0 : index
    %c0_352 = arith.constant 0 : index
    %661 = vector.load %arg1[%c158, %c0_351, %c0_352] : memref<257x8x128xf32, #tpu.memory_space<vmem>>, vector<1x8x128xf32>
    %662 = vector.shape_cast %661 : vector<1x8x128xf32> to vector<8x128xf32>
    %663 = arith.mulf %662, %313 : vector<8x128xf32>
    %664 = arith.addf %660, %663 : vector<8x128xf32>
    %c159 = arith.constant 159 : index
    %c0_353 = arith.constant 0 : index
    %c0_354 = arith.constant 0 : index
    %665 = vector.load %arg1[%c159, %c0_353, %c0_354] : memref<257x8x128xf32, #tpu.memory_space<vmem>>, vector<1x8x128xf32>
    %666 = vector.shape_cast %665 : vector<1x8x128xf32> to vector<8x128xf32>
    %667 = arith.mulf %666, %333 : vector<8x128xf32>
    %668 = arith.addf %664, %667 : vector<8x128xf32>
    %c212 = arith.constant 212 : index
    %c0_355 = arith.constant 0 : index
    %c0_356 = arith.constant 0 : index
    %669 = vector.load %arg1[%c212, %c0_355, %c0_356] : memref<257x8x128xf32, #tpu.memory_space<vmem>>, vector<1x8x128xf32>
    %670 = vector.shape_cast %669 : vector<1x8x128xf32> to vector<8x128xf32>
    %671 = arith.addf %668, %670 : vector<8x128xf32>
    %cst_357 = arith.constant 0.000000e+00 : f32
    %672 = vector.broadcast %cst_357 : f32 to vector<8x128xf32>
    %673 = arith.maximumf %671, %672 : vector<8x128xf32>
    %c160 = arith.constant 160 : index
    %c0_358 = arith.constant 0 : index
    %c0_359 = arith.constant 0 : index
    %674 = vector.load %arg1[%c160, %c0_358, %c0_359] : memref<257x8x128xf32, #tpu.memory_space<vmem>>, vector<1x8x128xf32>
    %675 = vector.shape_cast %674 : vector<1x8x128xf32> to vector<8x128xf32>
    %676 = arith.mulf %675, %33 : vector<8x128xf32>
    %c161 = arith.constant 161 : index
    %c0_360 = arith.constant 0 : index
    %c0_361 = arith.constant 0 : index
    %677 = vector.load %arg1[%c161, %c0_360, %c0_361] : memref<257x8x128xf32, #tpu.memory_space<vmem>>, vector<1x8x128xf32>
    %678 = vector.shape_cast %677 : vector<1x8x128xf32> to vector<8x128xf32>
    %679 = arith.mulf %678, %53 : vector<8x128xf32>
    %680 = arith.addf %676, %679 : vector<8x128xf32>
    %c162 = arith.constant 162 : index
    %c0_362 = arith.constant 0 : index
    %c0_363 = arith.constant 0 : index
    %681 = vector.load %arg1[%c162, %c0_362, %c0_363] : memref<257x8x128xf32, #tpu.memory_space<vmem>>, vector<1x8x128xf32>
    %682 = vector.shape_cast %681 : vector<1x8x128xf32> to vector<8x128xf32>
    %683 = arith.mulf %682, %73 : vector<8x128xf32>
    %684 = arith.addf %680, %683 : vector<8x128xf32>
    %c163 = arith.constant 163 : index
    %c0_364 = arith.constant 0 : index
    %c0_365 = arith.constant 0 : index
    %685 = vector.load %arg1[%c163, %c0_364, %c0_365] : memref<257x8x128xf32, #tpu.memory_space<vmem>>, vector<1x8x128xf32>
    %686 = vector.shape_cast %685 : vector<1x8x128xf32> to vector<8x128xf32>
    %687 = arith.mulf %686, %93 : vector<8x128xf32>
    %688 = arith.addf %684, %687 : vector<8x128xf32>
    %c164 = arith.constant 164 : index
    %c0_366 = arith.constant 0 : index
    %c0_367 = arith.constant 0 : index
    %689 = vector.load %arg1[%c164, %c0_366, %c0_367] : memref<257x8x128xf32, #tpu.memory_space<vmem>>, vector<1x8x128xf32>
    %690 = vector.shape_cast %689 : vector<1x8x128xf32> to vector<8x128xf32>
    %691 = arith.mulf %690, %113 : vector<8x128xf32>
    %692 = arith.addf %688, %691 : vector<8x128xf32>
    %c165 = arith.constant 165 : index
    %c0_368 = arith.constant 0 : index
    %c0_369 = arith.constant 0 : index
    %693 = vector.load %arg1[%c165, %c0_368, %c0_369] : memref<257x8x128xf32, #tpu.memory_space<vmem>>, vector<1x8x128xf32>
    %694 = vector.shape_cast %693 : vector<1x8x128xf32> to vector<8x128xf32>
    %695 = arith.mulf %694, %133 : vector<8x128xf32>
    %696 = arith.addf %692, %695 : vector<8x128xf32>
    %c166 = arith.constant 166 : index
    %c0_370 = arith.constant 0 : index
    %c0_371 = arith.constant 0 : index
    %697 = vector.load %arg1[%c166, %c0_370, %c0_371] : memref<257x8x128xf32, #tpu.memory_space<vmem>>, vector<1x8x128xf32>
    %698 = vector.shape_cast %697 : vector<1x8x128xf32> to vector<8x128xf32>
    %699 = arith.mulf %698, %153 : vector<8x128xf32>
    %700 = arith.addf %696, %699 : vector<8x128xf32>
    %c167 = arith.constant 167 : index
    %c0_372 = arith.constant 0 : index
    %c0_373 = arith.constant 0 : index
    %701 = vector.load %arg1[%c167, %c0_372, %c0_373] : memref<257x8x128xf32, #tpu.memory_space<vmem>>, vector<1x8x128xf32>
    %702 = vector.shape_cast %701 : vector<1x8x128xf32> to vector<8x128xf32>
    %703 = arith.mulf %702, %173 : vector<8x128xf32>
    %704 = arith.addf %700, %703 : vector<8x128xf32>
    %c168 = arith.constant 168 : index
    %c0_374 = arith.constant 0 : index
    %c0_375 = arith.constant 0 : index
    %705 = vector.load %arg1[%c168, %c0_374, %c0_375] : memref<257x8x128xf32, #tpu.memory_space<vmem>>, vector<1x8x128xf32>
    %706 = vector.shape_cast %705 : vector<1x8x128xf32> to vector<8x128xf32>
    %707 = arith.mulf %706, %193 : vector<8x128xf32>
    %708 = arith.addf %704, %707 : vector<8x128xf32>
    %c169 = arith.constant 169 : index
    %c0_376 = arith.constant 0 : index
    %c0_377 = arith.constant 0 : index
    %709 = vector.load %arg1[%c169, %c0_376, %c0_377] : memref<257x8x128xf32, #tpu.memory_space<vmem>>, vector<1x8x128xf32>
    %710 = vector.shape_cast %709 : vector<1x8x128xf32> to vector<8x128xf32>
    %711 = arith.mulf %710, %213 : vector<8x128xf32>
    %712 = arith.addf %708, %711 : vector<8x128xf32>
    %c170 = arith.constant 170 : index
    %c0_378 = arith.constant 0 : index
    %c0_379 = arith.constant 0 : index
    %713 = vector.load %arg1[%c170, %c0_378, %c0_379] : memref<257x8x128xf32, #tpu.memory_space<vmem>>, vector<1x8x128xf32>
    %714 = vector.shape_cast %713 : vector<1x8x128xf32> to vector<8x128xf32>
    %715 = arith.mulf %714, %233 : vector<8x128xf32>
    %716 = arith.addf %712, %715 : vector<8x128xf32>
    %c171 = arith.constant 171 : index
    %c0_380 = arith.constant 0 : index
    %c0_381 = arith.constant 0 : index
    %717 = vector.load %arg1[%c171, %c0_380, %c0_381] : memref<257x8x128xf32, #tpu.memory_space<vmem>>, vector<1x8x128xf32>
    %718 = vector.shape_cast %717 : vector<1x8x128xf32> to vector<8x128xf32>
    %719 = arith.mulf %718, %253 : vector<8x128xf32>
    %720 = arith.addf %716, %719 : vector<8x128xf32>
    %c172 = arith.constant 172 : index
    %c0_382 = arith.constant 0 : index
    %c0_383 = arith.constant 0 : index
    %721 = vector.load %arg1[%c172, %c0_382, %c0_383] : memref<257x8x128xf32, #tpu.memory_space<vmem>>, vector<1x8x128xf32>
    %722 = vector.shape_cast %721 : vector<1x8x128xf32> to vector<8x128xf32>
    %723 = arith.mulf %722, %273 : vector<8x128xf32>
    %724 = arith.addf %720, %723 : vector<8x128xf32>
    %c173 = arith.constant 173 : index
    %c0_384 = arith.constant 0 : index
    %c0_385 = arith.constant 0 : index
    %725 = vector.load %arg1[%c173, %c0_384, %c0_385] : memref<257x8x128xf32, #tpu.memory_space<vmem>>, vector<1x8x128xf32>
    %726 = vector.shape_cast %725 : vector<1x8x128xf32> to vector<8x128xf32>
    %727 = arith.mulf %726, %293 : vector<8x128xf32>
    %728 = arith.addf %724, %727 : vector<8x128xf32>
    %c174 = arith.constant 174 : index
    %c0_386 = arith.constant 0 : index
    %c0_387 = arith.constant 0 : index
    %729 = vector.load %arg1[%c174, %c0_386, %c0_387] : memref<257x8x128xf32, #tpu.memory_space<vmem>>, vector<1x8x128xf32>
    %730 = vector.shape_cast %729 : vector<1x8x128xf32> to vector<8x128xf32>
    %731 = arith.mulf %730, %313 : vector<8x128xf32>
    %732 = arith.addf %728, %731 : vector<8x128xf32>
    %c175 = arith.constant 175 : index
    %c0_388 = arith.constant 0 : index
    %c0_389 = arith.constant 0 : index
    %733 = vector.load %arg1[%c175, %c0_388, %c0_389] : memref<257x8x128xf32, #tpu.memory_space<vmem>>, vector<1x8x128xf32>
    %734 = vector.shape_cast %733 : vector<1x8x128xf32> to vector<8x128xf32>
    %735 = arith.mulf %734, %333 : vector<8x128xf32>
    %736 = arith.addf %732, %735 : vector<8x128xf32>
    %c213 = arith.constant 213 : index
    %c0_390 = arith.constant 0 : index
    %c0_391 = arith.constant 0 : index
    %737 = vector.load %arg1[%c213, %c0_390, %c0_391] : memref<257x8x128xf32, #tpu.memory_space<vmem>>, vector<1x8x128xf32>
    %738 = vector.shape_cast %737 : vector<1x8x128xf32> to vector<8x128xf32>
    %739 = arith.addf %736, %738 : vector<8x128xf32>
    %cst_392 = arith.constant 0.000000e+00 : f32
    %740 = vector.broadcast %cst_392 : f32 to vector<8x128xf32>
    %741 = arith.maximumf %739, %740 : vector<8x128xf32>
    %c176 = arith.constant 176 : index
    %c0_393 = arith.constant 0 : index
    %c0_394 = arith.constant 0 : index
    %742 = vector.load %arg1[%c176, %c0_393, %c0_394] : memref<257x8x128xf32, #tpu.memory_space<vmem>>, vector<1x8x128xf32>
    %743 = vector.shape_cast %742 : vector<1x8x128xf32> to vector<8x128xf32>
    %744 = arith.mulf %743, %33 : vector<8x128xf32>
    %c177 = arith.constant 177 : index
    %c0_395 = arith.constant 0 : index
    %c0_396 = arith.constant 0 : index
    %745 = vector.load %arg1[%c177, %c0_395, %c0_396] : memref<257x8x128xf32, #tpu.memory_space<vmem>>, vector<1x8x128xf32>
    %746 = vector.shape_cast %745 : vector<1x8x128xf32> to vector<8x128xf32>
    %747 = arith.mulf %746, %53 : vector<8x128xf32>
    %748 = arith.addf %744, %747 : vector<8x128xf32>
    %c178 = arith.constant 178 : index
    %c0_397 = arith.constant 0 : index
    %c0_398 = arith.constant 0 : index
    %749 = vector.load %arg1[%c178, %c0_397, %c0_398] : memref<257x8x128xf32, #tpu.memory_space<vmem>>, vector<1x8x128xf32>
    %750 = vector.shape_cast %749 : vector<1x8x128xf32> to vector<8x128xf32>
    %751 = arith.mulf %750, %73 : vector<8x128xf32>
    %752 = arith.addf %748, %751 : vector<8x128xf32>
    %c179 = arith.constant 179 : index
    %c0_399 = arith.constant 0 : index
    %c0_400 = arith.constant 0 : index
    %753 = vector.load %arg1[%c179, %c0_399, %c0_400] : memref<257x8x128xf32, #tpu.memory_space<vmem>>, vector<1x8x128xf32>
    %754 = vector.shape_cast %753 : vector<1x8x128xf32> to vector<8x128xf32>
    %755 = arith.mulf %754, %93 : vector<8x128xf32>
    %756 = arith.addf %752, %755 : vector<8x128xf32>
    %c180 = arith.constant 180 : index
    %c0_401 = arith.constant 0 : index
    %c0_402 = arith.constant 0 : index
    %757 = vector.load %arg1[%c180, %c0_401, %c0_402] : memref<257x8x128xf32, #tpu.memory_space<vmem>>, vector<1x8x128xf32>
    %758 = vector.shape_cast %757 : vector<1x8x128xf32> to vector<8x128xf32>
    %759 = arith.mulf %758, %113 : vector<8x128xf32>
    %760 = arith.addf %756, %759 : vector<8x128xf32>
    %c181 = arith.constant 181 : index
    %c0_403 = arith.constant 0 : index
    %c0_404 = arith.constant 0 : index
    %761 = vector.load %arg1[%c181, %c0_403, %c0_404] : memref<257x8x128xf32, #tpu.memory_space<vmem>>, vector<1x8x128xf32>
    %762 = vector.shape_cast %761 : vector<1x8x128xf32> to vector<8x128xf32>
    %763 = arith.mulf %762, %133 : vector<8x128xf32>
    %764 = arith.addf %760, %763 : vector<8x128xf32>
    %c182 = arith.constant 182 : index
    %c0_405 = arith.constant 0 : index
    %c0_406 = arith.constant 0 : index
    %765 = vector.load %arg1[%c182, %c0_405, %c0_406] : memref<257x8x128xf32, #tpu.memory_space<vmem>>, vector<1x8x128xf32>
    %766 = vector.shape_cast %765 : vector<1x8x128xf32> to vector<8x128xf32>
    %767 = arith.mulf %766, %153 : vector<8x128xf32>
    %768 = arith.addf %764, %767 : vector<8x128xf32>
    %c183 = arith.constant 183 : index
    %c0_407 = arith.constant 0 : index
    %c0_408 = arith.constant 0 : index
    %769 = vector.load %arg1[%c183, %c0_407, %c0_408] : memref<257x8x128xf32, #tpu.memory_space<vmem>>, vector<1x8x128xf32>
    %770 = vector.shape_cast %769 : vector<1x8x128xf32> to vector<8x128xf32>
    %771 = arith.mulf %770, %173 : vector<8x128xf32>
    %772 = arith.addf %768, %771 : vector<8x128xf32>
    %c184 = arith.constant 184 : index
    %c0_409 = arith.constant 0 : index
    %c0_410 = arith.constant 0 : index
    %773 = vector.load %arg1[%c184, %c0_409, %c0_410] : memref<257x8x128xf32, #tpu.memory_space<vmem>>, vector<1x8x128xf32>
    %774 = vector.shape_cast %773 : vector<1x8x128xf32> to vector<8x128xf32>
    %775 = arith.mulf %774, %193 : vector<8x128xf32>
    %776 = arith.addf %772, %775 : vector<8x128xf32>
    %c185 = arith.constant 185 : index
    %c0_411 = arith.constant 0 : index
    %c0_412 = arith.constant 0 : index
    %777 = vector.load %arg1[%c185, %c0_411, %c0_412] : memref<257x8x128xf32, #tpu.memory_space<vmem>>, vector<1x8x128xf32>
    %778 = vector.shape_cast %777 : vector<1x8x128xf32> to vector<8x128xf32>
    %779 = arith.mulf %778, %213 : vector<8x128xf32>
    %780 = arith.addf %776, %779 : vector<8x128xf32>
    %c186 = arith.constant 186 : index
    %c0_413 = arith.constant 0 : index
    %c0_414 = arith.constant 0 : index
    %781 = vector.load %arg1[%c186, %c0_413, %c0_414] : memref<257x8x128xf32, #tpu.memory_space<vmem>>, vector<1x8x128xf32>
    %782 = vector.shape_cast %781 : vector<1x8x128xf32> to vector<8x128xf32>
    %783 = arith.mulf %782, %233 : vector<8x128xf32>
    %784 = arith.addf %780, %783 : vector<8x128xf32>
    %c187 = arith.constant 187 : index
    %c0_415 = arith.constant 0 : index
    %c0_416 = arith.constant 0 : index
    %785 = vector.load %arg1[%c187, %c0_415, %c0_416] : memref<257x8x128xf32, #tpu.memory_space<vmem>>, vector<1x8x128xf32>
    %786 = vector.shape_cast %785 : vector<1x8x128xf32> to vector<8x128xf32>
    %787 = arith.mulf %786, %253 : vector<8x128xf32>
    %788 = arith.addf %784, %787 : vector<8x128xf32>
    %c188 = arith.constant 188 : index
    %c0_417 = arith.constant 0 : index
    %c0_418 = arith.constant 0 : index
    %789 = vector.load %arg1[%c188, %c0_417, %c0_418] : memref<257x8x128xf32, #tpu.memory_space<vmem>>, vector<1x8x128xf32>
    %790 = vector.shape_cast %789 : vector<1x8x128xf32> to vector<8x128xf32>
    %791 = arith.mulf %790, %273 : vector<8x128xf32>
    %792 = arith.addf %788, %791 : vector<8x128xf32>
    %c189 = arith.constant 189 : index
    %c0_419 = arith.constant 0 : index
    %c0_420 = arith.constant 0 : index
    %793 = vector.load %arg1[%c189, %c0_419, %c0_420] : memref<257x8x128xf32, #tpu.memory_space<vmem>>, vector<1x8x128xf32>
    %794 = vector.shape_cast %793 : vector<1x8x128xf32> to vector<8x128xf32>
    %795 = arith.mulf %794, %293 : vector<8x128xf32>
    %796 = arith.addf %792, %795 : vector<8x128xf32>
    %c190 = arith.constant 190 : index
    %c0_421 = arith.constant 0 : index
    %c0_422 = arith.constant 0 : index
    %797 = vector.load %arg1[%c190, %c0_421, %c0_422] : memref<257x8x128xf32, #tpu.memory_space<vmem>>, vector<1x8x128xf32>
    %798 = vector.shape_cast %797 : vector<1x8x128xf32> to vector<8x128xf32>
    %799 = arith.mulf %798, %313 : vector<8x128xf32>
    %800 = arith.addf %796, %799 : vector<8x128xf32>
    %c191 = arith.constant 191 : index
    %c0_423 = arith.constant 0 : index
    %c0_424 = arith.constant 0 : index
    %801 = vector.load %arg1[%c191, %c0_423, %c0_424] : memref<257x8x128xf32, #tpu.memory_space<vmem>>, vector<1x8x128xf32>
    %802 = vector.shape_cast %801 : vector<1x8x128xf32> to vector<8x128xf32>
    %803 = arith.mulf %802, %333 : vector<8x128xf32>
    %804 = arith.addf %800, %803 : vector<8x128xf32>
    %c214 = arith.constant 214 : index
    %c0_425 = arith.constant 0 : index
    %c0_426 = arith.constant 0 : index
    %805 = vector.load %arg1[%c214, %c0_425, %c0_426] : memref<257x8x128xf32, #tpu.memory_space<vmem>>, vector<1x8x128xf32>
    %806 = vector.shape_cast %805 : vector<1x8x128xf32> to vector<8x128xf32>
    %807 = arith.addf %804, %806 : vector<8x128xf32>
    %cst_427 = arith.constant 0.000000e+00 : f32
    %808 = vector.broadcast %cst_427 : f32 to vector<8x128xf32>
    %809 = arith.maximumf %807, %808 : vector<8x128xf32>
    %c192 = arith.constant 192 : index
    %c0_428 = arith.constant 0 : index
    %c0_429 = arith.constant 0 : index
    %810 = vector.load %arg1[%c192, %c0_428, %c0_429] : memref<257x8x128xf32, #tpu.memory_space<vmem>>, vector<1x8x128xf32>
    %811 = vector.shape_cast %810 : vector<1x8x128xf32> to vector<8x128xf32>
    %812 = arith.mulf %811, %33 : vector<8x128xf32>
    %c193 = arith.constant 193 : index
    %c0_430 = arith.constant 0 : index
    %c0_431 = arith.constant 0 : index
    %813 = vector.load %arg1[%c193, %c0_430, %c0_431] : memref<257x8x128xf32, #tpu.memory_space<vmem>>, vector<1x8x128xf32>
    %814 = vector.shape_cast %813 : vector<1x8x128xf32> to vector<8x128xf32>
    %815 = arith.mulf %814, %53 : vector<8x128xf32>
    %816 = arith.addf %812, %815 : vector<8x128xf32>
    %c194 = arith.constant 194 : index
    %c0_432 = arith.constant 0 : index
    %c0_433 = arith.constant 0 : index
    %817 = vector.load %arg1[%c194, %c0_432, %c0_433] : memref<257x8x128xf32, #tpu.memory_space<vmem>>, vector<1x8x128xf32>
    %818 = vector.shape_cast %817 : vector<1x8x128xf32> to vector<8x128xf32>
    %819 = arith.mulf %818, %73 : vector<8x128xf32>
    %820 = arith.addf %816, %819 : vector<8x128xf32>
    %c195 = arith.constant 195 : index
    %c0_434 = arith.constant 0 : index
    %c0_435 = arith.constant 0 : index
    %821 = vector.load %arg1[%c195, %c0_434, %c0_435] : memref<257x8x128xf32, #tpu.memory_space<vmem>>, vector<1x8x128xf32>
    %822 = vector.shape_cast %821 : vector<1x8x128xf32> to vector<8x128xf32>
    %823 = arith.mulf %822, %93 : vector<8x128xf32>
    %824 = arith.addf %820, %823 : vector<8x128xf32>
    %c196 = arith.constant 196 : index
    %c0_436 = arith.constant 0 : index
    %c0_437 = arith.constant 0 : index
    %825 = vector.load %arg1[%c196, %c0_436, %c0_437] : memref<257x8x128xf32, #tpu.memory_space<vmem>>, vector<1x8x128xf32>
    %826 = vector.shape_cast %825 : vector<1x8x128xf32> to vector<8x128xf32>
    %827 = arith.mulf %826, %113 : vector<8x128xf32>
    %828 = arith.addf %824, %827 : vector<8x128xf32>
    %c197 = arith.constant 197 : index
    %c0_438 = arith.constant 0 : index
    %c0_439 = arith.constant 0 : index
    %829 = vector.load %arg1[%c197, %c0_438, %c0_439] : memref<257x8x128xf32, #tpu.memory_space<vmem>>, vector<1x8x128xf32>
    %830 = vector.shape_cast %829 : vector<1x8x128xf32> to vector<8x128xf32>
    %831 = arith.mulf %830, %133 : vector<8x128xf32>
    %832 = arith.addf %828, %831 : vector<8x128xf32>
    %c198 = arith.constant 198 : index
    %c0_440 = arith.constant 0 : index
    %c0_441 = arith.constant 0 : index
    %833 = vector.load %arg1[%c198, %c0_440, %c0_441] : memref<257x8x128xf32, #tpu.memory_space<vmem>>, vector<1x8x128xf32>
    %834 = vector.shape_cast %833 : vector<1x8x128xf32> to vector<8x128xf32>
    %835 = arith.mulf %834, %153 : vector<8x128xf32>
    %836 = arith.addf %832, %835 : vector<8x128xf32>
    %c199 = arith.constant 199 : index
    %c0_442 = arith.constant 0 : index
    %c0_443 = arith.constant 0 : index
    %837 = vector.load %arg1[%c199, %c0_442, %c0_443] : memref<257x8x128xf32, #tpu.memory_space<vmem>>, vector<1x8x128xf32>
    %838 = vector.shape_cast %837 : vector<1x8x128xf32> to vector<8x128xf32>
    %839 = arith.mulf %838, %173 : vector<8x128xf32>
    %840 = arith.addf %836, %839 : vector<8x128xf32>
    %c200 = arith.constant 200 : index
    %c0_444 = arith.constant 0 : index
    %c0_445 = arith.constant 0 : index
    %841 = vector.load %arg1[%c200, %c0_444, %c0_445] : memref<257x8x128xf32, #tpu.memory_space<vmem>>, vector<1x8x128xf32>
    %842 = vector.shape_cast %841 : vector<1x8x128xf32> to vector<8x128xf32>
    %843 = arith.mulf %842, %193 : vector<8x128xf32>
    %844 = arith.addf %840, %843 : vector<8x128xf32>
    %c201 = arith.constant 201 : index
    %c0_446 = arith.constant 0 : index
    %c0_447 = arith.constant 0 : index
    %845 = vector.load %arg1[%c201, %c0_446, %c0_447] : memref<257x8x128xf32, #tpu.memory_space<vmem>>, vector<1x8x128xf32>
    %846 = vector.shape_cast %845 : vector<1x8x128xf32> to vector<8x128xf32>
    %847 = arith.mulf %846, %213 : vector<8x128xf32>
    %848 = arith.addf %844, %847 : vector<8x128xf32>
    %c202 = arith.constant 202 : index
    %c0_448 = arith.constant 0 : index
    %c0_449 = arith.constant 0 : index
    %849 = vector.load %arg1[%c202, %c0_448, %c0_449] : memref<257x8x128xf32, #tpu.memory_space<vmem>>, vector<1x8x128xf32>
    %850 = vector.shape_cast %849 : vector<1x8x128xf32> to vector<8x128xf32>
    %851 = arith.mulf %850, %233 : vector<8x128xf32>
    %852 = arith.addf %848, %851 : vector<8x128xf32>
    %c203 = arith.constant 203 : index
    %c0_450 = arith.constant 0 : index
    %c0_451 = arith.constant 0 : index
    %853 = vector.load %arg1[%c203, %c0_450, %c0_451] : memref<257x8x128xf32, #tpu.memory_space<vmem>>, vector<1x8x128xf32>
    %854 = vector.shape_cast %853 : vector<1x8x128xf32> to vector<8x128xf32>
    %855 = arith.mulf %854, %253 : vector<8x128xf32>
    %856 = arith.addf %852, %855 : vector<8x128xf32>
    %c204 = arith.constant 204 : index
    %c0_452 = arith.constant 0 : index
    %c0_453 = arith.constant 0 : index
    %857 = vector.load %arg1[%c204, %c0_452, %c0_453] : memref<257x8x128xf32, #tpu.memory_space<vmem>>, vector<1x8x128xf32>
    %858 = vector.shape_cast %857 : vector<1x8x128xf32> to vector<8x128xf32>
    %859 = arith.mulf %858, %273 : vector<8x128xf32>
    %860 = arith.addf %856, %859 : vector<8x128xf32>
    %c205 = arith.constant 205 : index
    %c0_454 = arith.constant 0 : index
    %c0_455 = arith.constant 0 : index
    %861 = vector.load %arg1[%c205, %c0_454, %c0_455] : memref<257x8x128xf32, #tpu.memory_space<vmem>>, vector<1x8x128xf32>
    %862 = vector.shape_cast %861 : vector<1x8x128xf32> to vector<8x128xf32>
    %863 = arith.mulf %862, %293 : vector<8x128xf32>
    %864 = arith.addf %860, %863 : vector<8x128xf32>
    %c206 = arith.constant 206 : index
    %c0_456 = arith.constant 0 : index
    %c0_457 = arith.constant 0 : index
    %865 = vector.load %arg1[%c206, %c0_456, %c0_457] : memref<257x8x128xf32, #tpu.memory_space<vmem>>, vector<1x8x128xf32>
    %866 = vector.shape_cast %865 : vector<1x8x128xf32> to vector<8x128xf32>
    %867 = arith.mulf %866, %313 : vector<8x128xf32>
    %868 = arith.addf %864, %867 : vector<8x128xf32>
    %c207 = arith.constant 207 : index
    %c0_458 = arith.constant 0 : index
    %c0_459 = arith.constant 0 : index
    %869 = vector.load %arg1[%c207, %c0_458, %c0_459] : memref<257x8x128xf32, #tpu.memory_space<vmem>>, vector<1x8x128xf32>
    %870 = vector.shape_cast %869 : vector<1x8x128xf32> to vector<8x128xf32>
    %871 = arith.mulf %870, %333 : vector<8x128xf32>
    %872 = arith.addf %868, %871 : vector<8x128xf32>
    %c215 = arith.constant 215 : index
    %c0_460 = arith.constant 0 : index
    %c0_461 = arith.constant 0 : index
    %873 = vector.load %arg1[%c215, %c0_460, %c0_461] : memref<257x8x128xf32, #tpu.memory_space<vmem>>, vector<1x8x128xf32>
    %874 = vector.shape_cast %873 : vector<1x8x128xf32> to vector<8x128xf32>
    %875 = arith.addf %872, %874 : vector<8x128xf32>
    %cst_462 = arith.constant 0.000000e+00 : f32
    %876 = vector.broadcast %cst_462 : f32 to vector<8x128xf32>
    %877 = arith.maximumf %875, %876 : vector<8x128xf32>
    %c216 = arith.constant 216 : index
    %c0_463 = arith.constant 0 : index
    %c0_464 = arith.constant 0 : index
    %878 = vector.load %arg1[%c216, %c0_463, %c0_464] : memref<257x8x128xf32, #tpu.memory_space<vmem>>, vector<1x8x128xf32>
    %879 = vector.shape_cast %878 : vector<1x8x128xf32> to vector<8x128xf32>
    %880 = arith.mulf %879, %401 : vector<8x128xf32>
    %c217 = arith.constant 217 : index
    %c0_465 = arith.constant 0 : index
    %c0_466 = arith.constant 0 : index
    %881 = vector.load %arg1[%c217, %c0_465, %c0_466] : memref<257x8x128xf32, #tpu.memory_space<vmem>>, vector<1x8x128xf32>
    %882 = vector.shape_cast %881 : vector<1x8x128xf32> to vector<8x128xf32>
    %883 = arith.mulf %882, %469 : vector<8x128xf32>
    %884 = arith.addf %880, %883 : vector<8x128xf32>
    %c218 = arith.constant 218 : index
    %c0_467 = arith.constant 0 : index
    %c0_468 = arith.constant 0 : index
    %885 = vector.load %arg1[%c218, %c0_467, %c0_468] : memref<257x8x128xf32, #tpu.memory_space<vmem>>, vector<1x8x128xf32>
    %886 = vector.shape_cast %885 : vector<1x8x128xf32> to vector<8x128xf32>
    %887 = arith.mulf %886, %537 : vector<8x128xf32>
    %888 = arith.addf %884, %887 : vector<8x128xf32>
    %c219 = arith.constant 219 : index
    %c0_469 = arith.constant 0 : index
    %c0_470 = arith.constant 0 : index
    %889 = vector.load %arg1[%c219, %c0_469, %c0_470] : memref<257x8x128xf32, #tpu.memory_space<vmem>>, vector<1x8x128xf32>
    %890 = vector.shape_cast %889 : vector<1x8x128xf32> to vector<8x128xf32>
    %891 = arith.mulf %890, %605 : vector<8x128xf32>
    %892 = arith.addf %888, %891 : vector<8x128xf32>
    %c220 = arith.constant 220 : index
    %c0_471 = arith.constant 0 : index
    %c0_472 = arith.constant 0 : index
    %893 = vector.load %arg1[%c220, %c0_471, %c0_472] : memref<257x8x128xf32, #tpu.memory_space<vmem>>, vector<1x8x128xf32>
    %894 = vector.shape_cast %893 : vector<1x8x128xf32> to vector<8x128xf32>
    %895 = arith.mulf %894, %673 : vector<8x128xf32>
    %896 = arith.addf %892, %895 : vector<8x128xf32>
    %c221 = arith.constant 221 : index
    %c0_473 = arith.constant 0 : index
    %c0_474 = arith.constant 0 : index
    %897 = vector.load %arg1[%c221, %c0_473, %c0_474] : memref<257x8x128xf32, #tpu.memory_space<vmem>>, vector<1x8x128xf32>
    %898 = vector.shape_cast %897 : vector<1x8x128xf32> to vector<8x128xf32>
    %899 = arith.mulf %898, %741 : vector<8x128xf32>
    %900 = arith.addf %896, %899 : vector<8x128xf32>
    %c222 = arith.constant 222 : index
    %c0_475 = arith.constant 0 : index
    %c0_476 = arith.constant 0 : index
    %901 = vector.load %arg1[%c222, %c0_475, %c0_476] : memref<257x8x128xf32, #tpu.memory_space<vmem>>, vector<1x8x128xf32>
    %902 = vector.shape_cast %901 : vector<1x8x128xf32> to vector<8x128xf32>
    %903 = arith.mulf %902, %809 : vector<8x128xf32>
    %904 = arith.addf %900, %903 : vector<8x128xf32>
    %c223 = arith.constant 223 : index
    %c0_477 = arith.constant 0 : index
    %c0_478 = arith.constant 0 : index
    %905 = vector.load %arg1[%c223, %c0_477, %c0_478] : memref<257x8x128xf32, #tpu.memory_space<vmem>>, vector<1x8x128xf32>
    %906 = vector.shape_cast %905 : vector<1x8x128xf32> to vector<8x128xf32>
    %907 = arith.mulf %906, %877 : vector<8x128xf32>
    %908 = arith.addf %904, %907 : vector<8x128xf32>
    %c248 = arith.constant 248 : index
    %c0_479 = arith.constant 0 : index
    %c0_480 = arith.constant 0 : index
    %909 = vector.load %arg1[%c248, %c0_479, %c0_480] : memref<257x8x128xf32, #tpu.memory_space<vmem>>, vector<1x8x128xf32>
    %910 = vector.shape_cast %909 : vector<1x8x128xf32> to vector<8x128xf32>
    %911 = arith.addf %908, %910 : vector<8x128xf32>
    %cst_481 = arith.constant 0.000000e+00 : f32
    %912 = vector.broadcast %cst_481 : f32 to vector<8x128xf32>
    %913 = arith.maximumf %911, %912 : vector<8x128xf32>
    %c224 = arith.constant 224 : index
    %c0_482 = arith.constant 0 : index
    %c0_483 = arith.constant 0 : index
    %914 = vector.load %arg1[%c224, %c0_482, %c0_483] : memref<257x8x128xf32, #tpu.memory_space<vmem>>, vector<1x8x128xf32>
    %915 = vector.shape_cast %914 : vector<1x8x128xf32> to vector<8x128xf32>
    %916 = arith.mulf %915, %401 : vector<8x128xf32>
    %c225 = arith.constant 225 : index
    %c0_484 = arith.constant 0 : index
    %c0_485 = arith.constant 0 : index
    %917 = vector.load %arg1[%c225, %c0_484, %c0_485] : memref<257x8x128xf32, #tpu.memory_space<vmem>>, vector<1x8x128xf32>
    %918 = vector.shape_cast %917 : vector<1x8x128xf32> to vector<8x128xf32>
    %919 = arith.mulf %918, %469 : vector<8x128xf32>
    %920 = arith.addf %916, %919 : vector<8x128xf32>
    %c226 = arith.constant 226 : index
    %c0_486 = arith.constant 0 : index
    %c0_487 = arith.constant 0 : index
    %921 = vector.load %arg1[%c226, %c0_486, %c0_487] : memref<257x8x128xf32, #tpu.memory_space<vmem>>, vector<1x8x128xf32>
    %922 = vector.shape_cast %921 : vector<1x8x128xf32> to vector<8x128xf32>
    %923 = arith.mulf %922, %537 : vector<8x128xf32>
    %924 = arith.addf %920, %923 : vector<8x128xf32>
    %c227 = arith.constant 227 : index
    %c0_488 = arith.constant 0 : index
    %c0_489 = arith.constant 0 : index
    %925 = vector.load %arg1[%c227, %c0_488, %c0_489] : memref<257x8x128xf32, #tpu.memory_space<vmem>>, vector<1x8x128xf32>
    %926 = vector.shape_cast %925 : vector<1x8x128xf32> to vector<8x128xf32>
    %927 = arith.mulf %926, %605 : vector<8x128xf32>
    %928 = arith.addf %924, %927 : vector<8x128xf32>
    %c228 = arith.constant 228 : index
    %c0_490 = arith.constant 0 : index
    %c0_491 = arith.constant 0 : index
    %929 = vector.load %arg1[%c228, %c0_490, %c0_491] : memref<257x8x128xf32, #tpu.memory_space<vmem>>, vector<1x8x128xf32>
    %930 = vector.shape_cast %929 : vector<1x8x128xf32> to vector<8x128xf32>
    %931 = arith.mulf %930, %673 : vector<8x128xf32>
    %932 = arith.addf %928, %931 : vector<8x128xf32>
    %c229 = arith.constant 229 : index
    %c0_492 = arith.constant 0 : index
    %c0_493 = arith.constant 0 : index
    %933 = vector.load %arg1[%c229, %c0_492, %c0_493] : memref<257x8x128xf32, #tpu.memory_space<vmem>>, vector<1x8x128xf32>
    %934 = vector.shape_cast %933 : vector<1x8x128xf32> to vector<8x128xf32>
    %935 = arith.mulf %934, %741 : vector<8x128xf32>
    %936 = arith.addf %932, %935 : vector<8x128xf32>
    %c230 = arith.constant 230 : index
    %c0_494 = arith.constant 0 : index
    %c0_495 = arith.constant 0 : index
    %937 = vector.load %arg1[%c230, %c0_494, %c0_495] : memref<257x8x128xf32, #tpu.memory_space<vmem>>, vector<1x8x128xf32>
    %938 = vector.shape_cast %937 : vector<1x8x128xf32> to vector<8x128xf32>
    %939 = arith.mulf %938, %809 : vector<8x128xf32>
    %940 = arith.addf %936, %939 : vector<8x128xf32>
    %c231 = arith.constant 231 : index
    %c0_496 = arith.constant 0 : index
    %c0_497 = arith.constant 0 : index
    %941 = vector.load %arg1[%c231, %c0_496, %c0_497] : memref<257x8x128xf32, #tpu.memory_space<vmem>>, vector<1x8x128xf32>
    %942 = vector.shape_cast %941 : vector<1x8x128xf32> to vector<8x128xf32>
    %943 = arith.mulf %942, %877 : vector<8x128xf32>
    %944 = arith.addf %940, %943 : vector<8x128xf32>
    %c249 = arith.constant 249 : index
    %c0_498 = arith.constant 0 : index
    %c0_499 = arith.constant 0 : index
    %945 = vector.load %arg1[%c249, %c0_498, %c0_499] : memref<257x8x128xf32, #tpu.memory_space<vmem>>, vector<1x8x128xf32>
    %946 = vector.shape_cast %945 : vector<1x8x128xf32> to vector<8x128xf32>
    %947 = arith.addf %944, %946 : vector<8x128xf32>
    %cst_500 = arith.constant 0.000000e+00 : f32
    %948 = vector.broadcast %cst_500 : f32 to vector<8x128xf32>
    %949 = arith.maximumf %947, %948 : vector<8x128xf32>
    %c232 = arith.constant 232 : index
    %c0_501 = arith.constant 0 : index
    %c0_502 = arith.constant 0 : index
    %950 = vector.load %arg1[%c232, %c0_501, %c0_502] : memref<257x8x128xf32, #tpu.memory_space<vmem>>, vector<1x8x128xf32>
    %951 = vector.shape_cast %950 : vector<1x8x128xf32> to vector<8x128xf32>
    %952 = arith.mulf %951, %401 : vector<8x128xf32>
    %c233 = arith.constant 233 : index
    %c0_503 = arith.constant 0 : index
    %c0_504 = arith.constant 0 : index
    %953 = vector.load %arg1[%c233, %c0_503, %c0_504] : memref<257x8x128xf32, #tpu.memory_space<vmem>>, vector<1x8x128xf32>
    %954 = vector.shape_cast %953 : vector<1x8x128xf32> to vector<8x128xf32>
    %955 = arith.mulf %954, %469 : vector<8x128xf32>
    %956 = arith.addf %952, %955 : vector<8x128xf32>
    %c234 = arith.constant 234 : index
    %c0_505 = arith.constant 0 : index
    %c0_506 = arith.constant 0 : index
    %957 = vector.load %arg1[%c234, %c0_505, %c0_506] : memref<257x8x128xf32, #tpu.memory_space<vmem>>, vector<1x8x128xf32>
    %958 = vector.shape_cast %957 : vector<1x8x128xf32> to vector<8x128xf32>
    %959 = arith.mulf %958, %537 : vector<8x128xf32>
    %960 = arith.addf %956, %959 : vector<8x128xf32>
    %c235 = arith.constant 235 : index
    %c0_507 = arith.constant 0 : index
    %c0_508 = arith.constant 0 : index
    %961 = vector.load %arg1[%c235, %c0_507, %c0_508] : memref<257x8x128xf32, #tpu.memory_space<vmem>>, vector<1x8x128xf32>
    %962 = vector.shape_cast %961 : vector<1x8x128xf32> to vector<8x128xf32>
    %963 = arith.mulf %962, %605 : vector<8x128xf32>
    %964 = arith.addf %960, %963 : vector<8x128xf32>
    %c236 = arith.constant 236 : index
    %c0_509 = arith.constant 0 : index
    %c0_510 = arith.constant 0 : index
    %965 = vector.load %arg1[%c236, %c0_509, %c0_510] : memref<257x8x128xf32, #tpu.memory_space<vmem>>, vector<1x8x128xf32>
    %966 = vector.shape_cast %965 : vector<1x8x128xf32> to vector<8x128xf32>
    %967 = arith.mulf %966, %673 : vector<8x128xf32>
    %968 = arith.addf %964, %967 : vector<8x128xf32>
    %c237 = arith.constant 237 : index
    %c0_511 = arith.constant 0 : index
    %c0_512 = arith.constant 0 : index
    %969 = vector.load %arg1[%c237, %c0_511, %c0_512] : memref<257x8x128xf32, #tpu.memory_space<vmem>>, vector<1x8x128xf32>
    %970 = vector.shape_cast %969 : vector<1x8x128xf32> to vector<8x128xf32>
    %971 = arith.mulf %970, %741 : vector<8x128xf32>
    %972 = arith.addf %968, %971 : vector<8x128xf32>
    %c238 = arith.constant 238 : index
    %c0_513 = arith.constant 0 : index
    %c0_514 = arith.constant 0 : index
    %973 = vector.load %arg1[%c238, %c0_513, %c0_514] : memref<257x8x128xf32, #tpu.memory_space<vmem>>, vector<1x8x128xf32>
    %974 = vector.shape_cast %973 : vector<1x8x128xf32> to vector<8x128xf32>
    %975 = arith.mulf %974, %809 : vector<8x128xf32>
    %976 = arith.addf %972, %975 : vector<8x128xf32>
    %c239 = arith.constant 239 : index
    %c0_515 = arith.constant 0 : index
    %c0_516 = arith.constant 0 : index
    %977 = vector.load %arg1[%c239, %c0_515, %c0_516] : memref<257x8x128xf32, #tpu.memory_space<vmem>>, vector<1x8x128xf32>
    %978 = vector.shape_cast %977 : vector<1x8x128xf32> to vector<8x128xf32>
    %979 = arith.mulf %978, %877 : vector<8x128xf32>
    %980 = arith.addf %976, %979 : vector<8x128xf32>
    %c250 = arith.constant 250 : index
    %c0_517 = arith.constant 0 : index
    %c0_518 = arith.constant 0 : index
    %981 = vector.load %arg1[%c250, %c0_517, %c0_518] : memref<257x8x128xf32, #tpu.memory_space<vmem>>, vector<1x8x128xf32>
    %982 = vector.shape_cast %981 : vector<1x8x128xf32> to vector<8x128xf32>
    %983 = arith.addf %980, %982 : vector<8x128xf32>
    %cst_519 = arith.constant 0.000000e+00 : f32
    %984 = vector.broadcast %cst_519 : f32 to vector<8x128xf32>
    %985 = arith.maximumf %983, %984 : vector<8x128xf32>
    %c240 = arith.constant 240 : index
    %c0_520 = arith.constant 0 : index
    %c0_521 = arith.constant 0 : index
    %986 = vector.load %arg1[%c240, %c0_520, %c0_521] : memref<257x8x128xf32, #tpu.memory_space<vmem>>, vector<1x8x128xf32>
    %987 = vector.shape_cast %986 : vector<1x8x128xf32> to vector<8x128xf32>
    %988 = arith.mulf %987, %401 : vector<8x128xf32>
    %c241 = arith.constant 241 : index
    %c0_522 = arith.constant 0 : index
    %c0_523 = arith.constant 0 : index
    %989 = vector.load %arg1[%c241, %c0_522, %c0_523] : memref<257x8x128xf32, #tpu.memory_space<vmem>>, vector<1x8x128xf32>
    %990 = vector.shape_cast %989 : vector<1x8x128xf32> to vector<8x128xf32>
    %991 = arith.mulf %990, %469 : vector<8x128xf32>
    %992 = arith.addf %988, %991 : vector<8x128xf32>
    %c242 = arith.constant 242 : index
    %c0_524 = arith.constant 0 : index
    %c0_525 = arith.constant 0 : index
    %993 = vector.load %arg1[%c242, %c0_524, %c0_525] : memref<257x8x128xf32, #tpu.memory_space<vmem>>, vector<1x8x128xf32>
    %994 = vector.shape_cast %993 : vector<1x8x128xf32> to vector<8x128xf32>
    %995 = arith.mulf %994, %537 : vector<8x128xf32>
    %996 = arith.addf %992, %995 : vector<8x128xf32>
    %c243 = arith.constant 243 : index
    %c0_526 = arith.constant 0 : index
    %c0_527 = arith.constant 0 : index
    %997 = vector.load %arg1[%c243, %c0_526, %c0_527] : memref<257x8x128xf32, #tpu.memory_space<vmem>>, vector<1x8x128xf32>
    %998 = vector.shape_cast %997 : vector<1x8x128xf32> to vector<8x128xf32>
    %999 = arith.mulf %998, %605 : vector<8x128xf32>
    %1000 = arith.addf %996, %999 : vector<8x128xf32>
    %c244 = arith.constant 244 : index
    %c0_528 = arith.constant 0 : index
    %c0_529 = arith.constant 0 : index
    %1001 = vector.load %arg1[%c244, %c0_528, %c0_529] : memref<257x8x128xf32, #tpu.memory_space<vmem>>, vector<1x8x128xf32>
    %1002 = vector.shape_cast %1001 : vector<1x8x128xf32> to vector<8x128xf32>
    %1003 = arith.mulf %1002, %673 : vector<8x128xf32>
    %1004 = arith.addf %1000, %1003 : vector<8x128xf32>
    %c245 = arith.constant 245 : index
    %c0_530 = arith.constant 0 : index
    %c0_531 = arith.constant 0 : index
    %1005 = vector.load %arg1[%c245, %c0_530, %c0_531] : memref<257x8x128xf32, #tpu.memory_space<vmem>>, vector<1x8x128xf32>
    %1006 = vector.shape_cast %1005 : vector<1x8x128xf32> to vector<8x128xf32>
    %1007 = arith.mulf %1006, %741 : vector<8x128xf32>
    %1008 = arith.addf %1004, %1007 : vector<8x128xf32>
    %c246 = arith.constant 246 : index
    %c0_532 = arith.constant 0 : index
    %c0_533 = arith.constant 0 : index
    %1009 = vector.load %arg1[%c246, %c0_532, %c0_533] : memref<257x8x128xf32, #tpu.memory_space<vmem>>, vector<1x8x128xf32>
    %1010 = vector.shape_cast %1009 : vector<1x8x128xf32> to vector<8x128xf32>
    %1011 = arith.mulf %1010, %809 : vector<8x128xf32>
    %1012 = arith.addf %1008, %1011 : vector<8x128xf32>
    %c247 = arith.constant 247 : index
    %c0_534 = arith.constant 0 : index
    %c0_535 = arith.constant 0 : index
    %1013 = vector.load %arg1[%c247, %c0_534, %c0_535] : memref<257x8x128xf32, #tpu.memory_space<vmem>>, vector<1x8x128xf32>
    %1014 = vector.shape_cast %1013 : vector<1x8x128xf32> to vector<8x128xf32>
    %1015 = arith.mulf %1014, %877 : vector<8x128xf32>
    %1016 = arith.addf %1012, %1015 : vector<8x128xf32>
    %c251 = arith.constant 251 : index
    %c0_536 = arith.constant 0 : index
    %c0_537 = arith.constant 0 : index
    %1017 = vector.load %arg1[%c251, %c0_536, %c0_537] : memref<257x8x128xf32, #tpu.memory_space<vmem>>, vector<1x8x128xf32>
    %1018 = vector.shape_cast %1017 : vector<1x8x128xf32> to vector<8x128xf32>
    %1019 = arith.addf %1016, %1018 : vector<8x128xf32>
    %cst_538 = arith.constant 0.000000e+00 : f32
    %1020 = vector.broadcast %cst_538 : f32 to vector<8x128xf32>
    %1021 = arith.maximumf %1019, %1020 : vector<8x128xf32>
    %c252 = arith.constant 252 : index
    %c0_539 = arith.constant 0 : index
    %c0_540 = arith.constant 0 : index
    %1022 = vector.load %arg1[%c252, %c0_539, %c0_540] : memref<257x8x128xf32, #tpu.memory_space<vmem>>, vector<1x8x128xf32>
    %1023 = vector.shape_cast %1022 : vector<1x8x128xf32> to vector<8x128xf32>
    %1024 = arith.mulf %1023, %913 : vector<8x128xf32>
    %c253 = arith.constant 253 : index
    %c0_541 = arith.constant 0 : index
    %c0_542 = arith.constant 0 : index
    %1025 = vector.load %arg1[%c253, %c0_541, %c0_542] : memref<257x8x128xf32, #tpu.memory_space<vmem>>, vector<1x8x128xf32>
    %1026 = vector.shape_cast %1025 : vector<1x8x128xf32> to vector<8x128xf32>
    %1027 = arith.mulf %1026, %949 : vector<8x128xf32>
    %1028 = arith.addf %1024, %1027 : vector<8x128xf32>
    %c254 = arith.constant 254 : index
    %c0_543 = arith.constant 0 : index
    %c0_544 = arith.constant 0 : index
    %1029 = vector.load %arg1[%c254, %c0_543, %c0_544] : memref<257x8x128xf32, #tpu.memory_space<vmem>>, vector<1x8x128xf32>
    %1030 = vector.shape_cast %1029 : vector<1x8x128xf32> to vector<8x128xf32>
    %1031 = arith.mulf %1030, %985 : vector<8x128xf32>
    %1032 = arith.addf %1028, %1031 : vector<8x128xf32>
    %c255 = arith.constant 255 : index
    %c0_545 = arith.constant 0 : index
    %c0_546 = arith.constant 0 : index
    %1033 = vector.load %arg1[%c255, %c0_545, %c0_546] : memref<257x8x128xf32, #tpu.memory_space<vmem>>, vector<1x8x128xf32>
    %1034 = vector.shape_cast %1033 : vector<1x8x128xf32> to vector<8x128xf32>
    %1035 = arith.mulf %1034, %1021 : vector<8x128xf32>
    %1036 = arith.addf %1032, %1035 : vector<8x128xf32>
    %c256 = arith.constant 256 : index
    %c0_547 = arith.constant 0 : index
    %c0_548 = arith.constant 0 : index
    %1037 = vector.load %arg1[%c256, %c0_547, %c0_548] : memref<257x8x128xf32, #tpu.memory_space<vmem>>, vector<1x8x128xf32>
    %1038 = vector.shape_cast %1037 : vector<1x8x128xf32> to vector<8x128xf32>
    %1039 = arith.addf %1036, %1038 : vector<8x128xf32>
    %1040 = arith.index_cast %1 : i32 to index
    %c0_549 = arith.constant 0 : index
    %1041 = vector.load %arg3[%1040, %c0_549] : memref<16x128xf32, #tpu.memory_space<vmem>>, vector<8x128xf32>
    tpu.vector_store %arg3[%1040, %c0_549], %1039 {strides = array<i32>} : memref<16x128xf32, #tpu.memory_space<vmem>>, vector<8x128xf32>,
    %c1_i32 = arith.constant 1 : i32
    %c8_i32_550 = arith.constant 8 : i32
    %1042 = arith.muli %c1_i32, %c8_i32_550 : i32
    %1043 = tpu.assume_multiple %1042, 8 : i32
    %c0_551 = arith.constant 0 : index
    %1044 = arith.index_cast %1043 : i32 to index
    %c0_552 = arith.constant 0 : index
    %1045 = vector.load %arg2[%c0_551, %1044, %c0_552] : memref<4x16x128xf32, #tpu.memory_space<vmem>>, vector<1x8x128xf32>
    %1046 = vector.shape_cast %1045 : vector<1x8x128xf32> to vector<8x128xf32>
    %c1_553 = arith.constant 1 : index
    %1047 = arith.index_cast %1043 : i32 to index
    %c0_554 = arith.constant 0 : index
    %1048 = vector.load %arg2[%c1_553, %1047, %c0_554] : memref<4x16x128xf32, #tpu.memory_space<vmem>>, vector<1x8x128xf32>
    %1049 = vector.shape_cast %1048 : vector<1x8x128xf32> to vector<8x128xf32>
    %c2_555 = arith.constant 2 : index
    %1050 = arith.index_cast %1043 : i32 to index
    %c0_556 = arith.constant 0 : index
    %1051 = vector.load %arg2[%c2_555, %1050, %c0_556] : memref<4x16x128xf32, #tpu.memory_space<vmem>>, vector<1x8x128xf32>
    %1052 = vector.shape_cast %1051 : vector<1x8x128xf32> to vector<8x128xf32>
    %c3_557 = arith.constant 3 : index
    %1053 = arith.index_cast %1043 : i32 to index
    %c0_558 = arith.constant 0 : index
    %1054 = vector.load %arg2[%c3_557, %1053, %c0_558] : memref<4x16x128xf32, #tpu.memory_space<vmem>>, vector<1x8x128xf32>
    %1055 = vector.shape_cast %1054 : vector<1x8x128xf32> to vector<8x128xf32>
    %c0_559 = arith.constant 0 : index
    %c0_560 = arith.constant 0 : index
    %c0_561 = arith.constant 0 : index
    %1056 = vector.load %arg1[%c0_559, %c0_560, %c0_561] : memref<257x8x128xf32, #tpu.memory_space<vmem>>, vector<1x8x128xf32>
    %1057 = vector.shape_cast %1056 : vector<1x8x128xf32> to vector<8x128xf32>
    %1058 = arith.mulf %1057, %1046 : vector<8x128xf32>
    %c1_562 = arith.constant 1 : index
    %c0_563 = arith.constant 0 : index
    %c0_564 = arith.constant 0 : index
    %1059 = vector.load %arg1[%c1_562, %c0_563, %c0_564] : memref<257x8x128xf32, #tpu.memory_space<vmem>>, vector<1x8x128xf32>
    %1060 = vector.shape_cast %1059 : vector<1x8x128xf32> to vector<8x128xf32>
    %1061 = arith.mulf %1060, %1049 : vector<8x128xf32>
    %1062 = arith.addf %1058, %1061 : vector<8x128xf32>
    %c2_565 = arith.constant 2 : index
    %c0_566 = arith.constant 0 : index
    %c0_567 = arith.constant 0 : index
    %1063 = vector.load %arg1[%c2_565, %c0_566, %c0_567] : memref<257x8x128xf32, #tpu.memory_space<vmem>>, vector<1x8x128xf32>
    %1064 = vector.shape_cast %1063 : vector<1x8x128xf32> to vector<8x128xf32>
    %1065 = arith.mulf %1064, %1052 : vector<8x128xf32>
    %1066 = arith.addf %1062, %1065 : vector<8x128xf32>
    %c3_568 = arith.constant 3 : index
    %c0_569 = arith.constant 0 : index
    %c0_570 = arith.constant 0 : index
    %1067 = vector.load %arg1[%c3_568, %c0_569, %c0_570] : memref<257x8x128xf32, #tpu.memory_space<vmem>>, vector<1x8x128xf32>
    %1068 = vector.shape_cast %1067 : vector<1x8x128xf32> to vector<8x128xf32>
    %1069 = arith.mulf %1068, %1055 : vector<8x128xf32>
    %1070 = arith.addf %1066, %1069 : vector<8x128xf32>
    %c64_571 = arith.constant 64 : index
    %c0_572 = arith.constant 0 : index
    %c0_573 = arith.constant 0 : index
    %1071 = vector.load %arg1[%c64_571, %c0_572, %c0_573] : memref<257x8x128xf32, #tpu.memory_space<vmem>>, vector<1x8x128xf32>
    %1072 = vector.shape_cast %1071 : vector<1x8x128xf32> to vector<8x128xf32>
    %1073 = arith.addf %1070, %1072 : vector<8x128xf32>
    %cst_574 = arith.constant 0.000000e+00 : f32
    %1074 = vector.broadcast %cst_574 : f32 to vector<8x128xf32>
    %1075 = arith.maximumf %1073, %1074 : vector<8x128xf32>
    %c4_575 = arith.constant 4 : index
    %c0_576 = arith.constant 0 : index
    %c0_577 = arith.constant 0 : index
    %1076 = vector.load %arg1[%c4_575, %c0_576, %c0_577] : memref<257x8x128xf32, #tpu.memory_space<vmem>>, vector<1x8x128xf32>
    %1077 = vector.shape_cast %1076 : vector<1x8x128xf32> to vector<8x128xf32>
    %1078 = arith.mulf %1077, %1046 : vector<8x128xf32>
    %c5_578 = arith.constant 5 : index
    %c0_579 = arith.constant 0 : index
    %c0_580 = arith.constant 0 : index
    %1079 = vector.load %arg1[%c5_578, %c0_579, %c0_580] : memref<257x8x128xf32, #tpu.memory_space<vmem>>, vector<1x8x128xf32>
    %1080 = vector.shape_cast %1079 : vector<1x8x128xf32> to vector<8x128xf32>
    %1081 = arith.mulf %1080, %1049 : vector<8x128xf32>
    %1082 = arith.addf %1078, %1081 : vector<8x128xf32>
    %c6_581 = arith.constant 6 : index
    %c0_582 = arith.constant 0 : index
    %c0_583 = arith.constant 0 : index
    %1083 = vector.load %arg1[%c6_581, %c0_582, %c0_583] : memref<257x8x128xf32, #tpu.memory_space<vmem>>, vector<1x8x128xf32>
    %1084 = vector.shape_cast %1083 : vector<1x8x128xf32> to vector<8x128xf32>
    %1085 = arith.mulf %1084, %1052 : vector<8x128xf32>
    %1086 = arith.addf %1082, %1085 : vector<8x128xf32>
    %c7_584 = arith.constant 7 : index
    %c0_585 = arith.constant 0 : index
    %c0_586 = arith.constant 0 : index
    %1087 = vector.load %arg1[%c7_584, %c0_585, %c0_586] : memref<257x8x128xf32, #tpu.memory_space<vmem>>, vector<1x8x128xf32>
    %1088 = vector.shape_cast %1087 : vector<1x8x128xf32> to vector<8x128xf32>
    %1089 = arith.mulf %1088, %1055 : vector<8x128xf32>
    %1090 = arith.addf %1086, %1089 : vector<8x128xf32>
    %c65_587 = arith.constant 65 : index
    %c0_588 = arith.constant 0 : index
    %c0_589 = arith.constant 0 : index
    %1091 = vector.load %arg1[%c65_587, %c0_588, %c0_589] : memref<257x8x128xf32, #tpu.memory_space<vmem>>, vector<1x8x128xf32>
    %1092 = vector.shape_cast %1091 : vector<1x8x128xf32> to vector<8x128xf32>
    %1093 = arith.addf %1090, %1092 : vector<8x128xf32>
    %cst_590 = arith.constant 0.000000e+00 : f32
    %1094 = vector.broadcast %cst_590 : f32 to vector<8x128xf32>
    %1095 = arith.maximumf %1093, %1094 : vector<8x128xf32>
    %c8_591 = arith.constant 8 : index
    %c0_592 = arith.constant 0 : index
    %c0_593 = arith.constant 0 : index
    %1096 = vector.load %arg1[%c8_591, %c0_592, %c0_593] : memref<257x8x128xf32, #tpu.memory_space<vmem>>, vector<1x8x128xf32>
    %1097 = vector.shape_cast %1096 : vector<1x8x128xf32> to vector<8x128xf32>
    %1098 = arith.mulf %1097, %1046 : vector<8x128xf32>
    %c9_594 = arith.constant 9 : index
    %c0_595 = arith.constant 0 : index
    %c0_596 = arith.constant 0 : index
    %1099 = vector.load %arg1[%c9_594, %c0_595, %c0_596] : memref<257x8x128xf32, #tpu.memory_space<vmem>>, vector<1x8x128xf32>
    %1100 = vector.shape_cast %1099 : vector<1x8x128xf32> to vector<8x128xf32>
    %1101 = arith.mulf %1100, %1049 : vector<8x128xf32>
    %1102 = arith.addf %1098, %1101 : vector<8x128xf32>
    %c10_597 = arith.constant 10 : index
    %c0_598 = arith.constant 0 : index
    %c0_599 = arith.constant 0 : index
    %1103 = vector.load %arg1[%c10_597, %c0_598, %c0_599] : memref<257x8x128xf32, #tpu.memory_space<vmem>>, vector<1x8x128xf32>
    %1104 = vector.shape_cast %1103 : vector<1x8x128xf32> to vector<8x128xf32>
    %1105 = arith.mulf %1104, %1052 : vector<8x128xf32>
    %1106 = arith.addf %1102, %1105 : vector<8x128xf32>
    %c11_600 = arith.constant 11 : index
    %c0_601 = arith.constant 0 : index
    %c0_602 = arith.constant 0 : index
    %1107 = vector.load %arg1[%c11_600, %c0_601, %c0_602] : memref<257x8x128xf32, #tpu.memory_space<vmem>>, vector<1x8x128xf32>
    %1108 = vector.shape_cast %1107 : vector<1x8x128xf32> to vector<8x128xf32>
    %1109 = arith.mulf %1108, %1055 : vector<8x128xf32>
    %1110 = arith.addf %1106, %1109 : vector<8x128xf32>
    %c66_603 = arith.constant 66 : index
    %c0_604 = arith.constant 0 : index
    %c0_605 = arith.constant 0 : index
    %1111 = vector.load %arg1[%c66_603, %c0_604, %c0_605] : memref<257x8x128xf32, #tpu.memory_space<vmem>>, vector<1x8x128xf32>
    %1112 = vector.shape_cast %1111 : vector<1x8x128xf32> to vector<8x128xf32>
    %1113 = arith.addf %1110, %1112 : vector<8x128xf32>
    %cst_606 = arith.constant 0.000000e+00 : f32
    %1114 = vector.broadcast %cst_606 : f32 to vector<8x128xf32>
    %1115 = arith.maximumf %1113, %1114 : vector<8x128xf32>
    %c12_607 = arith.constant 12 : index
    %c0_608 = arith.constant 0 : index
    %c0_609 = arith.constant 0 : index
    %1116 = vector.load %arg1[%c12_607, %c0_608, %c0_609] : memref<257x8x128xf32, #tpu.memory_space<vmem>>, vector<1x8x128xf32>
    %1117 = vector.shape_cast %1116 : vector<1x8x128xf32> to vector<8x128xf32>
    %1118 = arith.mulf %1117, %1046 : vector<8x128xf32>
    %c13_610 = arith.constant 13 : index
    %c0_611 = arith.constant 0 : index
    %c0_612 = arith.constant 0 : index
    %1119 = vector.load %arg1[%c13_610, %c0_611, %c0_612] : memref<257x8x128xf32, #tpu.memory_space<vmem>>, vector<1x8x128xf32>
    %1120 = vector.shape_cast %1119 : vector<1x8x128xf32> to vector<8x128xf32>
    %1121 = arith.mulf %1120, %1049 : vector<8x128xf32>
    %1122 = arith.addf %1118, %1121 : vector<8x128xf32>
    %c14_613 = arith.constant 14 : index
    %c0_614 = arith.constant 0 : index
    %c0_615 = arith.constant 0 : index
    %1123 = vector.load %arg1[%c14_613, %c0_614, %c0_615] : memref<257x8x128xf32, #tpu.memory_space<vmem>>, vector<1x8x128xf32>
    %1124 = vector.shape_cast %1123 : vector<1x8x128xf32> to vector<8x128xf32>
    %1125 = arith.mulf %1124, %1052 : vector<8x128xf32>
    %1126 = arith.addf %1122, %1125 : vector<8x128xf32>
    %c15_616 = arith.constant 15 : index
    %c0_617 = arith.constant 0 : index
    %c0_618 = arith.constant 0 : index
    %1127 = vector.load %arg1[%c15_616, %c0_617, %c0_618] : memref<257x8x128xf32, #tpu.memory_space<vmem>>, vector<1x8x128xf32>
    %1128 = vector.shape_cast %1127 : vector<1x8x128xf32> to vector<8x128xf32>
    %1129 = arith.mulf %1128, %1055 : vector<8x128xf32>
    %1130 = arith.addf %1126, %1129 : vector<8x128xf32>
    %c67_619 = arith.constant 67 : index
    %c0_620 = arith.constant 0 : index
    %c0_621 = arith.constant 0 : index
    %1131 = vector.load %arg1[%c67_619, %c0_620, %c0_621] : memref<257x8x128xf32, #tpu.memory_space<vmem>>, vector<1x8x128xf32>
    %1132 = vector.shape_cast %1131 : vector<1x8x128xf32> to vector<8x128xf32>
    %1133 = arith.addf %1130, %1132 : vector<8x128xf32>
    %cst_622 = arith.constant 0.000000e+00 : f32
    %1134 = vector.broadcast %cst_622 : f32 to vector<8x128xf32>
    %1135 = arith.maximumf %1133, %1134 : vector<8x128xf32>
    %c16_623 = arith.constant 16 : index
    %c0_624 = arith.constant 0 : index
    %c0_625 = arith.constant 0 : index
    %1136 = vector.load %arg1[%c16_623, %c0_624, %c0_625] : memref<257x8x128xf32, #tpu.memory_space<vmem>>, vector<1x8x128xf32>
    %1137 = vector.shape_cast %1136 : vector<1x8x128xf32> to vector<8x128xf32>
    %1138 = arith.mulf %1137, %1046 : vector<8x128xf32>
    %c17_626 = arith.constant 17 : index
    %c0_627 = arith.constant 0 : index
    %c0_628 = arith.constant 0 : index
    %1139 = vector.load %arg1[%c17_626, %c0_627, %c0_628] : memref<257x8x128xf32, #tpu.memory_space<vmem>>, vector<1x8x128xf32>
    %1140 = vector.shape_cast %1139 : vector<1x8x128xf32> to vector<8x128xf32>
    %1141 = arith.mulf %1140, %1049 : vector<8x128xf32>
    %1142 = arith.addf %1138, %1141 : vector<8x128xf32>
    %c18_629 = arith.constant 18 : index
    %c0_630 = arith.constant 0 : index
    %c0_631 = arith.constant 0 : index
    %1143 = vector.load %arg1[%c18_629, %c0_630, %c0_631] : memref<257x8x128xf32, #tpu.memory_space<vmem>>, vector<1x8x128xf32>
    %1144 = vector.shape_cast %1143 : vector<1x8x128xf32> to vector<8x128xf32>
    %1145 = arith.mulf %1144, %1052 : vector<8x128xf32>
    %1146 = arith.addf %1142, %1145 : vector<8x128xf32>
    %c19_632 = arith.constant 19 : index
    %c0_633 = arith.constant 0 : index
    %c0_634 = arith.constant 0 : index
    %1147 = vector.load %arg1[%c19_632, %c0_633, %c0_634] : memref<257x8x128xf32, #tpu.memory_space<vmem>>, vector<1x8x128xf32>
    %1148 = vector.shape_cast %1147 : vector<1x8x128xf32> to vector<8x128xf32>
    %1149 = arith.mulf %1148, %1055 : vector<8x128xf32>
    %1150 = arith.addf %1146, %1149 : vector<8x128xf32>
    %c68_635 = arith.constant 68 : index
    %c0_636 = arith.constant 0 : index
    %c0_637 = arith.constant 0 : index
    %1151 = vector.load %arg1[%c68_635, %c0_636, %c0_637] : memref<257x8x128xf32, #tpu.memory_space<vmem>>, vector<1x8x128xf32>
    %1152 = vector.shape_cast %1151 : vector<1x8x128xf32> to vector<8x128xf32>
    %1153 = arith.addf %1150, %1152 : vector<8x128xf32>
    %cst_638 = arith.constant 0.000000e+00 : f32
    %1154 = vector.broadcast %cst_638 : f32 to vector<8x128xf32>
    %1155 = arith.maximumf %1153, %1154 : vector<8x128xf32>
    %c20_639 = arith.constant 20 : index
    %c0_640 = arith.constant 0 : index
    %c0_641 = arith.constant 0 : index
    %1156 = vector.load %arg1[%c20_639, %c0_640, %c0_641] : memref<257x8x128xf32, #tpu.memory_space<vmem>>, vector<1x8x128xf32>
    %1157 = vector.shape_cast %1156 : vector<1x8x128xf32> to vector<8x128xf32>
    %1158 = arith.mulf %1157, %1046 : vector<8x128xf32>
    %c21_642 = arith.constant 21 : index
    %c0_643 = arith.constant 0 : index
    %c0_644 = arith.constant 0 : index
    %1159 = vector.load %arg1[%c21_642, %c0_643, %c0_644] : memref<257x8x128xf32, #tpu.memory_space<vmem>>, vector<1x8x128xf32>
    %1160 = vector.shape_cast %1159 : vector<1x8x128xf32> to vector<8x128xf32>
    %1161 = arith.mulf %1160, %1049 : vector<8x128xf32>
    %1162 = arith.addf %1158, %1161 : vector<8x128xf32>
    %c22_645 = arith.constant 22 : index
    %c0_646 = arith.constant 0 : index
    %c0_647 = arith.constant 0 : index
    %1163 = vector.load %arg1[%c22_645, %c0_646, %c0_647] : memref<257x8x128xf32, #tpu.memory_space<vmem>>, vector<1x8x128xf32>
    %1164 = vector.shape_cast %1163 : vector<1x8x128xf32> to vector<8x128xf32>
    %1165 = arith.mulf %1164, %1052 : vector<8x128xf32>
    %1166 = arith.addf %1162, %1165 : vector<8x128xf32>
    %c23_648 = arith.constant 23 : index
    %c0_649 = arith.constant 0 : index
    %c0_650 = arith.constant 0 : index
    %1167 = vector.load %arg1[%c23_648, %c0_649, %c0_650] : memref<257x8x128xf32, #tpu.memory_space<vmem>>, vector<1x8x128xf32>
    %1168 = vector.shape_cast %1167 : vector<1x8x128xf32> to vector<8x128xf32>
    %1169 = arith.mulf %1168, %1055 : vector<8x128xf32>
    %1170 = arith.addf %1166, %1169 : vector<8x128xf32>
    %c69_651 = arith.constant 69 : index
    %c0_652 = arith.constant 0 : index
    %c0_653 = arith.constant 0 : index
    %1171 = vector.load %arg1[%c69_651, %c0_652, %c0_653] : memref<257x8x128xf32, #tpu.memory_space<vmem>>, vector<1x8x128xf32>
    %1172 = vector.shape_cast %1171 : vector<1x8x128xf32> to vector<8x128xf32>
    %1173 = arith.addf %1170, %1172 : vector<8x128xf32>
    %cst_654 = arith.constant 0.000000e+00 : f32
    %1174 = vector.broadcast %cst_654 : f32 to vector<8x128xf32>
    %1175 = arith.maximumf %1173, %1174 : vector<8x128xf32>
    %c24_655 = arith.constant 24 : index
    %c0_656 = arith.constant 0 : index
    %c0_657 = arith.constant 0 : index
    %1176 = vector.load %arg1[%c24_655, %c0_656, %c0_657] : memref<257x8x128xf32, #tpu.memory_space<vmem>>, vector<1x8x128xf32>
    %1177 = vector.shape_cast %1176 : vector<1x8x128xf32> to vector<8x128xf32>
    %1178 = arith.mulf %1177, %1046 : vector<8x128xf32>
    %c25_658 = arith.constant 25 : index
    %c0_659 = arith.constant 0 : index
    %c0_660 = arith.constant 0 : index
    %1179 = vector.load %arg1[%c25_658, %c0_659, %c0_660] : memref<257x8x128xf32, #tpu.memory_space<vmem>>, vector<1x8x128xf32>
    %1180 = vector.shape_cast %1179 : vector<1x8x128xf32> to vector<8x128xf32>
    %1181 = arith.mulf %1180, %1049 : vector<8x128xf32>
    %1182 = arith.addf %1178, %1181 : vector<8x128xf32>
    %c26_661 = arith.constant 26 : index
    %c0_662 = arith.constant 0 : index
    %c0_663 = arith.constant 0 : index
    %1183 = vector.load %arg1[%c26_661, %c0_662, %c0_663] : memref<257x8x128xf32, #tpu.memory_space<vmem>>, vector<1x8x128xf32>
    %1184 = vector.shape_cast %1183 : vector<1x8x128xf32> to vector<8x128xf32>
    %1185 = arith.mulf %1184, %1052 : vector<8x128xf32>
    %1186 = arith.addf %1182, %1185 : vector<8x128xf32>
    %c27_664 = arith.constant 27 : index
    %c0_665 = arith.constant 0 : index
    %c0_666 = arith.constant 0 : index
    %1187 = vector.load %arg1[%c27_664, %c0_665, %c0_666] : memref<257x8x128xf32, #tpu.memory_space<vmem>>, vector<1x8x128xf32>
    %1188 = vector.shape_cast %1187 : vector<1x8x128xf32> to vector<8x128xf32>
    %1189 = arith.mulf %1188, %1055 : vector<8x128xf32>
    %1190 = arith.addf %1186, %1189 : vector<8x128xf32>
    %c70_667 = arith.constant 70 : index
    %c0_668 = arith.constant 0 : index
    %c0_669 = arith.constant 0 : index
    %1191 = vector.load %arg1[%c70_667, %c0_668, %c0_669] : memref<257x8x128xf32, #tpu.memory_space<vmem>>, vector<1x8x128xf32>
    %1192 = vector.shape_cast %1191 : vector<1x8x128xf32> to vector<8x128xf32>
    %1193 = arith.addf %1190, %1192 : vector<8x128xf32>
    %cst_670 = arith.constant 0.000000e+00 : f32
    %1194 = vector.broadcast %cst_670 : f32 to vector<8x128xf32>
    %1195 = arith.maximumf %1193, %1194 : vector<8x128xf32>
    %c28_671 = arith.constant 28 : index
    %c0_672 = arith.constant 0 : index
    %c0_673 = arith.constant 0 : index
    %1196 = vector.load %arg1[%c28_671, %c0_672, %c0_673] : memref<257x8x128xf32, #tpu.memory_space<vmem>>, vector<1x8x128xf32>
    %1197 = vector.shape_cast %1196 : vector<1x8x128xf32> to vector<8x128xf32>
    %1198 = arith.mulf %1197, %1046 : vector<8x128xf32>
    %c29_674 = arith.constant 29 : index
    %c0_675 = arith.constant 0 : index
    %c0_676 = arith.constant 0 : index
    %1199 = vector.load %arg1[%c29_674, %c0_675, %c0_676] : memref<257x8x128xf32, #tpu.memory_space<vmem>>, vector<1x8x128xf32>
    %1200 = vector.shape_cast %1199 : vector<1x8x128xf32> to vector<8x128xf32>
    %1201 = arith.mulf %1200, %1049 : vector<8x128xf32>
    %1202 = arith.addf %1198, %1201 : vector<8x128xf32>
    %c30_677 = arith.constant 30 : index
    %c0_678 = arith.constant 0 : index
    %c0_679 = arith.constant 0 : index
    %1203 = vector.load %arg1[%c30_677, %c0_678, %c0_679] : memref<257x8x128xf32, #tpu.memory_space<vmem>>, vector<1x8x128xf32>
    %1204 = vector.shape_cast %1203 : vector<1x8x128xf32> to vector<8x128xf32>
    %1205 = arith.mulf %1204, %1052 : vector<8x128xf32>
    %1206 = arith.addf %1202, %1205 : vector<8x128xf32>
    %c31_680 = arith.constant 31 : index
    %c0_681 = arith.constant 0 : index
    %c0_682 = arith.constant 0 : index
    %1207 = vector.load %arg1[%c31_680, %c0_681, %c0_682] : memref<257x8x128xf32, #tpu.memory_space<vmem>>, vector<1x8x128xf32>
    %1208 = vector.shape_cast %1207 : vector<1x8x128xf32> to vector<8x128xf32>
    %1209 = arith.mulf %1208, %1055 : vector<8x128xf32>
    %1210 = arith.addf %1206, %1209 : vector<8x128xf32>
    %c71_683 = arith.constant 71 : index
    %c0_684 = arith.constant 0 : index
    %c0_685 = arith.constant 0 : index
    %1211 = vector.load %arg1[%c71_683, %c0_684, %c0_685] : memref<257x8x128xf32, #tpu.memory_space<vmem>>, vector<1x8x128xf32>
    %1212 = vector.shape_cast %1211 : vector<1x8x128xf32> to vector<8x128xf32>
    %1213 = arith.addf %1210, %1212 : vector<8x128xf32>
    %cst_686 = arith.constant 0.000000e+00 : f32
    %1214 = vector.broadcast %cst_686 : f32 to vector<8x128xf32>
    %1215 = arith.maximumf %1213, %1214 : vector<8x128xf32>
    %c32_687 = arith.constant 32 : index
    %c0_688 = arith.constant 0 : index
    %c0_689 = arith.constant 0 : index
    %1216 = vector.load %arg1[%c32_687, %c0_688, %c0_689] : memref<257x8x128xf32, #tpu.memory_space<vmem>>, vector<1x8x128xf32>
    %1217 = vector.shape_cast %1216 : vector<1x8x128xf32> to vector<8x128xf32>
    %1218 = arith.mulf %1217, %1046 : vector<8x128xf32>
    %c33_690 = arith.constant 33 : index
    %c0_691 = arith.constant 0 : index
    %c0_692 = arith.constant 0 : index
    %1219 = vector.load %arg1[%c33_690, %c0_691, %c0_692] : memref<257x8x128xf32, #tpu.memory_space<vmem>>, vector<1x8x128xf32>
    %1220 = vector.shape_cast %1219 : vector<1x8x128xf32> to vector<8x128xf32>
    %1221 = arith.mulf %1220, %1049 : vector<8x128xf32>
    %1222 = arith.addf %1218, %1221 : vector<8x128xf32>
    %c34_693 = arith.constant 34 : index
    %c0_694 = arith.constant 0 : index
    %c0_695 = arith.constant 0 : index
    %1223 = vector.load %arg1[%c34_693, %c0_694, %c0_695] : memref<257x8x128xf32, #tpu.memory_space<vmem>>, vector<1x8x128xf32>
    %1224 = vector.shape_cast %1223 : vector<1x8x128xf32> to vector<8x128xf32>
    %1225 = arith.mulf %1224, %1052 : vector<8x128xf32>
    %1226 = arith.addf %1222, %1225 : vector<8x128xf32>
    %c35_696 = arith.constant 35 : index
    %c0_697 = arith.constant 0 : index
    %c0_698 = arith.constant 0 : index
    %1227 = vector.load %arg1[%c35_696, %c0_697, %c0_698] : memref<257x8x128xf32, #tpu.memory_space<vmem>>, vector<1x8x128xf32>
    %1228 = vector.shape_cast %1227 : vector<1x8x128xf32> to vector<8x128xf32>
    %1229 = arith.mulf %1228, %1055 : vector<8x128xf32>
    %1230 = arith.addf %1226, %1229 : vector<8x128xf32>
    %c72_699 = arith.constant 72 : index
    %c0_700 = arith.constant 0 : index
    %c0_701 = arith.constant 0 : index
    %1231 = vector.load %arg1[%c72_699, %c0_700, %c0_701] : memref<257x8x128xf32, #tpu.memory_space<vmem>>, vector<1x8x128xf32>
    %1232 = vector.shape_cast %1231 : vector<1x8x128xf32> to vector<8x128xf32>
    %1233 = arith.addf %1230, %1232 : vector<8x128xf32>
    %cst_702 = arith.constant 0.000000e+00 : f32
    %1234 = vector.broadcast %cst_702 : f32 to vector<8x128xf32>
    %1235 = arith.maximumf %1233, %1234 : vector<8x128xf32>
    %c36_703 = arith.constant 36 : index
    %c0_704 = arith.constant 0 : index
    %c0_705 = arith.constant 0 : index
    %1236 = vector.load %arg1[%c36_703, %c0_704, %c0_705] : memref<257x8x128xf32, #tpu.memory_space<vmem>>, vector<1x8x128xf32>
    %1237 = vector.shape_cast %1236 : vector<1x8x128xf32> to vector<8x128xf32>
    %1238 = arith.mulf %1237, %1046 : vector<8x128xf32>
    %c37_706 = arith.constant 37 : index
    %c0_707 = arith.constant 0 : index
    %c0_708 = arith.constant 0 : index
    %1239 = vector.load %arg1[%c37_706, %c0_707, %c0_708] : memref<257x8x128xf32, #tpu.memory_space<vmem>>, vector<1x8x128xf32>
    %1240 = vector.shape_cast %1239 : vector<1x8x128xf32> to vector<8x128xf32>
    %1241 = arith.mulf %1240, %1049 : vector<8x128xf32>
    %1242 = arith.addf %1238, %1241 : vector<8x128xf32>
    %c38_709 = arith.constant 38 : index
    %c0_710 = arith.constant 0 : index
    %c0_711 = arith.constant 0 : index
    %1243 = vector.load %arg1[%c38_709, %c0_710, %c0_711] : memref<257x8x128xf32, #tpu.memory_space<vmem>>, vector<1x8x128xf32>
    %1244 = vector.shape_cast %1243 : vector<1x8x128xf32> to vector<8x128xf32>
    %1245 = arith.mulf %1244, %1052 : vector<8x128xf32>
    %1246 = arith.addf %1242, %1245 : vector<8x128xf32>
    %c39_712 = arith.constant 39 : index
    %c0_713 = arith.constant 0 : index
    %c0_714 = arith.constant 0 : index
    %1247 = vector.load %arg1[%c39_712, %c0_713, %c0_714] : memref<257x8x128xf32, #tpu.memory_space<vmem>>, vector<1x8x128xf32>
    %1248 = vector.shape_cast %1247 : vector<1x8x128xf32> to vector<8x128xf32>
    %1249 = arith.mulf %1248, %1055 : vector<8x128xf32>
    %1250 = arith.addf %1246, %1249 : vector<8x128xf32>
    %c73_715 = arith.constant 73 : index
    %c0_716 = arith.constant 0 : index
    %c0_717 = arith.constant 0 : index
    %1251 = vector.load %arg1[%c73_715, %c0_716, %c0_717] : memref<257x8x128xf32, #tpu.memory_space<vmem>>, vector<1x8x128xf32>
    %1252 = vector.shape_cast %1251 : vector<1x8x128xf32> to vector<8x128xf32>
    %1253 = arith.addf %1250, %1252 : vector<8x128xf32>
    %cst_718 = arith.constant 0.000000e+00 : f32
    %1254 = vector.broadcast %cst_718 : f32 to vector<8x128xf32>
    %1255 = arith.maximumf %1253, %1254 : vector<8x128xf32>
    %c40_719 = arith.constant 40 : index
    %c0_720 = arith.constant 0 : index
    %c0_721 = arith.constant 0 : index
    %1256 = vector.load %arg1[%c40_719, %c0_720, %c0_721] : memref<257x8x128xf32, #tpu.memory_space<vmem>>, vector<1x8x128xf32>
    %1257 = vector.shape_cast %1256 : vector<1x8x128xf32> to vector<8x128xf32>
    %1258 = arith.mulf %1257, %1046 : vector<8x128xf32>
    %c41_722 = arith.constant 41 : index
    %c0_723 = arith.constant 0 : index
    %c0_724 = arith.constant 0 : index
    %1259 = vector.load %arg1[%c41_722, %c0_723, %c0_724] : memref<257x8x128xf32, #tpu.memory_space<vmem>>, vector<1x8x128xf32>
    %1260 = vector.shape_cast %1259 : vector<1x8x128xf32> to vector<8x128xf32>
    %1261 = arith.mulf %1260, %1049 : vector<8x128xf32>
    %1262 = arith.addf %1258, %1261 : vector<8x128xf32>
    %c42_725 = arith.constant 42 : index
    %c0_726 = arith.constant 0 : index
    %c0_727 = arith.constant 0 : index
    %1263 = vector.load %arg1[%c42_725, %c0_726, %c0_727] : memref<257x8x128xf32, #tpu.memory_space<vmem>>, vector<1x8x128xf32>
    %1264 = vector.shape_cast %1263 : vector<1x8x128xf32> to vector<8x128xf32>
    %1265 = arith.mulf %1264, %1052 : vector<8x128xf32>
    %1266 = arith.addf %1262, %1265 : vector<8x128xf32>
    %c43_728 = arith.constant 43 : index
    %c0_729 = arith.constant 0 : index
    %c0_730 = arith.constant 0 : index
    %1267 = vector.load %arg1[%c43_728, %c0_729, %c0_730] : memref<257x8x128xf32, #tpu.memory_space<vmem>>, vector<1x8x128xf32>
    %1268 = vector.shape_cast %1267 : vector<1x8x128xf32> to vector<8x128xf32>
    %1269 = arith.mulf %1268, %1055 : vector<8x128xf32>
    %1270 = arith.addf %1266, %1269 : vector<8x128xf32>
    %c74_731 = arith.constant 74 : index
    %c0_732 = arith.constant 0 : index
    %c0_733 = arith.constant 0 : index
    %1271 = vector.load %arg1[%c74_731, %c0_732, %c0_733] : memref<257x8x128xf32, #tpu.memory_space<vmem>>, vector<1x8x128xf32>
    %1272 = vector.shape_cast %1271 : vector<1x8x128xf32> to vector<8x128xf32>
    %1273 = arith.addf %1270, %1272 : vector<8x128xf32>
    %cst_734 = arith.constant 0.000000e+00 : f32
    %1274 = vector.broadcast %cst_734 : f32 to vector<8x128xf32>
    %1275 = arith.maximumf %1273, %1274 : vector<8x128xf32>
    %c44_735 = arith.constant 44 : index
    %c0_736 = arith.constant 0 : index
    %c0_737 = arith.constant 0 : index
    %1276 = vector.load %arg1[%c44_735, %c0_736, %c0_737] : memref<257x8x128xf32, #tpu.memory_space<vmem>>, vector<1x8x128xf32>
    %1277 = vector.shape_cast %1276 : vector<1x8x128xf32> to vector<8x128xf32>
    %1278 = arith.mulf %1277, %1046 : vector<8x128xf32>
    %c45_738 = arith.constant 45 : index
    %c0_739 = arith.constant 0 : index
    %c0_740 = arith.constant 0 : index
    %1279 = vector.load %arg1[%c45_738, %c0_739, %c0_740] : memref<257x8x128xf32, #tpu.memory_space<vmem>>, vector<1x8x128xf32>
    %1280 = vector.shape_cast %1279 : vector<1x8x128xf32> to vector<8x128xf32>
    %1281 = arith.mulf %1280, %1049 : vector<8x128xf32>
    %1282 = arith.addf %1278, %1281 : vector<8x128xf32>
    %c46_741 = arith.constant 46 : index
    %c0_742 = arith.constant 0 : index
    %c0_743 = arith.constant 0 : index
    %1283 = vector.load %arg1[%c46_741, %c0_742, %c0_743] : memref<257x8x128xf32, #tpu.memory_space<vmem>>, vector<1x8x128xf32>
    %1284 = vector.shape_cast %1283 : vector<1x8x128xf32> to vector<8x128xf32>
    %1285 = arith.mulf %1284, %1052 : vector<8x128xf32>
    %1286 = arith.addf %1282, %1285 : vector<8x128xf32>
    %c47_744 = arith.constant 47 : index
    %c0_745 = arith.constant 0 : index
    %c0_746 = arith.constant 0 : index
    %1287 = vector.load %arg1[%c47_744, %c0_745, %c0_746] : memref<257x8x128xf32, #tpu.memory_space<vmem>>, vector<1x8x128xf32>
    %1288 = vector.shape_cast %1287 : vector<1x8x128xf32> to vector<8x128xf32>
    %1289 = arith.mulf %1288, %1055 : vector<8x128xf32>
    %1290 = arith.addf %1286, %1289 : vector<8x128xf32>
    %c75_747 = arith.constant 75 : index
    %c0_748 = arith.constant 0 : index
    %c0_749 = arith.constant 0 : index
    %1291 = vector.load %arg1[%c75_747, %c0_748, %c0_749] : memref<257x8x128xf32, #tpu.memory_space<vmem>>, vector<1x8x128xf32>
    %1292 = vector.shape_cast %1291 : vector<1x8x128xf32> to vector<8x128xf32>
    %1293 = arith.addf %1290, %1292 : vector<8x128xf32>
    %cst_750 = arith.constant 0.000000e+00 : f32
    %1294 = vector.broadcast %cst_750 : f32 to vector<8x128xf32>
    %1295 = arith.maximumf %1293, %1294 : vector<8x128xf32>
    %c48_751 = arith.constant 48 : index
    %c0_752 = arith.constant 0 : index
    %c0_753 = arith.constant 0 : index
    %1296 = vector.load %arg1[%c48_751, %c0_752, %c0_753] : memref<257x8x128xf32, #tpu.memory_space<vmem>>, vector<1x8x128xf32>
    %1297 = vector.shape_cast %1296 : vector<1x8x128xf32> to vector<8x128xf32>
    %1298 = arith.mulf %1297, %1046 : vector<8x128xf32>
    %c49_754 = arith.constant 49 : index
    %c0_755 = arith.constant 0 : index
    %c0_756 = arith.constant 0 : index
    %1299 = vector.load %arg1[%c49_754, %c0_755, %c0_756] : memref<257x8x128xf32, #tpu.memory_space<vmem>>, vector<1x8x128xf32>
    %1300 = vector.shape_cast %1299 : vector<1x8x128xf32> to vector<8x128xf32>
    %1301 = arith.mulf %1300, %1049 : vector<8x128xf32>
    %1302 = arith.addf %1298, %1301 : vector<8x128xf32>
    %c50_757 = arith.constant 50 : index
    %c0_758 = arith.constant 0 : index
    %c0_759 = arith.constant 0 : index
    %1303 = vector.load %arg1[%c50_757, %c0_758, %c0_759] : memref<257x8x128xf32, #tpu.memory_space<vmem>>, vector<1x8x128xf32>
    %1304 = vector.shape_cast %1303 : vector<1x8x128xf32> to vector<8x128xf32>
    %1305 = arith.mulf %1304, %1052 : vector<8x128xf32>
    %1306 = arith.addf %1302, %1305 : vector<8x128xf32>
    %c51_760 = arith.constant 51 : index
    %c0_761 = arith.constant 0 : index
    %c0_762 = arith.constant 0 : index
    %1307 = vector.load %arg1[%c51_760, %c0_761, %c0_762] : memref<257x8x128xf32, #tpu.memory_space<vmem>>, vector<1x8x128xf32>
    %1308 = vector.shape_cast %1307 : vector<1x8x128xf32> to vector<8x128xf32>
    %1309 = arith.mulf %1308, %1055 : vector<8x128xf32>
    %1310 = arith.addf %1306, %1309 : vector<8x128xf32>
    %c76_763 = arith.constant 76 : index
    %c0_764 = arith.constant 0 : index
    %c0_765 = arith.constant 0 : index
    %1311 = vector.load %arg1[%c76_763, %c0_764, %c0_765] : memref<257x8x128xf32, #tpu.memory_space<vmem>>, vector<1x8x128xf32>
    %1312 = vector.shape_cast %1311 : vector<1x8x128xf32> to vector<8x128xf32>
    %1313 = arith.addf %1310, %1312 : vector<8x128xf32>
    %cst_766 = arith.constant 0.000000e+00 : f32
    %1314 = vector.broadcast %cst_766 : f32 to vector<8x128xf32>
    %1315 = arith.maximumf %1313, %1314 : vector<8x128xf32>
    %c52_767 = arith.constant 52 : index
    %c0_768 = arith.constant 0 : index
    %c0_769 = arith.constant 0 : index
    %1316 = vector.load %arg1[%c52_767, %c0_768, %c0_769] : memref<257x8x128xf32, #tpu.memory_space<vmem>>, vector<1x8x128xf32>
    %1317 = vector.shape_cast %1316 : vector<1x8x128xf32> to vector<8x128xf32>
    %1318 = arith.mulf %1317, %1046 : vector<8x128xf32>
    %c53_770 = arith.constant 53 : index
    %c0_771 = arith.constant 0 : index
    %c0_772 = arith.constant 0 : index
    %1319 = vector.load %arg1[%c53_770, %c0_771, %c0_772] : memref<257x8x128xf32, #tpu.memory_space<vmem>>, vector<1x8x128xf32>
    %1320 = vector.shape_cast %1319 : vector<1x8x128xf32> to vector<8x128xf32>
    %1321 = arith.mulf %1320, %1049 : vector<8x128xf32>
    %1322 = arith.addf %1318, %1321 : vector<8x128xf32>
    %c54_773 = arith.constant 54 : index
    %c0_774 = arith.constant 0 : index
    %c0_775 = arith.constant 0 : index
    %1323 = vector.load %arg1[%c54_773, %c0_774, %c0_775] : memref<257x8x128xf32, #tpu.memory_space<vmem>>, vector<1x8x128xf32>
    %1324 = vector.shape_cast %1323 : vector<1x8x128xf32> to vector<8x128xf32>
    %1325 = arith.mulf %1324, %1052 : vector<8x128xf32>
    %1326 = arith.addf %1322, %1325 : vector<8x128xf32>
    %c55_776 = arith.constant 55 : index
    %c0_777 = arith.constant 0 : index
    %c0_778 = arith.constant 0 : index
    %1327 = vector.load %arg1[%c55_776, %c0_777, %c0_778] : memref<257x8x128xf32, #tpu.memory_space<vmem>>, vector<1x8x128xf32>
    %1328 = vector.shape_cast %1327 : vector<1x8x128xf32> to vector<8x128xf32>
    %1329 = arith.mulf %1328, %1055 : vector<8x128xf32>
    %1330 = arith.addf %1326, %1329 : vector<8x128xf32>
    %c77_779 = arith.constant 77 : index
    %c0_780 = arith.constant 0 : index
    %c0_781 = arith.constant 0 : index
    %1331 = vector.load %arg1[%c77_779, %c0_780, %c0_781] : memref<257x8x128xf32, #tpu.memory_space<vmem>>, vector<1x8x128xf32>
    %1332 = vector.shape_cast %1331 : vector<1x8x128xf32> to vector<8x128xf32>
    %1333 = arith.addf %1330, %1332 : vector<8x128xf32>
    %cst_782 = arith.constant 0.000000e+00 : f32
    %1334 = vector.broadcast %cst_782 : f32 to vector<8x128xf32>
    %1335 = arith.maximumf %1333, %1334 : vector<8x128xf32>
    %c56_783 = arith.constant 56 : index
    %c0_784 = arith.constant 0 : index
    %c0_785 = arith.constant 0 : index
    %1336 = vector.load %arg1[%c56_783, %c0_784, %c0_785] : memref<257x8x128xf32, #tpu.memory_space<vmem>>, vector<1x8x128xf32>
    %1337 = vector.shape_cast %1336 : vector<1x8x128xf32> to vector<8x128xf32>
    %1338 = arith.mulf %1337, %1046 : vector<8x128xf32>
    %c57_786 = arith.constant 57 : index
    %c0_787 = arith.constant 0 : index
    %c0_788 = arith.constant 0 : index
    %1339 = vector.load %arg1[%c57_786, %c0_787, %c0_788] : memref<257x8x128xf32, #tpu.memory_space<vmem>>, vector<1x8x128xf32>
    %1340 = vector.shape_cast %1339 : vector<1x8x128xf32> to vector<8x128xf32>
    %1341 = arith.mulf %1340, %1049 : vector<8x128xf32>
    %1342 = arith.addf %1338, %1341 : vector<8x128xf32>
    %c58_789 = arith.constant 58 : index
    %c0_790 = arith.constant 0 : index
    %c0_791 = arith.constant 0 : index
    %1343 = vector.load %arg1[%c58_789, %c0_790, %c0_791] : memref<257x8x128xf32, #tpu.memory_space<vmem>>, vector<1x8x128xf32>
    %1344 = vector.shape_cast %1343 : vector<1x8x128xf32> to vector<8x128xf32>
    %1345 = arith.mulf %1344, %1052 : vector<8x128xf32>
    %1346 = arith.addf %1342, %1345 : vector<8x128xf32>
    %c59_792 = arith.constant 59 : index
    %c0_793 = arith.constant 0 : index
    %c0_794 = arith.constant 0 : index
    %1347 = vector.load %arg1[%c59_792, %c0_793, %c0_794] : memref<257x8x128xf32, #tpu.memory_space<vmem>>, vector<1x8x128xf32>
    %1348 = vector.shape_cast %1347 : vector<1x8x128xf32> to vector<8x128xf32>
    %1349 = arith.mulf %1348, %1055 : vector<8x128xf32>
    %1350 = arith.addf %1346, %1349 : vector<8x128xf32>
    %c78_795 = arith.constant 78 : index
    %c0_796 = arith.constant 0 : index
    %c0_797 = arith.constant 0 : index
    %1351 = vector.load %arg1[%c78_795, %c0_796, %c0_797] : memref<257x8x128xf32, #tpu.memory_space<vmem>>, vector<1x8x128xf32>
    %1352 = vector.shape_cast %1351 : vector<1x8x128xf32> to vector<8x128xf32>
    %1353 = arith.addf %1350, %1352 : vector<8x128xf32>
    %cst_798 = arith.constant 0.000000e+00 : f32
    %1354 = vector.broadcast %cst_798 : f32 to vector<8x128xf32>
    %1355 = arith.maximumf %1353, %1354 : vector<8x128xf32>
    %c60_799 = arith.constant 60 : index
    %c0_800 = arith.constant 0 : index
    %c0_801 = arith.constant 0 : index
    %1356 = vector.load %arg1[%c60_799, %c0_800, %c0_801] : memref<257x8x128xf32, #tpu.memory_space<vmem>>, vector<1x8x128xf32>
    %1357 = vector.shape_cast %1356 : vector<1x8x128xf32> to vector<8x128xf32>
    %1358 = arith.mulf %1357, %1046 : vector<8x128xf32>
    %c61_802 = arith.constant 61 : index
    %c0_803 = arith.constant 0 : index
    %c0_804 = arith.constant 0 : index
    %1359 = vector.load %arg1[%c61_802, %c0_803, %c0_804] : memref<257x8x128xf32, #tpu.memory_space<vmem>>, vector<1x8x128xf32>
    %1360 = vector.shape_cast %1359 : vector<1x8x128xf32> to vector<8x128xf32>
    %1361 = arith.mulf %1360, %1049 : vector<8x128xf32>
    %1362 = arith.addf %1358, %1361 : vector<8x128xf32>
    %c62_805 = arith.constant 62 : index
    %c0_806 = arith.constant 0 : index
    %c0_807 = arith.constant 0 : index
    %1363 = vector.load %arg1[%c62_805, %c0_806, %c0_807] : memref<257x8x128xf32, #tpu.memory_space<vmem>>, vector<1x8x128xf32>
    %1364 = vector.shape_cast %1363 : vector<1x8x128xf32> to vector<8x128xf32>
    %1365 = arith.mulf %1364, %1052 : vector<8x128xf32>
    %1366 = arith.addf %1362, %1365 : vector<8x128xf32>
    %c63_808 = arith.constant 63 : index
    %c0_809 = arith.constant 0 : index
    %c0_810 = arith.constant 0 : index
    %1367 = vector.load %arg1[%c63_808, %c0_809, %c0_810] : memref<257x8x128xf32, #tpu.memory_space<vmem>>, vector<1x8x128xf32>
    %1368 = vector.shape_cast %1367 : vector<1x8x128xf32> to vector<8x128xf32>
    %1369 = arith.mulf %1368, %1055 : vector<8x128xf32>
    %1370 = arith.addf %1366, %1369 : vector<8x128xf32>
    %c79_811 = arith.constant 79 : index
    %c0_812 = arith.constant 0 : index
    %c0_813 = arith.constant 0 : index
    %1371 = vector.load %arg1[%c79_811, %c0_812, %c0_813] : memref<257x8x128xf32, #tpu.memory_space<vmem>>, vector<1x8x128xf32>
    %1372 = vector.shape_cast %1371 : vector<1x8x128xf32> to vector<8x128xf32>
    %1373 = arith.addf %1370, %1372 : vector<8x128xf32>
    %cst_814 = arith.constant 0.000000e+00 : f32
    %1374 = vector.broadcast %cst_814 : f32 to vector<8x128xf32>
    %1375 = arith.maximumf %1373, %1374 : vector<8x128xf32>
    %c80_815 = arith.constant 80 : index
    %c0_816 = arith.constant 0 : index
    %c0_817 = arith.constant 0 : index
    %1376 = vector.load %arg1[%c80_815, %c0_816, %c0_817] : memref<257x8x128xf32, #tpu.memory_space<vmem>>, vector<1x8x128xf32>
    %1377 = vector.shape_cast %1376 : vector<1x8x128xf32> to vector<8x128xf32>
    %1378 = arith.mulf %1377, %1075 : vector<8x128xf32>
    %c81_818 = arith.constant 81 : index
    %c0_819 = arith.constant 0 : index
    %c0_820 = arith.constant 0 : index
    %1379 = vector.load %arg1[%c81_818, %c0_819, %c0_820] : memref<257x8x128xf32, #tpu.memory_space<vmem>>, vector<1x8x128xf32>
    %1380 = vector.shape_cast %1379 : vector<1x8x128xf32> to vector<8x128xf32>
    %1381 = arith.mulf %1380, %1095 : vector<8x128xf32>
    %1382 = arith.addf %1378, %1381 : vector<8x128xf32>
    %c82_821 = arith.constant 82 : index
    %c0_822 = arith.constant 0 : index
    %c0_823 = arith.constant 0 : index
    %1383 = vector.load %arg1[%c82_821, %c0_822, %c0_823] : memref<257x8x128xf32, #tpu.memory_space<vmem>>, vector<1x8x128xf32>
    %1384 = vector.shape_cast %1383 : vector<1x8x128xf32> to vector<8x128xf32>
    %1385 = arith.mulf %1384, %1115 : vector<8x128xf32>
    %1386 = arith.addf %1382, %1385 : vector<8x128xf32>
    %c83_824 = arith.constant 83 : index
    %c0_825 = arith.constant 0 : index
    %c0_826 = arith.constant 0 : index
    %1387 = vector.load %arg1[%c83_824, %c0_825, %c0_826] : memref<257x8x128xf32, #tpu.memory_space<vmem>>, vector<1x8x128xf32>
    %1388 = vector.shape_cast %1387 : vector<1x8x128xf32> to vector<8x128xf32>
    %1389 = arith.mulf %1388, %1135 : vector<8x128xf32>
    %1390 = arith.addf %1386, %1389 : vector<8x128xf32>
    %c84_827 = arith.constant 84 : index
    %c0_828 = arith.constant 0 : index
    %c0_829 = arith.constant 0 : index
    %1391 = vector.load %arg1[%c84_827, %c0_828, %c0_829] : memref<257x8x128xf32, #tpu.memory_space<vmem>>, vector<1x8x128xf32>
    %1392 = vector.shape_cast %1391 : vector<1x8x128xf32> to vector<8x128xf32>
    %1393 = arith.mulf %1392, %1155 : vector<8x128xf32>
    %1394 = arith.addf %1390, %1393 : vector<8x128xf32>
    %c85_830 = arith.constant 85 : index
    %c0_831 = arith.constant 0 : index
    %c0_832 = arith.constant 0 : index
    %1395 = vector.load %arg1[%c85_830, %c0_831, %c0_832] : memref<257x8x128xf32, #tpu.memory_space<vmem>>, vector<1x8x128xf32>
    %1396 = vector.shape_cast %1395 : vector<1x8x128xf32> to vector<8x128xf32>
    %1397 = arith.mulf %1396, %1175 : vector<8x128xf32>
    %1398 = arith.addf %1394, %1397 : vector<8x128xf32>
    %c86_833 = arith.constant 86 : index
    %c0_834 = arith.constant 0 : index
    %c0_835 = arith.constant 0 : index
    %1399 = vector.load %arg1[%c86_833, %c0_834, %c0_835] : memref<257x8x128xf32, #tpu.memory_space<vmem>>, vector<1x8x128xf32>
    %1400 = vector.shape_cast %1399 : vector<1x8x128xf32> to vector<8x128xf32>
    %1401 = arith.mulf %1400, %1195 : vector<8x128xf32>
    %1402 = arith.addf %1398, %1401 : vector<8x128xf32>
    %c87_836 = arith.constant 87 : index
    %c0_837 = arith.constant 0 : index
    %c0_838 = arith.constant 0 : index
    %1403 = vector.load %arg1[%c87_836, %c0_837, %c0_838] : memref<257x8x128xf32, #tpu.memory_space<vmem>>, vector<1x8x128xf32>
    %1404 = vector.shape_cast %1403 : vector<1x8x128xf32> to vector<8x128xf32>
    %1405 = arith.mulf %1404, %1215 : vector<8x128xf32>
    %1406 = arith.addf %1402, %1405 : vector<8x128xf32>
    %c88_839 = arith.constant 88 : index
    %c0_840 = arith.constant 0 : index
    %c0_841 = arith.constant 0 : index
    %1407 = vector.load %arg1[%c88_839, %c0_840, %c0_841] : memref<257x8x128xf32, #tpu.memory_space<vmem>>, vector<1x8x128xf32>
    %1408 = vector.shape_cast %1407 : vector<1x8x128xf32> to vector<8x128xf32>
    %1409 = arith.mulf %1408, %1235 : vector<8x128xf32>
    %1410 = arith.addf %1406, %1409 : vector<8x128xf32>
    %c89_842 = arith.constant 89 : index
    %c0_843 = arith.constant 0 : index
    %c0_844 = arith.constant 0 : index
    %1411 = vector.load %arg1[%c89_842, %c0_843, %c0_844] : memref<257x8x128xf32, #tpu.memory_space<vmem>>, vector<1x8x128xf32>
    %1412 = vector.shape_cast %1411 : vector<1x8x128xf32> to vector<8x128xf32>
    %1413 = arith.mulf %1412, %1255 : vector<8x128xf32>
    %1414 = arith.addf %1410, %1413 : vector<8x128xf32>
    %c90_845 = arith.constant 90 : index
    %c0_846 = arith.constant 0 : index
    %c0_847 = arith.constant 0 : index
    %1415 = vector.load %arg1[%c90_845, %c0_846, %c0_847] : memref<257x8x128xf32, #tpu.memory_space<vmem>>, vector<1x8x128xf32>
    %1416 = vector.shape_cast %1415 : vector<1x8x128xf32> to vector<8x128xf32>
    %1417 = arith.mulf %1416, %1275 : vector<8x128xf32>
    %1418 = arith.addf %1414, %1417 : vector<8x128xf32>
    %c91_848 = arith.constant 91 : index
    %c0_849 = arith.constant 0 : index
    %c0_850 = arith.constant 0 : index
    %1419 = vector.load %arg1[%c91_848, %c0_849, %c0_850] : memref<257x8x128xf32, #tpu.memory_space<vmem>>, vector<1x8x128xf32>
    %1420 = vector.shape_cast %1419 : vector<1x8x128xf32> to vector<8x128xf32>
    %1421 = arith.mulf %1420, %1295 : vector<8x128xf32>
    %1422 = arith.addf %1418, %1421 : vector<8x128xf32>
    %c92_851 = arith.constant 92 : index
    %c0_852 = arith.constant 0 : index
    %c0_853 = arith.constant 0 : index
    %1423 = vector.load %arg1[%c92_851, %c0_852, %c0_853] : memref<257x8x128xf32, #tpu.memory_space<vmem>>, vector<1x8x128xf32>
    %1424 = vector.shape_cast %1423 : vector<1x8x128xf32> to vector<8x128xf32>
    %1425 = arith.mulf %1424, %1315 : vector<8x128xf32>
    %1426 = arith.addf %1422, %1425 : vector<8x128xf32>
    %c93_854 = arith.constant 93 : index
    %c0_855 = arith.constant 0 : index
    %c0_856 = arith.constant 0 : index
    %1427 = vector.load %arg1[%c93_854, %c0_855, %c0_856] : memref<257x8x128xf32, #tpu.memory_space<vmem>>, vector<1x8x128xf32>
    %1428 = vector.shape_cast %1427 : vector<1x8x128xf32> to vector<8x128xf32>
    %1429 = arith.mulf %1428, %1335 : vector<8x128xf32>
    %1430 = arith.addf %1426, %1429 : vector<8x128xf32>
    %c94_857 = arith.constant 94 : index
    %c0_858 = arith.constant 0 : index
    %c0_859 = arith.constant 0 : index
    %1431 = vector.load %arg1[%c94_857, %c0_858, %c0_859] : memref<257x8x128xf32, #tpu.memory_space<vmem>>, vector<1x8x128xf32>
    %1432 = vector.shape_cast %1431 : vector<1x8x128xf32> to vector<8x128xf32>
    %1433 = arith.mulf %1432, %1355 : vector<8x128xf32>
    %1434 = arith.addf %1430, %1433 : vector<8x128xf32>
    %c95_860 = arith.constant 95 : index
    %c0_861 = arith.constant 0 : index
    %c0_862 = arith.constant 0 : index
    %1435 = vector.load %arg1[%c95_860, %c0_861, %c0_862] : memref<257x8x128xf32, #tpu.memory_space<vmem>>, vector<1x8x128xf32>
    %1436 = vector.shape_cast %1435 : vector<1x8x128xf32> to vector<8x128xf32>
    %1437 = arith.mulf %1436, %1375 : vector<8x128xf32>
    %1438 = arith.addf %1434, %1437 : vector<8x128xf32>
    %c208_863 = arith.constant 208 : index
    %c0_864 = arith.constant 0 : index
    %c0_865 = arith.constant 0 : index
    %1439 = vector.load %arg1[%c208_863, %c0_864, %c0_865] : memref<257x8x128xf32, #tpu.memory_space<vmem>>, vector<1x8x128xf32>
    %1440 = vector.shape_cast %1439 : vector<1x8x128xf32> to vector<8x128xf32>
    %1441 = arith.addf %1438, %1440 : vector<8x128xf32>
    %cst_866 = arith.constant 0.000000e+00 : f32
    %1442 = vector.broadcast %cst_866 : f32 to vector<8x128xf32>
    %1443 = arith.maximumf %1441, %1442 : vector<8x128xf32>
    %c96_867 = arith.constant 96 : index
    %c0_868 = arith.constant 0 : index
    %c0_869 = arith.constant 0 : index
    %1444 = vector.load %arg1[%c96_867, %c0_868, %c0_869] : memref<257x8x128xf32, #tpu.memory_space<vmem>>, vector<1x8x128xf32>
    %1445 = vector.shape_cast %1444 : vector<1x8x128xf32> to vector<8x128xf32>
    %1446 = arith.mulf %1445, %1075 : vector<8x128xf32>
    %c97_870 = arith.constant 97 : index
    %c0_871 = arith.constant 0 : index
    %c0_872 = arith.constant 0 : index
    %1447 = vector.load %arg1[%c97_870, %c0_871, %c0_872] : memref<257x8x128xf32, #tpu.memory_space<vmem>>, vector<1x8x128xf32>
    %1448 = vector.shape_cast %1447 : vector<1x8x128xf32> to vector<8x128xf32>
    %1449 = arith.mulf %1448, %1095 : vector<8x128xf32>
    %1450 = arith.addf %1446, %1449 : vector<8x128xf32>
    %c98_873 = arith.constant 98 : index
    %c0_874 = arith.constant 0 : index
    %c0_875 = arith.constant 0 : index
    %1451 = vector.load %arg1[%c98_873, %c0_874, %c0_875] : memref<257x8x128xf32, #tpu.memory_space<vmem>>, vector<1x8x128xf32>
    %1452 = vector.shape_cast %1451 : vector<1x8x128xf32> to vector<8x128xf32>
    %1453 = arith.mulf %1452, %1115 : vector<8x128xf32>
    %1454 = arith.addf %1450, %1453 : vector<8x128xf32>
    %c99_876 = arith.constant 99 : index
    %c0_877 = arith.constant 0 : index
    %c0_878 = arith.constant 0 : index
    %1455 = vector.load %arg1[%c99_876, %c0_877, %c0_878] : memref<257x8x128xf32, #tpu.memory_space<vmem>>, vector<1x8x128xf32>
    %1456 = vector.shape_cast %1455 : vector<1x8x128xf32> to vector<8x128xf32>
    %1457 = arith.mulf %1456, %1135 : vector<8x128xf32>
    %1458 = arith.addf %1454, %1457 : vector<8x128xf32>
    %c100_879 = arith.constant 100 : index
    %c0_880 = arith.constant 0 : index
    %c0_881 = arith.constant 0 : index
    %1459 = vector.load %arg1[%c100_879, %c0_880, %c0_881] : memref<257x8x128xf32, #tpu.memory_space<vmem>>, vector<1x8x128xf32>
    %1460 = vector.shape_cast %1459 : vector<1x8x128xf32> to vector<8x128xf32>
    %1461 = arith.mulf %1460, %1155 : vector<8x128xf32>
    %1462 = arith.addf %1458, %1461 : vector<8x128xf32>
    %c101_882 = arith.constant 101 : index
    %c0_883 = arith.constant 0 : index
    %c0_884 = arith.constant 0 : index
    %1463 = vector.load %arg1[%c101_882, %c0_883, %c0_884] : memref<257x8x128xf32, #tpu.memory_space<vmem>>, vector<1x8x128xf32>
    %1464 = vector.shape_cast %1463 : vector<1x8x128xf32> to vector<8x128xf32>
    %1465 = arith.mulf %1464, %1175 : vector<8x128xf32>
    %1466 = arith.addf %1462, %1465 : vector<8x128xf32>
    %c102_885 = arith.constant 102 : index
    %c0_886 = arith.constant 0 : index
    %c0_887 = arith.constant 0 : index
    %1467 = vector.load %arg1[%c102_885, %c0_886, %c0_887] : memref<257x8x128xf32, #tpu.memory_space<vmem>>, vector<1x8x128xf32>
    %1468 = vector.shape_cast %1467 : vector<1x8x128xf32> to vector<8x128xf32>
    %1469 = arith.mulf %1468, %1195 : vector<8x128xf32>
    %1470 = arith.addf %1466, %1469 : vector<8x128xf32>
    %c103_888 = arith.constant 103 : index
    %c0_889 = arith.constant 0 : index
    %c0_890 = arith.constant 0 : index
    %1471 = vector.load %arg1[%c103_888, %c0_889, %c0_890] : memref<257x8x128xf32, #tpu.memory_space<vmem>>, vector<1x8x128xf32>
    %1472 = vector.shape_cast %1471 : vector<1x8x128xf32> to vector<8x128xf32>
    %1473 = arith.mulf %1472, %1215 : vector<8x128xf32>
    %1474 = arith.addf %1470, %1473 : vector<8x128xf32>
    %c104_891 = arith.constant 104 : index
    %c0_892 = arith.constant 0 : index
    %c0_893 = arith.constant 0 : index
    %1475 = vector.load %arg1[%c104_891, %c0_892, %c0_893] : memref<257x8x128xf32, #tpu.memory_space<vmem>>, vector<1x8x128xf32>
    %1476 = vector.shape_cast %1475 : vector<1x8x128xf32> to vector<8x128xf32>
    %1477 = arith.mulf %1476, %1235 : vector<8x128xf32>
    %1478 = arith.addf %1474, %1477 : vector<8x128xf32>
    %c105_894 = arith.constant 105 : index
    %c0_895 = arith.constant 0 : index
    %c0_896 = arith.constant 0 : index
    %1479 = vector.load %arg1[%c105_894, %c0_895, %c0_896] : memref<257x8x128xf32, #tpu.memory_space<vmem>>, vector<1x8x128xf32>
    %1480 = vector.shape_cast %1479 : vector<1x8x128xf32> to vector<8x128xf32>
    %1481 = arith.mulf %1480, %1255 : vector<8x128xf32>
    %1482 = arith.addf %1478, %1481 : vector<8x128xf32>
    %c106_897 = arith.constant 106 : index
    %c0_898 = arith.constant 0 : index
    %c0_899 = arith.constant 0 : index
    %1483 = vector.load %arg1[%c106_897, %c0_898, %c0_899] : memref<257x8x128xf32, #tpu.memory_space<vmem>>, vector<1x8x128xf32>
    %1484 = vector.shape_cast %1483 : vector<1x8x128xf32> to vector<8x128xf32>
    %1485 = arith.mulf %1484, %1275 : vector<8x128xf32>
    %1486 = arith.addf %1482, %1485 : vector<8x128xf32>
    %c107_900 = arith.constant 107 : index
    %c0_901 = arith.constant 0 : index
    %c0_902 = arith.constant 0 : index
    %1487 = vector.load %arg1[%c107_900, %c0_901, %c0_902] : memref<257x8x128xf32, #tpu.memory_space<vmem>>, vector<1x8x128xf32>
    %1488 = vector.shape_cast %1487 : vector<1x8x128xf32> to vector<8x128xf32>
    %1489 = arith.mulf %1488, %1295 : vector<8x128xf32>
    %1490 = arith.addf %1486, %1489 : vector<8x128xf32>
    %c108_903 = arith.constant 108 : index
    %c0_904 = arith.constant 0 : index
    %c0_905 = arith.constant 0 : index
    %1491 = vector.load %arg1[%c108_903, %c0_904, %c0_905] : memref<257x8x128xf32, #tpu.memory_space<vmem>>, vector<1x8x128xf32>
    %1492 = vector.shape_cast %1491 : vector<1x8x128xf32> to vector<8x128xf32>
    %1493 = arith.mulf %1492, %1315 : vector<8x128xf32>
    %1494 = arith.addf %1490, %1493 : vector<8x128xf32>
    %c109_906 = arith.constant 109 : index
    %c0_907 = arith.constant 0 : index
    %c0_908 = arith.constant 0 : index
    %1495 = vector.load %arg1[%c109_906, %c0_907, %c0_908] : memref<257x8x128xf32, #tpu.memory_space<vmem>>, vector<1x8x128xf32>
    %1496 = vector.shape_cast %1495 : vector<1x8x128xf32> to vector<8x128xf32>
    %1497 = arith.mulf %1496, %1335 : vector<8x128xf32>
    %1498 = arith.addf %1494, %1497 : vector<8x128xf32>
    %c110_909 = arith.constant 110 : index
    %c0_910 = arith.constant 0 : index
    %c0_911 = arith.constant 0 : index
    %1499 = vector.load %arg1[%c110_909, %c0_910, %c0_911] : memref<257x8x128xf32, #tpu.memory_space<vmem>>, vector<1x8x128xf32>
    %1500 = vector.shape_cast %1499 : vector<1x8x128xf32> to vector<8x128xf32>
    %1501 = arith.mulf %1500, %1355 : vector<8x128xf32>
    %1502 = arith.addf %1498, %1501 : vector<8x128xf32>
    %c111_912 = arith.constant 111 : index
    %c0_913 = arith.constant 0 : index
    %c0_914 = arith.constant 0 : index
    %1503 = vector.load %arg1[%c111_912, %c0_913, %c0_914] : memref<257x8x128xf32, #tpu.memory_space<vmem>>, vector<1x8x128xf32>
    %1504 = vector.shape_cast %1503 : vector<1x8x128xf32> to vector<8x128xf32>
    %1505 = arith.mulf %1504, %1375 : vector<8x128xf32>
    %1506 = arith.addf %1502, %1505 : vector<8x128xf32>
    %c209_915 = arith.constant 209 : index
    %c0_916 = arith.constant 0 : index
    %c0_917 = arith.constant 0 : index
    %1507 = vector.load %arg1[%c209_915, %c0_916, %c0_917] : memref<257x8x128xf32, #tpu.memory_space<vmem>>, vector<1x8x128xf32>
    %1508 = vector.shape_cast %1507 : vector<1x8x128xf32> to vector<8x128xf32>
    %1509 = arith.addf %1506, %1508 : vector<8x128xf32>
    %cst_918 = arith.constant 0.000000e+00 : f32
    %1510 = vector.broadcast %cst_918 : f32 to vector<8x128xf32>
    %1511 = arith.maximumf %1509, %1510 : vector<8x128xf32>
    %c112_919 = arith.constant 112 : index
    %c0_920 = arith.constant 0 : index
    %c0_921 = arith.constant 0 : index
    %1512 = vector.load %arg1[%c112_919, %c0_920, %c0_921] : memref<257x8x128xf32, #tpu.memory_space<vmem>>, vector<1x8x128xf32>
    %1513 = vector.shape_cast %1512 : vector<1x8x128xf32> to vector<8x128xf32>
    %1514 = arith.mulf %1513, %1075 : vector<8x128xf32>
    %c113_922 = arith.constant 113 : index
    %c0_923 = arith.constant 0 : index
    %c0_924 = arith.constant 0 : index
    %1515 = vector.load %arg1[%c113_922, %c0_923, %c0_924] : memref<257x8x128xf32, #tpu.memory_space<vmem>>, vector<1x8x128xf32>
    %1516 = vector.shape_cast %1515 : vector<1x8x128xf32> to vector<8x128xf32>
    %1517 = arith.mulf %1516, %1095 : vector<8x128xf32>
    %1518 = arith.addf %1514, %1517 : vector<8x128xf32>
    %c114_925 = arith.constant 114 : index
    %c0_926 = arith.constant 0 : index
    %c0_927 = arith.constant 0 : index
    %1519 = vector.load %arg1[%c114_925, %c0_926, %c0_927] : memref<257x8x128xf32, #tpu.memory_space<vmem>>, vector<1x8x128xf32>
    %1520 = vector.shape_cast %1519 : vector<1x8x128xf32> to vector<8x128xf32>
    %1521 = arith.mulf %1520, %1115 : vector<8x128xf32>
    %1522 = arith.addf %1518, %1521 : vector<8x128xf32>
    %c115_928 = arith.constant 115 : index
    %c0_929 = arith.constant 0 : index
    %c0_930 = arith.constant 0 : index
    %1523 = vector.load %arg1[%c115_928, %c0_929, %c0_930] : memref<257x8x128xf32, #tpu.memory_space<vmem>>, vector<1x8x128xf32>
    %1524 = vector.shape_cast %1523 : vector<1x8x128xf32> to vector<8x128xf32>
    %1525 = arith.mulf %1524, %1135 : vector<8x128xf32>
    %1526 = arith.addf %1522, %1525 : vector<8x128xf32>
    %c116_931 = arith.constant 116 : index
    %c0_932 = arith.constant 0 : index
    %c0_933 = arith.constant 0 : index
    %1527 = vector.load %arg1[%c116_931, %c0_932, %c0_933] : memref<257x8x128xf32, #tpu.memory_space<vmem>>, vector<1x8x128xf32>
    %1528 = vector.shape_cast %1527 : vector<1x8x128xf32> to vector<8x128xf32>
    %1529 = arith.mulf %1528, %1155 : vector<8x128xf32>
    %1530 = arith.addf %1526, %1529 : vector<8x128xf32>
    %c117_934 = arith.constant 117 : index
    %c0_935 = arith.constant 0 : index
    %c0_936 = arith.constant 0 : index
    %1531 = vector.load %arg1[%c117_934, %c0_935, %c0_936] : memref<257x8x128xf32, #tpu.memory_space<vmem>>, vector<1x8x128xf32>
    %1532 = vector.shape_cast %1531 : vector<1x8x128xf32> to vector<8x128xf32>
    %1533 = arith.mulf %1532, %1175 : vector<8x128xf32>
    %1534 = arith.addf %1530, %1533 : vector<8x128xf32>
    %c118_937 = arith.constant 118 : index
    %c0_938 = arith.constant 0 : index
    %c0_939 = arith.constant 0 : index
    %1535 = vector.load %arg1[%c118_937, %c0_938, %c0_939] : memref<257x8x128xf32, #tpu.memory_space<vmem>>, vector<1x8x128xf32>
    %1536 = vector.shape_cast %1535 : vector<1x8x128xf32> to vector<8x128xf32>
    %1537 = arith.mulf %1536, %1195 : vector<8x128xf32>
    %1538 = arith.addf %1534, %1537 : vector<8x128xf32>
    %c119_940 = arith.constant 119 : index
    %c0_941 = arith.constant 0 : index
    %c0_942 = arith.constant 0 : index
    %1539 = vector.load %arg1[%c119_940, %c0_941, %c0_942] : memref<257x8x128xf32, #tpu.memory_space<vmem>>, vector<1x8x128xf32>
    %1540 = vector.shape_cast %1539 : vector<1x8x128xf32> to vector<8x128xf32>
    %1541 = arith.mulf %1540, %1215 : vector<8x128xf32>
    %1542 = arith.addf %1538, %1541 : vector<8x128xf32>
    %c120_943 = arith.constant 120 : index
    %c0_944 = arith.constant 0 : index
    %c0_945 = arith.constant 0 : index
    %1543 = vector.load %arg1[%c120_943, %c0_944, %c0_945] : memref<257x8x128xf32, #tpu.memory_space<vmem>>, vector<1x8x128xf32>
    %1544 = vector.shape_cast %1543 : vector<1x8x128xf32> to vector<8x128xf32>
    %1545 = arith.mulf %1544, %1235 : vector<8x128xf32>
    %1546 = arith.addf %1542, %1545 : vector<8x128xf32>
    %c121_946 = arith.constant 121 : index
    %c0_947 = arith.constant 0 : index
    %c0_948 = arith.constant 0 : index
    %1547 = vector.load %arg1[%c121_946, %c0_947, %c0_948] : memref<257x8x128xf32, #tpu.memory_space<vmem>>, vector<1x8x128xf32>
    %1548 = vector.shape_cast %1547 : vector<1x8x128xf32> to vector<8x128xf32>
    %1549 = arith.mulf %1548, %1255 : vector<8x128xf32>
    %1550 = arith.addf %1546, %1549 : vector<8x128xf32>
    %c122_949 = arith.constant 122 : index
    %c0_950 = arith.constant 0 : index
    %c0_951 = arith.constant 0 : index
    %1551 = vector.load %arg1[%c122_949, %c0_950, %c0_951] : memref<257x8x128xf32, #tpu.memory_space<vmem>>, vector<1x8x128xf32>
    %1552 = vector.shape_cast %1551 : vector<1x8x128xf32> to vector<8x128xf32>
    %1553 = arith.mulf %1552, %1275 : vector<8x128xf32>
    %1554 = arith.addf %1550, %1553 : vector<8x128xf32>
    %c123_952 = arith.constant 123 : index
    %c0_953 = arith.constant 0 : index
    %c0_954 = arith.constant 0 : index
    %1555 = vector.load %arg1[%c123_952, %c0_953, %c0_954] : memref<257x8x128xf32, #tpu.memory_space<vmem>>, vector<1x8x128xf32>
    %1556 = vector.shape_cast %1555 : vector<1x8x128xf32> to vector<8x128xf32>
    %1557 = arith.mulf %1556, %1295 : vector<8x128xf32>
    %1558 = arith.addf %1554, %1557 : vector<8x128xf32>
    %c124_955 = arith.constant 124 : index
    %c0_956 = arith.constant 0 : index
    %c0_957 = arith.constant 0 : index
    %1559 = vector.load %arg1[%c124_955, %c0_956, %c0_957] : memref<257x8x128xf32, #tpu.memory_space<vmem>>, vector<1x8x128xf32>
    %1560 = vector.shape_cast %1559 : vector<1x8x128xf32> to vector<8x128xf32>
    %1561 = arith.mulf %1560, %1315 : vector<8x128xf32>
    %1562 = arith.addf %1558, %1561 : vector<8x128xf32>
    %c125_958 = arith.constant 125 : index
    %c0_959 = arith.constant 0 : index
    %c0_960 = arith.constant 0 : index
    %1563 = vector.load %arg1[%c125_958, %c0_959, %c0_960] : memref<257x8x128xf32, #tpu.memory_space<vmem>>, vector<1x8x128xf32>
    %1564 = vector.shape_cast %1563 : vector<1x8x128xf32> to vector<8x128xf32>
    %1565 = arith.mulf %1564, %1335 : vector<8x128xf32>
    %1566 = arith.addf %1562, %1565 : vector<8x128xf32>
    %c126_961 = arith.constant 126 : index
    %c0_962 = arith.constant 0 : index
    %c0_963 = arith.constant 0 : index
    %1567 = vector.load %arg1[%c126_961, %c0_962, %c0_963] : memref<257x8x128xf32, #tpu.memory_space<vmem>>, vector<1x8x128xf32>
    %1568 = vector.shape_cast %1567 : vector<1x8x128xf32> to vector<8x128xf32>
    %1569 = arith.mulf %1568, %1355 : vector<8x128xf32>
    %1570 = arith.addf %1566, %1569 : vector<8x128xf32>
    %c127_964 = arith.constant 127 : index
    %c0_965 = arith.constant 0 : index
    %c0_966 = arith.constant 0 : index
    %1571 = vector.load %arg1[%c127_964, %c0_965, %c0_966] : memref<257x8x128xf32, #tpu.memory_space<vmem>>, vector<1x8x128xf32>
    %1572 = vector.shape_cast %1571 : vector<1x8x128xf32> to vector<8x128xf32>
    %1573 = arith.mulf %1572, %1375 : vector<8x128xf32>
    %1574 = arith.addf %1570, %1573 : vector<8x128xf32>
    %c210_967 = arith.constant 210 : index
    %c0_968 = arith.constant 0 : index
    %c0_969 = arith.constant 0 : index
    %1575 = vector.load %arg1[%c210_967, %c0_968, %c0_969] : memref<257x8x128xf32, #tpu.memory_space<vmem>>, vector<1x8x128xf32>
    %1576 = vector.shape_cast %1575 : vector<1x8x128xf32> to vector<8x128xf32>
    %1577 = arith.addf %1574, %1576 : vector<8x128xf32>
    %cst_970 = arith.constant 0.000000e+00 : f32
    %1578 = vector.broadcast %cst_970 : f32 to vector<8x128xf32>
    %1579 = arith.maximumf %1577, %1578 : vector<8x128xf32>
    %c128_971 = arith.constant 128 : index
    %c0_972 = arith.constant 0 : index
    %c0_973 = arith.constant 0 : index
    %1580 = vector.load %arg1[%c128_971, %c0_972, %c0_973] : memref<257x8x128xf32, #tpu.memory_space<vmem>>, vector<1x8x128xf32>
    %1581 = vector.shape_cast %1580 : vector<1x8x128xf32> to vector<8x128xf32>
    %1582 = arith.mulf %1581, %1075 : vector<8x128xf32>
    %c129_974 = arith.constant 129 : index
    %c0_975 = arith.constant 0 : index
    %c0_976 = arith.constant 0 : index
    %1583 = vector.load %arg1[%c129_974, %c0_975, %c0_976] : memref<257x8x128xf32, #tpu.memory_space<vmem>>, vector<1x8x128xf32>
    %1584 = vector.shape_cast %1583 : vector<1x8x128xf32> to vector<8x128xf32>
    %1585 = arith.mulf %1584, %1095 : vector<8x128xf32>
    %1586 = arith.addf %1582, %1585 : vector<8x128xf32>
    %c130_977 = arith.constant 130 : index
    %c0_978 = arith.constant 0 : index
    %c0_979 = arith.constant 0 : index
    %1587 = vector.load %arg1[%c130_977, %c0_978, %c0_979] : memref<257x8x128xf32, #tpu.memory_space<vmem>>, vector<1x8x128xf32>
    %1588 = vector.shape_cast %1587 : vector<1x8x128xf32> to vector<8x128xf32>
    %1589 = arith.mulf %1588, %1115 : vector<8x128xf32>
    %1590 = arith.addf %1586, %1589 : vector<8x128xf32>
    %c131_980 = arith.constant 131 : index
    %c0_981 = arith.constant 0 : index
    %c0_982 = arith.constant 0 : index
    %1591 = vector.load %arg1[%c131_980, %c0_981, %c0_982] : memref<257x8x128xf32, #tpu.memory_space<vmem>>, vector<1x8x128xf32>
    %1592 = vector.shape_cast %1591 : vector<1x8x128xf32> to vector<8x128xf32>
    %1593 = arith.mulf %1592, %1135 : vector<8x128xf32>
    %1594 = arith.addf %1590, %1593 : vector<8x128xf32>
    %c132_983 = arith.constant 132 : index
    %c0_984 = arith.constant 0 : index
    %c0_985 = arith.constant 0 : index
    %1595 = vector.load %arg1[%c132_983, %c0_984, %c0_985] : memref<257x8x128xf32, #tpu.memory_space<vmem>>, vector<1x8x128xf32>
    %1596 = vector.shape_cast %1595 : vector<1x8x128xf32> to vector<8x128xf32>
    %1597 = arith.mulf %1596, %1155 : vector<8x128xf32>
    %1598 = arith.addf %1594, %1597 : vector<8x128xf32>
    %c133_986 = arith.constant 133 : index
    %c0_987 = arith.constant 0 : index
    %c0_988 = arith.constant 0 : index
    %1599 = vector.load %arg1[%c133_986, %c0_987, %c0_988] : memref<257x8x128xf32, #tpu.memory_space<vmem>>, vector<1x8x128xf32>
    %1600 = vector.shape_cast %1599 : vector<1x8x128xf32> to vector<8x128xf32>
    %1601 = arith.mulf %1600, %1175 : vector<8x128xf32>
    %1602 = arith.addf %1598, %1601 : vector<8x128xf32>
    %c134_989 = arith.constant 134 : index
    %c0_990 = arith.constant 0 : index
    %c0_991 = arith.constant 0 : index
    %1603 = vector.load %arg1[%c134_989, %c0_990, %c0_991] : memref<257x8x128xf32, #tpu.memory_space<vmem>>, vector<1x8x128xf32>
    %1604 = vector.shape_cast %1603 : vector<1x8x128xf32> to vector<8x128xf32>
    %1605 = arith.mulf %1604, %1195 : vector<8x128xf32>
    %1606 = arith.addf %1602, %1605 : vector<8x128xf32>
    %c135_992 = arith.constant 135 : index
    %c0_993 = arith.constant 0 : index
    %c0_994 = arith.constant 0 : index
    %1607 = vector.load %arg1[%c135_992, %c0_993, %c0_994] : memref<257x8x128xf32, #tpu.memory_space<vmem>>, vector<1x8x128xf32>
    %1608 = vector.shape_cast %1607 : vector<1x8x128xf32> to vector<8x128xf32>
    %1609 = arith.mulf %1608, %1215 : vector<8x128xf32>
    %1610 = arith.addf %1606, %1609 : vector<8x128xf32>
    %c136_995 = arith.constant 136 : index
    %c0_996 = arith.constant 0 : index
    %c0_997 = arith.constant 0 : index
    %1611 = vector.load %arg1[%c136_995, %c0_996, %c0_997] : memref<257x8x128xf32, #tpu.memory_space<vmem>>, vector<1x8x128xf32>
    %1612 = vector.shape_cast %1611 : vector<1x8x128xf32> to vector<8x128xf32>
    %1613 = arith.mulf %1612, %1235 : vector<8x128xf32>
    %1614 = arith.addf %1610, %1613 : vector<8x128xf32>
    %c137_998 = arith.constant 137 : index
    %c0_999 = arith.constant 0 : index
    %c0_1000 = arith.constant 0 : index
    %1615 = vector.load %arg1[%c137_998, %c0_999, %c0_1000] : memref<257x8x128xf32, #tpu.memory_space<vmem>>, vector<1x8x128xf32>
    %1616 = vector.shape_cast %1615 : vector<1x8x128xf32> to vector<8x128xf32>
    %1617 = arith.mulf %1616, %1255 : vector<8x128xf32>
    %1618 = arith.addf %1614, %1617 : vector<8x128xf32>
    %c138_1001 = arith.constant 138 : index
    %c0_1002 = arith.constant 0 : index
    %c0_1003 = arith.constant 0 : index
    %1619 = vector.load %arg1[%c138_1001, %c0_1002, %c0_1003] : memref<257x8x128xf32, #tpu.memory_space<vmem>>, vector<1x8x128xf32>
    %1620 = vector.shape_cast %1619 : vector<1x8x128xf32> to vector<8x128xf32>
    %1621 = arith.mulf %1620, %1275 : vector<8x128xf32>
    %1622 = arith.addf %1618, %1621 : vector<8x128xf32>
    %c139_1004 = arith.constant 139 : index
    %c0_1005 = arith.constant 0 : index
    %c0_1006 = arith.constant 0 : index
    %1623 = vector.load %arg1[%c139_1004, %c0_1005, %c0_1006] : memref<257x8x128xf32, #tpu.memory_space<vmem>>, vector<1x8x128xf32>
    %1624 = vector.shape_cast %1623 : vector<1x8x128xf32> to vector<8x128xf32>
    %1625 = arith.mulf %1624, %1295 : vector<8x128xf32>
    %1626 = arith.addf %1622, %1625 : vector<8x128xf32>
    %c140_1007 = arith.constant 140 : index
    %c0_1008 = arith.constant 0 : index
    %c0_1009 = arith.constant 0 : index
    %1627 = vector.load %arg1[%c140_1007, %c0_1008, %c0_1009] : memref<257x8x128xf32, #tpu.memory_space<vmem>>, vector<1x8x128xf32>
    %1628 = vector.shape_cast %1627 : vector<1x8x128xf32> to vector<8x128xf32>
    %1629 = arith.mulf %1628, %1315 : vector<8x128xf32>
    %1630 = arith.addf %1626, %1629 : vector<8x128xf32>
    %c141_1010 = arith.constant 141 : index
    %c0_1011 = arith.constant 0 : index
    %c0_1012 = arith.constant 0 : index
    %1631 = vector.load %arg1[%c141_1010, %c0_1011, %c0_1012] : memref<257x8x128xf32, #tpu.memory_space<vmem>>, vector<1x8x128xf32>
    %1632 = vector.shape_cast %1631 : vector<1x8x128xf32> to vector<8x128xf32>
    %1633 = arith.mulf %1632, %1335 : vector<8x128xf32>
    %1634 = arith.addf %1630, %1633 : vector<8x128xf32>
    %c142_1013 = arith.constant 142 : index
    %c0_1014 = arith.constant 0 : index
    %c0_1015 = arith.constant 0 : index
    %1635 = vector.load %arg1[%c142_1013, %c0_1014, %c0_1015] : memref<257x8x128xf32, #tpu.memory_space<vmem>>, vector<1x8x128xf32>
    %1636 = vector.shape_cast %1635 : vector<1x8x128xf32> to vector<8x128xf32>
    %1637 = arith.mulf %1636, %1355 : vector<8x128xf32>
    %1638 = arith.addf %1634, %1637 : vector<8x128xf32>
    %c143_1016 = arith.constant 143 : index
    %c0_1017 = arith.constant 0 : index
    %c0_1018 = arith.constant 0 : index
    %1639 = vector.load %arg1[%c143_1016, %c0_1017, %c0_1018] : memref<257x8x128xf32, #tpu.memory_space<vmem>>, vector<1x8x128xf32>
    %1640 = vector.shape_cast %1639 : vector<1x8x128xf32> to vector<8x128xf32>
    %1641 = arith.mulf %1640, %1375 : vector<8x128xf32>
    %1642 = arith.addf %1638, %1641 : vector<8x128xf32>
    %c211_1019 = arith.constant 211 : index
    %c0_1020 = arith.constant 0 : index
    %c0_1021 = arith.constant 0 : index
    %1643 = vector.load %arg1[%c211_1019, %c0_1020, %c0_1021] : memref<257x8x128xf32, #tpu.memory_space<vmem>>, vector<1x8x128xf32>
    %1644 = vector.shape_cast %1643 : vector<1x8x128xf32> to vector<8x128xf32>
    %1645 = arith.addf %1642, %1644 : vector<8x128xf32>
    %cst_1022 = arith.constant 0.000000e+00 : f32
    %1646 = vector.broadcast %cst_1022 : f32 to vector<8x128xf32>
    %1647 = arith.maximumf %1645, %1646 : vector<8x128xf32>
    %c144_1023 = arith.constant 144 : index
    %c0_1024 = arith.constant 0 : index
    %c0_1025 = arith.constant 0 : index
    %1648 = vector.load %arg1[%c144_1023, %c0_1024, %c0_1025] : memref<257x8x128xf32, #tpu.memory_space<vmem>>, vector<1x8x128xf32>
    %1649 = vector.shape_cast %1648 : vector<1x8x128xf32> to vector<8x128xf32>
    %1650 = arith.mulf %1649, %1075 : vector<8x128xf32>
    %c145_1026 = arith.constant 145 : index
    %c0_1027 = arith.constant 0 : index
    %c0_1028 = arith.constant 0 : index
    %1651 = vector.load %arg1[%c145_1026, %c0_1027, %c0_1028] : memref<257x8x128xf32, #tpu.memory_space<vmem>>, vector<1x8x128xf32>
    %1652 = vector.shape_cast %1651 : vector<1x8x128xf32> to vector<8x128xf32>
    %1653 = arith.mulf %1652, %1095 : vector<8x128xf32>
    %1654 = arith.addf %1650, %1653 : vector<8x128xf32>
    %c146_1029 = arith.constant 146 : index
    %c0_1030 = arith.constant 0 : index
    %c0_1031 = arith.constant 0 : index
    %1655 = vector.load %arg1[%c146_1029, %c0_1030, %c0_1031] : memref<257x8x128xf32, #tpu.memory_space<vmem>>, vector<1x8x128xf32>
    %1656 = vector.shape_cast %1655 : vector<1x8x128xf32> to vector<8x128xf32>
    %1657 = arith.mulf %1656, %1115 : vector<8x128xf32>
    %1658 = arith.addf %1654, %1657 : vector<8x128xf32>
    %c147_1032 = arith.constant 147 : index
    %c0_1033 = arith.constant 0 : index
    %c0_1034 = arith.constant 0 : index
    %1659 = vector.load %arg1[%c147_1032, %c0_1033, %c0_1034] : memref<257x8x128xf32, #tpu.memory_space<vmem>>, vector<1x8x128xf32>
    %1660 = vector.shape_cast %1659 : vector<1x8x128xf32> to vector<8x128xf32>
    %1661 = arith.mulf %1660, %1135 : vector<8x128xf32>
    %1662 = arith.addf %1658, %1661 : vector<8x128xf32>
    %c148_1035 = arith.constant 148 : index
    %c0_1036 = arith.constant 0 : index
    %c0_1037 = arith.constant 0 : index
    %1663 = vector.load %arg1[%c148_1035, %c0_1036, %c0_1037] : memref<257x8x128xf32, #tpu.memory_space<vmem>>, vector<1x8x128xf32>
    %1664 = vector.shape_cast %1663 : vector<1x8x128xf32> to vector<8x128xf32>
    %1665 = arith.mulf %1664, %1155 : vector<8x128xf32>
    %1666 = arith.addf %1662, %1665 : vector<8x128xf32>
    %c149_1038 = arith.constant 149 : index
    %c0_1039 = arith.constant 0 : index
    %c0_1040 = arith.constant 0 : index
    %1667 = vector.load %arg1[%c149_1038, %c0_1039, %c0_1040] : memref<257x8x128xf32, #tpu.memory_space<vmem>>, vector<1x8x128xf32>
    %1668 = vector.shape_cast %1667 : vector<1x8x128xf32> to vector<8x128xf32>
    %1669 = arith.mulf %1668, %1175 : vector<8x128xf32>
    %1670 = arith.addf %1666, %1669 : vector<8x128xf32>
    %c150_1041 = arith.constant 150 : index
    %c0_1042 = arith.constant 0 : index
    %c0_1043 = arith.constant 0 : index
    %1671 = vector.load %arg1[%c150_1041, %c0_1042, %c0_1043] : memref<257x8x128xf32, #tpu.memory_space<vmem>>, vector<1x8x128xf32>
    %1672 = vector.shape_cast %1671 : vector<1x8x128xf32> to vector<8x128xf32>
    %1673 = arith.mulf %1672, %1195 : vector<8x128xf32>
    %1674 = arith.addf %1670, %1673 : vector<8x128xf32>
    %c151_1044 = arith.constant 151 : index
    %c0_1045 = arith.constant 0 : index
    %c0_1046 = arith.constant 0 : index
    %1675 = vector.load %arg1[%c151_1044, %c0_1045, %c0_1046] : memref<257x8x128xf32, #tpu.memory_space<vmem>>, vector<1x8x128xf32>
    %1676 = vector.shape_cast %1675 : vector<1x8x128xf32> to vector<8x128xf32>
    %1677 = arith.mulf %1676, %1215 : vector<8x128xf32>
    %1678 = arith.addf %1674, %1677 : vector<8x128xf32>
    %c152_1047 = arith.constant 152 : index
    %c0_1048 = arith.constant 0 : index
    %c0_1049 = arith.constant 0 : index
    %1679 = vector.load %arg1[%c152_1047, %c0_1048, %c0_1049] : memref<257x8x128xf32, #tpu.memory_space<vmem>>, vector<1x8x128xf32>
    %1680 = vector.shape_cast %1679 : vector<1x8x128xf32> to vector<8x128xf32>
    %1681 = arith.mulf %1680, %1235 : vector<8x128xf32>
    %1682 = arith.addf %1678, %1681 : vector<8x128xf32>
    %c153_1050 = arith.constant 153 : index
    %c0_1051 = arith.constant 0 : index
    %c0_1052 = arith.constant 0 : index
    %1683 = vector.load %arg1[%c153_1050, %c0_1051, %c0_1052] : memref<257x8x128xf32, #tpu.memory_space<vmem>>, vector<1x8x128xf32>
    %1684 = vector.shape_cast %1683 : vector<1x8x128xf32> to vector<8x128xf32>
    %1685 = arith.mulf %1684, %1255 : vector<8x128xf32>
    %1686 = arith.addf %1682, %1685 : vector<8x128xf32>
    %c154_1053 = arith.constant 154 : index
    %c0_1054 = arith.constant 0 : index
    %c0_1055 = arith.constant 0 : index
    %1687 = vector.load %arg1[%c154_1053, %c0_1054, %c0_1055] : memref<257x8x128xf32, #tpu.memory_space<vmem>>, vector<1x8x128xf32>
    %1688 = vector.shape_cast %1687 : vector<1x8x128xf32> to vector<8x128xf32>
    %1689 = arith.mulf %1688, %1275 : vector<8x128xf32>
    %1690 = arith.addf %1686, %1689 : vector<8x128xf32>
    %c155_1056 = arith.constant 155 : index
    %c0_1057 = arith.constant 0 : index
    %c0_1058 = arith.constant 0 : index
    %1691 = vector.load %arg1[%c155_1056, %c0_1057, %c0_1058] : memref<257x8x128xf32, #tpu.memory_space<vmem>>, vector<1x8x128xf32>
    %1692 = vector.shape_cast %1691 : vector<1x8x128xf32> to vector<8x128xf32>
    %1693 = arith.mulf %1692, %1295 : vector<8x128xf32>
    %1694 = arith.addf %1690, %1693 : vector<8x128xf32>
    %c156_1059 = arith.constant 156 : index
    %c0_1060 = arith.constant 0 : index
    %c0_1061 = arith.constant 0 : index
    %1695 = vector.load %arg1[%c156_1059, %c0_1060, %c0_1061] : memref<257x8x128xf32, #tpu.memory_space<vmem>>, vector<1x8x128xf32>
    %1696 = vector.shape_cast %1695 : vector<1x8x128xf32> to vector<8x128xf32>
    %1697 = arith.mulf %1696, %1315 : vector<8x128xf32>
    %1698 = arith.addf %1694, %1697 : vector<8x128xf32>
    %c157_1062 = arith.constant 157 : index
    %c0_1063 = arith.constant 0 : index
    %c0_1064 = arith.constant 0 : index
    %1699 = vector.load %arg1[%c157_1062, %c0_1063, %c0_1064] : memref<257x8x128xf32, #tpu.memory_space<vmem>>, vector<1x8x128xf32>
    %1700 = vector.shape_cast %1699 : vector<1x8x128xf32> to vector<8x128xf32>
    %1701 = arith.mulf %1700, %1335 : vector<8x128xf32>
    %1702 = arith.addf %1698, %1701 : vector<8x128xf32>
    %c158_1065 = arith.constant 158 : index
    %c0_1066 = arith.constant 0 : index
    %c0_1067 = arith.constant 0 : index
    %1703 = vector.load %arg1[%c158_1065, %c0_1066, %c0_1067] : memref<257x8x128xf32, #tpu.memory_space<vmem>>, vector<1x8x128xf32>
    %1704 = vector.shape_cast %1703 : vector<1x8x128xf32> to vector<8x128xf32>
    %1705 = arith.mulf %1704, %1355 : vector<8x128xf32>
    %1706 = arith.addf %1702, %1705 : vector<8x128xf32>
    %c159_1068 = arith.constant 159 : index
    %c0_1069 = arith.constant 0 : index
    %c0_1070 = arith.constant 0 : index
    %1707 = vector.load %arg1[%c159_1068, %c0_1069, %c0_1070] : memref<257x8x128xf32, #tpu.memory_space<vmem>>, vector<1x8x128xf32>
    %1708 = vector.shape_cast %1707 : vector<1x8x128xf32> to vector<8x128xf32>
    %1709 = arith.mulf %1708, %1375 : vector<8x128xf32>
    %1710 = arith.addf %1706, %1709 : vector<8x128xf32>
    %c212_1071 = arith.constant 212 : index
    %c0_1072 = arith.constant 0 : index
    %c0_1073 = arith.constant 0 : index
    %1711 = vector.load %arg1[%c212_1071, %c0_1072, %c0_1073] : memref<257x8x128xf32, #tpu.memory_space<vmem>>, vector<1x8x128xf32>
    %1712 = vector.shape_cast %1711 : vector<1x8x128xf32> to vector<8x128xf32>
    %1713 = arith.addf %1710, %1712 : vector<8x128xf32>
    %cst_1074 = arith.constant 0.000000e+00 : f32
    %1714 = vector.broadcast %cst_1074 : f32 to vector<8x128xf32>
    %1715 = arith.maximumf %1713, %1714 : vector<8x128xf32>
    %c160_1075 = arith.constant 160 : index
    %c0_1076 = arith.constant 0 : index
    %c0_1077 = arith.constant 0 : index
    %1716 = vector.load %arg1[%c160_1075, %c0_1076, %c0_1077] : memref<257x8x128xf32, #tpu.memory_space<vmem>>, vector<1x8x128xf32>
    %1717 = vector.shape_cast %1716 : vector<1x8x128xf32> to vector<8x128xf32>
    %1718 = arith.mulf %1717, %1075 : vector<8x128xf32>
    %c161_1078 = arith.constant 161 : index
    %c0_1079 = arith.constant 0 : index
    %c0_1080 = arith.constant 0 : index
    %1719 = vector.load %arg1[%c161_1078, %c0_1079, %c0_1080] : memref<257x8x128xf32, #tpu.memory_space<vmem>>, vector<1x8x128xf32>
    %1720 = vector.shape_cast %1719 : vector<1x8x128xf32> to vector<8x128xf32>
    %1721 = arith.mulf %1720, %1095 : vector<8x128xf32>
    %1722 = arith.addf %1718, %1721 : vector<8x128xf32>
    %c162_1081 = arith.constant 162 : index
    %c0_1082 = arith.constant 0 : index
    %c0_1083 = arith.constant 0 : index
    %1723 = vector.load %arg1[%c162_1081, %c0_1082, %c0_1083] : memref<257x8x128xf32, #tpu.memory_space<vmem>>, vector<1x8x128xf32>
    %1724 = vector.shape_cast %1723 : vector<1x8x128xf32> to vector<8x128xf32>
    %1725 = arith.mulf %1724, %1115 : vector<8x128xf32>
    %1726 = arith.addf %1722, %1725 : vector<8x128xf32>
    %c163_1084 = arith.constant 163 : index
    %c0_1085 = arith.constant 0 : index
    %c0_1086 = arith.constant 0 : index
    %1727 = vector.load %arg1[%c163_1084, %c0_1085, %c0_1086] : memref<257x8x128xf32, #tpu.memory_space<vmem>>, vector<1x8x128xf32>
    %1728 = vector.shape_cast %1727 : vector<1x8x128xf32> to vector<8x128xf32>
    %1729 = arith.mulf %1728, %1135 : vector<8x128xf32>
    %1730 = arith.addf %1726, %1729 : vector<8x128xf32>
    %c164_1087 = arith.constant 164 : index
    %c0_1088 = arith.constant 0 : index
    %c0_1089 = arith.constant 0 : index
    %1731 = vector.load %arg1[%c164_1087, %c0_1088, %c0_1089] : memref<257x8x128xf32, #tpu.memory_space<vmem>>, vector<1x8x128xf32>
    %1732 = vector.shape_cast %1731 : vector<1x8x128xf32> to vector<8x128xf32>
    %1733 = arith.mulf %1732, %1155 : vector<8x128xf32>
    %1734 = arith.addf %1730, %1733 : vector<8x128xf32>
    %c165_1090 = arith.constant 165 : index
    %c0_1091 = arith.constant 0 : index
    %c0_1092 = arith.constant 0 : index
    %1735 = vector.load %arg1[%c165_1090, %c0_1091, %c0_1092] : memref<257x8x128xf32, #tpu.memory_space<vmem>>, vector<1x8x128xf32>
    %1736 = vector.shape_cast %1735 : vector<1x8x128xf32> to vector<8x128xf32>
    %1737 = arith.mulf %1736, %1175 : vector<8x128xf32>
    %1738 = arith.addf %1734, %1737 : vector<8x128xf32>
    %c166_1093 = arith.constant 166 : index
    %c0_1094 = arith.constant 0 : index
    %c0_1095 = arith.constant 0 : index
    %1739 = vector.load %arg1[%c166_1093, %c0_1094, %c0_1095] : memref<257x8x128xf32, #tpu.memory_space<vmem>>, vector<1x8x128xf32>
    %1740 = vector.shape_cast %1739 : vector<1x8x128xf32> to vector<8x128xf32>
    %1741 = arith.mulf %1740, %1195 : vector<8x128xf32>
    %1742 = arith.addf %1738, %1741 : vector<8x128xf32>
    %c167_1096 = arith.constant 167 : index
    %c0_1097 = arith.constant 0 : index
    %c0_1098 = arith.constant 0 : index
    %1743 = vector.load %arg1[%c167_1096, %c0_1097, %c0_1098] : memref<257x8x128xf32, #tpu.memory_space<vmem>>, vector<1x8x128xf32>
    %1744 = vector.shape_cast %1743 : vector<1x8x128xf32> to vector<8x128xf32>
    %1745 = arith.mulf %1744, %1215 : vector<8x128xf32>
    %1746 = arith.addf %1742, %1745 : vector<8x128xf32>
    %c168_1099 = arith.constant 168 : index
    %c0_1100 = arith.constant 0 : index
    %c0_1101 = arith.constant 0 : index
    %1747 = vector.load %arg1[%c168_1099, %c0_1100, %c0_1101] : memref<257x8x128xf32, #tpu.memory_space<vmem>>, vector<1x8x128xf32>
    %1748 = vector.shape_cast %1747 : vector<1x8x128xf32> to vector<8x128xf32>
    %1749 = arith.mulf %1748, %1235 : vector<8x128xf32>
    %1750 = arith.addf %1746, %1749 : vector<8x128xf32>
    %c169_1102 = arith.constant 169 : index
    %c0_1103 = arith.constant 0 : index
    %c0_1104 = arith.constant 0 : index
    %1751 = vector.load %arg1[%c169_1102, %c0_1103, %c0_1104] : memref<257x8x128xf32, #tpu.memory_space<vmem>>, vector<1x8x128xf32>
    %1752 = vector.shape_cast %1751 : vector<1x8x128xf32> to vector<8x128xf32>
    %1753 = arith.mulf %1752, %1255 : vector<8x128xf32>
    %1754 = arith.addf %1750, %1753 : vector<8x128xf32>
    %c170_1105 = arith.constant 170 : index
    %c0_1106 = arith.constant 0 : index
    %c0_1107 = arith.constant 0 : index
    %1755 = vector.load %arg1[%c170_1105, %c0_1106, %c0_1107] : memref<257x8x128xf32, #tpu.memory_space<vmem>>, vector<1x8x128xf32>
    %1756 = vector.shape_cast %1755 : vector<1x8x128xf32> to vector<8x128xf32>
    %1757 = arith.mulf %1756, %1275 : vector<8x128xf32>
    %1758 = arith.addf %1754, %1757 : vector<8x128xf32>
    %c171_1108 = arith.constant 171 : index
    %c0_1109 = arith.constant 0 : index
    %c0_1110 = arith.constant 0 : index
    %1759 = vector.load %arg1[%c171_1108, %c0_1109, %c0_1110] : memref<257x8x128xf32, #tpu.memory_space<vmem>>, vector<1x8x128xf32>
    %1760 = vector.shape_cast %1759 : vector<1x8x128xf32> to vector<8x128xf32>
    %1761 = arith.mulf %1760, %1295 : vector<8x128xf32>
    %1762 = arith.addf %1758, %1761 : vector<8x128xf32>
    %c172_1111 = arith.constant 172 : index
    %c0_1112 = arith.constant 0 : index
    %c0_1113 = arith.constant 0 : index
    %1763 = vector.load %arg1[%c172_1111, %c0_1112, %c0_1113] : memref<257x8x128xf32, #tpu.memory_space<vmem>>, vector<1x8x128xf32>
    %1764 = vector.shape_cast %1763 : vector<1x8x128xf32> to vector<8x128xf32>
    %1765 = arith.mulf %1764, %1315 : vector<8x128xf32>
    %1766 = arith.addf %1762, %1765 : vector<8x128xf32>
    %c173_1114 = arith.constant 173 : index
    %c0_1115 = arith.constant 0 : index
    %c0_1116 = arith.constant 0 : index
    %1767 = vector.load %arg1[%c173_1114, %c0_1115, %c0_1116] : memref<257x8x128xf32, #tpu.memory_space<vmem>>, vector<1x8x128xf32>
    %1768 = vector.shape_cast %1767 : vector<1x8x128xf32> to vector<8x128xf32>
    %1769 = arith.mulf %1768, %1335 : vector<8x128xf32>
    %1770 = arith.addf %1766, %1769 : vector<8x128xf32>
    %c174_1117 = arith.constant 174 : index
    %c0_1118 = arith.constant 0 : index
    %c0_1119 = arith.constant 0 : index
    %1771 = vector.load %arg1[%c174_1117, %c0_1118, %c0_1119] : memref<257x8x128xf32, #tpu.memory_space<vmem>>, vector<1x8x128xf32>
    %1772 = vector.shape_cast %1771 : vector<1x8x128xf32> to vector<8x128xf32>
    %1773 = arith.mulf %1772, %1355 : vector<8x128xf32>
    %1774 = arith.addf %1770, %1773 : vector<8x128xf32>
    %c175_1120 = arith.constant 175 : index
    %c0_1121 = arith.constant 0 : index
    %c0_1122 = arith.constant 0 : index
    %1775 = vector.load %arg1[%c175_1120, %c0_1121, %c0_1122] : memref<257x8x128xf32, #tpu.memory_space<vmem>>, vector<1x8x128xf32>
    %1776 = vector.shape_cast %1775 : vector<1x8x128xf32> to vector<8x128xf32>
    %1777 = arith.mulf %1776, %1375 : vector<8x128xf32>
    %1778 = arith.addf %1774, %1777 : vector<8x128xf32>
    %c213_1123 = arith.constant 213 : index
    %c0_1124 = arith.constant 0 : index
    %c0_1125 = arith.constant 0 : index
    %1779 = vector.load %arg1[%c213_1123, %c0_1124, %c0_1125] : memref<257x8x128xf32, #tpu.memory_space<vmem>>, vector<1x8x128xf32>
    %1780 = vector.shape_cast %1779 : vector<1x8x128xf32> to vector<8x128xf32>
    %1781 = arith.addf %1778, %1780 : vector<8x128xf32>
    %cst_1126 = arith.constant 0.000000e+00 : f32
    %1782 = vector.broadcast %cst_1126 : f32 to vector<8x128xf32>
    %1783 = arith.maximumf %1781, %1782 : vector<8x128xf32>
    %c176_1127 = arith.constant 176 : index
    %c0_1128 = arith.constant 0 : index
    %c0_1129 = arith.constant 0 : index
    %1784 = vector.load %arg1[%c176_1127, %c0_1128, %c0_1129] : memref<257x8x128xf32, #tpu.memory_space<vmem>>, vector<1x8x128xf32>
    %1785 = vector.shape_cast %1784 : vector<1x8x128xf32> to vector<8x128xf32>
    %1786 = arith.mulf %1785, %1075 : vector<8x128xf32>
    %c177_1130 = arith.constant 177 : index
    %c0_1131 = arith.constant 0 : index
    %c0_1132 = arith.constant 0 : index
    %1787 = vector.load %arg1[%c177_1130, %c0_1131, %c0_1132] : memref<257x8x128xf32, #tpu.memory_space<vmem>>, vector<1x8x128xf32>
    %1788 = vector.shape_cast %1787 : vector<1x8x128xf32> to vector<8x128xf32>
    %1789 = arith.mulf %1788, %1095 : vector<8x128xf32>
    %1790 = arith.addf %1786, %1789 : vector<8x128xf32>
    %c178_1133 = arith.constant 178 : index
    %c0_1134 = arith.constant 0 : index
    %c0_1135 = arith.constant 0 : index
    %1791 = vector.load %arg1[%c178_1133, %c0_1134, %c0_1135] : memref<257x8x128xf32, #tpu.memory_space<vmem>>, vector<1x8x128xf32>
    %1792 = vector.shape_cast %1791 : vector<1x8x128xf32> to vector<8x128xf32>
    %1793 = arith.mulf %1792, %1115 : vector<8x128xf32>
    %1794 = arith.addf %1790, %1793 : vector<8x128xf32>
    %c179_1136 = arith.constant 179 : index
    %c0_1137 = arith.constant 0 : index
    %c0_1138 = arith.constant 0 : index
    %1795 = vector.load %arg1[%c179_1136, %c0_1137, %c0_1138] : memref<257x8x128xf32, #tpu.memory_space<vmem>>, vector<1x8x128xf32>
    %1796 = vector.shape_cast %1795 : vector<1x8x128xf32> to vector<8x128xf32>
    %1797 = arith.mulf %1796, %1135 : vector<8x128xf32>
    %1798 = arith.addf %1794, %1797 : vector<8x128xf32>
    %c180_1139 = arith.constant 180 : index
    %c0_1140 = arith.constant 0 : index
    %c0_1141 = arith.constant 0 : index
    %1799 = vector.load %arg1[%c180_1139, %c0_1140, %c0_1141] : memref<257x8x128xf32, #tpu.memory_space<vmem>>, vector<1x8x128xf32>
    %1800 = vector.shape_cast %1799 : vector<1x8x128xf32> to vector<8x128xf32>
    %1801 = arith.mulf %1800, %1155 : vector<8x128xf32>
    %1802 = arith.addf %1798, %1801 : vector<8x128xf32>
    %c181_1142 = arith.constant 181 : index
    %c0_1143 = arith.constant 0 : index
    %c0_1144 = arith.constant 0 : index
    %1803 = vector.load %arg1[%c181_1142, %c0_1143, %c0_1144] : memref<257x8x128xf32, #tpu.memory_space<vmem>>, vector<1x8x128xf32>
    %1804 = vector.shape_cast %1803 : vector<1x8x128xf32> to vector<8x128xf32>
    %1805 = arith.mulf %1804, %1175 : vector<8x128xf32>
    %1806 = arith.addf %1802, %1805 : vector<8x128xf32>
    %c182_1145 = arith.constant 182 : index
    %c0_1146 = arith.constant 0 : index
    %c0_1147 = arith.constant 0 : index
    %1807 = vector.load %arg1[%c182_1145, %c0_1146, %c0_1147] : memref<257x8x128xf32, #tpu.memory_space<vmem>>, vector<1x8x128xf32>
    %1808 = vector.shape_cast %1807 : vector<1x8x128xf32> to vector<8x128xf32>
    %1809 = arith.mulf %1808, %1195 : vector<8x128xf32>
    %1810 = arith.addf %1806, %1809 : vector<8x128xf32>
    %c183_1148 = arith.constant 183 : index
    %c0_1149 = arith.constant 0 : index
    %c0_1150 = arith.constant 0 : index
    %1811 = vector.load %arg1[%c183_1148, %c0_1149, %c0_1150] : memref<257x8x128xf32, #tpu.memory_space<vmem>>, vector<1x8x128xf32>
    %1812 = vector.shape_cast %1811 : vector<1x8x128xf32> to vector<8x128xf32>
    %1813 = arith.mulf %1812, %1215 : vector<8x128xf32>
    %1814 = arith.addf %1810, %1813 : vector<8x128xf32>
    %c184_1151 = arith.constant 184 : index
    %c0_1152 = arith.constant 0 : index
    %c0_1153 = arith.constant 0 : index
    %1815 = vector.load %arg1[%c184_1151, %c0_1152, %c0_1153] : memref<257x8x128xf32, #tpu.memory_space<vmem>>, vector<1x8x128xf32>
    %1816 = vector.shape_cast %1815 : vector<1x8x128xf32> to vector<8x128xf32>
    %1817 = arith.mulf %1816, %1235 : vector<8x128xf32>
    %1818 = arith.addf %1814, %1817 : vector<8x128xf32>
    %c185_1154 = arith.constant 185 : index
    %c0_1155 = arith.constant 0 : index
    %c0_1156 = arith.constant 0 : index
    %1819 = vector.load %arg1[%c185_1154, %c0_1155, %c0_1156] : memref<257x8x128xf32, #tpu.memory_space<vmem>>, vector<1x8x128xf32>
    %1820 = vector.shape_cast %1819 : vector<1x8x128xf32> to vector<8x128xf32>
    %1821 = arith.mulf %1820, %1255 : vector<8x128xf32>
    %1822 = arith.addf %1818, %1821 : vector<8x128xf32>
    %c186_1157 = arith.constant 186 : index
    %c0_1158 = arith.constant 0 : index
    %c0_1159 = arith.constant 0 : index
    %1823 = vector.load %arg1[%c186_1157, %c0_1158, %c0_1159] : memref<257x8x128xf32, #tpu.memory_space<vmem>>, vector<1x8x128xf32>
    %1824 = vector.shape_cast %1823 : vector<1x8x128xf32> to vector<8x128xf32>
    %1825 = arith.mulf %1824, %1275 : vector<8x128xf32>
    %1826 = arith.addf %1822, %1825 : vector<8x128xf32>
    %c187_1160 = arith.constant 187 : index
    %c0_1161 = arith.constant 0 : index
    %c0_1162 = arith.constant 0 : index
    %1827 = vector.load %arg1[%c187_1160, %c0_1161, %c0_1162] : memref<257x8x128xf32, #tpu.memory_space<vmem>>, vector<1x8x128xf32>
    %1828 = vector.shape_cast %1827 : vector<1x8x128xf32> to vector<8x128xf32>
    %1829 = arith.mulf %1828, %1295 : vector<8x128xf32>
    %1830 = arith.addf %1826, %1829 : vector<8x128xf32>
    %c188_1163 = arith.constant 188 : index
    %c0_1164 = arith.constant 0 : index
    %c0_1165 = arith.constant 0 : index
    %1831 = vector.load %arg1[%c188_1163, %c0_1164, %c0_1165] : memref<257x8x128xf32, #tpu.memory_space<vmem>>, vector<1x8x128xf32>
    %1832 = vector.shape_cast %1831 : vector<1x8x128xf32> to vector<8x128xf32>
    %1833 = arith.mulf %1832, %1315 : vector<8x128xf32>
    %1834 = arith.addf %1830, %1833 : vector<8x128xf32>
    %c189_1166 = arith.constant 189 : index
    %c0_1167 = arith.constant 0 : index
    %c0_1168 = arith.constant 0 : index
    %1835 = vector.load %arg1[%c189_1166, %c0_1167, %c0_1168] : memref<257x8x128xf32, #tpu.memory_space<vmem>>, vector<1x8x128xf32>
    %1836 = vector.shape_cast %1835 : vector<1x8x128xf32> to vector<8x128xf32>
    %1837 = arith.mulf %1836, %1335 : vector<8x128xf32>
    %1838 = arith.addf %1834, %1837 : vector<8x128xf32>
    %c190_1169 = arith.constant 190 : index
    %c0_1170 = arith.constant 0 : index
    %c0_1171 = arith.constant 0 : index
    %1839 = vector.load %arg1[%c190_1169, %c0_1170, %c0_1171] : memref<257x8x128xf32, #tpu.memory_space<vmem>>, vector<1x8x128xf32>
    %1840 = vector.shape_cast %1839 : vector<1x8x128xf32> to vector<8x128xf32>
    %1841 = arith.mulf %1840, %1355 : vector<8x128xf32>
    %1842 = arith.addf %1838, %1841 : vector<8x128xf32>
    %c191_1172 = arith.constant 191 : index
    %c0_1173 = arith.constant 0 : index
    %c0_1174 = arith.constant 0 : index
    %1843 = vector.load %arg1[%c191_1172, %c0_1173, %c0_1174] : memref<257x8x128xf32, #tpu.memory_space<vmem>>, vector<1x8x128xf32>
    %1844 = vector.shape_cast %1843 : vector<1x8x128xf32> to vector<8x128xf32>
    %1845 = arith.mulf %1844, %1375 : vector<8x128xf32>
    %1846 = arith.addf %1842, %1845 : vector<8x128xf32>
    %c214_1175 = arith.constant 214 : index
    %c0_1176 = arith.constant 0 : index
    %c0_1177 = arith.constant 0 : index
    %1847 = vector.load %arg1[%c214_1175, %c0_1176, %c0_1177] : memref<257x8x128xf32, #tpu.memory_space<vmem>>, vector<1x8x128xf32>
    %1848 = vector.shape_cast %1847 : vector<1x8x128xf32> to vector<8x128xf32>
    %1849 = arith.addf %1846, %1848 : vector<8x128xf32>
    %cst_1178 = arith.constant 0.000000e+00 : f32
    %1850 = vector.broadcast %cst_1178 : f32 to vector<8x128xf32>
    %1851 = arith.maximumf %1849, %1850 : vector<8x128xf32>
    %c192_1179 = arith.constant 192 : index
    %c0_1180 = arith.constant 0 : index
    %c0_1181 = arith.constant 0 : index
    %1852 = vector.load %arg1[%c192_1179, %c0_1180, %c0_1181] : memref<257x8x128xf32, #tpu.memory_space<vmem>>, vector<1x8x128xf32>
    %1853 = vector.shape_cast %1852 : vector<1x8x128xf32> to vector<8x128xf32>
    %1854 = arith.mulf %1853, %1075 : vector<8x128xf32>
    %c193_1182 = arith.constant 193 : index
    %c0_1183 = arith.constant 0 : index
    %c0_1184 = arith.constant 0 : index
    %1855 = vector.load %arg1[%c193_1182, %c0_1183, %c0_1184] : memref<257x8x128xf32, #tpu.memory_space<vmem>>, vector<1x8x128xf32>
    %1856 = vector.shape_cast %1855 : vector<1x8x128xf32> to vector<8x128xf32>
    %1857 = arith.mulf %1856, %1095 : vector<8x128xf32>
    %1858 = arith.addf %1854, %1857 : vector<8x128xf32>
    %c194_1185 = arith.constant 194 : index
    %c0_1186 = arith.constant 0 : index
    %c0_1187 = arith.constant 0 : index
    %1859 = vector.load %arg1[%c194_1185, %c0_1186, %c0_1187] : memref<257x8x128xf32, #tpu.memory_space<vmem>>, vector<1x8x128xf32>
    %1860 = vector.shape_cast %1859 : vector<1x8x128xf32> to vector<8x128xf32>
    %1861 = arith.mulf %1860, %1115 : vector<8x128xf32>
    %1862 = arith.addf %1858, %1861 : vector<8x128xf32>
    %c195_1188 = arith.constant 195 : index
    %c0_1189 = arith.constant 0 : index
    %c0_1190 = arith.constant 0 : index
    %1863 = vector.load %arg1[%c195_1188, %c0_1189, %c0_1190] : memref<257x8x128xf32, #tpu.memory_space<vmem>>, vector<1x8x128xf32>
    %1864 = vector.shape_cast %1863 : vector<1x8x128xf32> to vector<8x128xf32>
    %1865 = arith.mulf %1864, %1135 : vector<8x128xf32>
    %1866 = arith.addf %1862, %1865 : vector<8x128xf32>
    %c196_1191 = arith.constant 196 : index
    %c0_1192 = arith.constant 0 : index
    %c0_1193 = arith.constant 0 : index
    %1867 = vector.load %arg1[%c196_1191, %c0_1192, %c0_1193] : memref<257x8x128xf32, #tpu.memory_space<vmem>>, vector<1x8x128xf32>
    %1868 = vector.shape_cast %1867 : vector<1x8x128xf32> to vector<8x128xf32>
    %1869 = arith.mulf %1868, %1155 : vector<8x128xf32>
    %1870 = arith.addf %1866, %1869 : vector<8x128xf32>
    %c197_1194 = arith.constant 197 : index
    %c0_1195 = arith.constant 0 : index
    %c0_1196 = arith.constant 0 : index
    %1871 = vector.load %arg1[%c197_1194, %c0_1195, %c0_1196] : memref<257x8x128xf32, #tpu.memory_space<vmem>>, vector<1x8x128xf32>
    %1872 = vector.shape_cast %1871 : vector<1x8x128xf32> to vector<8x128xf32>
    %1873 = arith.mulf %1872, %1175 : vector<8x128xf32>
    %1874 = arith.addf %1870, %1873 : vector<8x128xf32>
    %c198_1197 = arith.constant 198 : index
    %c0_1198 = arith.constant 0 : index
    %c0_1199 = arith.constant 0 : index
    %1875 = vector.load %arg1[%c198_1197, %c0_1198, %c0_1199] : memref<257x8x128xf32, #tpu.memory_space<vmem>>, vector<1x8x128xf32>
    %1876 = vector.shape_cast %1875 : vector<1x8x128xf32> to vector<8x128xf32>
    %1877 = arith.mulf %1876, %1195 : vector<8x128xf32>
    %1878 = arith.addf %1874, %1877 : vector<8x128xf32>
    %c199_1200 = arith.constant 199 : index
    %c0_1201 = arith.constant 0 : index
    %c0_1202 = arith.constant 0 : index
    %1879 = vector.load %arg1[%c199_1200, %c0_1201, %c0_1202] : memref<257x8x128xf32, #tpu.memory_space<vmem>>, vector<1x8x128xf32>
    %1880 = vector.shape_cast %1879 : vector<1x8x128xf32> to vector<8x128xf32>
    %1881 = arith.mulf %1880, %1215 : vector<8x128xf32>
    %1882 = arith.addf %1878, %1881 : vector<8x128xf32>
    %c200_1203 = arith.constant 200 : index
    %c0_1204 = arith.constant 0 : index
    %c0_1205 = arith.constant 0 : index
    %1883 = vector.load %arg1[%c200_1203, %c0_1204, %c0_1205] : memref<257x8x128xf32, #tpu.memory_space<vmem>>, vector<1x8x128xf32>
    %1884 = vector.shape_cast %1883 : vector<1x8x128xf32> to vector<8x128xf32>
    %1885 = arith.mulf %1884, %1235 : vector<8x128xf32>
    %1886 = arith.addf %1882, %1885 : vector<8x128xf32>
    %c201_1206 = arith.constant 201 : index
    %c0_1207 = arith.constant 0 : index
    %c0_1208 = arith.constant 0 : index
    %1887 = vector.load %arg1[%c201_1206, %c0_1207, %c0_1208] : memref<257x8x128xf32, #tpu.memory_space<vmem>>, vector<1x8x128xf32>
    %1888 = vector.shape_cast %1887 : vector<1x8x128xf32> to vector<8x128xf32>
    %1889 = arith.mulf %1888, %1255 : vector<8x128xf32>
    %1890 = arith.addf %1886, %1889 : vector<8x128xf32>
    %c202_1209 = arith.constant 202 : index
    %c0_1210 = arith.constant 0 : index
    %c0_1211 = arith.constant 0 : index
    %1891 = vector.load %arg1[%c202_1209, %c0_1210, %c0_1211] : memref<257x8x128xf32, #tpu.memory_space<vmem>>, vector<1x8x128xf32>
    %1892 = vector.shape_cast %1891 : vector<1x8x128xf32> to vector<8x128xf32>
    %1893 = arith.mulf %1892, %1275 : vector<8x128xf32>
    %1894 = arith.addf %1890, %1893 : vector<8x128xf32>
    %c203_1212 = arith.constant 203 : index
    %c0_1213 = arith.constant 0 : index
    %c0_1214 = arith.constant 0 : index
    %1895 = vector.load %arg1[%c203_1212, %c0_1213, %c0_1214] : memref<257x8x128xf32, #tpu.memory_space<vmem>>, vector<1x8x128xf32>
    %1896 = vector.shape_cast %1895 : vector<1x8x128xf32> to vector<8x128xf32>
    %1897 = arith.mulf %1896, %1295 : vector<8x128xf32>
    %1898 = arith.addf %1894, %1897 : vector<8x128xf32>
    %c204_1215 = arith.constant 204 : index
    %c0_1216 = arith.constant 0 : index
    %c0_1217 = arith.constant 0 : index
    %1899 = vector.load %arg1[%c204_1215, %c0_1216, %c0_1217] : memref<257x8x128xf32, #tpu.memory_space<vmem>>, vector<1x8x128xf32>
    %1900 = vector.shape_cast %1899 : vector<1x8x128xf32> to vector<8x128xf32>
    %1901 = arith.mulf %1900, %1315 : vector<8x128xf32>
    %1902 = arith.addf %1898, %1901 : vector<8x128xf32>
    %c205_1218 = arith.constant 205 : index
    %c0_1219 = arith.constant 0 : index
    %c0_1220 = arith.constant 0 : index
    %1903 = vector.load %arg1[%c205_1218, %c0_1219, %c0_1220] : memref<257x8x128xf32, #tpu.memory_space<vmem>>, vector<1x8x128xf32>
    %1904 = vector.shape_cast %1903 : vector<1x8x128xf32> to vector<8x128xf32>
    %1905 = arith.mulf %1904, %1335 : vector<8x128xf32>
    %1906 = arith.addf %1902, %1905 : vector<8x128xf32>
    %c206_1221 = arith.constant 206 : index
    %c0_1222 = arith.constant 0 : index
    %c0_1223 = arith.constant 0 : index
    %1907 = vector.load %arg1[%c206_1221, %c0_1222, %c0_1223] : memref<257x8x128xf32, #tpu.memory_space<vmem>>, vector<1x8x128xf32>
    %1908 = vector.shape_cast %1907 : vector<1x8x128xf32> to vector<8x128xf32>
    %1909 = arith.mulf %1908, %1355 : vector<8x128xf32>
    %1910 = arith.addf %1906, %1909 : vector<8x128xf32>
    %c207_1224 = arith.constant 207 : index
    %c0_1225 = arith.constant 0 : index
    %c0_1226 = arith.constant 0 : index
    %1911 = vector.load %arg1[%c207_1224, %c0_1225, %c0_1226] : memref<257x8x128xf32, #tpu.memory_space<vmem>>, vector<1x8x128xf32>
    %1912 = vector.shape_cast %1911 : vector<1x8x128xf32> to vector<8x128xf32>
    %1913 = arith.mulf %1912, %1375 : vector<8x128xf32>
    %1914 = arith.addf %1910, %1913 : vector<8x128xf32>
    %c215_1227 = arith.constant 215 : index
    %c0_1228 = arith.constant 0 : index
    %c0_1229 = arith.constant 0 : index
    %1915 = vector.load %arg1[%c215_1227, %c0_1228, %c0_1229] : memref<257x8x128xf32, #tpu.memory_space<vmem>>, vector<1x8x128xf32>
    %1916 = vector.shape_cast %1915 : vector<1x8x128xf32> to vector<8x128xf32>
    %1917 = arith.addf %1914, %1916 : vector<8x128xf32>
    %cst_1230 = arith.constant 0.000000e+00 : f32
    %1918 = vector.broadcast %cst_1230 : f32 to vector<8x128xf32>
    %1919 = arith.maximumf %1917, %1918 : vector<8x128xf32>
    %c216_1231 = arith.constant 216 : index
    %c0_1232 = arith.constant 0 : index
    %c0_1233 = arith.constant 0 : index
    %1920 = vector.load %arg1[%c216_1231, %c0_1232, %c0_1233] : memref<257x8x128xf32, #tpu.memory_space<vmem>>, vector<1x8x128xf32>
    %1921 = vector.shape_cast %1920 : vector<1x8x128xf32> to vector<8x128xf32>
    %1922 = arith.mulf %1921, %1443 : vector<8x128xf32>
    %c217_1234 = arith.constant 217 : index
    %c0_1235 = arith.constant 0 : index
    %c0_1236 = arith.constant 0 : index
    %1923 = vector.load %arg1[%c217_1234, %c0_1235, %c0_1236] : memref<257x8x128xf32, #tpu.memory_space<vmem>>, vector<1x8x128xf32>
    %1924 = vector.shape_cast %1923 : vector<1x8x128xf32> to vector<8x128xf32>
    %1925 = arith.mulf %1924, %1511 : vector<8x128xf32>
    %1926 = arith.addf %1922, %1925 : vector<8x128xf32>
    %c218_1237 = arith.constant 218 : index
    %c0_1238 = arith.constant 0 : index
    %c0_1239 = arith.constant 0 : index
    %1927 = vector.load %arg1[%c218_1237, %c0_1238, %c0_1239] : memref<257x8x128xf32, #tpu.memory_space<vmem>>, vector<1x8x128xf32>
    %1928 = vector.shape_cast %1927 : vector<1x8x128xf32> to vector<8x128xf32>
    %1929 = arith.mulf %1928, %1579 : vector<8x128xf32>
    %1930 = arith.addf %1926, %1929 : vector<8x128xf32>
    %c219_1240 = arith.constant 219 : index
    %c0_1241 = arith.constant 0 : index
    %c0_1242 = arith.constant 0 : index
    %1931 = vector.load %arg1[%c219_1240, %c0_1241, %c0_1242] : memref<257x8x128xf32, #tpu.memory_space<vmem>>, vector<1x8x128xf32>
    %1932 = vector.shape_cast %1931 : vector<1x8x128xf32> to vector<8x128xf32>
    %1933 = arith.mulf %1932, %1647 : vector<8x128xf32>
    %1934 = arith.addf %1930, %1933 : vector<8x128xf32>
    %c220_1243 = arith.constant 220 : index
    %c0_1244 = arith.constant 0 : index
    %c0_1245 = arith.constant 0 : index
    %1935 = vector.load %arg1[%c220_1243, %c0_1244, %c0_1245] : memref<257x8x128xf32, #tpu.memory_space<vmem>>, vector<1x8x128xf32>
    %1936 = vector.shape_cast %1935 : vector<1x8x128xf32> to vector<8x128xf32>
    %1937 = arith.mulf %1936, %1715 : vector<8x128xf32>
    %1938 = arith.addf %1934, %1937 : vector<8x128xf32>
    %c221_1246 = arith.constant 221 : index
    %c0_1247 = arith.constant 0 : index
    %c0_1248 = arith.constant 0 : index
    %1939 = vector.load %arg1[%c221_1246, %c0_1247, %c0_1248] : memref<257x8x128xf32, #tpu.memory_space<vmem>>, vector<1x8x128xf32>
    %1940 = vector.shape_cast %1939 : vector<1x8x128xf32> to vector<8x128xf32>
    %1941 = arith.mulf %1940, %1783 : vector<8x128xf32>
    %1942 = arith.addf %1938, %1941 : vector<8x128xf32>
    %c222_1249 = arith.constant 222 : index
    %c0_1250 = arith.constant 0 : index
    %c0_1251 = arith.constant 0 : index
    %1943 = vector.load %arg1[%c222_1249, %c0_1250, %c0_1251] : memref<257x8x128xf32, #tpu.memory_space<vmem>>, vector<1x8x128xf32>
    %1944 = vector.shape_cast %1943 : vector<1x8x128xf32> to vector<8x128xf32>
    %1945 = arith.mulf %1944, %1851 : vector<8x128xf32>
    %1946 = arith.addf %1942, %1945 : vector<8x128xf32>
    %c223_1252 = arith.constant 223 : index
    %c0_1253 = arith.constant 0 : index
    %c0_1254 = arith.constant 0 : index
    %1947 = vector.load %arg1[%c223_1252, %c0_1253, %c0_1254] : memref<257x8x128xf32, #tpu.memory_space<vmem>>, vector<1x8x128xf32>
    %1948 = vector.shape_cast %1947 : vector<1x8x128xf32> to vector<8x128xf32>
    %1949 = arith.mulf %1948, %1919 : vector<8x128xf32>
    %1950 = arith.addf %1946, %1949 : vector<8x128xf32>
    %c248_1255 = arith.constant 248 : index
    %c0_1256 = arith.constant 0 : index
    %c0_1257 = arith.constant 0 : index
    %1951 = vector.load %arg1[%c248_1255, %c0_1256, %c0_1257] : memref<257x8x128xf32, #tpu.memory_space<vmem>>, vector<1x8x128xf32>
    %1952 = vector.shape_cast %1951 : vector<1x8x128xf32> to vector<8x128xf32>
    %1953 = arith.addf %1950, %1952 : vector<8x128xf32>
    %cst_1258 = arith.constant 0.000000e+00 : f32
    %1954 = vector.broadcast %cst_1258 : f32 to vector<8x128xf32>
    %1955 = arith.maximumf %1953, %1954 : vector<8x128xf32>
    %c224_1259 = arith.constant 224 : index
    %c0_1260 = arith.constant 0 : index
    %c0_1261 = arith.constant 0 : index
    %1956 = vector.load %arg1[%c224_1259, %c0_1260, %c0_1261] : memref<257x8x128xf32, #tpu.memory_space<vmem>>, vector<1x8x128xf32>
    %1957 = vector.shape_cast %1956 : vector<1x8x128xf32> to vector<8x128xf32>
    %1958 = arith.mulf %1957, %1443 : vector<8x128xf32>
    %c225_1262 = arith.constant 225 : index
    %c0_1263 = arith.constant 0 : index
    %c0_1264 = arith.constant 0 : index
    %1959 = vector.load %arg1[%c225_1262, %c0_1263, %c0_1264] : memref<257x8x128xf32, #tpu.memory_space<vmem>>, vector<1x8x128xf32>
    %1960 = vector.shape_cast %1959 : vector<1x8x128xf32> to vector<8x128xf32>
    %1961 = arith.mulf %1960, %1511 : vector<8x128xf32>
    %1962 = arith.addf %1958, %1961 : vector<8x128xf32>
    %c226_1265 = arith.constant 226 : index
    %c0_1266 = arith.constant 0 : index
    %c0_1267 = arith.constant 0 : index
    %1963 = vector.load %arg1[%c226_1265, %c0_1266, %c0_1267] : memref<257x8x128xf32, #tpu.memory_space<vmem>>, vector<1x8x128xf32>
    %1964 = vector.shape_cast %1963 : vector<1x8x128xf32> to vector<8x128xf32>
    %1965 = arith.mulf %1964, %1579 : vector<8x128xf32>
    %1966 = arith.addf %1962, %1965 : vector<8x128xf32>
    %c227_1268 = arith.constant 227 : index
    %c0_1269 = arith.constant 0 : index
    %c0_1270 = arith.constant 0 : index
    %1967 = vector.load %arg1[%c227_1268, %c0_1269, %c0_1270] : memref<257x8x128xf32, #tpu.memory_space<vmem>>, vector<1x8x128xf32>
    %1968 = vector.shape_cast %1967 : vector<1x8x128xf32> to vector<8x128xf32>
    %1969 = arith.mulf %1968, %1647 : vector<8x128xf32>
    %1970 = arith.addf %1966, %1969 : vector<8x128xf32>
    %c228_1271 = arith.constant 228 : index
    %c0_1272 = arith.constant 0 : index
    %c0_1273 = arith.constant 0 : index
    %1971 = vector.load %arg1[%c228_1271, %c0_1272, %c0_1273] : memref<257x8x128xf32, #tpu.memory_space<vmem>>, vector<1x8x128xf32>
    %1972 = vector.shape_cast %1971 : vector<1x8x128xf32> to vector<8x128xf32>
    %1973 = arith.mulf %1972, %1715 : vector<8x128xf32>
    %1974 = arith.addf %1970, %1973 : vector<8x128xf32>
    %c229_1274 = arith.constant 229 : index
    %c0_1275 = arith.constant 0 : index
    %c0_1276 = arith.constant 0 : index
    %1975 = vector.load %arg1[%c229_1274, %c0_1275, %c0_1276] : memref<257x8x128xf32, #tpu.memory_space<vmem>>, vector<1x8x128xf32>
    %1976 = vector.shape_cast %1975 : vector<1x8x128xf32> to vector<8x128xf32>
    %1977 = arith.mulf %1976, %1783 : vector<8x128xf32>
    %1978 = arith.addf %1974, %1977 : vector<8x128xf32>
    %c230_1277 = arith.constant 230 : index
    %c0_1278 = arith.constant 0 : index
    %c0_1279 = arith.constant 0 : index
    %1979 = vector.load %arg1[%c230_1277, %c0_1278, %c0_1279] : memref<257x8x128xf32, #tpu.memory_space<vmem>>, vector<1x8x128xf32>
    %1980 = vector.shape_cast %1979 : vector<1x8x128xf32> to vector<8x128xf32>
    %1981 = arith.mulf %1980, %1851 : vector<8x128xf32>
    %1982 = arith.addf %1978, %1981 : vector<8x128xf32>
    %c231_1280 = arith.constant 231 : index
    %c0_1281 = arith.constant 0 : index
    %c0_1282 = arith.constant 0 : index
    %1983 = vector.load %arg1[%c231_1280, %c0_1281, %c0_1282] : memref<257x8x128xf32, #tpu.memory_space<vmem>>, vector<1x8x128xf32>
    %1984 = vector.shape_cast %1983 : vector<1x8x128xf32> to vector<8x128xf32>
    %1985 = arith.mulf %1984, %1919 : vector<8x128xf32>
    %1986 = arith.addf %1982, %1985 : vector<8x128xf32>
    %c249_1283 = arith.constant 249 : index
    %c0_1284 = arith.constant 0 : index
    %c0_1285 = arith.constant 0 : index
    %1987 = vector.load %arg1[%c249_1283, %c0_1284, %c0_1285] : memref<257x8x128xf32, #tpu.memory_space<vmem>>, vector<1x8x128xf32>
    %1988 = vector.shape_cast %1987 : vector<1x8x128xf32> to vector<8x128xf32>
    %1989 = arith.addf %1986, %1988 : vector<8x128xf32>
    %cst_1286 = arith.constant 0.000000e+00 : f32
    %1990 = vector.broadcast %cst_1286 : f32 to vector<8x128xf32>
    %1991 = arith.maximumf %1989, %1990 : vector<8x128xf32>
    %c232_1287 = arith.constant 232 : index
    %c0_1288 = arith.constant 0 : index
    %c0_1289 = arith.constant 0 : index
    %1992 = vector.load %arg1[%c232_1287, %c0_1288, %c0_1289] : memref<257x8x128xf32, #tpu.memory_space<vmem>>, vector<1x8x128xf32>
    %1993 = vector.shape_cast %1992 : vector<1x8x128xf32> to vector<8x128xf32>
    %1994 = arith.mulf %1993, %1443 : vector<8x128xf32>
    %c233_1290 = arith.constant 233 : index
    %c0_1291 = arith.constant 0 : index
    %c0_1292 = arith.constant 0 : index
    %1995 = vector.load %arg1[%c233_1290, %c0_1291, %c0_1292] : memref<257x8x128xf32, #tpu.memory_space<vmem>>, vector<1x8x128xf32>
    %1996 = vector.shape_cast %1995 : vector<1x8x128xf32> to vector<8x128xf32>
    %1997 = arith.mulf %1996, %1511 : vector<8x128xf32>
    %1998 = arith.addf %1994, %1997 : vector<8x128xf32>
    %c234_1293 = arith.constant 234 : index
    %c0_1294 = arith.constant 0 : index
    %c0_1295 = arith.constant 0 : index
    %1999 = vector.load %arg1[%c234_1293, %c0_1294, %c0_1295] : memref<257x8x128xf32, #tpu.memory_space<vmem>>, vector<1x8x128xf32>
    %2000 = vector.shape_cast %1999 : vector<1x8x128xf32> to vector<8x128xf32>
    %2001 = arith.mulf %2000, %1579 : vector<8x128xf32>
    %2002 = arith.addf %1998, %2001 : vector<8x128xf32>
    %c235_1296 = arith.constant 235 : index
    %c0_1297 = arith.constant 0 : index
    %c0_1298 = arith.constant 0 : index
    %2003 = vector.load %arg1[%c235_1296, %c0_1297, %c0_1298] : memref<257x8x128xf32, #tpu.memory_space<vmem>>, vector<1x8x128xf32>
    %2004 = vector.shape_cast %2003 : vector<1x8x128xf32> to vector<8x128xf32>
    %2005 = arith.mulf %2004, %1647 : vector<8x128xf32>
    %2006 = arith.addf %2002, %2005 : vector<8x128xf32>
    %c236_1299 = arith.constant 236 : index
    %c0_1300 = arith.constant 0 : index
    %c0_1301 = arith.constant 0 : index
    %2007 = vector.load %arg1[%c236_1299, %c0_1300, %c0_1301] : memref<257x8x128xf32, #tpu.memory_space<vmem>>, vector<1x8x128xf32>
    %2008 = vector.shape_cast %2007 : vector<1x8x128xf32> to vector<8x128xf32>
    %2009 = arith.mulf %2008, %1715 : vector<8x128xf32>
    %2010 = arith.addf %2006, %2009 : vector<8x128xf32>
    %c237_1302 = arith.constant 237 : index
    %c0_1303 = arith.constant 0 : index
    %c0_1304 = arith.constant 0 : index
    %2011 = vector.load %arg1[%c237_1302, %c0_1303, %c0_1304] : memref<257x8x128xf32, #tpu.memory_space<vmem>>, vector<1x8x128xf32>
    %2012 = vector.shape_cast %2011 : vector<1x8x128xf32> to vector<8x128xf32>
    %2013 = arith.mulf %2012, %1783 : vector<8x128xf32>
    %2014 = arith.addf %2010, %2013 : vector<8x128xf32>
    %c238_1305 = arith.constant 238 : index
    %c0_1306 = arith.constant 0 : index
    %c0_1307 = arith.constant 0 : index
    %2015 = vector.load %arg1[%c238_1305, %c0_1306, %c0_1307] : memref<257x8x128xf32, #tpu.memory_space<vmem>>, vector<1x8x128xf32>
    %2016 = vector.shape_cast %2015 : vector<1x8x128xf32> to vector<8x128xf32>
    %2017 = arith.mulf %2016, %1851 : vector<8x128xf32>
    %2018 = arith.addf %2014, %2017 : vector<8x128xf32>
    %c239_1308 = arith.constant 239 : index
    %c0_1309 = arith.constant 0 : index
    %c0_1310 = arith.constant 0 : index
    %2019 = vector.load %arg1[%c239_1308, %c0_1309, %c0_1310] : memref<257x8x128xf32, #tpu.memory_space<vmem>>, vector<1x8x128xf32>
    %2020 = vector.shape_cast %2019 : vector<1x8x128xf32> to vector<8x128xf32>
    %2021 = arith.mulf %2020, %1919 : vector<8x128xf32>
    %2022 = arith.addf %2018, %2021 : vector<8x128xf32>
    %c250_1311 = arith.constant 250 : index
    %c0_1312 = arith.constant 0 : index
    %c0_1313 = arith.constant 0 : index
    %2023 = vector.load %arg1[%c250_1311, %c0_1312, %c0_1313] : memref<257x8x128xf32, #tpu.memory_space<vmem>>, vector<1x8x128xf32>
    %2024 = vector.shape_cast %2023 : vector<1x8x128xf32> to vector<8x128xf32>
    %2025 = arith.addf %2022, %2024 : vector<8x128xf32>
    %cst_1314 = arith.constant 0.000000e+00 : f32
    %2026 = vector.broadcast %cst_1314 : f32 to vector<8x128xf32>
    %2027 = arith.maximumf %2025, %2026 : vector<8x128xf32>
    %c240_1315 = arith.constant 240 : index
    %c0_1316 = arith.constant 0 : index
    %c0_1317 = arith.constant 0 : index
    %2028 = vector.load %arg1[%c240_1315, %c0_1316, %c0_1317] : memref<257x8x128xf32, #tpu.memory_space<vmem>>, vector<1x8x128xf32>
    %2029 = vector.shape_cast %2028 : vector<1x8x128xf32> to vector<8x128xf32>
    %2030 = arith.mulf %2029, %1443 : vector<8x128xf32>
    %c241_1318 = arith.constant 241 : index
    %c0_1319 = arith.constant 0 : index
    %c0_1320 = arith.constant 0 : index
    %2031 = vector.load %arg1[%c241_1318, %c0_1319, %c0_1320] : memref<257x8x128xf32, #tpu.memory_space<vmem>>, vector<1x8x128xf32>
    %2032 = vector.shape_cast %2031 : vector<1x8x128xf32> to vector<8x128xf32>
    %2033 = arith.mulf %2032, %1511 : vector<8x128xf32>
    %2034 = arith.addf %2030, %2033 : vector<8x128xf32>
    %c242_1321 = arith.constant 242 : index
    %c0_1322 = arith.constant 0 : index
    %c0_1323 = arith.constant 0 : index
    %2035 = vector.load %arg1[%c242_1321, %c0_1322, %c0_1323] : memref<257x8x128xf32, #tpu.memory_space<vmem>>, vector<1x8x128xf32>
    %2036 = vector.shape_cast %2035 : vector<1x8x128xf32> to vector<8x128xf32>
    %2037 = arith.mulf %2036, %1579 : vector<8x128xf32>
    %2038 = arith.addf %2034, %2037 : vector<8x128xf32>
    %c243_1324 = arith.constant 243 : index
    %c0_1325 = arith.constant 0 : index
    %c0_1326 = arith.constant 0 : index
    %2039 = vector.load %arg1[%c243_1324, %c0_1325, %c0_1326] : memref<257x8x128xf32, #tpu.memory_space<vmem>>, vector<1x8x128xf32>
    %2040 = vector.shape_cast %2039 : vector<1x8x128xf32> to vector<8x128xf32>
    %2041 = arith.mulf %2040, %1647 : vector<8x128xf32>
    %2042 = arith.addf %2038, %2041 : vector<8x128xf32>
    %c244_1327 = arith.constant 244 : index
    %c0_1328 = arith.constant 0 : index
    %c0_1329 = arith.constant 0 : index
    %2043 = vector.load %arg1[%c244_1327, %c0_1328, %c0_1329] : memref<257x8x128xf32, #tpu.memory_space<vmem>>, vector<1x8x128xf32>
    %2044 = vector.shape_cast %2043 : vector<1x8x128xf32> to vector<8x128xf32>
    %2045 = arith.mulf %2044, %1715 : vector<8x128xf32>
    %2046 = arith.addf %2042, %2045 : vector<8x128xf32>
    %c245_1330 = arith.constant 245 : index
    %c0_1331 = arith.constant 0 : index
    %c0_1332 = arith.constant 0 : index
    %2047 = vector.load %arg1[%c245_1330, %c0_1331, %c0_1332] : memref<257x8x128xf32, #tpu.memory_space<vmem>>, vector<1x8x128xf32>
    %2048 = vector.shape_cast %2047 : vector<1x8x128xf32> to vector<8x128xf32>
    %2049 = arith.mulf %2048, %1783 : vector<8x128xf32>
    %2050 = arith.addf %2046, %2049 : vector<8x128xf32>
    %c246_1333 = arith.constant 246 : index
    %c0_1334 = arith.constant 0 : index
    %c0_1335 = arith.constant 0 : index
    %2051 = vector.load %arg1[%c246_1333, %c0_1334, %c0_1335] : memref<257x8x128xf32, #tpu.memory_space<vmem>>, vector<1x8x128xf32>
    %2052 = vector.shape_cast %2051 : vector<1x8x128xf32> to vector<8x128xf32>
    %2053 = arith.mulf %2052, %1851 : vector<8x128xf32>
    %2054 = arith.addf %2050, %2053 : vector<8x128xf32>
    %c247_1336 = arith.constant 247 : index
    %c0_1337 = arith.constant 0 : index
    %c0_1338 = arith.constant 0 : index
    %2055 = vector.load %arg1[%c247_1336, %c0_1337, %c0_1338] : memref<257x8x128xf32, #tpu.memory_space<vmem>>, vector<1x8x128xf32>
    %2056 = vector.shape_cast %2055 : vector<1x8x128xf32> to vector<8x128xf32>
    %2057 = arith.mulf %2056, %1919 : vector<8x128xf32>
    %2058 = arith.addf %2054, %2057 : vector<8x128xf32>
    %c251_1339 = arith.constant 251 : index
    %c0_1340 = arith.constant 0 : index
    %c0_1341 = arith.constant 0 : index
    %2059 = vector.load %arg1[%c251_1339, %c0_1340, %c0_1341] : memref<257x8x128xf32, #tpu.memory_space<vmem>>, vector<1x8x128xf32>
    %2060 = vector.shape_cast %2059 : vector<1x8x128xf32> to vector<8x128xf32>
    %2061 = arith.addf %2058, %2060 : vector<8x128xf32>
    %cst_1342 = arith.constant 0.000000e+00 : f32
    %2062 = vector.broadcast %cst_1342 : f32 to vector<8x128xf32>
    %2063 = arith.maximumf %2061, %2062 : vector<8x128xf32>
    %c252_1343 = arith.constant 252 : index
    %c0_1344 = arith.constant 0 : index
    %c0_1345 = arith.constant 0 : index
    %2064 = vector.load %arg1[%c252_1343, %c0_1344, %c0_1345] : memref<257x8x128xf32, #tpu.memory_space<vmem>>, vector<1x8x128xf32>
    %2065 = vector.shape_cast %2064 : vector<1x8x128xf32> to vector<8x128xf32>
    %2066 = arith.mulf %2065, %1955 : vector<8x128xf32>
    %c253_1346 = arith.constant 253 : index
    %c0_1347 = arith.constant 0 : index
    %c0_1348 = arith.constant 0 : index
    %2067 = vector.load %arg1[%c253_1346, %c0_1347, %c0_1348] : memref<257x8x128xf32, #tpu.memory_space<vmem>>, vector<1x8x128xf32>
    %2068 = vector.shape_cast %2067 : vector<1x8x128xf32> to vector<8x128xf32>
    %2069 = arith.mulf %2068, %1991 : vector<8x128xf32>
    %2070 = arith.addf %2066, %2069 : vector<8x128xf32>
    %c254_1349 = arith.constant 254 : index
    %c0_1350 = arith.constant 0 : index
    %c0_1351 = arith.constant 0 : index
    %2071 = vector.load %arg1[%c254_1349, %c0_1350, %c0_1351] : memref<257x8x128xf32, #tpu.memory_space<vmem>>, vector<1x8x128xf32>
    %2072 = vector.shape_cast %2071 : vector<1x8x128xf32> to vector<8x128xf32>
    %2073 = arith.mulf %2072, %2027 : vector<8x128xf32>
    %2074 = arith.addf %2070, %2073 : vector<8x128xf32>
    %c255_1352 = arith.constant 255 : index
    %c0_1353 = arith.constant 0 : index
    %c0_1354 = arith.constant 0 : index
    %2075 = vector.load %arg1[%c255_1352, %c0_1353, %c0_1354] : memref<257x8x128xf32, #tpu.memory_space<vmem>>, vector<1x8x128xf32>
    %2076 = vector.shape_cast %2075 : vector<1x8x128xf32> to vector<8x128xf32>
    %2077 = arith.mulf %2076, %2063 : vector<8x128xf32>
    %2078 = arith.addf %2074, %2077 : vector<8x128xf32>
    %c256_1355 = arith.constant 256 : index
    %c0_1356 = arith.constant 0 : index
    %c0_1357 = arith.constant 0 : index
    %2079 = vector.load %arg1[%c256_1355, %c0_1356, %c0_1357] : memref<257x8x128xf32, #tpu.memory_space<vmem>>, vector<1x8x128xf32>
    %2080 = vector.shape_cast %2079 : vector<1x8x128xf32> to vector<8x128xf32>
    %2081 = arith.addf %2078, %2080 : vector<8x128xf32>
    %2082 = arith.index_cast %1043 : i32 to index
    %c0_1358 = arith.constant 0 : index
    %2083 = vector.load %arg3[%2082, %c0_1358] : memref<16x128xf32, #tpu.memory_space<vmem>>, vector<8x128xf32>
    tpu.vector_store %arg3[%2082, %c0_1358], %2081 {strides = array<i32>} : memref<16x128xf32, #tpu.memory_space<vmem>>, vector<8x128xf32>,
    %c2_i32 = arith.constant 2 : i32
    return
  }
  func.func @transform_0(%arg0: i32) -> (i32, i32, i32) {
    %c0_i32 = arith.constant 0 : i32
    %c0_i32_0 = arith.constant 0 : i32
    %c0_i32_1 = arith.constant 0 : i32
    %c0_i32_2 = arith.constant 0 : i32
    return %c0_i32, %c0_i32_0, %c0_i32_1 : i32, i32, i32
  }
  func.func @transform_1(%arg0: i32) -> (i32, i32, i32) {
    %c0_i32 = arith.constant 0 : i32
    %c0_i32_0 = arith.constant 0 : i32
    %c0_i32_1 = arith.constant 0 : i32
    return %c0_i32, %arg0, %c0_i32_0 : i32, i32, i32
  }
  func.func @transform_2(%arg0: i32) -> (i32, i32) {
    %c0_i32 = arith.constant 0 : i32
    %c0_i32_0 = arith.constant 0 : i32
    return %arg0, %c0_i32 : i32, i32
  }
}

</mosaic_0001>

<bundles_post_ra>
// kernel: mlp_forward.1
= control target key start
LH: loop header
LB: loop body
LE: loop exit
PB: predicated region body
PF: predicated region fallthrough
CT: control target
= control target key end

     0   :  { %7 = vsyncpa [#allocation4], 0  ;;  %s5163_s0 = inlined_call_operand.vmem [shape: f32[257,8,128], index: 0, kind: input, shape index: {}]   ;;  %s5164_s1 = inlined_call_operand.vmem [shape: f32[4,32,128], index: 1, kind: input, shape index: {}]   ;;  %s5165_s2 = inlined_call_operand.hbm [shape: f32[32,128], index: 2, kind: output, shape index: {}]  }
   0x1   :  { %9 = vsyncpa [#allocation4 + $0x1], 0  ;;  %s2716_s9 = smov 0   ;;  %s2718_s10 = smov 0  }
   0x2   :  { %s2720_s11 = smov 0   ;;  %s2722_s12 = smov 0  }
   0x3 LB: > { %s2056_s13 = sadd.s32 4294967295, %s2696_s12   ;;  %s2057_s14 = sadd.s32 4294967294, %s2696_s12   ;;  %s2696_s12 = sphi %s2722_s12, %s5171_s12   ;;  %s2692_s11 = sphi %s2720_s11, %s5170_s11   ;;  %s2688_s10 = sphi %s2718_s10, %s5169_s10   ;;  %s2684_s9 = sphi %s2716_s9, %s5168_s9  }
   0x4   : > { %s2739_s15 = sadd.s32 1, %s2696_s12   ;;  %s43_s16 = sadd.s32 1, %s2692_s11 }
   0x5   : > { %s40_s17 = ssub.s32 %s2696_s12, %s2739_s15  ;;  %p50_p0 = scmp.ne.s32.totalorder %s2692_s11, %s2688_s10 }
   0x6   : > { %p41_p1 = scmp.eq.s32.totalorder %s40_s17, 0  ;;  %p51_p2 = scmp.eq.s32.totalorder %s2696_s12, 0 }
   0x7   : > { %p80_p3 = scmp.eq.s32.totalorder %s2056_s13, 1  ;;  %p85_p4 = scmp.ne.s32.totalorder %s2688_s10, %s2684_s9 }
   0x8   : > { %s2752_s18 = scalar_select %p41_p1, %s2692_s11, %s43_s16  }
   0x9   : > { %p52_p5 = por %p51_p2, %p50_p0  ;;  %p2754_p6 = por %p80_p3, %p50_p0 }
   0xa   : > { %p86_p7 = scmp.eq.s32.totalorder %s2057_s14, 1  ;;  %p2059_p9 = scmp.ge.s32.totalorder %s2696_s12, 2 }
   0xc   : > { %p2758_p8 = por %p86_p7, %p85_p4  ;;  %105 = sbr.rel (%p2059_p9) target bundleno = 27 (0x1b), region = 20 }
  0x13   : > { %108 = sbr.rel (!%p52_p5) target bundleno = 27 (0x1b), region = 24  ;;  %s110_s21 = sand.u32 (%p52_p5), 1, %s2692_s11  }
  0x14   : > { %s2591_s22 = sshll.u32 (%p52_p5), %s2696_s12, 4  ;;  %s2060_s23 = sshll.u32 (%p52_p5), %s110_s21, 6 }
  0x15   : > { %s115_s26 = scalar_lea.vmem (%p52_p5), %s5164_s1, %s2591_s22  ;;  %s112_s27 = scalar_lea.vmem (%p52_p5), [#allocation2], %s2060_s23 }
  0x16   : > { %v157_v0 = vld [vmem:[%s115_s26] sm:$0xff] (%p52_p5)  ;;  %v159_v1 = vld [vmem:[%s115_s26 + $0x8] sm:$0xff] (%p52_p5) }
  0x17   : > { %v161_v2 = vld [vmem:[%s115_s26 + $0x20] sm:$0xff] (%p52_p5)  ;;  %158 = vst [vmem:[%s112_s27] sm:$0xff] (%p52_p5), %v157_v0  ;;  %160 = vst [vmem:[%s112_s27 + $0x8] sm:$0xff] (%p52_p5), %v159_v1  ;;  %v163_v3 = vld [vmem:[%s115_s26 + $0x28] sm:$0xff] (%p52_p5) }
  0x18   : > { %162 = vst [vmem:[%s112_s27 + $0x10] sm:$0xff] (%p52_p5), %v161_v2  ;;  %v165_v4 = vld [vmem:[%s115_s26 + $0x40] sm:$0xff] (%p52_p5)  ;;  %v167_v5 = vld [vmem:[%s115_s26 + $0x48] sm:$0xff] (%p52_p5)  ;;  %164 = vst [vmem:[%s112_s27 + $0x18] sm:$0xff] (%p52_p5), %v163_v3 }
  0x19   : > { %166 = vst [vmem:[%s112_s27 + $0x20] sm:$0xff] (%p52_p5), %v165_v4  ;;  %168 = vst [vmem:[%s112_s27 + $0x28] sm:$0xff] (%p52_p5), %v167_v5  ;;  %v169_v6 = vld [vmem:[%s115_s26 + $0x60] sm:$0xff] (%p52_p5)  ;;  %v171_v7 = vld [vmem:[%s115_s26 + $0x68] sm:$0xff] (%p52_p5) }
  0x1a   : > { %170 = vst [vmem:[%s112_s27 + $0x30] sm:$0xff] %v169_v6  ;;  %172 = vst [vmem:[%s112_s27 + $0x38] sm:$0xff] %v171_v7 }
  0x1b PF: > { %p2063_p10 = scmp.ge.s32.totalorder %s2696_s12, 1  ;;  %p177_p11 = scmp.lt.s32.totalorder %s2696_s12, 3 }
  0x1d   : > { %p178_p12 = pnand %p2063_p10, %p177_p11 }
  0x1e   : > { %s2773_s28 = sand.u32 (!%p178_p12), 1, %s2688_s10   ;;  %v217_v8 = vld [vmem:[%s5163_s0] sm:$0xff] (!%p178_p12)  ;;  %v2069_v9 = vld [vmem:[%s5163_s0 + $0x8] sm:$0xff] (!%p178_p12)  ;;  %v2070_v10 = vld [vmem:[%s5163_s0 + $0x10] sm:$0xff] (!%p178_p12)  ;;  %s2698_s17 = smov (!%p178_p12), [#allocation3]  }
  0x1f   : > { %181 = sbr.rel (%p178_p12) target bundleno = 308 (0x134), region = 62  ;;  %s2064_s3 = sshll.u32 (!%p178_p12), %s2773_s28, 6  ;;  %v2073_v11 = vld [vmem:[%s5163_s0 + $0x20] sm:$0xff] (!%p178_p12)  ;;  %v2071_v12 = vld [vmem:[%s5163_s0 + $0x18] sm:$0xff] (!%p178_p12)  ;;  %v2074_v13 = vld [vmem:[%s5163_s0 + $0x28] sm:$0xff] (!%p178_p12) }
  0x20   : > { %v2075_v14 = vld [vmem:[%s5163_s0 + $0x30] sm:$0xff] (!%p178_p12)  ;;  %s2797_s25 = scalar_lea.vmem (!%p178_p12), [#allocation2], %s2064_s3  ;;  %v2076_v23 = vld [vmem:[%s5163_s0 + $0x38] sm:$0xff] (!%p178_p12)  ;;  %v2078_v24 = vld [vmem:[%s5163_s0 + $0x40] sm:$0xff] (!%p178_p12)  ;;  %s2065_s4 = sshll.u32 (!%p178_p12), %s2773_s28, 4 }
  0x21   : > { %v2800_v15 = vld [vmem:[%s2797_s25] sm:$0xff] (!%p178_p12)  ;;  %v2803_v16 = vld [vmem:[%s2797_s25 + $0x10] sm:$0xff] (!%p178_p12)  ;;  %v2079_v28 = vld [vmem:[%s5163_s0 + $0x48] sm:$0xff] (!%p178_p12)  ;;  %s4195_s27 = scalar_lea.vmem (!%p178_p12), [#allocation3], %s2065_s4  ;;  %s2592_s3 = sshll.u32 (!%p178_p12), %s2056_s13, 8 }
  0x22   : > { %v2806_v17 = vld [vmem:[%s2797_s25 + $0x20] sm:$0xff] (!%p178_p12)  ;;  %v2809_v18 = vld [vmem:[%s2797_s25 + $0x30] sm:$0xff] (!%p178_p12)  ;;  %v218_v19 = vmul.f32 (!%p178_p12), %v217_v8, %v2800_v15  ;;  %v221_v20 = vmul.f32 (!%p178_p12), %v2069_v9, %v2803_v16  ;;  %v237_v22 = vmul.f32 (!%p178_p12), %v2073_v11, %v2800_v15  ;;  %v240_v26 = vmul.f32 (!%p178_p12), %v2074_v13, %v2803_v16  ;;  %v2081_v30 = vld [vmem:[%s5163_s0 + $0x58] sm:$0xff] (!%p178_p12)  ;;  %s1983_s5 = sshll.u32 (!%p178_p12), %s4195_s27, 4  ;;  %s5116_s14 = scalar_lea.hbm (!%p178_p12), %s5165_s2, %s2592_s3  ;;  %s5118_s5 = int_to_ptr.vmem [resolvable:$true] %s1983_s5 }
  0x23   : > { %v225_v21 = vmul.f32 (!%p178_p12), %v2070_v10, %v2806_v17  ;;  %v229_v25 = vmul.f32 (!%p178_p12), %v2071_v12, %v2809_v18  ;;  %v244_v27 = vmul.f32 (!%p178_p12), %v2075_v14, %v2806_v17  ;;  %v2080_v29 = vld [vmem:[%s5163_s0 + $0x50] sm:$0xff] (!%p178_p12)  ;;  %v256_v32 = vmul.f32 (!%p178_p12), %v2078_v24, %v2800_v15  ;;  %v2083_v35 = vld [vmem:[%s5163_s0 + $0x60] sm:$0xff] (!%p178_p12)  ;;  %v2084_v36 = vld [vmem:[%s5163_s0 + $0x68] sm:$0xff] (!%p178_p12)  ;;  %s1970_s16 = scalar_lea.sflag (!%p178_p12), [#allocation4], %s2773_s28  ;;  %s2634_s13 = scalar_lea.vmem (!%p178_p12), %s5118_s5, 256 }
  0x24   : > { %v222_v31 = vadd.f32 (!%p178_p12), %v221_v20, %v218_v19  ;;  %v259_v33 = vmul.f32 (!%p178_p12), %v2079_v28, %v2803_v16  ;;  %v263_v34 = vmul.f32 (!%p178_p12), %v2080_v29, %v2806_v17  ;;  %v241_v37 = vadd.f32 (!%p178_p12), %v240_v26, %v237_v22  ;;  %v2085_v41 = vld [vmem:[%s5163_s0 + $0x70] sm:$0xff] (!%p178_p12)  ;;  %v2086_v42 = vld [vmem:[%s5163_s0 + $0x78] sm:$0xff] (!%p178_p12)  ;;  %v2088_v47 = vld [vmem:[%s5163_s0 + $0x80] sm:$0xff] (!%p178_p12)  ;;  %p2635_p13 = scmp.ne.s32.totalorder (!%p178_p12), %s5118_s5, %s2634_s13  ;;  %s2638_s21 = sshll.u32 (!%p178_p12), %s2698_s17, 4  ;;  %s2639_s21 = int_to_ptr.vmem [resolvable:$false] %s2638_s21 }
  0x25   : > { %v248_v38 = vmul.f32 (!%p178_p12), %v2076_v23, %v2809_v18  ;;  %v275_v39 = vmul.f32 (!%p178_p12), %v2083_v35, %v2800_v15  ;;  %v278_v40 = vmul.f32 (!%p178_p12), %v2084_v36, %v2803_v16  ;;  %v267_v45 = vmul.f32 (!%p178_p12), %v2081_v30, %v2809_v18  ;;  %v2089_v48 = vld [vmem:[%s5163_s0 + $0x88] sm:$0xff] (!%p178_p12)  ;;  %v2090_v49 = vld [vmem:[%s5163_s0 + $0x90] sm:$0xff] (!%p178_p12)  ;;  %v2091_v54 = vld [vmem:[%s5163_s0 + $0x98] sm:$0xff] (!%p178_p12)  ;;  %s2640_s22 = scalar_lea.vmem (!%p178_p12), %s2639_s21, 512  ;;  %p2641_p2 = scmp.lt.s32.totalorder (!%p178_p12), %s5118_s5, %s2639_s21 }
  0x26   : > { %v226_v43 = vadd.f32 %v225_v21, %v222_v31  ;;  %v260_v44 = vadd.f32 %v259_v33, %v256_v32  ;;  %v282_v46 = vmul.f32 %v2085_v41, %v2806_v17  ;;  %v245_v50 = vadd.f32 %v244_v27, %v241_v37  ;;  %v2093_v55 = vld [vmem:[%s5163_s0 + $0xa0] sm:$0xff]  ;;  %v2094_v61 = vld [vmem:[%s5163_s0 + $0xa8] sm:$0xff]  ;;  %v2095_v62 = vld [vmem:[%s5163_s0 + $0xb0] sm:$0xff]  ;;  %p2636_p0 = pnand %p2635_p13, %p2754_p6  ;;  %p2642_p3 = scmp.lt.s32.totalorder %s2640_s22, %s2634_s13 }
  0x27   : > { %v279_v51 = vadd.f32 %v278_v40, %v275_v39  ;;  %v294_v52 = vmul.f32 %v2088_v47, %v2800_v15  ;;  %v297_v53 = vmul.f32 %v2089_v48, %v2803_v16  ;;  %v2072_v57 = vld [vmem:[%s5163_s0 + $0x200] sm:$0xff]  ;;  %v286_v59 = vmul.f32 %v2086_v42, %v2809_v18  ;;  %v2077_v0 = vld [vmem:[%s5163_s0 + $0x208] sm:$0xff]  ;;  %v2082_v6 = vld [vmem:[%s5163_s0 + $0x210] sm:$0xff] }
  0x28   : > { %v230_v56 = vadd.f32 %v229_v25, %v226_v43  ;;  %v264_v58 = vadd.f32 %v263_v34, %v260_v44  ;;  %v301_v60 = vmul.f32 %v2090_v49, %v2806_v17  ;;  %v249_v63 = vadd.f32 %v248_v38, %v245_v50  ;;  %v2098_v4 = vld [vmem:[%s5163_s0 + $0xc0] sm:$0xff]  ;;  %v2099_v10 = vld [vmem:[%s5163_s0 + $0xc8] sm:$0xff]  ;;  %v2096_v13 = vld [vmem:[%s5163_s0 + $0xb8] sm:$0xff]  ;;  %p2637_p1 = pneg %p2636_p0  ;;  %p2643_p4 = por %p2642_p3, %p2641_p2 }
  0x29   : > { %v283_v1 = vadd.f32 %v282_v46, %v279_v51  ;;  %v298_v2 = vadd.f32 %v297_v53, %v294_v52  ;;  %v313_v3 = vmul.f32 %v2093_v55, %v2800_v15  ;;  %v305_v7 = vmul.f32 %v2091_v54, %v2809_v18  ;;  %v2100_v14 = vld [vmem:[%s5163_s0 + $0xd0] sm:$0xff]  ;;  %v2101_v23 = vld [vmem:[%s5163_s0 + $0xd8] sm:$0xff]  ;;  %v2103_v24 = vld [vmem:[%s5163_s0 + $0xe0] sm:$0xff] }
  0x2a   : > { %v268_v5 = vadd.f32 %v267_v45, %v264_v58  ;;  %v316_v8 = vmul.f32 %v2094_v61, %v2803_v16  ;;  %v320_v9 = vmul.f32 %v2095_v62, %v2806_v17  ;;  %v233_v11 = vadd.f32 %v2072_v57, %v230_v56  ;;  %v2087_v26 = vld [vmem:[%s5163_s0 + $0x218] sm:$0xff]  ;;  %v2104_v28 = vld [vmem:[%s5163_s0 + $0xe8] sm:$0xff]  ;;  %v2105_v29 = vld [vmem:[%s5163_s0 + $0xf0] sm:$0xff]  ;;  %p2644_p5 = pnand %p2643_p4, %p2637_p1 }
  0x2b   : > { %v302_v12 = vadd.f32 %v301_v60, %v298_v2  ;;  %v252_v19 = vadd.f32 %v2077_v0, %v249_v63  ;;  %v287_v20 = vadd.f32 %v286_v59, %v283_v1  ;;  %v332_v22 = vmul.f32 %v2098_v4, %v2800_v15  ;;  %v2108_v34 = vld [vmem:[%s5163_s0 + $0x100] sm:$0xff]  ;;  %v2109_v35 = vld [vmem:[%s5163_s0 + $0x108] sm:$0xff]  ;;  %v2110_v41 = vld [vmem:[%s5163_s0 + $0x110] sm:$0xff] }
  0x2c   : > { %v317_v21 = vadd.f32 %v316_v8, %v313_v3  ;;  %v271_v25 = vadd.f32 %v2082_v6, %v268_v5  ;;  %v335_v27 = vmul.f32 %v2099_v10, %v2803_v16  ;;  %v324_v32 = vmul.f32 %v2096_v13, %v2809_v18  ;;  %v2092_v37 = vld [vmem:[%s5163_s0 + $0x220] sm:$0xff]  ;;  %v2114_v47 = vld [vmem:[%s5163_s0 + $0x128] sm:$0xff]  ;;  %v2106_v50 = vld [vmem:[%s5163_s0 + $0xf8] sm:$0xff] }
  0x2d   : > { %v306_v30 = vadd.f32 %v305_v7, %v302_v12  ;;  %v339_v33 = vmul.f32 %v2100_v14, %v2806_v17  ;;  %v2928_v36 = vmax.f32 %v233_v11, 0.0  ;;  %v343_v39 = vmul.f32 %v2101_v23, %v2809_v18  ;;  %v2113_v46 = vld [vmem:[%s5163_s0 + $0x120] sm:$0xff]  ;;  %v2111_v53 = vld [vmem:[%s5163_s0 + $0x118] sm:$0xff]  ;;  %v2115_v54 = vld [vmem:[%s5163_s0 + $0x130] sm:$0xff] }
  0x2e   : > { %v321_v31 = vadd.f32 %v320_v9, %v317_v21  ;;  %v336_v38 = vadd.f32 %v335_v27, %v332_v22  ;;  %v351_v40 = vmul.f32 %v2103_v24, %v2800_v15  ;;  %v2938_v42 = vmax.f32 %v252_v19, 0.0  ;;  %v2116_v59 = vld [vmem:[%s5163_s0 + $0x138] sm:$0xff]  ;;  %v2118_v60 = vld [vmem:[%s5163_s0 + $0x140] sm:$0xff]  ;;  %v2119_v1 = vld [vmem:[%s5163_s0 + $0x148] sm:$0xff] }
  0x2f   : > { %v290_v43 = vadd.f32 %v2087_v26, %v287_v20  ;;  %v354_v44 = vmul.f32 %v2104_v28, %v2803_v16  ;;  %v358_v45 = vmul.f32 %v2105_v29, %v2806_v17  ;;  %v2948_v48 = vmax.f32 %v271_v25, 0.0  ;;  %v2120_v2 = vld [vmem:[%s5163_s0 + $0x150] sm:$0xff]  ;;  %v2097_v3 = vld [vmem:[%s5163_s0 + $0x228] sm:$0xff]  ;;  %v2123_v9 = vld [vmem:[%s5163_s0 + $0x160] sm:$0xff] }
  0x30   : > { %v340_v49 = vadd.f32 %v339_v33, %v336_v38  ;;  %v370_v51 = vmul.f32 %v2108_v34, %v2800_v15  ;;  %v373_v52 = vmul.f32 %v2109_v35, %v2803_v16  ;;  %v309_v55 = vadd.f32 %v2092_v37, %v306_v30  ;;  %v2102_v4 = vld [vmem:[%s5163_s0 + $0x230] sm:$0xff]  ;;  %v2121_v14 = vld [vmem:[%s5163_s0 + $0x158] sm:$0xff]  ;;  %v2124_v19 = vld [vmem:[%s5163_s0 + $0x168] sm:$0xff] }
  0x31   : > { %v325_v56 = vadd.f32 %v324_v32, %v321_v31  ;;  %v355_v57 = vadd.f32 %v354_v44, %v351_v40  ;;  %v377_v58 = vmul.f32 %v2110_v41, %v2806_v17  ;;  %v389_v63 = vmul.f32 %v2113_v46, %v2800_v15  ;;  %v2125_v20 = vld [vmem:[%s5163_s0 + $0x170] sm:$0xff]  ;;  %v2128_v25 = vld [vmem:[%s5163_s0 + $0x180] sm:$0xff]  ;;  %v2126_v30 = vld [vmem:[%s5163_s0 + $0x178] sm:$0xff] }
  0x32   : > { %v344_v61 = vadd.f32 %v343_v39, %v340_v49  ;;  %v374_v62 = vadd.f32 %v373_v52, %v370_v51  ;;  %v392_v0 = vmul.f32 %v2114_v47, %v2803_v16  ;;  %v362_v6 = vmul.f32 %v2106_v50, %v2809_v18  ;;  %v2129_v31 = vld [vmem:[%s5163_s0 + $0x188] sm:$0xff]  ;;  %v2130_v37 = vld [vmem:[%s5163_s0 + $0x190] sm:$0xff]  ;;  %v2131_v38 = vld [vmem:[%s5163_s0 + $0x198] sm:$0xff] }
  0x33   : > { %v359_v5 = vadd.f32 %v358_v45, %v355_v57  ;;  %v381_v7 = vmul.f32 %v2111_v53, %v2809_v18  ;;  %v396_v8 = vmul.f32 %v2115_v54, %v2806_v17  ;;  %v400_v12 = vmul.f32 %v2116_v59, %v2809_v18  ;;  %v2107_v40 = vld [vmem:[%s5163_s0 + $0x238] sm:$0xff]  ;;  %v2133_v45 = vld [vmem:[%s5163_s0 + $0x1a0] sm:$0xff]  ;;  %v2134_v52 = vld [vmem:[%s5163_s0 + $0x1a8] sm:$0xff] }
  0x34   : > { %v378_v10 = vadd.f32 %v377_v58, %v374_v62  ;;  %v393_v11 = vadd.f32 %v392_v0, %v389_v63  ;;  %v408_v13 = vmul.f32 %v2118_v60, %v2800_v15  ;;  %v2999_v21 = vmax.f32 %v290_v43, 0.0  ;;  %v2112_v46 = vld [vmem:[%s5163_s0 + $0x240] sm:$0xff]  ;;  %v2135_v53 = vld [vmem:[%s5163_s0 + $0x1b0] sm:$0xff]  ;;  %v2136_v0 = vld [vmem:[%s5163_s0 + $0x1b8] sm:$0xff] }
  0x35   : > { %v3001_v22 = vmax.f32 %v309_v55, 0.0  ;;  %v411_v23 = vmul.f32 %v2119_v1, %v2803_v16  ;;  %v415_v24 = vmul.f32 %v2120_v2, %v2806_v17  ;;  %v328_v26 = vadd.f32 %v2097_v3, %v325_v56  ;;  %v2117_v56 = vld [vmem:[%s5163_s0 + $0x248] sm:$0xff]  ;;  %v2138_v59 = vld [vmem:[%s5163_s0 + $0x1c0] sm:$0xff]  ;;  %v2140_v2 = vld [vmem:[%s5163_s0 + $0x1d0] sm:$0xff] }
  0x36   : > { %v347_v27 = vadd.f32 %v2102_v4, %v344_v61  ;;  %v397_v28 = vadd.f32 %v396_v8, %v393_v11  ;;  %v427_v29 = vmul.f32 %v2123_v9, %v2800_v15  ;;  %v419_v33 = vmul.f32 %v2121_v14, %v2809_v18  ;;  %v2139_v1 = vld [vmem:[%s5163_s0 + $0x1c8] sm:$0xff]  ;;  %v2141_v8 = vld [vmem:[%s5163_s0 + $0x1d8] sm:$0xff]  ;;  %v2143_v9 = vld [vmem:[%s5163_s0 + $0x1e0] sm:$0xff] }
  0x37   : > { %v412_v32 = vadd.f32 %v411_v23, %v408_v13  ;;  %v430_v34 = vmul.f32 %v2124_v19, %v2803_v16  ;;  %v434_v35 = vmul.f32 %v2125_v20, %v2806_v17  ;;  %v363_v39 = vadd.f32 %v362_v6, %v359_v5  ;;  %v2122_v5 = vld [vmem:[%s5163_s0 + $0x250] sm:$0xff]  ;;  %v2144_v19 = vld [vmem:[%s5163_s0 + $0x1e8] sm:$0xff]  ;;  %v2132_v23 = vld [vmem:[%s5163_s0 + $0x260] sm:$0xff] }
  0x38   : > { %v382_v41 = vadd.f32 %v381_v7, %v378_v10  ;;  %v401_v43 = vadd.f32 %v400_v12, %v397_v28  ;;  %v446_v44 = vmul.f32 %v2128_v25, %v2800_v15  ;;  %v438_v50 = vmul.f32 %v2126_v30, %v2809_v18  ;;  %v2127_v12 = vld [vmem:[%s5163_s0 + $0x258] sm:$0xff]  ;;  %v2145_v20 = vld [vmem:[%s5163_s0 + $0x1f0] sm:$0xff] }
  0x39   : > { %v416_v47 = vadd.f32 %v415_v24, %v412_v32  ;;  %v431_v49 = vadd.f32 %v430_v34, %v427_v29  ;;  %v449_v51 = vmul.f32 %v2129_v31, %v2803_v16  ;;  %v3042_v54 = vmax.f32 %v328_v26, 0.0  ;;  %v2146_v28 = vld [vmem:[%s5163_s0 + $0x1f8] sm:$0xff]  ;;  %v2148_v29 = vld [vmem:[%s5163_s0 + $0x280] sm:$0xff]  ;;  %v2149_v34 = vld [vmem:[%s5163_s0 + $0x288] sm:$0xff] }
  0x3a   : > { %v3044_v55 = vmax.f32 %v347_v27, 0.0  ;;  %v453_v57 = vmul.f32 %v2130_v37, %v2806_v17  ;;  %v457_v58 = vmul.f32 %v2131_v38, %v2809_v18  ;;  %v465_v63 = vmul.f32 %v2133_v45, %v2800_v15 }
  0x3b   : > { %v420_v60 = vadd.f32 %v419_v33, %v416_v47  ;;  %v435_v61 = vadd.f32 %v434_v35, %v431_v49  ;;  %v450_v62 = vadd.f32 %v449_v51, %v446_v44  ;;  %v366_v3 = vadd.f32 %v2107_v40, %v363_v39  ;;  %v2150_v40 = vld [vmem:[%s5163_s0 + $0x290] sm:$0xff]  ;;  %v2137_v44 = vld [vmem:[%s5163_s0 + $0x268] sm:$0xff] }
  0x3c   : > { %v385_v4 = vadd.f32 %v2112_v46, %v382_v41  ;;  %v468_v6 = vmul.f32 %v2134_v52, %v2803_v16  ;;  %v472_v7 = vmul.f32 %v2135_v53, %v2806_v17  ;;  %v404_v10 = vadd.f32 %v2117_v56, %v401_v43  ;;  %v2151_v41 = vld [vmem:[%s5163_s0 + $0x298] sm:$0xff]  ;;  %v2142_v52 = vld [vmem:[%s5163_s0 + $0x270] sm:$0xff] }
  0x3d   : > { %v439_v11 = vadd.f32 %v438_v50, %v435_v61  ;;  %v454_v13 = vadd.f32 %v453_v57, %v450_v62  ;;  %v484_v14 = vmul.f32 %v2138_v59, %v2800_v15  ;;  %v476_v25 = vmul.f32 %v2136_v0, %v2809_v18  ;;  %v2147_v53 = vld [vmem:[%s5163_s0 + $0x278] sm:$0xff]  ;;  %v2152_v57 = vld [vmem:[%s5163_s0 + $0x2a0] sm:$0xff]  ;;  %v2153_v62 = vld [vmem:[%s5163_s0 + $0x2a8] sm:$0xff] }
  0x3e   : > { %v469_v24 = vadd.f32 %v468_v6, %v465_v63  ;;  %v487_v26 = vmul.f32 %v2139_v1, %v2803_v16  ;;  %v491_v27 = vmul.f32 %v2140_v2, %v2806_v17  ;;  %v423_v30 = vadd.f32 %v2122_v5, %v420_v60  ;;  %v2154_v63 = vld [vmem:[%s5163_s0 + $0x2b0] sm:$0xff]  ;;  %v2155_v0 = vld [vmem:[%s5163_s0 + $0x2b8] sm:$0xff]  ;;  %v2156_v5 = vld [vmem:[%s5163_s0 + $0x2c0] sm:$0xff] }
  0x3f   : > { %v458_v31 = vadd.f32 %v457_v58, %v454_v13  ;;  %v495_v32 = vmul.f32 %v2141_v8, %v2809_v18  ;;  %v503_v33 = vmul.f32 %v2143_v9, %v2800_v15  ;;  %v506_v38 = vmul.f32 %v2144_v19, %v2803_v16  ;;  %v2157_v6 = vld [vmem:[%s5163_s0 + $0x2c8] sm:$0xff]  ;;  %v2167_v13 = vld [vmem:[%s5163_s0 + $0x310] sm:$0xff] }
  0x40   : > { %v473_v35 = vadd.f32 %v472_v7, %v469_v24  ;;  %v488_v37 = vadd.f32 %v487_v26, %v484_v14  ;;  %v510_v39 = vmul.f32 %v2145_v20, %v2806_v17  ;;  %v442_v43 = vadd.f32 %v2127_v12, %v439_v11  ;;  %v2165_v11 = vld [vmem:[%s5163_s0 + $0x300] sm:$0xff]  ;;  %v2166_v12 = vld [vmem:[%s5163_s0 + $0x308] sm:$0xff]  ;;  %v2158_v24 = vld [vmem:[%s5163_s0 + $0x2d0] sm:$0xff] }
  0x41   : > { %v461_v15 = vadd.f32 %v2132_v23, %v458_v31  ;;  %v514_v45 = vmul.f32 %v2146_v28, %v2809_v18  ;;  %v522_v16 = vmul.f32 %v2148_v29, %v2928_v36  ;;  %v507_v47 = vadd.f32 %v506_v38, %v503_v33  ;;  %v2161_v31 = vld [vmem:[%s5163_s0 + $0x2e8] sm:$0xff] }
  0x42   : > { %v477_v46 = vadd.f32 %v476_v25, %v473_v35  ;;  %v492_v17 = vadd.f32 %v491_v27, %v488_v37  ;;  %v525_v49 = vmul.f32 %v2149_v34, %v2938_v42  ;;  %v3116_v50 = vmax.f32 %v366_v3, 0.0  ;;  %v2159_v25 = vld [vmem:[%s5163_s0 + $0x2d8] sm:$0xff]  ;;  %v2162_v34 = vld [vmem:[%s5163_s0 + $0x2f0] sm:$0xff] }
  0x43   : > { %v3118_v51 = vmax.f32 %v385_v4, 0.0  ;;  %v529_v18 = vmul.f32 %v2150_v40, %v2948_v48  ;;  %v533_v56 = vmul.f32 %v2151_v41, %v2999_v21  ;;  %v511_v60 = vadd.f32 %v510_v39, %v507_v47  ;;  %v2169_v39 = vld [vmem:[%s5163_s0 + $0x320] sm:$0xff]  ;;  %v2170_v40 = vld [vmem:[%s5163_s0 + $0x328] sm:$0xff] }
  0x44   : > { %v480_v58 = vadd.f32 %v2137_v44, %v477_v46  ;;  %v496_v59 = vadd.f32 %v495_v32, %v492_v17  ;;  %v526_v61 = vadd.f32 %v525_v49, %v522_v16  ;;  %v3140_v1 = vmax.f32 %v404_v10, 0.0  ;;  %v2168_v32 = vld [vmem:[%s5163_s0 + $0x318] sm:$0xff]  ;;  %v2171_v16 = vld [vmem:[%s5163_s0 + $0x330] sm:$0xff] }
  0x45   : > { %v3142_v2 = vmax.f32 %v423_v30, 0.0  ;;  %v3144_v3 = vmax.f32 %v442_v43, 0.0  ;;  %v3146_v4 = vmax.f32 %v461_v15, 0.0  ;;  %v515_v8 = vadd.f32 %v514_v45, %v511_v60  ;;  %v2160_v30 = vld [vmem:[%s5163_s0 + $0x2e0] sm:$0xff]  ;;  %v2163_v45 = vld [vmem:[%s5163_s0 + $0x2f8] sm:$0xff] }
  0x46   : > { %v499_v7 = vadd.f32 %v2142_v52, %v496_v59  ;;  %v530_v9 = vadd.f32 %v529_v18, %v526_v61  ;;  %v537_v10 = vmul.f32 %v2152_v57, %v3001_v22  ;;  %v3164_v14 = vmax.f32 %v480_v58, 0.0  ;;  %v2172_v46 = vld [vmem:[%s5163_s0 + $0x338] sm:$0xff]  ;;  %v2174_v18 = vld [vmem:[%s5163_s0 + $0x348] sm:$0xff]  ;;  %v2182_v61 = vld [vmem:[%s5163_s0 + $0x380] sm:$0xff] }
  0x47   : > { %v541_v19 = vmul.f32 %v2153_v62, %v3042_v54  ;;  %v545_v20 = vmul.f32 %v2154_v63, %v3044_v55  ;;  %v549_v23 = vmul.f32 %v2155_v0, %v3116_v50  ;;  %v518_v27 = vadd.f32 %v2147_v53, %v515_v8  ;;  %v2173_v53 = vld [vmem:[%s5163_s0 + $0x340] sm:$0xff]  ;;  %v2183_v62 = vld [vmem:[%s5163_s0 + $0x388] sm:$0xff]  ;;  %v2184_v63 = vld [vmem:[%s5163_s0 + $0x390] sm:$0xff] }
  0x48   : > { %v3175_v26 = vmax.f32 %v499_v7, 0.0  ;;  %v534_v28 = vadd.f32 %v533_v56, %v530_v9  ;;  %v3178_v29 = vmul.f32 %v2156_v5, %v3118_v51  ;;  %v3190_v33 = vmul.f32 %v2157_v6, %v3140_v1  ;;  %v2175_v56 = vld [vmem:[%s5163_s0 + $0x350] sm:$0xff]  ;;  %v2176_v8 = vld [vmem:[%s5163_s0 + $0x358] sm:$0xff]  ;;  %v2177_v9 = vld [vmem:[%s5163_s0 + $0x360] sm:$0xff] }
  0x49   : > { %v589_v35 = vmul.f32 %v2165_v11, %v2928_v36  ;;  %v592_v37 = vmul.f32 %v2166_v12, %v2938_v42  ;;  %v596_v38 = vmul.f32 %v2167_v13, %v2948_v48  ;;  %v3204_v41 = vmax.f32 %v518_v27, 0.0 }
  0x4a   : > { %v538_v43 = vadd.f32 %v537_v10, %v534_v28  ;;  %v3207_v15 = vmul.f32 %v2158_v24, %v3142_v2  ;;  %v3210_v44 = vmul.f32 %v2159_v25, %v3144_v3  ;;  %v3222_v17 = vmul.f32 %v2160_v30, %v3146_v4  ;;  %v2178_v10 = vld [vmem:[%s5163_s0 + $0x368] sm:$0xff]  ;;  %v2179_v24 = vld [vmem:[%s5163_s0 + $0x370] sm:$0xff]  ;;  %v2185_v25 = vld [vmem:[%s5163_s0 + $0x398] sm:$0xff] }
  0x4b   : > { %v3225_v47 = vmul.f32 %v2161_v31, %v3164_v14  ;;  %v593_v49 = vadd.f32 %v592_v37, %v589_v35  ;;  %v600_v52 = vmul.f32 %v2168_v32, %v2999_v21  ;;  %v3238_v58 = vmul.f32 %v2162_v34, %v3175_v26  ;;  %v2186_v32 = vld [vmem:[%s5163_s0 + $0x3a0] sm:$0xff]  ;;  %v2187_v34 = vld [vmem:[%s5163_s0 + $0x3a8] sm:$0xff] }
  0x4c   : > { %v542_v57 = vadd.f32 %v541_v19, %v538_v43  ;;  %v604_v59 = vmul.f32 %v2169_v39, %v3001_v22  ;;  %v608_v60 = vmul.f32 %v2170_v40, %v3042_v54  ;;  %v3252_v0 = vmul.f32 %v2163_v45, %v3204_v41  ;;  %v2188_v40 = vld [vmem:[%s5163_s0 + $0x3b0] sm:$0xff]  ;;  %v2189_v43 = vld [vmem:[%s5163_s0 + $0x3b8] sm:$0xff] }
  0x4d   : > { %v597_v5 = vadd.f32 %v596_v38, %v593_v49  ;;  %v612_v6 = vmul.f32 %v2171_v16, %v3044_v55  ;;  %v616_v7 = vmul.f32 %v2172_v46, %v3116_v50  ;;  %v3266_v12 = vmul.f32 %v2173_v53, %v3118_v51  ;;  %v2190_v49 = vld [vmem:[%s5163_s0 + $0x3c0] sm:$0xff]  ;;  %v2192_v53 = vld [vmem:[%s5163_s0 + $0x3d0] sm:$0xff] }
  0x4e   : > { %v546_v11 = vadd.f32 %v545_v20, %v542_v57  ;;  %v3269_v13 = vmul.f32 %v2174_v18, %v3140_v1  ;;  %v3272_v19 = vmul.f32 %v2175_v56, %v3142_v2  ;;  %v2180_v20 = vld [vmem:[%s5163_s0 + $0x378] sm:$0xff]  ;;  %v656_v28 = vmul.f32 %v2182_v61, %v2928_v36  ;;  %v2199_v61 = vld [vmem:[%s5163_s0 + $0x400] sm:$0xff] }
  0x4f   : > { %v601_v27 = vadd.f32 %v600_v52, %v597_v5  ;;  %v659_v30 = vmul.f32 %v2183_v62, %v2938_v42  ;;  %v663_v31 = vmul.f32 %v2184_v63, %v2948_v48  ;;  %v3293_v37 = vmul.f32 %v2176_v8, %v3144_v3  ;;  %v2191_v52 = vld [vmem:[%s5163_s0 + $0x3c8] sm:$0xff] }
  0x50   : > { %v550_v35 = vadd.f32 %v549_v23, %v546_v11  ;;  %v3296_v38 = vmul.f32 %v2177_v9, %v3146_v4  ;;  %v3299_v39 = vmul.f32 %v2178_v10, %v3164_v14  ;;  %v3308_v23 = vmul.f32 %v2179_v24, %v3175_v26  ;;  %v2200_v62 = vld [vmem:[%s5163_s0 + $0x408] sm:$0xff]  ;;  %v2193_v9 = vld [vmem:[%s5163_s0 + $0x3d8] sm:$0xff]  ;;  %v2194_v10 = vld [vmem:[%s5163_s0 + $0x3e0] sm:$0xff] }
  0x51   : > { %v605_v45 = vadd.f32 %v604_v59, %v601_v27  ;;  %v660_v16 = vadd.f32 %v659_v30, %v656_v28  ;;  %v667_v46 = vmul.f32 %v2185_v25, %v2999_v21  ;;  %v3322_v56 = vmul.f32 %v2180_v20, %v3204_v41  ;;  %v2201_v11 = vld [vmem:[%s5163_s0 + $0x410] sm:$0xff]  ;;  %v2202_v20 = vld [vmem:[%s5163_s0 + $0x418] sm:$0xff] }
  0x52   : > { %v554_v18 = vadd.f32 %v3178_v29, %v550_v35  ;;  %v671_v57 = vmul.f32 %v2186_v32, %v3001_v22  ;;  %v675_v59 = vmul.f32 %v2187_v34, %v3042_v54  ;;  %v679_v8 = vmul.f32 %v2188_v40, %v3044_v55  ;;  %v2197_v32 = vld [vmem:[%s5163_s0 + $0x3f8] sm:$0xff] }
  0x53   : > { %v609_v63 = vadd.f32 %v608_v60, %v605_v45  ;;  %v664_v5 = vadd.f32 %v663_v31, %v660_v16  ;;  %v683_v29 = vmul.f32 %v2189_v43, %v3116_v50  ;;  %v3345_v60 = vmul.f32 %v2190_v49, %v3118_v51  ;;  %v2195_v31 = vld [vmem:[%s5163_s0 + $0x3e8] sm:$0xff]  ;;  %v2203_v16 = vld [vmem:[%s5163_s0 + $0x420] sm:$0xff] }
  0x54   : > { %v558_v24 = vadd.f32 %v3190_v33, %v554_v18  ;;  %v3348_v25 = vmul.f32 %v2191_v52, %v3140_v1  ;;  %v3351_v27 = vmul.f32 %v2192_v53, %v3142_v2  ;;  %v2196_v33 = vld [vmem:[%s5163_s0 + $0x3f0] sm:$0xff]  ;;  %v723_v34 = vmul.f32 %v2199_v61, %v2928_v36  ;;  %v2206_v61 = vld [vmem:[%s5163_s0 + $0x438] sm:$0xff] }
  0x55   : > { %v613_v28 = vadd.f32 %v612_v6, %v609_v63  ;;  %v668_v30 = vadd.f32 %v667_v46, %v664_v5  ;;  %v726_v35 = vmul.f32 %v2200_v62, %v2938_v42  ;;  %v3369_v6 = vmul.f32 %v2193_v9, %v3144_v3  ;;  %v2205_v18 = vld [vmem:[%s5163_s0 + $0x430] sm:$0xff]  ;;  %v2207_v5 = vld [vmem:[%s5163_s0 + $0x440] sm:$0xff] }
  0x56   : > { %v562_v40 = vadd.f32 %v3207_v15, %v558_v24  ;;  %v3372_v43 = vmul.f32 %v2194_v10, %v3146_v4  ;;  %v730_v45 = vmul.f32 %v2201_v11, %v2948_v48  ;;  %v734_v53 = vmul.f32 %v2202_v20, %v2999_v21  ;;  %v2204_v15 = vld [vmem:[%s5163_s0 + $0x428] sm:$0xff]  ;;  %v2209_v20 = vld [vmem:[%s5163_s0 + $0x450] sm:$0xff] }
  0x57   : > { %v617_v46 = vadd.f32 %v616_v7, %v613_v28  ;;  %v672_v49 = vadd.f32 %v671_v57, %v668_v30  ;;  %v727_v52 = vadd.f32 %v726_v35, %v723_v34  ;;  %v3390_v7 = vmul.f32 %v2195_v31, %v3164_v14  ;;  %v2216_v28 = vld [vmem:[%s5163_s0 + $0x480] sm:$0xff] }
  0x58   : > { %v566_v62 = vadd.f32 %v3210_v44, %v562_v40  ;;  %v3393_v57 = vmul.f32 %v2196_v33, %v3175_v26  ;;  %v3396_v63 = vmul.f32 %v2197_v32, %v3204_v41  ;;  %v738_v24 = vmul.f32 %v2203_v16, %v3001_v22  ;;  %v2208_v44 = vld [vmem:[%s5163_s0 + $0x448] sm:$0xff]  ;;  %v2219_v16 = vld [vmem:[%s5163_s0 + $0x498] sm:$0xff] }
  0x59   : > { %v621_v9 = vadd.f32 %v3266_v12, %v617_v46  ;;  %v676_v10 = vadd.f32 %v675_v59, %v672_v49  ;;  %v731_v11 = vadd.f32 %v730_v45, %v727_v52  ;;  %v742_v12 = vmul.f32 %v2204_v15, %v3042_v54  ;;  %v2217_v33 = vld [vmem:[%s5163_s0 + $0x488] sm:$0xff]  ;;  %v2218_v45 = vld [vmem:[%s5163_s0 + $0x490] sm:$0xff] }
  0x5a   : > { %v570_v30 = vadd.f32 %v3222_v17, %v566_v62  ;;  %v746_v59 = vmul.f32 %v2205_v18, %v3044_v55  ;;  %v750_v31 = vmul.f32 %v2206_v61, %v3116_v50  ;;  %v754_v40 = vmul.f32 %v2207_v5, %v3118_v51  ;;  %v2210_v17 = vld [vmem:[%s5163_s0 + $0x458] sm:$0xff]  ;;  %v2211_v18 = vld [vmem:[%s5163_s0 + $0x460] sm:$0xff] }
  0x5b   : > { %v625_v32 = vadd.f32 %v3269_v13, %v621_v9  ;;  %v680_v34 = vadd.f32 %v679_v8, %v676_v10  ;;  %v735_v35 = vadd.f32 %v734_v53, %v731_v11  ;;  %v3432_v13 = vmul.f32 %v2208_v44, %v3140_v1  ;;  %v2220_v62 = vld [vmem:[%s5163_s0 + $0x4a0] sm:$0xff] }
  0x5c   : > { %v574_v46 = vadd.f32 %v3225_v47, %v570_v30  ;;  %v3435_v8 = vmul.f32 %v2209_v20, %v3142_v2  ;;  %v790_v49 = vmul.f32 %v2216_v28, %v2928_v36  ;;  %v2212_v47 = vld [vmem:[%s5163_s0 + $0x468] sm:$0xff]  ;;  %v793_v61 = vmul.f32 %v2217_v33, %v2938_v42  ;;  %v2214_v20 = vld [vmem:[%s5163_s0 + $0x478] sm:$0xff] }
  0x5d   : > { %v629_v52 = vadd.f32 %v3272_v19, %v625_v32  ;;  %v684_v53 = vadd.f32 %v683_v29, %v680_v34  ;;  %v739_v15 = vadd.f32 %v738_v24, %v735_v35  ;;  %v2164_v19 = vld [vmem:[%s5163_s0 + $0x680] sm:$0xff]  ;;  %v3454_v29 = vmul.f32 %v2210_v17, %v3144_v3  ;;  %v2221_v30 = vld [vmem:[%s5163_s0 + $0x4a8] sm:$0xff]  ;;  %v2222_v32 = vld [vmem:[%s5163_s0 + $0x4b0] sm:$0xff] }
  0x5e   : > { %v578_v5 = vadd.f32 %v3238_v58, %v574_v46  ;;  %v797_v9 = vmul.f32 %v2218_v45, %v2948_v48  ;;  %v801_v10 = vmul.f32 %v2219_v16, %v2999_v21  ;;  %v2213_v58 = vld [vmem:[%s5163_s0 + $0x470] sm:$0xff]  ;;  %v794_v28 = vadd.f32 %v793_v61, %v790_v49  ;;  %v2224_v16 = vld [vmem:[%s5163_s0 + $0x4c0] sm:$0xff]  ;;  %v2225_v46 = vld [vmem:[%s5163_s0 + $0x4c8] sm:$0xff] }
  0x5f   : > { %v633_v11 = vadd.f32 %v3293_v37, %v629_v52  ;;  %v688_v24 = vadd.f32 %v3345_v60, %v684_v53  ;;  %v743_v44 = vadd.f32 %v742_v12, %v739_v15  ;;  %v3471_v37 = vmul.f32 %v2211_v18, %v3146_v4  ;;  %v2233_v61 = vld [vmem:[%s5163_s0 + $0x500] sm:$0xff] }
  0x60   : > { %v582_v33 = vadd.f32 %v3252_v0, %v578_v5  ;;  %v3474_v60 = vmul.f32 %v2212_v47, %v3164_v14  ;;  %v805_v12 = vmul.f32 %v2220_v62, %v3001_v22  ;;  %v798_v45 = vadd.f32 %v797_v9, %v794_v28  ;;  %v2223_v0 = vld [vmem:[%s5163_s0 + $0x4b8] sm:$0xff]  ;;  %v2226_v47 = vld [vmem:[%s5163_s0 + $0x4d0] sm:$0xff]  ;;  %v2234_v62 = vld [vmem:[%s5163_s0 + $0x508] sm:$0xff] }
  0x61   : > { %v637_v34 = vadd.f32 %v3296_v38, %v633_v11  ;;  %v692_v35 = vadd.f32 %v3348_v25, %v688_v24  ;;  %v747_v17 = vadd.f32 %v746_v59, %v743_v44  ;;  %v3492_v52 = vmul.f32 %v2213_v58, %v3175_v26  ;;  %v2227_v24 = vld [vmem:[%s5163_s0 + $0x4d8] sm:$0xff]  ;;  %v2235_v44 = vld [vmem:[%s5163_s0 + $0x510] sm:$0xff] }
  0x62   : > { %v585_v49 = vadd.f32 %v2164_v19, %v582_v33  ;;  %v3495_v38 = vmul.f32 %v2214_v20, %v3204_v41  ;;  %v809_v25 = vmul.f32 %v2221_v30, %v3042_v54  ;;  %v802_v18 = vadd.f32 %v801_v10, %v798_v45  ;;  %v2236_v58 = vld [vmem:[%s5163_s0 + $0x518] sm:$0xff]  ;;  %v2181_v33 = vld [vmem:[%s5163_s0 + $0x688] sm:$0xff] }
  0x63   : > { %v641_v59 = vadd.f32 %v3299_v39, %v637_v34  ;;  %v696_v53 = vadd.f32 %v3351_v27, %v692_v35  ;;  %v751_v15 = vadd.f32 %v750_v31, %v747_v17  ;;  %v813_v5 = vmul.f32 %v2222_v32, %v3044_v55  ;;  %v2229_v35 = vld [vmem:[%s5163_s0 + $0x4e8] sm:$0xff]  ;;  %v2237_v17 = vld [vmem:[%s5163_s0 + $0x520] sm:$0xff] }
  0x64   : > { %v817_v39 = vmul.f32 %v2223_v0, %v3116_v50  ;;  %v821_v27 = vmul.f32 %v2224_v16, %v3118_v51  ;;  %v3513_v31 = vmul.f32 %v2225_v46, %v3140_v1  ;;  %v806_v11 = vadd.f32 %v805_v12, %v802_v18 }
  0x65   : > { %v645_v19 = vadd.f32 %v3308_v23, %v641_v59  ;;  %v700_v9 = vadd.f32 %v3369_v6, %v696_v53  ;;  %v755_v10 = vadd.f32 %v754_v40, %v751_v15  ;;  %v3526_v20 = vmax.f32 %v585_v49, 0.0  ;;  %v2228_v6 = vld [vmem:[%s5163_s0 + $0x4e0] sm:$0xff]  ;;  %v2231_v59 = vld [vmem:[%s5163_s0 + $0x4f8] sm:$0xff]  ;;  %v2238_v53 = vld [vmem:[%s5163_s0 + $0x528] sm:$0xff] }
  0x66   : > { %v3529_v23 = vmul.f32 %v2226_v47, %v3142_v2  ;;  %v857_v40 = vmul.f32 %v2233_v61, %v2928_v36  ;;  %v860_v28 = vmul.f32 %v2234_v62, %v2938_v42  ;;  %v810_v34 = vadd.f32 %v809_v25, %v806_v11  ;;  %v2239_v15 = vld [vmem:[%s5163_s0 + $0x530] sm:$0xff]  ;;  %v2240_v61 = vld [vmem:[%s5163_s0 + $0x538] sm:$0xff]  ;;  %v2242_v11 = vld [vmem:[%s5163_s0 + $0x548] sm:$0xff] }
  0x67   : > { %v649_v30 = vadd.f32 %v3322_v56, %v645_v19  ;;  %v704_v12 = vadd.f32 %v3372_v43, %v700_v9  ;;  %v759_v32 = vadd.f32 %v3432_v13, %v755_v10  ;;  %v3549_v45 = vmul.f32 %v2227_v24, %v3144_v3  ;;  %v2230_v56 = vld [vmem:[%s5163_s0 + $0x4f0] sm:$0xff]  ;;  %v2241_v10 = vld [vmem:[%s5163_s0 + $0x540] sm:$0xff] }
  0x68   : > { %v861_v0 = vadd.f32 %v860_v28, %v857_v40  ;;  %v864_v43 = vmul.f32 %v2235_v44, %v2948_v48  ;;  %v868_v13 = vmul.f32 %v2236_v58, %v2999_v21  ;;  %v814_v49 = vadd.f32 %v813_v5, %v810_v34  ;;  %v2198_v24 = vld [vmem:[%s5163_s0 + $0x690] sm:$0xff] }
  0x69   : > { %v708_v16 = vadd.f32 %v3390_v7, %v704_v12  ;;  %v763_v46 = vadd.f32 %v3435_v8, %v759_v32  ;;  %v3559_v25 = vmul.f32 %v2228_v6, %v3146_v4  ;;  %v652_v18 = vadd.f32 %v2181_v33, %v649_v30  ;;  %v2243_v58 = vld [vmem:[%s5163_s0 + $0x550] sm:$0xff]  ;;  %v2250_v33 = vld [vmem:[%s5163_s0 + $0x580] sm:$0xff]  ;;  %v2251_v12 = vld [vmem:[%s5163_s0 + $0x588] sm:$0xff] }
  0x6a   : > { %v3571_v7 = vmul.f32 %v2229_v35, %v3164_v14  ;;  %v865_v8 = vadd.f32 %v864_v43, %v861_v0  ;;  %v872_v47 = vmul.f32 %v2237_v17, %v3001_v22  ;;  %v818_v19 = vadd.f32 %v817_v39, %v814_v49  ;;  %v2252_v32 = vld [vmem:[%s5163_s0 + $0x590] sm:$0xff]  ;;  %v2244_v35 = vld [vmem:[%s5163_s0 + $0x558] sm:$0xff]  ;;  %v2245_v17 = vld [vmem:[%s5163_s0 + $0x560] sm:$0xff] }
  0x6b   : > { %v712_v62 = vadd.f32 %v3393_v57, %v708_v16  ;;  %v767_v5 = vadd.f32 %v3454_v29, %v763_v46  ;;  %v3580_v9 = vmul.f32 %v2230_v56, %v3175_v26  ;;  %v3592_v57 = vmul.f32 %v2231_v59, %v3204_v41  ;;  %v2246_v16 = vld [vmem:[%s5163_s0 + $0x568] sm:$0xff]  ;;  %v2253_v46 = vld [vmem:[%s5163_s0 + $0x598] sm:$0xff]  ;;  %v2247_v59 = vld [vmem:[%s5163_s0 + $0x570] sm:$0xff] }
  0x6c   : > { %v869_v29 = vadd.f32 %v868_v13, %v865_v8  ;;  %v876_v39 = vmul.f32 %v2238_v53, %v3042_v54  ;;  %v880_v44 = vmul.f32 %v2239_v15, %v3044_v55  ;;  %v822_v28 = vadd.f32 %v821_v27, %v818_v19 }
  0x6d   : > { %v716_v6 = vadd.f32 %v3396_v63, %v712_v62  ;;  %v771_v40 = vadd.f32 %v3471_v37, %v767_v5  ;;  %v884_v30 = vmul.f32 %v2240_v61, %v3116_v50  ;;  %v3611_v34 = vmax.f32 %v652_v18, 0.0  ;;  %v2254_v62 = vld [vmem:[%s5163_s0 + $0x5a0] sm:$0xff] }
  0x6e   : > { %v873_v63 = vadd.f32 %v872_v47, %v869_v29  ;;  %v888_v37 = vmul.f32 %v2241_v10, %v3118_v51  ;;  %v892_v27 = vmul.f32 %v2242_v11, %v3140_v1  ;;  %v826_v43 = vadd.f32 %v3513_v31, %v822_v28 }
  0x6f   : > { %v719_v56 = vadd.f32 %v2198_v24, %v716_v6  ;;  %v775_v0 = vadd.f32 %v3474_v60, %v771_v40  ;;  %v3624_v13 = vmul.f32 %v2243_v58, %v3142_v2  ;;  %v2248_v60 = vld [vmem:[%s5163_s0 + $0x578] sm:$0xff]  ;;  %v924_v31 = vmul.f32 %v2250_v33, %v2928_v36  ;;  %v2258_v6 = vld [vmem:[%s5163_s0 + $0x5c0] sm:$0xff]  ;;  %v2259_v40 = vld [vmem:[%s5163_s0 + $0x5c8] sm:$0xff] }
  0x70   : > { %v877_v49 = vadd.f32 %v876_v39, %v873_v63  ;;  %v927_v53 = vmul.f32 %v2251_v12, %v2938_v42  ;;  %v931_v15 = vmul.f32 %v2252_v32, %v2948_v48  ;;  %v830_v8 = vadd.f32 %v3529_v23, %v826_v43  ;;  %v2256_v23 = vld [vmem:[%s5163_s0 + $0x5b0] sm:$0xff]  ;;  %v2257_v24 = vld [vmem:[%s5163_s0 + $0x5b8] sm:$0xff]  ;;  %v2268_v43 = vld [vmem:[%s5163_s0 + $0x608] sm:$0xff] }
  0x71   : > { %v779_v18 = vadd.f32 %v3492_v52, %v775_v0  ;;  %v3644_v47 = vmul.f32 %v2244_v35, %v3144_v3  ;;  %v3647_v61 = vmul.f32 %v2245_v17, %v3146_v4  ;;  %v3653_v19 = vmul.f32 %v2246_v16, %v3164_v14  ;;  %v2255_v52 = vld [vmem:[%s5163_s0 + $0x5a8] sm:$0xff]  ;;  %v2260_v32 = vld [vmem:[%s5163_s0 + $0x5d0] sm:$0xff]  ;;  %v2261_v63 = vld [vmem:[%s5163_s0 + $0x5d8] sm:$0xff] }
  0x72   : > { %v881_v5 = vadd.f32 %v880_v44, %v877_v49  ;;  %v928_v10 = vadd.f32 %v927_v53, %v924_v31  ;;  %v935_v11 = vmul.f32 %v2253_v46, %v2999_v21  ;;  %v834_v39 = vadd.f32 %v3549_v45, %v830_v8  ;;  %v2269_v31 = vld [vmem:[%s5163_s0 + $0x610] sm:$0xff]  ;;  %v2270_v8 = vld [vmem:[%s5163_s0 + $0x618] sm:$0xff] }
  0x73   : > { %v783_v29 = vadd.f32 %v3495_v38, %v779_v18  ;;  %v3668_v44 = vmul.f32 %v2247_v59, %v3175_v26  ;;  %v3671_v58 = vmul.f32 %v2248_v60, %v3204_v41  ;;  %v3679_v28 = vmax.f32 %v719_v56, 0.0  ;;  %v2215_v38 = vld [vmem:[%s5163_s0 + $0x698] sm:$0xff]  ;;  %v2262_v59 = vld [vmem:[%s5163_s0 + $0x5e0] sm:$0xff]  ;;  %v2263_v60 = vld [vmem:[%s5163_s0 + $0x5e8] sm:$0xff] }
  0x74   : > { %v885_v45 = vadd.f32 %v884_v30, %v881_v5  ;;  %v932_v33 = vadd.f32 %v931_v15, %v928_v10  ;;  %v939_v12 = vmul.f32 %v2254_v62, %v3001_v22  ;;  %v838_v35 = vadd.f32 %v3559_v25, %v834_v39  ;;  %v2267_v30 = vld [vmem:[%s5163_s0 + $0x600] sm:$0xff]  ;;  %v2264_v10 = vld [vmem:[%s5163_s0 + $0x5f0] sm:$0xff] }
  0x75   : > { %v943_v17 = vmul.f32 %v2255_v52, %v3042_v54  ;;  %v947_v56 = vmul.f32 %v2256_v23, %v3044_v55  ;;  %v951_v0 = vmul.f32 %v2257_v24, %v3116_v50  ;;  %v955_v49 = vmul.f32 %v2258_v6, %v3118_v51  ;;  %v2232_v24 = vld [vmem:[%s5163_s0 + $0x6a0] sm:$0xff] }
  0x76   : > { %v889_v16 = vadd.f32 %v888_v37, %v885_v45  ;;  %v936_v46 = vadd.f32 %v935_v11, %v932_v33  ;;  %v3703_v25 = vmul.f32 %v2259_v40, %v3140_v1  ;;  %v786_v53 = vadd.f32 %v2215_v38, %v783_v29  ;;  %v2272_v38 = vld [vmem:[%s5163_s0 + $0x628] sm:$0xff]  ;;  %v2273_v45 = vld [vmem:[%s5163_s0 + $0x630] sm:$0xff] }
  0x77   : > { %v842_v37 = vadd.f32 %v3571_v7, %v838_v35  ;;  %v3716_v15 = vmul.f32 %v2260_v32, %v3142_v2  ;;  %v3719_v18 = vmul.f32 %v2261_v63, %v3144_v3  ;;  %v2265_v7 = vld [vmem:[%s5163_s0 + $0x5f8] sm:$0xff]  ;;  %v991_v11 = vmul.f32 %v2267_v30, %v2928_v36  ;;  %v2271_v36 = vld [vmem:[%s5163_s0 + $0x620] sm:$0xff]  ;;  %v2276_v63 = vld [vmem:[%s5163_s0 + $0x648] sm:$0xff] }
  0x78   : > { %v893_v62 = vadd.f32 %v892_v27, %v889_v16  ;;  %v940_v5 = vadd.f32 %v939_v12, %v936_v46  ;;  %v994_v52 = vmul.f32 %v2268_v43, %v2938_v42  ;;  %v3737_v27 = vmul.f32 %v2262_v59, %v3146_v4  ;;  %v2275_v32 = vld [vmem:[%s5163_s0 + $0x640] sm:$0xff]  ;;  %v2277_v43 = vld [vmem:[%s5163_s0 + $0x650] sm:$0xff]  ;;  %v2278_v16 = vld [vmem:[%s5163_s0 + $0x658] sm:$0xff] }
  0x79   : > { %v846_v23 = vadd.f32 %v3580_v9, %v842_v37  ;;  %v3740_v29 = vmul.f32 %v2263_v60, %v3164_v14  ;;  %v998_v39 = vmul.f32 %v2269_v31, %v2948_v48  ;;  %v1002_v40 = vmul.f32 %v2270_v8, %v2999_v21  ;;  %v2274_v48 = vld [vmem:[%s5163_s0 + $0x638] sm:$0xff]  ;;  %v2284_v46 = vld [vmem:[%s5163_s0 + $0x6c0] sm:$0xff] }
  0x7a   : > { %v897_v42 = vadd.f32 %v3624_v13, %v893_v62  ;;  %v944_v6 = vadd.f32 %v943_v17, %v940_v5  ;;  %v995_v9 = vadd.f32 %v994_v52, %v991_v11  ;;  %v3757_v33 = vmax.f32 %v786_v53, 0.0  ;;  %v2279_v62 = vld [vmem:[%s5163_s0 + $0x660] sm:$0xff]  ;;  %v2287_v5 = vld [vmem:[%s5163_s0 + $0x6d8] sm:$0xff] }
  0x7b   : > { %v850_v13 = vadd.f32 %v3592_v57, %v846_v23  ;;  %v3761_v12 = vmul.f32 %v2264_v10, %v3175_v26  ;;  %v3764_v21 = vmul.f32 %v2265_v7, %v3204_v41  ;;  %v1006_v57 = vmul.f32 %v2271_v36, %v3001_v22  ;;  %v2285_v22 = vld [vmem:[%s5163_s0 + $0x6c8] sm:$0xff] }
  0x7c   : > { %v901_v35 = vadd.f32 %v3644_v47, %v897_v42  ;;  %v948_v17 = vadd.f32 %v947_v56, %v944_v6  ;;  %v999_v30 = vadd.f32 %v998_v39, %v995_v9  ;;  %v1010_v60 = vmul.f32 %v2272_v38, %v3042_v54  ;;  %v2286_v54 = vld [vmem:[%s5163_s0 + $0x6d0] sm:$0xff]  ;;  %v2302_v9 = vld [vmem:[%s5163_s0 + $0x740] sm:$0xff] }
  0x7d   : > { %v853_v59 = vadd.f32 %v2232_v24, %v850_v13  ;;  %v1014_v47 = vmul.f32 %v2273_v45, %v3044_v55  ;;  %v1018_v56 = vmul.f32 %v2274_v48, %v3116_v50  ;;  %v1022_v8 = vmul.f32 %v2275_v32, %v3118_v51  ;;  %v2293_v55 = vld [vmem:[%s5163_s0 + $0x700] sm:$0xff] }
  0x7e   : > { %v905_v31 = vadd.f32 %v3647_v61, %v901_v35  ;;  %v952_v53 = vadd.f32 %v951_v0, %v948_v17  ;;  %v1003_v37 = vadd.f32 %v1002_v40, %v999_v30  ;;  %v3801_v50 = vmul.f32 %v2276_v63, %v3140_v1  ;;  %v2294_v1 = vld [vmem:[%s5163_s0 + $0x708] sm:$0xff]  ;;  %v2288_v38 = vld [vmem:[%s5163_s0 + $0x6e0] sm:$0xff] }
  0x7f   : > { %v3804_v61 = vmul.f32 %v2277_v43, %v3142_v2  ;;  %v3807_v51 = vmul.f32 %v2278_v16, %v3144_v3  ;;  %v1058_v0 = vmul.f32 %v2284_v46, %v3526_v20  ;;  %v1061_v52 = vmul.f32 %v2285_v22, %v3611_v34  ;;  %v2295_v2 = vld [vmem:[%s5163_s0 + $0x710] sm:$0xff]  ;;  %v2296_v3 = vld [vmem:[%s5163_s0 + $0x718] sm:$0xff]  ;;  %v2303_v40 = vld [vmem:[%s5163_s0 + $0x748] sm:$0xff] }
  0x80   : > { %v909_v10 = vadd.f32 %v3653_v19, %v905_v31  ;;  %v956_v7 = vadd.f32 %v955_v49, %v952_v53  ;;  %v1007_v11 = vadd.f32 %v1006_v57, %v1003_v37  ;;  %v3824_v23 = vmax.f32 %v853_v59, 0.0  ;;  %v2297_v30 = vld [vmem:[%s5163_s0 + $0x720] sm:$0xff]  ;;  %v2305_v59 = vld [vmem:[%s5163_s0 + $0x758] sm:$0xff]  ;;  %v2312_v31 = vld [vmem:[%s5163_s0 + $0x788] sm:$0xff] }
  0x81   : > { %v3827_v19 = vmul.f32 %v2279_v62, %v3146_v4  ;;  %v1065_v49 = vmul.f32 %v2286_v54, %v3679_v28  ;;  %v1093_v24 = vmul.f32 %v2293_v55, %v3526_v20  ;;  %v1062_v6 = vadd.f32 %v1061_v52, %v1058_v0  ;;  %v2304_v4 = vld [vmem:[%s5163_s0 + $0x750] sm:$0xff]  ;;  %v2311_v22 = vld [vmem:[%s5163_s0 + $0x780] sm:$0xff]  ;;  %v2280_v53 = vld [vmem:[%s5163_s0 + $0x668] sm:$0xff] }
  0x82   : > { %v913_v39 = vadd.f32 %v3668_v44, %v909_v10  ;;  %v960_v36 = vadd.f32 %v3703_v25, %v956_v7  ;;  %v1011_v42 = vadd.f32 %v1010_v60, %v1007_v11  ;;  %v2249_v44 = vld [vmem:[%s5163_s0 + $0x6a8] sm:$0xff]  ;;  %v1069_v25 = vmul.f32 %v2287_v5, %v3757_v33  ;;  %v2281_v37 = vld [vmem:[%s5163_s0 + $0x670] sm:$0xff]  ;;  %v2282_v10 = vld [vmem:[%s5163_s0 + $0x678] sm:$0xff] }
  0x83   : > { %v1096_v45 = vmul.f32 %v2294_v1, %v3611_v34  ;;  %v1100_v48 = vmul.f32 %v2295_v2, %v3679_v28  ;;  %v1104_v13 = vmul.f32 %v2296_v3, %v3757_v33  ;;  %v1066_v17 = vadd.f32 %v1065_v49, %v1062_v6  ;;  %v2306_v11 = vld [vmem:[%s5163_s0 + $0x760] sm:$0xff]  ;;  %v2289_v52 = vld [vmem:[%s5163_s0 + $0x6e8] sm:$0xff]  ;;  %v2313_v49 = vld [vmem:[%s5163_s0 + $0x790] sm:$0xff] }
  0x84   : > { %v917_v32 = vadd.f32 %v3671_v58, %v913_v39  ;;  %v964_v63 = vadd.f32 %v3716_v15, %v960_v36  ;;  %v1015_v35 = vadd.f32 %v1014_v47, %v1011_v42  ;;  %v1128_v43 = vmul.f32 %v2302_v9, %v3526_v20  ;;  %v2307_v6 = vld [vmem:[%s5163_s0 + $0x768] sm:$0xff] }
  0x85   : > { %v1097_v57 = vadd.f32 %v1096_v45, %v1093_v24  ;;  %v1131_v16 = vmul.f32 %v2303_v40, %v3611_v34  ;;  %v1135_v46 = vmul.f32 %v2304_v4, %v3679_v28  ;;  %v1073_v47 = vmul.f32 %v2288_v38, %v3824_v23  ;;  %v3918_v40 = vld [vmem:[%s2797_s25 + $0x18] sm:$0xff]  ;;  %v3921_v4 = vld [vmem:[%s2797_s25 + $0x28] sm:$0xff] }
  0x86   : > { %v920_v58 = vadd.f32 %v2249_v44, %v917_v32  ;;  %v968_v15 = vadd.f32 %v3719_v18, %v964_v63  ;;  %v1019_v60 = vadd.f32 %v1018_v56, %v1015_v35  ;;  %v1070_v18 = vadd.f32 %v1069_v25, %v1066_v17 }
  0x87   : > { %v1101_v56 = vadd.f32 %v1100_v48, %v1097_v57  ;;  %v1108_v62 = vmul.f32 %v2297_v30, %v3824_v23  ;;  %v1132_v54 = vadd.f32 %v1131_v16, %v1128_v43  ;;  %v1139_v7 = vmul.f32 %v2305_v59, %v3757_v33  ;;  %v2329_v48 = vld [vmem:[%s5163_s0 + $0x8] sm:$0xff]  ;;  %v2333_v16 = vld [vmem:[%s5163_s0 + $0x20] sm:$0xff]  ;;  %v3952_v59 = vld [vmem:[%s2797_s25 + $0x38] sm:$0xff] }
  0x88   : > { %v921_v55 = vmax.f32 %v920_v58, 0.0  ;;  %v972_v0 = vadd.f32 %v3737_v27, %v968_v15  ;;  %v1023_v5 = vadd.f32 %v1022_v8, %v1019_v60  ;;  %v2298_v27 = vld [vmem:[%s5163_s0 + $0x728] sm:$0xff]  ;;  %v1163_v2 = vmul.f32 %v2311_v22, %v3526_v20  ;;  %v2314_v20 = vld [vmem:[%s5163_s0 + $0x798] sm:$0xff] }
  0x89   : > { %v1105_v1 = vadd.f32 %v1104_v13, %v1101_v56  ;;  %v1136_v8 = vadd.f32 %v1135_v46, %v1132_v54  ;;  %v1166_v3 = vmul.f32 %v2312_v31, %v3611_v34  ;;  %v1042_v36 = vmul.f32 %v2280_v53, %v3164_v14  ;;  %v2315_v34 = vld [vmem:[%s5163_s0 + $0x7a0] sm:$0xff]  ;;  %v2330_v13 = vld [vmem:[%s5163_s0 + $0x10] sm:$0xff]  ;;  %v2316_v43 = vld [vmem:[%s5163_s0 + $0x7a8] sm:$0xff] }
  0x8a   : > { %v976_v24 = vadd.f32 %v3740_v29, %v972_v0  ;;  %v1027_v39 = vadd.f32 %v3801_v50, %v1023_v5  ;;  %v1046_v42 = vmul.f32 %v2281_v37, %v3175_v26  ;;  %v3911_v29 = vmul.f32 %v2282_v10, %v3204_v41  ;;  %v3915_v26 = vld [vmem:[%s2797_s25 + $0x8] sm:$0xff]  ;;  %v1226_v41 = vld [vmem:[%s5163_s0] sm:$0xff]  ;;  %v2331_v58 = vld [vmem:[%s5163_s0 + $0x18] sm:$0xff] }
  0x8b   : > { %v1074_v50 = vadd.f32 %v1073_v47, %v1070_v18  ;;  %v1143_v14 = vmul.f32 %v2306_v11, %v3824_v23  ;;  %v1167_v9 = vadd.f32 %v1166_v3, %v1163_v2  ;;  %v1140_v38 = vadd.f32 %v1139_v7, %v1136_v8  ;;  %v2334_v46 = vld [vmem:[%s5163_s0 + $0x28] sm:$0xff]  ;;  %v2335_v56 = vld [vmem:[%s5163_s0 + $0x30] sm:$0xff]  ;;  %v2338_v3 = vld [vmem:[%s5163_s0 + $0x40] sm:$0xff] }
  0x8c   : > { %v980_v44 = vadd.f32 %v3761_v12, %v976_v24  ;;  %v1031_v25 = vadd.f32 %v3804_v61, %v1027_v39  ;;  %v1170_v45 = vmul.f32 %v2313_v49, %v3679_v28  ;;  %v2266_v12 = vld [vmem:[%s5163_s0 + $0x6b0] sm:$0xff]  ;;  %v1077_v61 = vmul.f32 %v2289_v52, %v921_v55  ;;  %v2339_v49 = vld [vmem:[%s5163_s0 + $0x48] sm:$0xff]  ;;  %v2283_v24 = vld [vmem:[%s5163_s0 + $0x6b8] sm:$0xff] }
  0x8d   : > { %v1109_v32 = vadd.f32 %v1108_v62, %v1105_v1  ;;  %v1112_v28 = vmul.f32 %v2298_v27, %v921_v55  ;;  %v1174_v63 = vmul.f32 %v2314_v20, %v3757_v33  ;;  %v1178_v57 = vmul.f32 %v2315_v34, %v3824_v23  ;;  %v2290_v0 = vld [vmem:[%s5163_s0 + $0x6f0] sm:$0xff]  ;;  %v2336_v20 = vld [vmem:[%s5163_s0 + $0x38] sm:$0xff] }
  0x8e   : > { %v984_v35 = vadd.f32 %v3764_v21, %v980_v44  ;;  %v1035_v17 = vadd.f32 %v3807_v51, %v1031_v25  ;;  %v1171_v30 = vadd.f32 %v1170_v45, %v1167_v9  ;;  %v1147_v33 = vmul.f32 %v2307_v6, %v921_v55  ;;  %v2317_v11 = vld [vmem:[%s5163_s0 + $0x7b0] sm:$0xff]  ;;  %v2343_v44 = vld [vmem:[%s5163_s0 + $0x60] sm:$0xff]  ;;  %v2344_v25 = vld [vmem:[%s5163_s0 + $0x68] sm:$0xff] }
  0x8f   : > { %v1227_v21 = vmul.f32 %v3915_v26, %v1226_v41  ;;  %v1229_v51 = vmul.f32 %v2329_v48, %v3918_v40  ;;  %v1232_v23 = vmul.f32 %v2330_v13, %v3921_v4  ;;  %v1144_v47 = vadd.f32 %v1143_v14, %v1140_v38  ;;  %v2291_v38 = vld [vmem:[%s5163_s0 + $0x6f8] sm:$0xff]  ;;  %v2332_v45 = vld [vmem:[%s5163_s0 + $0x200] sm:$0xff] }
  0x90   : > { %v987_v15 = vadd.f32 %v2266_v12, %v984_v35  ;;  %v1039_v60 = vadd.f32 %v3827_v19, %v1035_v17  ;;  %v1175_v22 = vadd.f32 %v1174_v63, %v1171_v30  ;;  %v1182_v31 = vmul.f32 %v2316_v43, %v921_v55  ;;  %v2299_v19 = vld [vmem:[%s5163_s0 + $0x730] sm:$0xff]  ;;  %v2300_v17 = vld [vmem:[%s5163_s0 + $0x738] sm:$0xff] }
  0x91   : > { %v1230_v53 = vadd.f32 %v1229_v51, %v1227_v21  ;;  %v1241_v37 = vmul.f32 %v2333_v16, %v3915_v26  ;;  %v1243_v18 = vmul.f32 %v2334_v46, %v3918_v40  ;;  %v2308_v55 = vld [vmem:[%s5163_s0 + $0x770] sm:$0xff]  ;;  %v1235_v10 = vmul.f32 %v2331_v58, %v3952_v59  ;;  %v2309_v30 = vld [vmem:[%s5163_s0 + $0x778] sm:$0xff] }
  0x92   : > { %v988_v62 = vmax.f32 %v987_v15, 0.0  ;;  %v1043_v54 = vadd.f32 %v1042_v36, %v1039_v60  ;;  %v1179_v5 = vadd.f32 %v1178_v57, %v1175_v22  ;;  %v1078_v7 = vadd.f32 %v1077_v61, %v1074_v50  ;;  %v2340_v61 = vld [vmem:[%s5163_s0 + $0x50] sm:$0xff]  ;;  %v2318_v57 = vld [vmem:[%s5163_s0 + $0x7b8] sm:$0xff] }
  0x93   : > { %v1233_v52 = vadd.f32 %v1232_v23, %v1230_v53  ;;  %v1113_v27 = vadd.f32 %v1112_v28, %v1109_v32  ;;  %v1244_v8 = vadd.f32 %v1243_v18, %v1241_v37  ;;  %v1246_v2 = vmul.f32 %v2335_v56, %v3921_v4  ;;  %v2348_v32 = vld [vmem:[%s5163_s0 + $0x80] sm:$0xff]  ;;  %v2349_v28 = vld [vmem:[%s5163_s0 + $0x88] sm:$0xff]  ;;  %v2341_v23 = vld [vmem:[%s5163_s0 + $0x58] sm:$0xff] }
  0x94   : > { %v1047_v1 = vadd.f32 %v1046_v42, %v1043_v54  ;;  %v1081_v39 = vmul.f32 %v2290_v0, %v988_v62  ;;  %v1116_v36 = vmul.f32 %v2299_v19, %v988_v62  ;;  %v1148_v6 = vadd.f32 %v1147_v33, %v1144_v47  ;;  %v2345_v58 = vld [vmem:[%s5163_s0 + $0x70] sm:$0xff]  ;;  %v2292_v53 = vld [vmem:[%s5163_s0 + $0x7c0] sm:$0xff]  ;;  %v2301_v0 = vld [vmem:[%s5163_s0 + $0x7c8] sm:$0xff] }
  0x95   : > { %v1151_v42 = vmul.f32 %v2308_v55, %v988_v62  ;;  %v1183_v50 = vadd.f32 %v1182_v31, %v1179_v5  ;;  %v1186_v14 = vmul.f32 %v2317_v11, %v988_v62  ;;  %v1236_v9 = vadd.f32 %v1235_v10, %v1233_v52  ;;  %v2350_v62 = vld [vmem:[%s5163_s0 + $0x90] sm:$0xff]  ;;  %v2353_v54 = vld [vmem:[%s5163_s0 + $0xa0] sm:$0xff]  ;;  %v2319_v55 = vld [vmem:[%s5163_s0 + $0x7d8] sm:$0xff] }
  0x96   : > { %v1051_v34 = vadd.f32 %v3911_v29, %v1047_v1  ;;  %v1255_v29 = vmul.f32 %v2338_v3, %v3915_v26  ;;  %v1257_v41 = vmul.f32 %v2339_v49, %v3918_v40  ;;  %v1247_v13 = vadd.f32 %v1246_v2, %v1244_v8  ;;  %v2310_v19 = vld [vmem:[%s5163_s0 + $0x7d0] sm:$0xff]  ;;  %v2346_v2 = vld [vmem:[%s5163_s0 + $0x78] sm:$0xff]  ;;  %v2354_v3 = vld [vmem:[%s5163_s0 + $0xa8] sm:$0xff] }
  0x97   : > { %v1249_v12 = vmul.f32 %v2336_v20, %v3952_v59  ;;  %v1082_v63 = vadd.f32 %v1081_v39, %v1078_v7  ;;  %v1117_v35 = vadd.f32 %v1116_v36, %v1113_v27  ;;  %v1269_v43 = vmul.f32 %v2343_v44, %v3915_v26  ;;  %v2321_v44 = vld [vmem:[%s5163_s0 + $0x7e8] sm:$0xff] }
  0x98   : > { %v1054_v48 = vadd.f32 %v2283_v24, %v1051_v34  ;;  %v1271_v16 = vmul.f32 %v2344_v25, %v3918_v40  ;;  %v1152_v33 = vadd.f32 %v1151_v42, %v1148_v6  ;;  %v1187_v21 = vadd.f32 %v1186_v14, %v1183_v50  ;;  %v2320_v50 = vld [vmem:[%s5163_s0 + $0x7e0] sm:$0xff]  ;;  %v2351_v14 = vld [vmem:[%s5163_s0 + $0x98] sm:$0xff]  ;;  %v2322_v25 = vld [vmem:[%s5163_s0 + $0x7f0] sm:$0xff] }
  0x99   : > { %v1238_v51 = vadd.f32 %v2332_v45, %v1236_v9  ;;  %v1258_v15 = vadd.f32 %v1257_v41, %v1255_v29  ;;  %v1260_v60 = vmul.f32 %v2340_v61, %v3921_v4  ;;  %v1283_v47 = vmul.f32 %v2348_v32, %v3915_v26  ;;  %v2355_v9 = vld [vmem:[%s5163_s0 + $0xb0] sm:$0xff]  ;;  %v2337_v45 = vld [vmem:[%s5163_s0 + $0x208] sm:$0xff] }
  0x9a   : > { %v1055_v46 = vmax.f32 %v1054_v48, 0.0  ;;  %v1285_v22 = vmul.f32 %v2349_v28, %v3918_v40  ;;  %v1250_v5 = vadd.f32 %v1249_v12, %v1247_v13  ;;  %v1263_v10 = vmul.f32 %v2341_v23, %v3952_v59  ;;  %v2356_v28 = vld [vmem:[%s5163_s0 + $0xb8] sm:$0xff]  ;;  %v2360_v23 = vld [vmem:[%s5163_s0 + $0xd0] sm:$0xff] }
  0x9b   : > { %v1272_v7 = vadd.f32 %v1271_v16, %v1269_v43  ;;  %v1274_v11 = vmul.f32 %v2345_v58, %v3921_v4  ;;  %v1261_v49 = vadd.f32 %v1260_v60, %v1258_v15  ;;  %v1288_v39 = vmul.f32 %v2350_v62, %v3921_v4  ;;  %v2359_v16 = vld [vmem:[%s5163_s0 + $0xc8] sm:$0xff]  ;;  %v2363_v58 = vld [vmem:[%s5163_s0 + $0xe0] sm:$0xff] }
  0x9c   : > { %v1085_v31 = vmul.f32 %v2291_v38, %v1055_v46  ;;  %v1120_v37 = vmul.f32 %v2300_v17, %v1055_v46  ;;  %v1155_v18 = vmul.f32 %v2309_v30, %v1055_v46  ;;  %v1190_v56 = vmul.f32 %v2318_v57, %v1055_v46  ;;  %v2364_v15 = vld [vmem:[%s5163_s0 + $0xe8] sm:$0xff] }
  0x9d   : > { %v1286_v24 = vadd.f32 %v1285_v22, %v1283_v47  ;;  %v1297_v36 = vmul.f32 %v2353_v54, %v3915_v26  ;;  %v4080_v38 = vmax.f32 %v1238_v51, 0.0  ;;  %v1275_v29 = vadd.f32 %v1274_v11, %v1272_v7  ;;  %v2342_v47 = vld [vmem:[%s5163_s0 + $0x210] sm:$0xff] }
  0x9e   : > { %v1086_v52 = vadd.f32 %v1085_v31, %v1082_v63  ;;  %v1121_v1 = vadd.f32 %v1120_v37, %v1117_v35  ;;  %v1156_v27 = vadd.f32 %v1155_v18, %v1152_v33  ;;  %v1191_v8 = vadd.f32 %v1190_v56, %v1187_v21  ;;  %v2358_v63 = vld [vmem:[%s5163_s0 + $0xc0] sm:$0xff]  ;;  %v2323_v35 = vld [vmem:[%s5163_s0 + $0x7f8] sm:$0xff]  ;;  %v2365_v54 = vld [vmem:[%s5163_s0 + $0xf0] sm:$0xff] }
  0x9f   : > { %v1277_v41 = vmul.f32 %v2346_v2, %v3952_v59  ;;  %v1299_v48 = vmul.f32 %v2354_v3, %v3918_v40  ;;  %v1289_v17 = vadd.f32 %v1288_v39, %v1286_v24  ;;  %v1291_v30 = vmul.f32 %v2351_v14, %v3952_v59  ;;  %v2374_v24 = vld [vmem:[%s5163_s0 + $0x128] sm:$0xff]  ;;  %v2324_v39 = vld [vmem:[%s5163_s0 + $0x800] sm:$0xff] }
  0xa0   : > { %v1089_v6 = vadd.f32 %v2292_v53, %v1086_v52  ;;  %v1124_v42 = vadd.f32 %v2301_v0, %v1121_v1  ;;  %v1159_v20 = vadd.f32 %v2310_v19, %v1156_v27  ;;  %v1194_v34 = vadd.f32 %v2319_v55, %v1191_v8  ;;  %v2368_v0 = vld [vmem:[%s5163_s0 + $0x100] sm:$0xff]  ;;  %v2369_v19 = vld [vmem:[%s5163_s0 + $0x108] sm:$0xff]  ;;  %v2347_v55 = vld [vmem:[%s5163_s0 + $0x218] sm:$0xff] }
  0xa1   : > { %v1300_v57 = vadd.f32 %v1299_v48, %v1297_v36  ;;  %v1302_v43 = vmul.f32 %v2355_v9, %v3921_v4  ;;  %v1264_v51 = vadd.f32 %v1263_v10, %v1261_v49  ;;  %v1252_v60 = vadd.f32 %v2337_v45, %v1250_v5  ;;  %v2373_v52 = vld [vmem:[%s5163_s0 + $0x120] sm:$0xff]  ;;  %v2361_v49 = vld [vmem:[%s5163_s0 + $0xd8] sm:$0xff]  ;;  %v2357_v36 = vld [vmem:[%s5163_s0 + $0x228] sm:$0xff] }
  0xa2   : > { %v1090_v13 = vmax.f32 %v1089_v6, 0.0  ;;  %v1125_v12 = vmax.f32 %v1124_v42, 0.0  ;;  %v1160_v61 = vmax.f32 %v1159_v20, 0.0  ;;  %v1195_v32 = vmax.f32 %v1194_v34, 0.0  ;;  %v2352_v8 = vld [vmem:[%s5163_s0 + $0x220] sm:$0xff]  ;;  %v2366_v20 = vld [vmem:[%s5163_s0 + $0xf8] sm:$0xff] }
  0xa3   : > { %v1303_v22 = vadd.f32 %v1302_v43, %v1300_v57  ;;  %v1305_v31 = vmul.f32 %v2356_v28, %v3952_v59  ;;  %v1311_v53 = vmul.f32 %v2358_v63, %v3915_v26  ;;  %v1278_v56 = vadd.f32 %v1277_v41, %v1275_v29  ;;  %v2378_v29 = vld [vmem:[%s5163_s0 + $0x140] sm:$0xff] }
  0xa4   : > { %v1198_v46 = vmul.f32 %v2320_v50, %v1090_v13  ;;  %v1201_v33 = vmul.f32 %v2321_v44, %v1125_v12  ;;  %v1205_v21 = vmul.f32 %v2322_v25, %v1160_v61  ;;  %v1209_v18 = vmul.f32 %v2323_v35, %v1195_v32  ;;  %v2370_v25 = vld [vmem:[%s5163_s0 + $0x110] sm:$0xff]  ;;  %v2379_v32 = vld [vmem:[%s5163_s0 + $0x148] sm:$0xff]  ;;  %v2383_v57 = vld [vmem:[%s5163_s0 + $0x160] sm:$0xff] }
  0xa5   : > { %v1313_v62 = vmul.f32 %v2359_v16, %v3918_v40  ;;  %v1292_v5 = vadd.f32 %v1291_v30, %v1289_v17  ;;  %v1316_v10 = vmul.f32 %v2360_v23, %v3921_v4  ;;  %v1325_v7 = vmul.f32 %v2363_v58, %v3915_v26  ;;  %v2375_v61 = vld [vmem:[%s5163_s0 + $0x130] sm:$0xff]  ;;  %v2371_v30 = vld [vmem:[%s5163_s0 + $0x118] sm:$0xff] }
  0xa6   : > { %v1202_v37 = vadd.f32 %v1201_v33, %v1198_v46  ;;  %v1327_v11 = vmul.f32 %v2364_v15, %v3918_v40  ;;  %v1266_v27 = vadd.f32 %v2342_v47, %v1264_v51  ;;  %v1306_v2 = vadd.f32 %v1305_v31, %v1303_v22  ;;  %v2384_v51 = vld [vmem:[%s5163_s0 + $0x168] sm:$0xff]  ;;  %v2385_v23 = vld [vmem:[%s5163_s0 + $0x170] sm:$0xff]  ;;  %v2376_v47 = vld [vmem:[%s5163_s0 + $0x138] sm:$0xff] }
  0xa7   : > { %v1314_v3 = vadd.f32 %v1313_v62, %v1311_v53  ;;  %v1330_v42 = vmul.f32 %v2365_v54, %v3921_v4  ;;  %v1339_v34 = vmul.f32 %v2368_v0, %v3915_v26  ;;  %v1341_v50 = vmul.f32 %v2369_v19, %v3918_v40  ;;  %v2388_v62 = vld [vmem:[%s5163_s0 + $0x180] sm:$0xff]  ;;  %v2389_v54 = vld [vmem:[%s5163_s0 + $0x188] sm:$0xff] }
  0xa8   : > { %v1206_v1 = vadd.f32 %v1205_v21, %v1202_v37  ;;  %v1328_v6 = vadd.f32 %v1327_v11, %v1325_v7  ;;  %v4156_v9 = vmax.f32 %v1252_v60, 0.0  ;;  %v1280_v44 = vadd.f32 %v2347_v55, %v1278_v56  ;;  %v2380_v21 = vld [vmem:[%s5163_s0 + $0x150] sm:$0xff]  ;;  %v2381_v55 = vld [vmem:[%s5163_s0 + $0x158] sm:$0xff] }
  0xa9   : > { %v1353_v45 = vmul.f32 %v2373_v52, %v3915_v26  ;;  %v1294_v41 = vadd.f32 %v2352_v8, %v1292_v5  ;;  %v1317_v48 = vadd.f32 %v1316_v10, %v1314_v3  ;;  %v1319_v13 = vmul.f32 %v2361_v49, %v3952_v59  ;;  %v2362_v37 = vld [vmem:[%s5163_s0 + $0x230] sm:$0xff]  ;;  %v2386_v7 = vld [vmem:[%s5163_s0 + $0x178] sm:$0xff] }
  0xaa   : > { %v1210_v14 = vadd.f32 %v1209_v18, %v1206_v1  ;;  %v1355_v12 = vmul.f32 %v2374_v24, %v3918_v40  ;;  %v4173_v63 = vmax.f32 %v1266_v27, 0.0  ;;  %v1308_v35 = vadd.f32 %v2357_v36, %v1306_v2  ;;  %v2390_v11 = vld [vmem:[%s5163_s0 + $0x190] sm:$0xff]  ;;  %v2393_v2 = vld [vmem:[%s5163_s0 + $0x1a0] sm:$0xff]  ;;  %v2367_v3 = vld [vmem:[%s5163_s0 + $0x238] sm:$0xff] }
  0xab   : > { %v1333_v17 = vmul.f32 %v2366_v20, %v3952_v59  ;;  %v1331_v43 = vadd.f32 %v1330_v42, %v1328_v6  ;;  %v1342_v16 = vadd.f32 %v1341_v50, %v1339_v34  ;;  %v1344_v46 = vmul.f32 %v2370_v25, %v3921_v4  ;;  %v2394_v6 = vld [vmem:[%s5163_s0 + $0x1a8] sm:$0xff]  ;;  %v2395_v42 = vld [vmem:[%s5163_s0 + $0x1b0] sm:$0xff]  ;;  %v2398_v25 = vld [vmem:[%s5163_s0 + $0x1c0] sm:$0xff] }
  0xac   : > { %v1213_v28 = vadd.f32 %v2324_v39, %v1210_v14  ;;  %v1367_v33 = vmul.f32 %v2378_v29, %v3915_v26  ;;  %v4198_v58 = vmax.f32 %v1280_v44, 0.0  ;;  %v1356_v15 = vadd.f32 %v1355_v12, %v1353_v45  ;;  %v2391_v44 = vld [vmem:[%s5163_s0 + $0x198] sm:$0xff]  ;;  %v2399_v12 = vld [vmem:[%s5163_s0 + $0x1c8] sm:$0xff] }
  0xad   : > { %v1358_v60 = vmul.f32 %v2375_v61, %v3921_v4  ;;  %v1369_v22 = vmul.f32 %v2379_v32, %v3918_v40  ;;  %v4205_v31 = vmax.f32 %v1294_v41, 0.0  ;;  %v1320_v53 = vadd.f32 %v1319_v13, %v1317_v48  ;;  %v2396_v13 = vld [vmem:[%s5163_s0 + $0x1b8] sm:$0xff]  ;;  %v2400_v61 = vld [vmem:[%s5163_s0 + $0x1d0] sm:$0xff] }
  0xae   : > { %1214 = vst [vmem:[%s4195_s27] sm:$0xff] %v1213_v28  ;;  %v1347_v18 = vmul.f32 %v2371_v30, %v3952_v59  ;;  %v1381_v56 = vmul.f32 %v2383_v57, %v3915_v26  ;;  %v1372_v19 = vmul.f32 %v2380_v21, %v3921_v4  ;;  %v1383_v5 = vmul.f32 %v2384_v51, %v3918_v40  ;;  %v2401_v30 = vld [vmem:[%s5163_s0 + $0x1d8] sm:$0xff]  ;;  %v2403_v57 = vld [vmem:[%s5163_s0 + $0x1e0] sm:$0xff]  ;;  %v2404_v21 = vld [vmem:[%s5163_s0 + $0x1e8] sm:$0xff] }
  0xaf   : > { %v1370_v0 = vadd.f32 %v1369_v22, %v1367_v33  ;;  %v1386_v10 = vmul.f32 %v2385_v23, %v3921_v4  ;;  %v4230_v52 = vmax.f32 %v1308_v35, 0.0  ;;  %v1334_v1 = vadd.f32 %v1333_v17, %v1331_v43  ;;  %v2405_v51 = vld [vmem:[%s5163_s0 + $0x1f0] sm:$0xff]  ;;  %v2372_v23 = vld [vmem:[%s5163_s0 + $0x240] sm:$0xff] }
  0xb0   : > { %v1345_v27 = vadd.f32 %v1344_v46, %v1342_v16  ;;  %v1361_v8 = vmul.f32 %v2376_v47, %v3952_v59  ;;  %v1359_v49 = vadd.f32 %v1358_v60, %v1356_v15  ;;  %v1384_v24 = vadd.f32 %v1383_v5, %v1381_v56  ;;  %v2387_v5 = vld [vmem:[%s5163_s0 + $0x258] sm:$0xff] }
  0xb1   : > { %v1395_v39 = vmul.f32 %v2388_v62, %v3915_v26  ;;  %v1397_v36 = vmul.f32 %v2389_v54, %v3918_v40  ;;  %v4247_v20 = vadd.f32 %v2362_v37, %v1320_v53  ;;  %v1375_v34 = vmul.f32 %v2381_v55, %v3952_v59  ;;  %v2406_v53 = vld [vmem:[%s5163_s0 + $0x1f8] sm:$0xff]  ;;  %v2408_v37 = vld [vmem:[%s5163_s0 + $0x280] sm:$0xff]  ;;  %v2382_v55 = vld [vmem:[%s5163_s0 + $0x250] sm:$0xff] }
  0xb2   : > { %v1389_v50 = vmul.f32 %v2386_v7, %v3952_v59  ;;  %v1400_v14 = vmul.f32 %v2390_v11, %v3921_v4  ;;  %v1373_v45 = vadd.f32 %v1372_v19, %v1370_v0  ;;  %v1387_v29 = vadd.f32 %v1386_v10, %v1384_v24  ;;  %v2409_v19 = vld [vmem:[%s5163_s0 + $0x288] sm:$0xff] }
  0xb3   : > { %v1398_v41 = vadd.f32 %v1397_v36, %v1395_v39  ;;  %v1409_v48 = vmul.f32 %v2393_v2, %v3915_v26  ;;  %v4268_v32 = vadd.f32 %v2367_v3, %v1334_v1  ;;  %v1348_v28 = vadd.f32 %v1347_v18, %v1345_v27  ;;  %v2377_v18 = vld [vmem:[%s5163_s0 + $0x248] sm:$0xff] }
  0xb4   : > { %v1411_v35 = vmul.f32 %v2394_v6, %v3918_v40  ;;  %v1414_v17 = vmul.f32 %v2395_v42, %v3921_v4  ;;  %v1362_v43 = vadd.f32 %v1361_v8, %v1359_v49  ;;  %v1403_v46 = vmul.f32 %v2391_v44, %v3952_v59  ;;  %v2411_v49 = vld [vmem:[%s5163_s0 + $0x298] sm:$0xff]  ;;  %v2412_v6 = vld [vmem:[%s5163_s0 + $0x2a0] sm:$0xff] }
  0xb5   : > { %v1401_v16 = vadd.f32 %v1400_v14, %v1398_v41  ;;  %v1423_v33 = vmul.f32 %v2398_v25, %v3915_v26  ;;  %v1417_v60 = vmul.f32 %v2396_v13, %v3952_v59  ;;  %v1425_v47 = vmul.f32 %v2399_v12, %v3918_v40  ;;  %v2402_v14 = vld [vmem:[%s5163_s0 + $0x270] sm:$0xff]  ;;  %v2407_v12 = vld [vmem:[%s5163_s0 + $0x278] sm:$0xff] }
  0xb6   : > { %v1412_v15 = vadd.f32 %v1411_v35, %v1409_v48  ;;  %v1428_v22 = vmul.f32 %v2400_v61, %v3921_v4  ;;  %v1376_v56 = vadd.f32 %v1375_v34, %v1373_v45  ;;  %v1390_v62 = vadd.f32 %v1389_v50, %v1387_v29  ;;  %v2397_v50 = vld [vmem:[%s5163_s0 + $0x268] sm:$0xff] }
  0xb7   : > { %v1431_v54 = vmul.f32 %v2401_v30, %v3952_v59  ;;  %v1437_v0 = vmul.f32 %v2403_v57, %v3915_v26  ;;  %v1426_v7 = vadd.f32 %v1425_v47, %v1423_v33  ;;  %v1439_v11 = vmul.f32 %v2404_v21, %v3918_v40  ;;  %v2410_v26 = vld [vmem:[%s5163_s0 + $0x290] sm:$0xff]  ;;  %v2392_v40 = vld [vmem:[%s5163_s0 + $0x260] sm:$0xff] }
  0xb8   : > { %v1415_v10 = vadd.f32 %v1414_v17, %v1412_v15  ;;  %v1442_v1 = vmul.f32 %v2405_v51, %v3921_v4  ;;  %v1350_v27 = vadd.f32 %v2372_v23, %v1348_v28  ;;  %v1404_v8 = vadd.f32 %v1403_v46, %v1401_v16  ;;  %v2413_v28 = vld [vmem:[%s5163_s0 + $0x2a8] sm:$0xff]  ;;  %v2427_v16 = vld [vmem:[%s5163_s0 + $0x310] sm:$0xff] }
  0xb9   : > { %v1445_v2 = vmul.f32 %v2406_v53, %v3952_v59  ;;  %v1451_v3 = vmul.f32 %v2408_v37, %v4080_v38  ;;  %v1429_v4 = vadd.f32 %v1428_v22, %v1426_v7  ;;  %v1440_v39 = vadd.f32 %v1439_v11, %v1437_v0  ;;  %v2414_v23 = vld [vmem:[%s5163_s0 + $0x2b0] sm:$0xff]  ;;  %v2416_v53 = vld [vmem:[%s5163_s0 + $0x2c0] sm:$0xff]  ;;  %v2428_v37 = vld [vmem:[%s5163_s0 + $0x318] sm:$0xff] }
  0xba   : > { %v1418_v24 = vadd.f32 %v1417_v60, %v1415_v10  ;;  %v1453_v36 = vmul.f32 %v2409_v19, %v4156_v9  ;;  %v1364_v59 = vadd.f32 %v2377_v18, %v1362_v43  ;;  %v1378_v42 = vadd.f32 %v2382_v55, %v1376_v56  ;;  %v2426_v43 = vld [vmem:[%s5163_s0 + $0x308] sm:$0xff]  ;;  %v2419_v11 = vld [vmem:[%s5163_s0 + $0x2d8] sm:$0xff] }
  0xbb   : > { %v1392_v34 = vadd.f32 %v2387_v5, %v1390_v62  ;;  %v1456_v44 = vmul.f32 %v2410_v26, %v4173_v63  ;;  %v1432_v25 = vadd.f32 %v1431_v54, %v1429_v4  ;;  %v1443_v45 = vadd.f32 %v1442_v1, %v1440_v39  ;;  %v2417_v56 = vld [vmem:[%s5163_s0 + $0x2c8] sm:$0xff]  ;;  %v2418_v62 = vld [vmem:[%s5163_s0 + $0x2d0] sm:$0xff]  ;;  %v2420_v1 = vld [vmem:[%s5163_s0 + $0x2e0] sm:$0xff] }
  0xbc   : > { %v1454_v29 = vadd.f32 %v1453_v36, %v1451_v3  ;;  %v1459_v41 = vmul.f32 %v2411_v49, %v4198_v58  ;;  %v4338_v48 = vmax.f32 %v4247_v20, 0.0  ;;  %v1406_v13 = vadd.f32 %v2392_v40, %v1404_v8  ;;  %v2425_v20 = vld [vmem:[%s5163_s0 + $0x300] sm:$0xff]  ;;  %v2422_v3 = vld [vmem:[%s5163_s0 + $0x2f0] sm:$0xff] }
  0xbd   : > { %v1462_v61 = vmul.f32 %v2412_v6, %v4205_v31  ;;  %v1420_v35 = vadd.f32 %v2397_v50, %v1418_v24  ;;  %v1434_v17 = vadd.f32 %v2402_v14, %v1432_v25  ;;  %v1446_v30 = vadd.f32 %v1445_v2, %v1443_v45  ;;  %v2429_v26 = vld [vmem:[%s5163_s0 + $0x320] sm:$0xff]  ;;  %v2421_v2 = vld [vmem:[%s5163_s0 + $0x2e8] sm:$0xff] }
  0xbe   : > { %v1457_v57 = vadd.f32 %v1456_v44, %v1454_v29  ;;  %v4357_v46 = vmax.f32 %v4268_v32, 0.0  ;;  %v4359_v33 = vmax.f32 %v1350_v27, 0.0  ;;  %v4361_v21 = vmax.f32 %v1364_v59, 0.0  ;;  %v2415_v32 = vld [vmem:[%s5163_s0 + $0x2b8] sm:$0xff]  ;;  %v2430_v24 = vld [vmem:[%s5163_s0 + $0x328] sm:$0xff]  ;;  %v2442_v59 = vld [vmem:[%s5163_s0 + $0x380] sm:$0xff] }
  0xbf   : > { %v4363_v51 = vmax.f32 %v1378_v42, 0.0  ;;  %v4368_v15 = vmax.f32 %v1392_v34, 0.0  ;;  %v1448_v60 = vadd.f32 %v2407_v12, %v1446_v30  ;;  %v1465_v22 = vmul.f32 %v2413_v28, %v4230_v52  ;;  %v2443_v42 = vld [vmem:[%s5163_s0 + $0x388] sm:$0xff]  ;;  %v2444_v34 = vld [vmem:[%s5163_s0 + $0x390] sm:$0xff]  ;;  %v2423_v44 = vld [vmem:[%s5163_s0 + $0x2f8] sm:$0xff] }
  0xc0   : > { %v1460_v47 = vadd.f32 %v1459_v41, %v1457_v57  ;;  %v4380_v18 = vmax.f32 %v1406_v13, 0.0  ;;  %v1501_v54 = vmul.f32 %v2425_v20, %v4080_v38  ;;  %v1503_v0 = vmul.f32 %v2426_v43, %v4156_v9  ;;  %v2431_v29 = vld [vmem:[%s5163_s0 + $0x330] sm:$0xff]  ;;  %v2432_v41 = vld [vmem:[%s5163_s0 + $0x338] sm:$0xff]  ;;  %v2434_v57 = vld [vmem:[%s5163_s0 + $0x348] sm:$0xff] }
  0xc1   : > { %v1506_v19 = vmul.f32 %v2427_v16, %v4173_v63  ;;  %v4391_v55 = vmax.f32 %v1420_v35, 0.0  ;;  %v4393_v5 = vmax.f32 %v1434_v17, 0.0  ;;  %v1468_v7 = vmul.f32 %v2414_v23, %v4338_v48  ;;  %v2433_v35 = vld [vmem:[%s5163_s0 + $0x340] sm:$0xff]  ;;  %v2445_v17 = vld [vmem:[%s5163_s0 + $0x398] sm:$0xff]  ;;  %v2435_v20 = vld [vmem:[%s5163_s0 + $0x350] sm:$0xff] }
  0xc2   : > { %v1463_v10 = vadd.f32 %v1462_v61, %v1460_v47  ;;  %v1471_v27 = vmul.f32 %v2415_v32, %v4357_v46  ;;  %v1474_v8 = vmul.f32 %v2416_v53, %v4359_v33  ;;  %v1504_v49 = vadd.f32 %v1503_v0, %v1501_v54  ;;  %v2436_v43 = vld [vmem:[%s5163_s0 + $0x358] sm:$0xff]  ;;  %v2438_v0 = vld [vmem:[%s5163_s0 + $0x368] sm:$0xff] }
  0xc3   : > { %v1509_v40 = vmul.f32 %v2428_v37, %v4198_v58  ;;  %v4417_v4 = vmax.f32 %v1448_v60, 0.0  ;;  %v1477_v36 = vmul.f32 %v2417_v56, %v4361_v21  ;;  %v1480_v6 = vmul.f32 %v2418_v62, %v4363_v51  ;;  %v2437_v37 = vld [vmem:[%s5163_s0 + $0x360] sm:$0xff] }
  0xc4   : > { %v1466_v39 = vadd.f32 %v1465_v22, %v1463_v10  ;;  %v4431_v50 = vmul.f32 %v2419_v11, %v4368_v15  ;;  %v4434_v14 = vmul.f32 %v2420_v1, %v4380_v18  ;;  %v1507_v25 = vadd.f32 %v1506_v19, %v1504_v49  ;;  %v2446_v56 = vld [vmem:[%s5163_s0 + $0x3a0] sm:$0xff]  ;;  %v2439_v19 = vld [vmem:[%s5163_s0 + $0x370] sm:$0xff]  ;;  %v2447_v11 = vld [vmem:[%s5163_s0 + $0x3a8] sm:$0xff] }
  0xc5   : > { %v1512_v45 = vmul.f32 %v2429_v26, %v4205_v31  ;;  %v4447_v12 = vmul.f32 %v2421_v2, %v4391_v55  ;;  %v4450_v61 = vmul.f32 %v2422_v3, %v4393_v5  ;;  %v1515_v28 = vmul.f32 %v2430_v24, %v4230_v52  ;;  %v2459_v3 = vld [vmem:[%s5163_s0 + $0x400] sm:$0xff]  ;;  %v2460_v49 = vld [vmem:[%s5163_s0 + $0x408] sm:$0xff] }
  0xc6   : > { %v1469_v13 = vadd.f32 %v1468_v7, %v1466_v39  ;;  %v1510_v30 = vadd.f32 %v1509_v40, %v1507_v25  ;;  %v1551_v16 = vmul.f32 %v2442_v59, %v4080_v38  ;;  %v1553_v23 = vmul.f32 %v2443_v42, %v4156_v9  ;;  %v2448_v42 = vld [vmem:[%s5163_s0 + $0x3b0] sm:$0xff] }
  0xc7   : > { %v1556_v60 = vmul.f32 %v2444_v34, %v4173_v63  ;;  %v4472_v22 = vmul.f32 %v2423_v44, %v4417_v4  ;;  %v1518_v32 = vmul.f32 %v2431_v29, %v4338_v48  ;;  %v1521_v53 = vmul.f32 %v2432_v41, %v4357_v46  ;;  %v2461_v34 = vld [vmem:[%s5163_s0 + $0x410] sm:$0xff]  ;;  %v2462_v41 = vld [vmem:[%s5163_s0 + $0x418] sm:$0xff] }
  0xc8   : > { %v1472_v47 = vadd.f32 %v1471_v27, %v1469_v13  ;;  %v1513_v62 = vadd.f32 %v1512_v45, %v1510_v30  ;;  %v1524_v54 = vmul.f32 %v2433_v35, %v4359_v33  ;;  %v1554_v10 = vadd.f32 %v1553_v23, %v1551_v16  ;;  %v2449_v35 = vld [vmem:[%s5163_s0 + $0x3b8] sm:$0xff] }
  0xc9   : > { %v1559_v7 = vmul.f32 %v2445_v17, %v4198_v58  ;;  %v1527_v26 = vmul.f32 %v2434_v57, %v4361_v21  ;;  %v4495_v27 = vmul.f32 %v2435_v20, %v4363_v51  ;;  %v4498_v2 = vmul.f32 %v2436_v43, %v4368_v15  ;;  %v2451_v17 = vld [vmem:[%s5163_s0 + $0x3c8] sm:$0xff] }
  0xca   : > { %v1475_v1 = vadd.f32 %v1474_v8, %v1472_v47  ;;  %v1516_v40 = vadd.f32 %v1515_v28, %v1513_v62  ;;  %v4507_v24 = vmul.f32 %v2437_v37, %v4380_v18  ;;  %v2440_v8 = vld [vmem:[%s5163_s0 + $0x378] sm:$0xff]  ;;  %v1557_v39 = vadd.f32 %v1556_v60, %v1554_v10  ;;  %v2463_v60 = vld [vmem:[%s5163_s0 + $0x420] sm:$0xff]  ;;  %v2452_v37 = vld [vmem:[%s5163_s0 + $0x3d0] sm:$0xff] }
  0xcb   : > { %v1562_v59 = vmul.f32 %v2446_v56, %v4205_v31  ;;  %v4520_v25 = vmul.f32 %v2438_v0, %v4391_v55  ;;  %v4523_v45 = vmul.f32 %v2439_v19, %v4393_v5  ;;  %v1565_v29 = vmul.f32 %v2447_v11, %v4230_v52  ;;  %v2454_v56 = vld [vmem:[%s5163_s0 + $0x3e0] sm:$0xff]  ;;  %v2464_v11 = vld [vmem:[%s5163_s0 + $0x428] sm:$0xff] }
  0xcc   : > { %v1478_v44 = vadd.f32 %v1477_v36, %v1475_v1  ;;  %v1519_v13 = vadd.f32 %v1518_v32, %v1516_v40  ;;  %v1560_v28 = vadd.f32 %v1559_v7, %v1557_v39  ;;  %v2450_v36 = vld [vmem:[%s5163_s0 + $0x3c0] sm:$0xff]  ;;  %v1601_v30 = vmul.f32 %v2459_v3, %v4080_v38 }
  0xcd   : > { %v1603_v57 = vmul.f32 %v2460_v49, %v4156_v9  ;;  %v4541_v43 = vmul.f32 %v2440_v8, %v4417_v4  ;;  %v1568_v16 = vmul.f32 %v2448_v42, %v4338_v48  ;;  %v1606_v23 = vmul.f32 %v2461_v34, %v4173_v63  ;;  %v2455_v49 = vld [vmem:[%s5163_s0 + $0x3e8] sm:$0xff]  ;;  %v2476_v39 = vld [vmem:[%s5163_s0 + $0x480] sm:$0xff] }
  0xce   : > { %v1481_v20 = vadd.f32 %v1480_v6, %v1478_v44  ;;  %v1522_v47 = vadd.f32 %v1521_v53, %v1519_v13  ;;  %v1563_v32 = vadd.f32 %v1562_v59, %v1560_v28  ;;  %v2453_v6 = vld [vmem:[%s5163_s0 + $0x3d8] sm:$0xff]  ;;  %v1609_v0 = vmul.f32 %v2462_v41, %v4198_v58  ;;  %v2477_v44 = vld [vmem:[%s5163_s0 + $0x488] sm:$0xff] }
  0xcf   : > { %v1604_v62 = vadd.f32 %v1603_v57, %v1601_v30  ;;  %v1571_v53 = vmul.f32 %v2449_v35, %v4357_v46  ;;  %v1574_v10 = vmul.f32 %v2450_v36, %v4359_v33  ;;  %v1577_v7 = vmul.f32 %v2451_v17, %v4361_v21  ;;  %v2478_v35 = vld [vmem:[%s5163_s0 + $0x490] sm:$0xff]  ;;  %v2479_v36 = vld [vmem:[%s5163_s0 + $0x498] sm:$0xff] }
  0xd0   : > { %v1484_v19 = vadd.f32 %v4431_v50, %v1481_v20  ;;  %v1525_v1 = vadd.f32 %v1524_v54, %v1522_v47  ;;  %v1566_v3 = vadd.f32 %v1565_v29, %v1563_v32  ;;  %v1612_v8 = vmul.f32 %v2463_v60, %v4205_v31  ;;  %v2465_v50 = vld [vmem:[%s5163_s0 + $0x430] sm:$0xff]  ;;  %v2457_v60 = vld [vmem:[%s5163_s0 + $0x3f8] sm:$0xff] }
  0xd1   : > { %v1607_v40 = vadd.f32 %v1606_v23, %v1604_v62  ;;  %v1580_v54 = vmul.f32 %v2452_v37, %v4363_v51  ;;  %v4578_v42 = vmul.f32 %v2453_v6, %v4368_v15  ;;  %v4581_v34 = vmul.f32 %v2454_v56, %v4380_v18  ;;  %v2456_v30 = vld [vmem:[%s5163_s0 + $0x3f0] sm:$0xff]  ;;  %v2480_v37 = vld [vmem:[%s5163_s0 + $0x4a0] sm:$0xff] }
  0xd2   : > { %v1487_v59 = vadd.f32 %v4434_v14, %v1484_v19  ;;  %v1528_v29 = vadd.f32 %v1527_v26, %v1525_v1  ;;  %v1569_v41 = vadd.f32 %v1568_v16, %v1566_v3  ;;  %v1615_v28 = vmul.f32 %v2464_v11, %v4230_v52  ;;  %v2466_v14 = vld [vmem:[%s5163_s0 + $0x438] sm:$0xff]  ;;  %v2468_v11 = vld [vmem:[%s5163_s0 + $0x448] sm:$0xff]  ;;  %v2469_v1 = vld [vmem:[%s5163_s0 + $0x450] sm:$0xff] }
  0xd3   : > { %v1610_v13 = vadd.f32 %v1609_v0, %v1607_v40  ;;  %v4598_v26 = vmul.f32 %v2455_v49, %v4391_v55  ;;  %v1618_v57 = vmul.f32 %v2465_v50, %v4338_v48  ;;  %v1651_v20 = vmul.f32 %v2476_v39, %v4080_v38  ;;  %v2470_v40 = vld [vmem:[%s5163_s0 + $0x458] sm:$0xff] }
  0xd4   : > { %v1490_v17 = vadd.f32 %v4447_v12, %v1487_v59  ;;  %v1531_v16 = vadd.f32 %v4495_v27, %v1528_v29  ;;  %v1572_v23 = vadd.f32 %v1571_v53, %v1569_v41  ;;  %v2467_v12 = vld [vmem:[%s5163_s0 + $0x440] sm:$0xff]  ;;  %v1653_v32 = vmul.f32 %v2477_v44, %v4156_v9  ;;  %v2472_v29 = vld [vmem:[%s5163_s0 + $0x468] sm:$0xff] }
  0xd5   : > { %v1613_v47 = vadd.f32 %v1612_v8, %v1610_v13  ;;  %v1621_v27 = vmul.f32 %v2466_v14, %v4357_v46  ;;  %v1656_v56 = vmul.f32 %v2478_v35, %v4173_v63  ;;  %v1659_v62 = vmul.f32 %v2479_v36, %v4198_v58  ;;  %v2471_v44 = vld [vmem:[%s5163_s0 + $0x460] sm:$0xff]  ;;  %v2482_v13 = vld [vmem:[%s5163_s0 + $0x4b0] sm:$0xff] }
  0xd6   : > { %v1493_v6 = vadd.f32 %v4450_v61, %v1490_v17  ;;  %v1534_v0 = vadd.f32 %v4498_v2, %v1531_v16  ;;  %v1575_v19 = vadd.f32 %v1574_v10, %v1572_v23  ;;  %v1654_v3 = vadd.f32 %v1653_v32, %v1651_v20  ;;  %v2481_v61 = vld [vmem:[%s5163_s0 + $0x4a8] sm:$0xff]  ;;  %v2483_v20 = vld [vmem:[%s5163_s0 + $0x4b8] sm:$0xff]  ;;  %v2424_v23 = vld [vmem:[%s5163_s0 + $0x680] sm:$0xff] }
  0xd7   : > { %v1616_v53 = vadd.f32 %v1615_v28, %v1613_v47  ;;  %v4631_v49 = vmul.f32 %v2456_v30, %v4393_v5  ;;  %v4634_v2 = vmul.f32 %v2457_v60, %v4417_v4  ;;  %v1624_v10 = vmul.f32 %v2467_v12, %v4359_v33  ;;  %v2494_v16 = vld [vmem:[%s5163_s0 + $0x508] sm:$0xff] }
  0xd8   : > { %v1662_v8 = vmul.f32 %v2480_v37, %v4205_v31  ;;  %v1537_v50 = vadd.f32 %v4507_v24, %v1534_v0  ;;  %v1578_v39 = vadd.f32 %v1577_v7, %v1575_v19  ;;  %v1657_v41 = vadd.f32 %v1656_v56, %v1654_v3  ;;  %v2473_v7 = vld [vmem:[%s5163_s0 + $0x470] sm:$0xff]  ;;  %v2474_v3 = vld [vmem:[%s5163_s0 + $0x478] sm:$0xff] }
  0xd9   : > { %v1619_v59 = vadd.f32 %v1618_v57, %v1616_v53  ;;  %v1496_v28 = vadd.f32 %v4472_v22, %v1493_v6  ;;  %v1627_v14 = vmul.f32 %v2468_v11, %v4361_v21  ;;  %v1630_v24 = vmul.f32 %v2469_v1, %v4363_v51  ;;  %v2493_v22 = vld [vmem:[%s5163_s0 + $0x500] sm:$0xff]  ;;  %v2495_v56 = vld [vmem:[%s5163_s0 + $0x510] sm:$0xff] }
  0xda   : > { %v1665_v35 = vmul.f32 %v2481_v61, %v4230_v52  ;;  %v1540_v36 = vadd.f32 %v4520_v25, %v1537_v50  ;;  %v1581_v17 = vadd.f32 %v1580_v54, %v1578_v39  ;;  %v1660_v57 = vadd.f32 %v1659_v62, %v1657_v41  ;;  %v2496_v62 = vld [vmem:[%s5163_s0 + $0x518] sm:$0xff] }
  0xdb   : > { %v1622_v30 = vadd.f32 %v1621_v27, %v1619_v59  ;;  %v1633_v25 = vmul.f32 %v2470_v40, %v4368_v15  ;;  %v1636_v54 = vmul.f32 %v2471_v44, %v4380_v18  ;;  %v1639_v60 = vmul.f32 %v2472_v29, %v4391_v55  ;;  %v2484_v27 = vld [vmem:[%s5163_s0 + $0x4c0] sm:$0xff] }
  0xdc   : > { %v1668_v47 = vmul.f32 %v2482_v13, %v4338_v48  ;;  %v1543_v12 = vadd.f32 %v4523_v45, %v1540_v36  ;;  %v1584_v32 = vadd.f32 %v4578_v42, %v1581_v17  ;;  %v1663_v6 = vadd.f32 %v1662_v8, %v1660_v57  ;;  %v2497_v40 = vld [vmem:[%s5163_s0 + $0x520] sm:$0xff] }
  0xdd   : > { %v1625_v37 = vadd.f32 %v1624_v10, %v1622_v30  ;;  %v4687_v0 = vmul.f32 %v2473_v7, %v4393_v5  ;;  %v1671_v45 = vmul.f32 %v2483_v20, %v4357_v46  ;;  %v1701_v42 = vmul.f32 %v2493_v22, %v4080_v38  ;;  %v2485_v10 = vld [vmem:[%s5163_s0 + $0x4c8] sm:$0xff] }
  0xde   : > { %v1703_v19 = vmul.f32 %v2494_v16, %v4156_v9  ;;  %v1498_v53 = vadd.f32 %v2424_v23, %v1496_v28  ;;  %v1587_v11 = vadd.f32 %v4581_v34, %v1584_v32  ;;  %v1666_v61 = vadd.f32 %v1665_v35, %v1663_v6  ;;  %v2486_v34 = vld [vmem:[%s5163_s0 + $0x4d0] sm:$0xff]  ;;  %v2487_v28 = vld [vmem:[%s5163_s0 + $0x4d8] sm:$0xff]  ;;  %v2441_v7 = vld [vmem:[%s5163_s0 + $0x688] sm:$0xff] }
  0xdf   : > { %v1628_v1 = vadd.f32 %v1627_v14, %v1625_v37  ;;  %v1674_v8 = vmul.f32 %v2484_v27, %v4359_v33  ;;  %v1706_v39 = vmul.f32 %v2495_v56, %v4173_v63  ;;  %v1709_v59 = vmul.f32 %v2496_v62, %v4198_v58  ;;  %v2498_v14 = vld [vmem:[%s5163_s0 + $0x528] sm:$0xff]  ;;  %v2490_v16 = vld [vmem:[%s5163_s0 + $0x4f0] sm:$0xff]  ;;  %v2500_v32 = vld [vmem:[%s5163_s0 + $0x538] sm:$0xff] }
  0xe0   : > { %v1704_v50 = vadd.f32 %v1703_v19, %v1701_v42  ;;  %v1546_v44 = vadd.f32 %v4541_v43, %v1543_v12  ;;  %v1590_v29 = vadd.f32 %v4598_v26, %v1587_v11  ;;  %v1669_v13 = vadd.f32 %v1668_v47, %v1666_v61  ;;  %v2488_v26 = vld [vmem:[%s5163_s0 + $0x4e0] sm:$0xff]  ;;  %v2489_v22 = vld [vmem:[%s5163_s0 + $0x4e8] sm:$0xff]  ;;  %v2499_v23 = vld [vmem:[%s5163_s0 + $0x530] sm:$0xff] }
  0xe1   : > { %v1631_v41 = vadd.f32 %v1630_v24, %v1628_v1  ;;  %v4720_v35 = vmul.f32 %v2474_v3, %v4417_v4  ;;  %v1677_v43 = vmul.f32 %v2485_v10, %v4361_v21  ;;  %v1712_v36 = vmul.f32 %v2497_v40, %v4205_v31  ;;  %v2510_v62 = vld [vmem:[%s5163_s0 + $0x580] sm:$0xff]  ;;  %v2512_v42 = vld [vmem:[%s5163_s0 + $0x590] sm:$0xff] }
  0xe2   : > { %v1707_v24 = vadd.f32 %v1706_v39, %v1704_v50  ;;  %v1593_v17 = vadd.f32 %v4631_v49, %v1590_v29  ;;  %v1672_v57 = vadd.f32 %v1671_v45, %v1669_v13  ;;  %v1680_v20 = vmul.f32 %v2486_v34, %v4363_v51  ;;  %v2511_v45 = vld [vmem:[%s5163_s0 + $0x588] sm:$0xff]  ;;  %v2513_v34 = vld [vmem:[%s5163_s0 + $0x598] sm:$0xff]  ;;  %v2458_v50 = vld [vmem:[%s5163_s0 + $0x690] sm:$0xff] }
  0xe3   : > { %v1634_v30 = vadd.f32 %v1633_v25, %v1631_v41  ;;  %v4738_v47 = vmax.f32 %v1498_v53, 0.0  ;;  %v1683_v49 = vmul.f32 %v2487_v28, %v4368_v15  ;;  %v1715_v12 = vmul.f32 %v2498_v14, %v4230_v52 }
  0xe4   : > { %v1710_v25 = vadd.f32 %v1709_v59, %v1707_v24  ;;  %v1548_v37 = vadd.f32 %v2441_v7, %v1546_v44  ;;  %v1675_v27 = vadd.f32 %v1674_v8, %v1672_v57  ;;  %v1686_v56 = vmul.f32 %v2488_v26, %v4380_v18  ;;  %v2501_v8 = vld [vmem:[%s5163_s0 + $0x540] sm:$0xff]  ;;  %v2504_v7 = vld [vmem:[%s5163_s0 + $0x558] sm:$0xff] }
  0xe5   : > { %v1637_v6 = vadd.f32 %v1636_v54, %v1634_v30  ;;  %v1689_v19 = vmul.f32 %v2489_v22, %v4391_v55  ;;  %v4757_v53 = vmul.f32 %v2490_v16, %v4393_v5  ;;  %v2491_v54 = vld [vmem:[%s5163_s0 + $0x4f8] sm:$0xff]  ;;  %v1718_v1 = vmul.f32 %v2499_v23, %v4338_v48  ;;  %v2507_v23 = vld [vmem:[%s5163_s0 + $0x570] sm:$0xff] }
  0xe6   : > { %v1713_v11 = vadd.f32 %v1712_v36, %v1710_v25  ;;  %v1596_v3 = vadd.f32 %v4634_v2, %v1593_v17  ;;  %v1678_v10 = vadd.f32 %v1677_v43, %v1675_v27  ;;  %v1721_v40 = vmul.f32 %v2500_v32, %v4357_v46  ;;  %v2502_v2 = vld [vmem:[%s5163_s0 + $0x548] sm:$0xff]  ;;  %v2514_v43 = vld [vmem:[%s5163_s0 + $0x5a0] sm:$0xff]  ;;  %v2516_v27 = vld [vmem:[%s5163_s0 + $0x5b0] sm:$0xff] }
  0xe7   : > { %v1640_v61 = vadd.f32 %v1639_v60, %v1637_v6  ;;  %v2503_v60 = vld [vmem:[%s5163_s0 + $0x550] sm:$0xff]  ;;  %v1751_v59 = vmul.f32 %v2510_v62, %v4080_v38  ;;  %v1753_v44 = vmul.f32 %v2511_v45, %v4156_v9  ;;  %v1756_v29 = vmul.f32 %v2512_v42, %v4173_v63  ;;  %v2505_v36 = vld [vmem:[%s5163_s0 + $0x560] sm:$0xff]  ;;  %v2515_v25 = vld [vmem:[%s5163_s0 + $0x5a8] sm:$0xff] }
  0xe8   : > { %v1716_v39 = vadd.f32 %v1715_v12, %v1713_v11  ;;  %v4783_v41 = vmax.f32 %v1548_v37, 0.0  ;;  %v1681_v28 = vadd.f32 %v1680_v20, %v1678_v10  ;;  %v4787_v14 = vmul.f32 %v2491_v54, %v4417_v4  ;;  %v2508_v37 = vld [vmem:[%s5163_s0 + $0x578] sm:$0xff]  ;;  %v2527_v11 = vld [vmem:[%s5163_s0 + $0x600] sm:$0xff] }
  0xe9   : > { %v1643_v13 = vadd.f32 %v4687_v0, %v1640_v61  ;;  %v1724_v24 = vmul.f32 %v2501_v8, %v4359_v33  ;;  %v2506_v0 = vld [vmem:[%s5163_s0 + $0x568] sm:$0xff]  ;;  %v1754_v17 = vadd.f32 %v1753_v44, %v1751_v59  ;;  %v1759_v30 = vmul.f32 %v2513_v34, %v4198_v58  ;;  %v2529_v8 = vld [vmem:[%s5163_s0 + $0x610] sm:$0xff]  ;;  %v2530_v59 = vld [vmem:[%s5163_s0 + $0x618] sm:$0xff] }
  0xea   : > { %v1719_v26 = vadd.f32 %v1718_v1, %v1716_v39  ;;  %v1598_v57 = vadd.f32 %v2458_v50, %v1596_v3  ;;  %v1684_v20 = vadd.f32 %v1683_v49, %v1681_v28  ;;  %v1727_v22 = vmul.f32 %v2502_v2, %v4361_v21  ;;  %v2528_v1 = vld [vmem:[%s5163_s0 + $0x608] sm:$0xff]  ;;  %v2475_v3 = vld [vmem:[%s5163_s0 + $0x698] sm:$0xff] }
  0xeb   : > { %v1730_v16 = vmul.f32 %v2503_v60, %v4363_v51  ;;  %v1733_v32 = vmul.f32 %v2504_v7, %v4368_v15  ;;  %v1757_v49 = vadd.f32 %v1756_v29, %v1754_v17  ;;  %v1762_v6 = vmul.f32 %v2514_v43, %v4205_v31  ;;  %v2518_v60 = vld [vmem:[%s5163_s0 + $0x5c0] sm:$0xff]  ;;  %v2521_v28 = vld [vmem:[%s5163_s0 + $0x5d8] sm:$0xff] }
  0xec   : > { %v1722_v12 = vadd.f32 %v1721_v40, %v1719_v26  ;;  %v1646_v62 = vadd.f32 %v4720_v35, %v1643_v13  ;;  %v1687_v45 = vadd.f32 %v1686_v56, %v1684_v20  ;;  %v1736_v42 = vmul.f32 %v2505_v36, %v4380_v18  ;;  %v2517_v40 = vld [vmem:[%s5163_s0 + $0x5b8] sm:$0xff]  ;;  %v2519_v13 = vld [vmem:[%s5163_s0 + $0x5c8] sm:$0xff]  ;;  %v2531_v17 = vld [vmem:[%s5163_s0 + $0x620] sm:$0xff] }
  0xed   : > { %v4822_v54 = vmul.f32 %v2506_v0, %v4391_v55  ;;  %v4834_v35 = vmul.f32 %v2507_v23, %v4393_v5  ;;  %v1760_v56 = vadd.f32 %v1759_v30, %v1757_v49  ;;  %v1765_v10 = vmul.f32 %v2515_v25, %v4230_v52  ;;  %v2522_v20 = vld [vmem:[%s5163_s0 + $0x5e0] sm:$0xff] }
  0xee   : > { %v1725_v61 = vadd.f32 %v1724_v24, %v1722_v12  ;;  %v4843_v34 = vmax.f32 %v1598_v57, 0.0  ;;  %v1690_v50 = vadd.f32 %v1689_v19, %v1687_v45  ;;  %v4846_v39 = vmul.f32 %v2508_v37, %v4417_v4  ;;  %v2520_v19 = vld [vmem:[%s5163_s0 + $0x5d0] sm:$0xff]  ;;  %v2544_v45 = vld [vmem:[%s5163_s0 + $0x6c0] sm:$0xff] }
  0xef   : > { %v1768_v2 = vmul.f32 %v2516_v27, %v4338_v48  ;;  %v1763_v29 = vadd.f32 %v1762_v6, %v1760_v56  ;;  %v1801_v7 = vmul.f32 %v2527_v11, %v4080_v38  ;;  %v1803_v43 = vmul.f32 %v2528_v1, %v4156_v9  ;;  %v2523_v38 = vld [vmem:[%s5163_s0 + $0x5e8] sm:$0xff]  ;;  %v2524_v12 = vld [vmem:[%s5163_s0 + $0x5f0] sm:$0xff] }
  0xf0   : > { %v1728_v44 = vadd.f32 %v1727_v22, %v1725_v61  ;;  %v1648_v26 = vadd.f32 %v2475_v3, %v1646_v62  ;;  %v1693_v24 = vadd.f32 %v4757_v53, %v1690_v50  ;;  %v1771_v36 = vmul.f32 %v2517_v40, %v4357_v46  ;;  %v2533_v62 = vld [vmem:[%s5163_s0 + $0x630] sm:$0xff]  ;;  %v2545_v61 = vld [vmem:[%s5163_s0 + $0x6c8] sm:$0xff]  ;;  %v2535_v50 = vld [vmem:[%s5163_s0 + $0x640] sm:$0xff] }
  0xf1   : > { %v1806_v0 = vmul.f32 %v2529_v8, %v4173_v63  ;;  %v1766_v57 = vadd.f32 %v1765_v10, %v1763_v29  ;;  %v1804_v9 = vadd.f32 %v1803_v43, %v1801_v7  ;;  %v1809_v53 = vmul.f32 %v2530_v59, %v4198_v58  ;;  %v2532_v63 = vld [vmem:[%s5163_s0 + $0x628] sm:$0xff]  ;;  %v2525_v58 = vld [vmem:[%s5163_s0 + $0x5f8] sm:$0xff]  ;;  %v2546_v43 = vld [vmem:[%s5163_s0 + $0x6d0] sm:$0xff] }
  0xf2   : > { %v1731_v30 = vadd.f32 %v1730_v16, %v1728_v44  ;;  %v1774_v22 = vmul.f32 %v2518_v60, %v4359_v33  ;;  %v1777_v16 = vmul.f32 %v2519_v13, %v4361_v21  ;;  %v1780_v23 = vmul.f32 %v2520_v19, %v4363_v51  ;;  %v2492_v60 = vld [vmem:[%s5163_s0 + $0x6a0] sm:$0xff] }
  0xf3   : > { %v4886_v25 = vmul.f32 %v2521_v28, %v4368_v15  ;;  %v1769_v49 = vadd.f32 %v1768_v2, %v1766_v57  ;;  %v1807_v6 = vadd.f32 %v1806_v0, %v1804_v9  ;;  %v1812_v27 = vmul.f32 %v2531_v17, %v4205_v31  ;;  %v2534_v31 = vld [vmem:[%s5163_s0 + $0x638] sm:$0xff]  ;;  %v2553_v2 = vld [vmem:[%s5163_s0 + $0x700] sm:$0xff]  ;;  %v2537_v28 = vld [vmem:[%s5163_s0 + $0x650] sm:$0xff] }
  0xf4   : > { %v1734_v37 = vadd.f32 %v1733_v32, %v1731_v30  ;;  %v4901_v11 = vmax.f32 %v1648_v26, 0.0  ;;  %v4904_v32 = vmul.f32 %v2522_v20, %v4380_v18  ;;  %v4907_v1 = vmul.f32 %v2523_v38, %v4391_v55  ;;  %v2555_v0 = vld [vmem:[%s5163_s0 + $0x710] sm:$0xff]  ;;  %v2562_v38 = vld [vmem:[%s5163_s0 + $0x740] sm:$0xff] }
  0xf5   : > { %v1815_v3 = vmul.f32 %v2532_v63, %v4230_v52  ;;  %v1696_v56 = vadd.f32 %v4787_v14, %v1693_v24  ;;  %v1772_v40 = vadd.f32 %v1771_v36, %v1769_v49  ;;  %v1810_v8 = vadd.f32 %v1809_v53, %v1807_v6  ;;  %v2536_v52 = vld [vmem:[%s5163_s0 + $0x648] sm:$0xff] }
  0xf6   : > { %v1737_v10 = vadd.f32 %v1736_v42, %v1734_v37  ;;  %v4930_v14 = vmul.f32 %v2524_v12, %v4393_v5  ;;  %v4933_v42 = vmul.f32 %v2525_v58, %v4417_v4  ;;  %v1818_v59 = vmul.f32 %v2533_v62, %v4338_v48  ;;  %v2554_v48 = vld [vmem:[%s5163_s0 + $0x708] sm:$0xff]  ;;  %v2547_v37 = vld [vmem:[%s5163_s0 + $0x6d8] sm:$0xff] }
  0xf7   : > { %v1851_v44 = vmul.f32 %v2544_v45, %v4738_v47  ;;  %v1775_v13 = vadd.f32 %v1774_v22, %v1772_v40  ;;  %v1813_v19 = vadd.f32 %v1812_v27, %v1810_v8  ;;  %v1853_v7 = vmul.f32 %v2545_v61, %v4783_v41  ;;  %v2509_v58 = vld [vmem:[%s5163_s0 + $0x6a8] sm:$0xff]  ;;  %v2565_v61 = vld [vmem:[%s5163_s0 + $0x758] sm:$0xff]  ;;  %v2539_v40 = vld [vmem:[%s5163_s0 + $0x660] sm:$0xff] }
  0xf8   : > { %v1740_v29 = vadd.f32 %v4822_v54, %v1737_v10  ;;  %v1821_v26 = vmul.f32 %v2534_v31, %v4357_v46  ;;  %v1824_v54 = vmul.f32 %v2535_v50, %v4359_v33  ;;  %v1827_v24 = vmul.f32 %v2536_v52, %v4361_v21  ;;  %v2563_v46 = vld [vmem:[%s5163_s0 + $0x748] sm:$0xff]  ;;  %v2564_v33 = vld [vmem:[%s5163_s0 + $0x750] sm:$0xff] }
  0xf9   : > { %v1877_v36 = vmul.f32 %v2553_v2, %v4738_v47  ;;  %v1698_v17 = vadd.f32 %v2492_v60, %v1696_v56  ;;  %v1778_v57 = vadd.f32 %v1777_v16, %v1775_v13  ;;  %v1816_v20 = vadd.f32 %v1815_v3, %v1813_v19  ;;  %v2571_v56 = vld [vmem:[%s5163_s0 + $0x780] sm:$0xff]  ;;  %v2572_v10 = vld [vmem:[%s5163_s0 + $0x788] sm:$0xff] }
  0xfa   : > { %v1743_v30 = vadd.f32 %v4834_v35, %v1740_v29  ;;  %v1830_v21 = vmul.f32 %v2537_v28, %v4363_v51  ;;  %v2538_v35 = vld [vmem:[%s5163_s0 + $0x658] sm:$0xff]  ;;  %v1854_v9 = vadd.f32 %v1853_v7, %v1851_v44  ;;  %v1856_v53 = vmul.f32 %v2546_v43, %v4843_v34  ;;  %v2548_v44 = vld [vmem:[%s5163_s0 + $0x6e0] sm:$0xff] }
  0xfb   : > { %v1879_v63 = vmul.f32 %v2554_v48, %v4783_v41  ;;  %v1781_v16 = vadd.f32 %v1780_v23, %v1778_v57  ;;  %v1819_v12 = vadd.f32 %v1818_v59, %v1816_v20  ;;  %v1882_v49 = vmul.f32 %v2555_v0, %v4843_v34  ;;  %v2556_v51 = vld [vmem:[%s5163_s0 + $0x718] sm:$0xff]  ;;  %v2557_v13 = vld [vmem:[%s5163_s0 + $0x720] sm:$0xff]  ;;  %v2541_v20 = vld [vmem:[%s5163_s0 + $0x670] sm:$0xff] }
  0xfc   : > { %v1746_v22 = vadd.f32 %v4846_v39, %v1743_v30  ;;  %v1903_v27 = vmul.f32 %v2562_v38, %v4738_v47  ;;  %v1905_v39 = vmul.f32 %v2563_v46, %v4783_v41  ;;  %v1908_v23 = vmul.f32 %v2564_v33, %v4843_v34  ;;  %v2566_v0 = vld [vmem:[%s5163_s0 + $0x760] sm:$0xff]  ;;  %v2542_v38 = vld [vmem:[%s5163_s0 + $0x678] sm:$0xff]  ;;  %v2526_v33 = vld [vmem:[%s5163_s0 + $0x6b0] sm:$0xff] }
  0xfd   : > { %v1880_v6 = vadd.f32 %v1879_v63, %v1877_v36  ;;  %v1699_v62 = vmax.f32 %v1698_v17, 0.0  ;;  %v1784_v45 = vadd.f32 %v4886_v25, %v1781_v16  ;;  %v1822_v3 = vadd.f32 %v1821_v26, %v1819_v12  ;;  %v2567_v16 = vld [vmem:[%s5163_s0 + $0x768] sm:$0xff] }
  0xfe   : > { %v1833_v31 = vmul.f32 %v2538_v35, %v4368_v15  ;;  %v2540_v15 = vld [vmem:[%s5163_s0 + $0x668] sm:$0xff]  ;;  %v1857_v25 = vadd.f32 %v1856_v53, %v1854_v9  ;;  %v1859_v8 = vmul.f32 %v2547_v37, %v4901_v11  ;;  %v1885_v50 = vmul.f32 %v2556_v51, %v4901_v11 }
  0xff   : > { %v1906_v52 = vadd.f32 %v1905_v39, %v1903_v27  ;;  %v1748_v2 = vadd.f32 %v2509_v58, %v1746_v22  ;;  %v1787_v60 = vadd.f32 %v4904_v32, %v1784_v45  ;;  %v1825_v59 = vadd.f32 %v1824_v54, %v1822_v3  ;;  %v2573_v32 = vld [vmem:[%s5163_s0 + $0x790] sm:$0xff]  ;;  %v2549_v35 = vld [vmem:[%s5163_s0 + $0x6e8] sm:$0xff] }
 0x100   : > { %v1883_v29 = vadd.f32 %v1882_v49, %v1880_v6  ;;  %v1911_v28 = vmul.f32 %v2565_v61, %v4901_v11  ;;  %v1929_v7 = vmul.f32 %v2571_v56, %v4738_v47  ;;  %v1931_v43 = vmul.f32 %v2572_v10, %v4783_v41  ;;  %v2574_v47 = vld [vmem:[%s5163_s0 + $0x798] sm:$0xff] }
 0x101   : > { %v1909_v19 = vadd.f32 %v1908_v23, %v1906_v52  ;;  %v1790_v48 = vadd.f32 %v4907_v1, %v1787_v60  ;;  %v1828_v26 = vadd.f32 %v1827_v24, %v1825_v59  ;;  %v1836_v54 = vmul.f32 %v2539_v40, %v4380_v18  ;;  %v2575_v1 = vld [vmem:[%s5163_s0 + $0x7a0] sm:$0xff]  ;;  %v2568_v40 = vld [vmem:[%s5163_s0 + $0x770] sm:$0xff] }
 0x102   : > { %v1839_v36 = vmul.f32 %v2540_v15, %v4391_v55  ;;  %v1860_v41 = vadd.f32 %v1859_v8, %v1857_v25  ;;  %v1862_v17 = vmul.f32 %v2548_v44, %v1699_v62  ;;  %v1888_v30 = vmul.f32 %v2557_v13, %v1699_v62  ;;  %v2577_v15 = vld [vmem:[%s5163_s0 + $0x7b0] sm:$0xff] }
 0x103   : > { %v1932_v57 = vadd.f32 %v1931_v43, %v1929_v7  ;;  %v1749_v24 = vmax.f32 %v1748_v2, 0.0  ;;  %v1793_v18 = vadd.f32 %v4930_v14, %v1790_v48  ;;  %v1831_v55 = vadd.f32 %v1830_v21, %v1828_v26  ;;  %v2551_v7 = vld [vmem:[%s5163_s0 + $0x6f8] sm:$0xff] }
 0x104   : > { %v1934_v46 = vmul.f32 %v2573_v32, %v4843_v34  ;;  %v1886_v14 = vadd.f32 %v1885_v50, %v1883_v29  ;;  %v1912_v21 = vadd.f32 %v1911_v28, %v1909_v19  ;;  %v1914_v9 = vmul.f32 %v2566_v0, %v1699_v62  ;;  %v2558_v34 = vld [vmem:[%s5163_s0 + $0x728] sm:$0xff]  ;;  %v2543_v50 = vld [vmem:[%s5163_s0 + $0x6b8] sm:$0xff] }
 0x105   : > { %v1937_v53 = vmul.f32 %v2574_v47, %v4901_v11  ;;  %v1796_v63 = vadd.f32 %v4933_v42, %v1793_v18  ;;  %v1834_v22 = vadd.f32 %v1833_v31, %v1831_v55  ;;  %v1940_v37 = vmul.f32 %v2575_v1, %v1699_v62  ;;  %v2576_v11 = vld [vmem:[%s5163_s0 + $0x7a8] sm:$0xff]  ;;  %v2560_v32 = vld [vmem:[%s5163_s0 + $0x738] sm:$0xff]  ;;  %v2570_v18 = vld [vmem:[%s5163_s0 + $0x7d0] sm:$0xff] }
 0x106   : > { %v1935_v12 = vadd.f32 %v1934_v46, %v1932_v57  ;;  %v1842_v49 = vmul.f32 %v2541_v20, %v4393_v5  ;;  %v1845_v51 = vmul.f32 %v2542_v38, %v4417_v4  ;;  %v1863_v58 = vadd.f32 %v1862_v17, %v1860_v41  ;;  %v2550_v5 = vld [vmem:[%s5163_s0 + $0x6f0] sm:$0xff]  ;;  %v2569_v48 = vld [vmem:[%s5163_s0 + $0x778] sm:$0xff]  ;;  %v2552_v17 = vld [vmem:[%s5163_s0 + $0x7c0] sm:$0xff] }
 0x107   : > { %v1798_v42 = vadd.f32 %v2526_v33, %v1796_v63  ;;  %v1837_v6 = vadd.f32 %v1836_v54, %v1834_v22  ;;  %v1865_v27 = vmul.f32 %v2549_v35, %v1749_v24  ;;  %v1889_v23 = vadd.f32 %v1888_v30, %v1886_v14  ;;  %v2559_v4 = vld [vmem:[%s5163_s0 + $0x730] sm:$0xff]  ;;  %v2578_v26 = vld [vmem:[%s5163_s0 + $0x7b8] sm:$0xff]  ;;  %v2581_v63 = vld [vmem:[%s5163_s0 + $0x7e8] sm:$0xff] }
 0x108   : > { %v1938_v39 = vadd.f32 %v1937_v53, %v1935_v12  ;;  %v1891_v45 = vmul.f32 %v2558_v34, %v1749_v24  ;;  %v1915_v3 = vadd.f32 %v1914_v9, %v1912_v21  ;;  %v1917_v31 = vmul.f32 %v2567_v16, %v1749_v24  ;;  %v2579_v55 = vld [vmem:[%s5163_s0 + $0x7d8] sm:$0xff]  ;;  %v2580_v53 = vld [vmem:[%s5163_s0 + $0x7e0] sm:$0xff]  ;;  %v2582_v22 = vld [vmem:[%s5163_s0 + $0x7f0] sm:$0xff] }
 0x109   : > { %v1799_v61 = vmax.f32 %v1798_v42, 0.0  ;;  %v1840_v56 = vadd.f32 %v1839_v36, %v1837_v6  ;;  %v1943_v10 = vmul.f32 %v2576_v11, %v1749_v24  ;;  %v1866_v8 = vadd.f32 %v1865_v27, %v1863_v58  ;;  %v2561_v24 = vld [vmem:[%s5163_s0 + $0x7c8] sm:$0xff] }
 0x10a   : > { %v1941_v62 = vadd.f32 %v1940_v37, %v1938_v39  ;;  %v1892_v2 = vadd.f32 %v1891_v45, %v1889_v23  ;;  %v1918_v59 = vadd.f32 %v1917_v31, %v1915_v3  ;;  %v2584_v39 = vld [vmem:[%s5163_s0 + $0x800] sm:$0xff] }
 0x10b   : > { %v1843_v25 = vadd.f32 %v1842_v49, %v1840_v56  ;;  %v1868_v52 = vmul.f32 %v2550_v5, %v1799_v61  ;;  %v1894_v60 = vmul.f32 %v2559_v4, %v1799_v61  ;;  %v1920_v29 = vmul.f32 %v2568_v40, %v1799_v61  ;;  %v2583_v49 = vld [vmem:[%s5163_s0 + $0x7f8] sm:$0xff] }
 0x10c   : > { %v1944_v13 = vadd.f32 %v1943_v10, %v1941_v62  ;;  %v1946_v19 = vmul.f32 %v2577_v15, %v1799_v61 }
 0x10d   : > { %v1846_v44 = vadd.f32 %v1845_v51, %v1843_v25  ;;  %v1869_v43 = vadd.f32 %v1868_v52, %v1866_v8  ;;  %v1895_v36 = vadd.f32 %v1894_v60, %v1892_v2  ;;  %v1921_v0 = vadd.f32 %v1920_v29, %v1918_v59 }
 0x10e   : > { %v1947_v47 = vadd.f32 %v1946_v19, %v1944_v13 }
 0x10f   : > { %v1848_v28 = vadd.f32 %v2543_v50, %v1846_v44 }
 0x111   : > { %v1849_v54 = vmax.f32 %v1848_v28, 0.0 }
 0x113   : > { %v1871_v41 = vmul.f32 %v2551_v7, %v1849_v54  ;;  %v1897_v30 = vmul.f32 %v2560_v32, %v1849_v54  ;;  %v1923_v57 = vmul.f32 %v2569_v48, %v1849_v54  ;;  %v1949_v1 = vmul.f32 %v2578_v26, %v1849_v54 }
 0x115   : > { %v1872_v20 = vadd.f32 %v1871_v41, %v1869_v43  ;;  %v1898_v38 = vadd.f32 %v1897_v30, %v1895_v36  ;;  %v1924_v46 = vadd.f32 %v1923_v57, %v1921_v0  ;;  %v1950_v33 = vadd.f32 %v1949_v1, %v1947_v47 }
 0x117   : > { %v1874_v35 = vadd.f32 %v2552_v17, %v1872_v20  ;;  %v1900_v14 = vadd.f32 %v2561_v24, %v1898_v38  ;;  %v1926_v21 = vadd.f32 %v2570_v18, %v1924_v46  ;;  %v1952_v9 = vadd.f32 %v2579_v55, %v1950_v33 }
 0x119   : > { %v1875_v34 = vmax.f32 %v1874_v35, 0.0  ;;  %v1901_v16 = vmax.f32 %v1900_v14, 0.0  ;;  %v1927_v12 = vmax.f32 %v1926_v21, 0.0  ;;  %v1953_v37 = vmax.f32 %v1952_v9, 0.0 }
 0x11b   : > { %v1955_v51 = vmul.f32 %v2580_v53, %v1875_v34  ;;  %v1957_v58 = vmul.f32 %v2581_v63, %v1901_v16  ;;  %v1960_v11 = vmul.f32 %v2582_v22, %v1927_v12  ;;  %v1963_v6 = vmul.f32 %v2583_v49, %v1953_v37 }
 0x11d   : > { %v1958_v42 = vadd.f32 %v1957_v58, %v1955_v51 }
 0x11f   : > { %v1961_v27 = vadd.f32 %v1960_v11, %v1958_v42 }
 0x121   : > { %v1964_v23 = vadd.f32 %v1963_v6, %v1961_v27 }
 0x123   : > { %v1966_v45 = vadd.f32 %v2584_v39, %v1964_v23 }
 0x125   : > { %2585 = vst [vmem:[%s4195_s27 + $0x8] sm:$0xff] %v1966_v45 }
 0x126   : > { %2647 = shalt.err (!%p2644_p5)
}
 0x127   : > { %s2648_s27 = scalar_lea.hbm %s5116_s14, 256  ;;  %s2652_s25 = scalar_lea.hbm %s5165_s2, 512 }
 0x128   : > { %p2649_p7 = scmp.ne.s32.totalorder %s5116_s14, %s2648_s27  ;;  %p2653_p12 = scmp.lt.u32.totalorder %s5116_s14, %s5165_s2 }
 0x129   : > { %p2654_p13 = scmp.lt.u32.totalorder %s2652_s25, %s2648_s27  ;;  %p2656_p1 = scmp.lt.u32.totalorder %s2648_s27, %s5116_s14 }
 0x12a   : > { %p2650_p10 = pnand %p2649_p7, %p2754_p6 }
 0x12b   : > { %p2655_p0 = por %p2654_p13, %p2653_p12 }
 0x12c   : > { %p2651_p11 = pneg %p2650_p10 }
 0x12d   : > { %p2657_p2 = por %p2656_p1, %p2655_p0 }
 0x12f   : > { %p2658_p3 = pnand %p2657_p2, %p2651_p11 }
 0x131   : > { %2661 = shalt.err (!%p2658_p3)
}
 0x132   : > { %s2699_s30 = smov 128   ;;  %s2700_s3 = smov 8  }
 0x133   : > { %2593 = dma.vmem_to_hbm [thread:$0]  (%p2754_p6), %s5118_s5, 256, %s5116_s14, %s1970_s16, %s2699_s30, %s2699_s30, %s2700_s3  }
 0x134 PF: > { %s1998_s4 = sand.u32 1, %s2684_s9   ;;  %p2596_p4 = pnand %p2059_p9, %p2758_p8 }
 0x135   : > { %s1999_s6 = scalar_lea.sflag [#allocation4], %s1998_s4 }
 0x136   : > { %2679 = dma.done.wait (!%p2596_p4), %s1999_s6, 256  }
 0x137   : > { %2681 = vsyncadd (!%p2596_p4), %s1999_s6, 4294967040  ;;  %p12_p5 = scmp.ge.s32.totalorder %s2739_s15, 4   ;;  %s5168_s9 = smov %s2688_s10 }
 0x138   : > { %s5169_s10 = smov %s2692_s11  ;;  %s5170_s11 = smov %s2752_s18 }
 0x139   : > { %s5171_s12 = smov %s2739_s15  ;;  %14 = sbr.rel (!%p12_p5) target bundleno = 3 (0x3), region = 370 }
 0x140   :  { %2004 = vsyncpa [#allocation4], 1 }
 0x141   :  { %2006 = vsyncpa [#allocation4 + $0x1], 1 }

</bundles_post_ra>
